<compile_context>
chip_gen: v5e
topology: v5e:2x2
jax: 0.10.0
libtpu: 0.0.40
codegen_flags: <defaults>
</compile_context>

<pallas_src>
import functools

import jax
import jax.numpy as jnp
import numpy as np
from jax.experimental import pallas as pl
from jax.experimental.pallas import tpu as pltpu

DIM = 33   # default of Generator3DLUT_identity
LANE = 128
SUB = 8


def _round_up(v, m):
    return pl.cdiv(v, m) * m


def _lut_apply_kernel(lut_ref, nidx_ref, rmod_ref, sel_ref, x_ref, o_ref, *, dim):
    """Trilinear 3D-LUT interpolation for one tile of pixels (pixels on lanes).

    lut_ref : (M_pad, K_pad) f32, lut_mat[c*dim + r, b*dim + g] = LUT[c, b, g, r]
    nidx_ref: (K_pad, 2)  f32, col 0 = blue grid index, col 1 = green grid index of
              each joint-axis row (pad rows = -2 so their weights are 0).
    rmod_ref: (M_pad, 1)  f32, red grid index of each LUT-matrix row (pad rows = -2).
    sel_ref : (8, M_pad)  f32, sel[c, m] = 1 iff row m belongs to channel c.
    x_ref   : (3, T) pixels, rows = (r, g, b), values expected in [0, 1].
    o_ref   : (3, T)
    """
    binsize = 1.000001 / (dim - 1)        # matches the CUDA trilinear op exactly
    inv_binsize = 1.0 / binsize           # multiply instead of divide on the VPU

    x = x_ref[...].astype(jnp.float32)    # (3, T)
    r = x[0:1, :]
    g = x[1:2, :]
    b = x[2:3, :]

    def id_and_frac(v):                   # (1, T) each -- tiny VPU work
        vid = jnp.floor(v * inv_binsize)
        vd = (v - vid * binsize) * inv_binsize
        return vid, vd

    r_id, r_d = id_and_frac(r)
    g_id, g_d = id_and_frac(g)
    b_id, b_d = id_and_frac(b)

    # Dense hat-function weights over the joint (blue, green) axis: K on sublanes,
    # pixels on lanes.  relu(1 - |idx - id - frac|) = (1-d) at idx==id, d at idx==id+1,
    # 0 elsewhere.  Precomputed index columns avoid any per-tile div/mod.
    i_b = nidx_ref[:, 0:1]                                            # (K_pad, 1)
    j_g = nidx_ref[:, 1:2]                                            # (K_pad, 1)
    w_b = jnp.maximum(1.0 - jnp.abs((i_b - b_id) - b_d), 0.0)         # (K_pad, T)
    w_g = jnp.maximum(1.0 - jnp.abs((j_g - g_id) - g_d), 0.0)         # (K_pad, T)
    w_bg = w_b * w_g                                                  # (K_pad, T)

    # MXU: contract the entire joint (b, g) axis (K = dim^2, zero-padded) at once.
    s = jnp.dot(lut_ref[...], w_bg, preferred_element_type=jnp.float32)  # (M_pad, T)

    # Per-pixel red-axis weights, replicated per channel block of the LUT matrix.
    w_r = jnp.maximum(1.0 - jnp.abs((rmod_ref[...] - r_id) - r_d), 0.0)  # (M_pad, T)

    # Tiny selection matmul sums each channel's `dim` rows -> (8, T); rows 3..7 are 0.
    res = jnp.dot(sel_ref[...], s * w_r, preferred_element_type=jnp.float32)
    o_ref[...] = res[0:3, :].astype(o_ref.dtype)


@functools.lru_cache(maxsize=None)
def _index_constants(dim, k_pad, m_pad):
    """Host-side f32 index constants (value-independent, cached)."""
    dim2 = dim * dim
    n = np.arange(k_pad)
    b_idx = np.where(n < dim2, n // dim, -2).astype(np.float32)   # blue grid index
    g_idx = np.where(n < dim2, n % dim, -2).astype(np.float32)    # green grid index
    nidx = np.ascontiguousarray(np.stack([b_idx, g_idx], axis=1))  # (k_pad, 2)

    m = np.arange(m_pad)
    rmod = np.where(m < 3 * dim, m % dim, -2).astype(np.float32)[:, None]  # (m_pad, 1)

    sel = np.zeros((SUB, m_pad), dtype=np.float32)
    for c in range(3):
        sel[c, c * dim:(c + 1) * dim] = 1.0
    return jnp.asarray(nidx), jnp.asarray(rmod), jnp.asarray(sel)


def trilinear_lut_apply(lut, x, *, tile=1024):
    """Forward of Generator3DLUT_identity: apply a 3D LUT via trilinear interpolation.

    lut: (3, dim, dim, dim) f32, indexed [c, b_idx, g_idx, r_idx]
    x  : (B, 3, W, H) (NCHW, values expected in [0, 1])
    returns (B, 3, W, H), same dtype as x
    """
    batch, chan, w, h = x.shape
    assert chan == 3, "3D LUT expects RGB input"
    dim = lut.shape[-1]
    dim2 = dim * dim
    k_pad = _round_up(dim2, LANE)      # MXU contraction axis (joint b,g), 1089 -> 1152
    m_pad = _round_up(3 * dim, LANE)   # matmul result rows (channel, r), 99 -> 128

    # LUT as the (resident) matmul LHS: lut_mat[c*dim + r, b*dim + g] = lut[c, b, g, r].
    lut_mat = jnp.transpose(lut, (0, 3, 1, 2)).reshape(3 * dim, dim2).astype(jnp.float32)
    lut_mat = jnp.pad(lut_mat, ((0, m_pad - 3 * dim), (0, k_pad - dim2)))

    nidx, rmod, sel = _index_constants(dim, k_pad, m_pad)

    # Channel-planar, pixel-lane-dense view: (B, 3, W, H) -> (B, 3, S).  Free reshape.
    s_len = w * h
    x_p = x.reshape(batch, 3, s_len)
    tile = max(LANE, min(tile, _round_up(s_len, LANE)))   # clamp for small images
    s_pad = _round_up(s_len, tile)
    if s_pad != s_len:
        x_p = jnp.pad(x_p, ((0, 0), (0, 0), (0, s_pad - s_len)))

    grid = (batch, s_pad // tile)

    out = pl.pallas_call(
        functools.partial(_lut_apply_kernel, dim=dim),
        out_shape=jax.ShapeDtypeStruct((batch, 3, s_pad), x.dtype),
        grid_spec=pltpu.PrefetchScalarGridSpec(
            num_scalar_prefetch=0,
            grid=grid,
            in_specs=[
                pl.BlockSpec((m_pad, k_pad), lambda bi, si: (0, 0)),   # LUT matrix
                pl.BlockSpec((k_pad, 2), lambda bi, si: (0, 0)),       # (b, g) indices
                pl.BlockSpec((m_pad, 1), lambda bi, si: (0, 0)),       # r indices
                pl.BlockSpec((SUB, m_pad), lambda bi, si: (0, 0)),     # channel select
                pl.BlockSpec((None, 3, tile), lambda bi, si: (bi, 0, si)),  # pixels
            ],
            out_specs=pl.BlockSpec((None, 3, tile), lambda bi, si: (bi, 0, si)),
        ),
        compiler_params=pltpu.CompilerParams(
            dimension_semantics=("parallel", "parallel"),
            vmem_limit_bytes=48 * 1024 * 1024,
        ),
    )(lut_mat, nidx, rmod, sel, x_p)

    return out[:, :, :s_len].reshape(batch, 3, w, h)


def identity_lut(dim=DIM):
    """Deterministic identity LUT, same values the module parses from IdentityLUT33.txt:
    buffer[0, i, j, k] = k/(dim-1), buffer[1, i, j, k] = j/(dim-1), buffer[2, i, j, k] = i/(dim-1)
    (i = blue index, j = green index, k = red index)."""
    grid = np.arange(dim, dtype=np.float32) / (dim - 1)
    buf = np.zeros((3, dim, dim, dim), dtype=np.float32)
    buf[0] = grid[None, None, :]
    buf[1] = grid[None, :, None]
    buf[2] = grid[:, None, None]
    return jnp.asarray(buf)


def ref_trilinear_np(lut, x):
    """Pure-numpy reference matching the CUDA trilinear.forward semantics (NCHW x)."""
    lut = np.asarray(lut, dtype=np.float32)
    x = np.asarray(x, dtype=np.float32)
    dim = lut.shape[-1]
    binsize = 1.000001 / (dim - 1)
    r, g, b = x[:, 0], x[:, 1], x[:, 2]
    rid = np.floor(r / binsize).astype(np.int64)
    gid = np.floor(g / binsize).astype(np.int64)
    bid = np.floor(b / binsize).astype(np.int64)
    rd = (r - rid * binsize) / binsize
    gd = (g - gid * binsize) / binsize
    bd = (b - bid * binsize) / binsize
    out = np.zeros_like(x)
    for dr in (0, 1):
        for dg in (0, 1):
            for db in (0, 1):
                wgt = ((rd if dr else 1.0 - rd)
                       * (gd if dg else 1.0 - gd)
                       * (bd if db else 1.0 - bd))
                for c in range(3):
                    out[:, c] += wgt * lut[c, bid + db, gid + dg, rid + dr]
    return out


# TODO(synk): only the forward pass is implemented; the custom autograd backward
# (trilinear.backward LUT/image gradients) is out of scope for this kernel.

if __name__ == "__main__":
    key = jax.random.PRNGKey(0)
    # x mirrors the PyTorch NCHW input (batch, 3, W, H), values in [0, 1]
    x = jax.random.uniform(key, (2, 3, 16, 16), dtype=jnp.float32)
    lut = identity_lut(DIM)

    out = trilinear_lut_apply(lut, x)
    out = jax.block_until_ready(out)

    assert out.shape == x.shape and out.dtype == x.dtype
    ref = ref_trilinear_np(lut, x)
    np.testing.assert_allclose(np.asarray(out), ref, rtol=1e-5, atol=1e-5)
    # Identity LUT should (up to the 1.000001 binsize fudge) reproduce the input.
    np.testing.assert_allclose(np.asarray(out), np.asarray(x), atol=1e-4)
    print("KERNEL_OK")
</pallas_src>

<mosaic_0001>
module attributes {stable_mosaic.version = 11 : i64} {
  func.func @_lut_apply_kernel(%arg0: i32, %arg1: i32, %arg2: memref<128x1152xf32, #tpu.memory_space<vmem>>, %arg3: memref<1152x2xf32, #tpu.memory_space<vmem>>, %arg4: memref<128x1xf32, #tpu.memory_space<vmem>>, %arg5: memref<8x128xf32, #tpu.memory_space<vmem>>, %arg6: memref<1x3x256xf32, #tpu.memory_space<vmem>>, %arg7: memref<1x3x256xf32, #tpu.memory_space<vmem>>) attributes {dimension_semantics = [#tpu.dimension_semantics<parallel>, #tpu.dimension_semantics<parallel>], iteration_bounds = array<i64: 2, 1>, scalar_prefetch = 0 : i64, scratch_operands = 0 : i64, tpu.core_type = #tpu.core_type<tc>, window_params = [{pipeline_mode = #tpu.pipeline_mode<synchronous>, transform_indices = @transform_0, window_bounds = array<i64: 128, 1152>}, {pipeline_mode = #tpu.pipeline_mode<synchronous>, transform_indices = @transform_1, window_bounds = array<i64: 1152, 2>}, {pipeline_mode = #tpu.pipeline_mode<synchronous>, transform_indices = @transform_2, window_bounds = array<i64: 128, 1>}, {pipeline_mode = #tpu.pipeline_mode<synchronous>, transform_indices = @transform_3, window_bounds = array<i64: 8, 128>}, {transform_indices = @transform_4, window_bounds = array<i64: 1, 3, 256>}, {transform_indices = @transform_5, window_bounds = array<i64: 1, 3, 256>}]} {
    %c0 = arith.constant 0 : index
    %c0_0 = arith.constant 0 : index
    %c0_1 = arith.constant 0 : index
    %0 = vector.load %arg6[%c0, %c0_0, %c0_1] : memref<1x3x256xf32, #tpu.memory_space<vmem>>, vector<1x3x256xf32>
    %1 = vector.shape_cast %0 : vector<1x3x256xf32> to vector<3x256xf32>
    %2 = vector.extract_strided_slice %1 {offsets = [0, 0], sizes = [1, 256], strides = [1, 1]} : vector<3x256xf32> to vector<1x256xf32>
    %3 = vector.extract_strided_slice %1 {offsets = [1, 0], sizes = [1, 256], strides = [1, 1]} : vector<3x256xf32> to vector<1x256xf32>
    %4 = vector.extract_strided_slice %1 {offsets = [2, 0], sizes = [1, 256], strides = [1, 1]} : vector<3x256xf32> to vector<1x256xf32>
    %cst = arith.constant 31.9999676 : f32
    %5 = vector.broadcast %cst : f32 to vector<1x256xf32>
    %6 = arith.mulf %2, %5 : vector<1x256xf32>
    %7 = math.floor %6 : vector<1x256xf32>
    %cst_2 = arith.constant 0.0312500298 : f32
    %8 = vector.broadcast %cst_2 : f32 to vector<1x256xf32>
    %9 = arith.mulf %7, %8 : vector<1x256xf32>
    %10 = arith.subf %2, %9 : vector<1x256xf32>
    %cst_3 = arith.constant 31.9999676 : f32
    %11 = vector.broadcast %cst_3 : f32 to vector<1x256xf32>
    %12 = arith.mulf %10, %11 : vector<1x256xf32>
    %cst_4 = arith.constant 31.9999676 : f32
    %13 = vector.broadcast %cst_4 : f32 to vector<1x256xf32>
    %14 = arith.mulf %3, %13 : vector<1x256xf32>
    %15 = math.floor %14 : vector<1x256xf32>
    %cst_5 = arith.constant 0.0312500298 : f32
    %16 = vector.broadcast %cst_5 : f32 to vector<1x256xf32>
    %17 = arith.mulf %15, %16 : vector<1x256xf32>
    %18 = arith.subf %3, %17 : vector<1x256xf32>
    %cst_6 = arith.constant 31.9999676 : f32
    %19 = vector.broadcast %cst_6 : f32 to vector<1x256xf32>
    %20 = arith.mulf %18, %19 : vector<1x256xf32>
    %cst_7 = arith.constant 31.9999676 : f32
    %21 = vector.broadcast %cst_7 : f32 to vector<1x256xf32>
    %22 = arith.mulf %4, %21 : vector<1x256xf32>
    %23 = math.floor %22 : vector<1x256xf32>
    %cst_8 = arith.constant 0.0312500298 : f32
    %24 = vector.broadcast %cst_8 : f32 to vector<1x256xf32>
    %25 = arith.mulf %23, %24 : vector<1x256xf32>
    %26 = arith.subf %4, %25 : vector<1x256xf32>
    %cst_9 = arith.constant 31.9999676 : f32
    %27 = vector.broadcast %cst_9 : f32 to vector<1x256xf32>
    %28 = arith.mulf %26, %27 : vector<1x256xf32>
    %c0_10 = arith.constant 0 : index
    %c0_11 = arith.constant 0 : index
    %29 = vector.load %arg3[%c0_10, %c0_11] : memref<1152x2xf32, #tpu.memory_space<vmem>>, vector<1152x1xf32>
    %c0_12 = arith.constant 0 : index
    %c1 = arith.constant 1 : index
    %30 = vector.load %arg3[%c0_12, %c1] : memref<1152x2xf32, #tpu.memory_space<vmem>>, vector<1152x1xf32>
    %31 = vector.broadcast %29 : vector<1152x1xf32> to vector<1152x256xf32>
    %32 = vector.broadcast %23 : vector<1x256xf32> to vector<1152x256xf32>
    %33 = arith.subf %31, %32 : vector<1152x256xf32>
    %34 = vector.broadcast %28 : vector<1x256xf32> to vector<1152x256xf32>
    %35 = arith.subf %33, %34 : vector<1152x256xf32>
    %36 = math.absf %35 : vector<1152x256xf32>
    %cst_13 = arith.constant 1.000000e+00 : f32
    %37 = vector.broadcast %cst_13 : f32 to vector<1152x256xf32>
    %38 = arith.subf %37, %36 : vector<1152x256xf32>
    %cst_14 = arith.constant 0.000000e+00 : f32
    %39 = vector.broadcast %cst_14 : f32 to vector<1152x256xf32>
    %40 = arith.maximumf %38, %39 : vector<1152x256xf32>
    %41 = vector.broadcast %30 : vector<1152x1xf32> to vector<1152x256xf32>
    %42 = vector.broadcast %15 : vector<1x256xf32> to vector<1152x256xf32>
    %43 = arith.subf %41, %42 : vector<1152x256xf32>
    %44 = vector.broadcast %20 : vector<1x256xf32> to vector<1152x256xf32>
    %45 = arith.subf %43, %44 : vector<1152x256xf32>
    %46 = math.absf %45 : vector<1152x256xf32>
    %cst_15 = arith.constant 1.000000e+00 : f32
    %47 = vector.broadcast %cst_15 : f32 to vector<1152x256xf32>
    %48 = arith.subf %47, %46 : vector<1152x256xf32>
    %cst_16 = arith.constant 0.000000e+00 : f32
    %49 = vector.broadcast %cst_16 : f32 to vector<1152x256xf32>
    %50 = arith.maximumf %48, %49 : vector<1152x256xf32>
    %51 = arith.mulf %40, %50 : vector<1152x256xf32>
    %c0_17 = arith.constant 0 : index
    %c0_18 = arith.constant 0 : index
    %52 = vector.load %arg2[%c0_17, %c0_18] : memref<128x1152xf32, #tpu.memory_space<vmem>>, vector<128x1152xf32>
    %cst_19 = arith.constant dense<0.000000e+00> : vector<128x256xf32>
    %53 = tpu.matmul %52, %51, %cst_19 {dimension_numbers = #tpu.dot_dimension_numbers<[1], [0], [0], [1], [0, 0, 1, 1], [], []>} : vector<128x1152xf32>, vector<1152x256xf32>, vector<128x256xf32> -> vector<128x256xf32>
    %c0_20 = arith.constant 0 : index
    %c0_21 = arith.constant 0 : index
    %54 = vector.load %arg4[%c0_20, %c0_21] : memref<128x1xf32, #tpu.memory_space<vmem>>, vector<128x1xf32>
    %55 = vector.broadcast %54 : vector<128x1xf32> to vector<128x256xf32>
    %56 = vector.broadcast %7 : vector<1x256xf32> to vector<128x256xf32>
    %57 = arith.subf %55, %56 : vector<128x256xf32>
    %58 = vector.broadcast %12 : vector<1x256xf32> to vector<128x256xf32>
    %59 = arith.subf %57, %58 : vector<128x256xf32>
    %60 = math.absf %59 : vector<128x256xf32>
    %cst_22 = arith.constant 1.000000e+00 : f32
    %61 = vector.broadcast %cst_22 : f32 to vector<128x256xf32>
    %62 = arith.subf %61, %60 : vector<128x256xf32>
    %cst_23 = arith.constant 0.000000e+00 : f32
    %63 = vector.broadcast %cst_23 : f32 to vector<128x256xf32>
    %64 = arith.maximumf %62, %63 : vector<128x256xf32>
    %c0_24 = arith.constant 0 : index
    %c0_25 = arith.constant 0 : index
    %65 = vector.load %arg5[%c0_24, %c0_25] : memref<8x128xf32, #tpu.memory_space<vmem>>, vector<8x128xf32>
    %66 = arith.mulf %53, %64 : vector<128x256xf32>
    %cst_26 = arith.constant dense<0.000000e+00> : vector<8x256xf32>
    %67 = tpu.matmul %65, %66, %cst_26 {dimension_numbers = #tpu.dot_dimension_numbers<[1], [0], [0], [1], [0, 0, 1, 1], [], []>} : vector<8x128xf32>, vector<128x256xf32>, vector<8x256xf32> -> vector<8x256xf32>
    %68 = vector.extract_strided_slice %67 {offsets = [0, 0], sizes = [3, 256], strides = [1, 1]} : vector<8x256xf32> to vector<3x256xf32>
    %c0_27 = arith.constant 0 : index
    %c0_28 = arith.constant 0 : index
    %c0_29 = arith.constant 0 : index
    %69 = vector.load %arg7[%c0_27, %c0_28, %c0_29] : memref<1x3x256xf32, #tpu.memory_space<vmem>>, vector<1x3x256xf32>
    %70 = vector.shape_cast %69 : vector<1x3x256xf32> to vector<3x256xf32>
    %71 = vector.shape_cast %68 : vector<3x256xf32> to vector<1x3x256xf32>
    tpu.vector_store %arg7[%c0_27, %c0_28, %c0_29], %71 {strides = array<i32>} : memref<1x3x256xf32, #tpu.memory_space<vmem>>, vector<1x3x256xf32>,
    return
  }
  func.func @transform_0(%arg0: i32, %arg1: i32) -> (i32, i32) {
    %c0_i32 = arith.constant 0 : i32
    %c0_i32_0 = arith.constant 0 : i32
    %c0_i32_1 = arith.constant 0 : i32
    return %c0_i32, %c0_i32_0 : i32, i32
  }
  func.func @transform_1(%arg0: i32, %arg1: i32) -> (i32, i32) {
    %c0_i32 = arith.constant 0 : i32
    %c0_i32_0 = arith.constant 0 : i32
    %c0_i32_1 = arith.constant 0 : i32
    return %c0_i32, %c0_i32_0 : i32, i32
  }
  func.func @transform_2(%arg0: i32, %arg1: i32) -> (i32, i32) {
    %c0_i32 = arith.constant 0 : i32
    %c0_i32_0 = arith.constant 0 : i32
    %c0_i32_1 = arith.constant 0 : i32
    return %c0_i32, %c0_i32_0 : i32, i32
  }
  func.func @transform_3(%arg0: i32, %arg1: i32) -> (i32, i32) {
    %c0_i32 = arith.constant 0 : i32
    %c0_i32_0 = arith.constant 0 : i32
    %c0_i32_1 = arith.constant 0 : i32
    return %c0_i32, %c0_i32_0 : i32, i32
  }
  func.func @transform_4(%arg0: i32, %arg1: i32) -> (i32, i32, i32) {
    %c0_i32 = arith.constant 0 : i32
    %c0_i32_0 = arith.constant 0 : i32
    return %arg0, %c0_i32, %arg1 : i32, i32, i32
  }
  func.func @transform_5(%arg0: i32, %arg1: i32) -> (i32, i32, i32) {
    %c0_i32 = arith.constant 0 : i32
    %c0_i32_0 = arith.constant 0 : i32
    return %arg0, %c0_i32, %arg1 : i32, i32, i32
  }
}

</mosaic_0001>

<bundles_post_ra>
// kernel: tpu_custom_call.1
= control target key start
LH: loop header
LB: loop body
LE: loop exit
PB: predicated region body
PF: predicated region fallthrough
CT: control target
= control target key end

     0   :  { %s7077_s18 = smov 0   ;;  %s7079_s19 = smov 0   ;;  %s14284_s0 = inlined_call_operand.vmem [shape: f32[128,1152], index: 0, kind: input, shape index: {}]   ;;  %s14285_s1 = inlined_call_operand.vmem [shape: f32[1152,2], index: 1, kind: input, shape index: {}]   ;;  %s14286_s2 = inlined_call_operand.vmem [shape: f32[128,1], index: 2, kind: input, shape index: {}]   ;;  %s14287_s3 = inlined_call_operand.vmem [shape: f32[8,128], index: 3, kind: input, shape index: {}]   ;;  %s14288_s4 = inlined_call_operand.vmem [shape: f32[2,3,256], index: 4, kind: input, shape index: {}]   ;;  %s14289_s5 = inlined_call_operand.vmem [shape: f32[2,3,256], index: 5, kind: output, shape index: {}]  }
   0x1   :  { %s7081_s20 = smov 0  }
   0x2 LB: > { %s27_s21 = sadd.s32 1, %s7039_s19  ;;  %p6657_p0 = scmp.ge.s32.totalorder %s7043_s20, 1  ;;  %s7043_s20 = sphi %s7081_s20, %s15_s20   ;;  %s7039_s19 = sphi %s7079_s19, %s16117_s19   ;;  %s7035_s18 = sphi %s7077_s18, %s16116_s18  }
   0x3   : > { %p29_p1 = scmp.ge.s32.totalorder %s27_s21, 2  ;;  %p208_p2 = scmp.lt.s32.totalorder %s7043_s20, 3 }
   0x5   : > { %s16119_s21 = smov (%p29_p1, %s27_s21), 0  ;;  %p209_p3 = pnand %p6657_p0, %p208_p2 }
   0x7   : > { %212 = sbr.rel (%p209_p3) target bundleno = 1735 (0x6c7), region = 40 }
   0xc   : > { %v274_v0 = vld [vmem:[%s14285_s1 + $0x20] sm:$0xff]  ;;  %v272_v1 = vld [vmem:[%s14285_s1 + $0x10] sm:$0xff]  ;;  %v14290_v3 = vmov 0   ;;  %v275_v4 = vld [vmem:[%s14285_s1 + $0x28] sm:$0xff]  ;;  %p245_p4 = scmp.lt.s32.totalorder %s7035_s18, 1  ;;  %vm6562_vm0 = vcmask 1043456  }
   0xd   : > { %v270_v2 = vld [vmem:[%s14285_s1] sm:$0xff]  ;;  %6726 = vset.pattern.permute.xlu2 %v14290_v3  ;;  %6725 = vset.pattern.permute.xlu1 %v14290_v3  ;;  %v273_v5 = vld [vmem:[%s14285_s1 + $0x18] sm:$0xff]  ;;  %v271_v6 = vld [vmem:[%s14285_s1 + $0x8] sm:$0xff] }
   0xe   : > { %6724 = vset.pattern.permute.xlu0 %v14290_v3  ;;  %436 = vperm.xlu2 %6726, %v274_v0   ;;  %v278_v7 = vld [vmem:[%s14285_s1 + $0x40] sm:$0xff]  ;;  %v277_v8 = vld [vmem:[%s14285_s1 + $0x38] sm:$0xff]  ;;  %v276_v9 = vld [vmem:[%s14285_s1 + $0x30] sm:$0xff]  ;;  %s16121_s18 = smov (!%p245_p4, %s7035_s18), 1 }
   0xf   : > { %426 = vperm.xlu1 %6725, %v272_v1   ;;  %416 = vperm.xlu0 %6724, %v270_v2   ;;  %v281_v10 = vld [vmem:[%s14285_s1 + $0x58] sm:$0xff]  ;;  %v280_v11 = vld [vmem:[%s14285_s1 + $0x50] sm:$0xff]  ;;  %v279_v12 = vld [vmem:[%s14285_s1 + $0x48] sm:$0xff]  ;;  %s6664_s25 = sshll.u32 %s16121_s18, 3 }
  0x10   : > { %v284_v13 = vld [vmem:[%s14285_s1 + $0x70] sm:$0xff]  ;;  %v283_v14 = vld [vmem:[%s14285_s1 + $0x68] sm:$0xff]  ;;  %v282_v15 = vld [vmem:[%s14285_s1 + $0x60] sm:$0xff]  ;;  %s252_s9 = scalar_lea.vmem %s14288_s4, %s6664_s25  ;;  %s262_s27 = scalar_lea.vmem %s14289_s5, %s6664_s25 }
  0x11   : > { %v287_v16 = vld [vmem:[%s14285_s1 + $0x88] sm:$0xff]  ;;  %v286_v17 = vld [vmem:[%s14285_s1 + $0x80] sm:$0xff]  ;;  %v285_v18 = vld [vmem:[%s14285_s1 + $0x78] sm:$0xff] }
  0x12   : > { %v290_v19 = vld [vmem:[%s14285_s1 + $0xa0] sm:$0xff]  ;;  %v289_v20 = vld [vmem:[%s14285_s1 + $0x98] sm:$0xff]  ;;  %v288_v21 = vld [vmem:[%s14285_s1 + $0x90] sm:$0xff] }
  0x13   : > { %v293_v22 = vld [vmem:[%s14285_s1 + $0xb8] sm:$0xff]  ;;  %v292_v23 = vld [vmem:[%s14285_s1 + $0xb0] sm:$0xff]  ;;  %v291_v24 = vld [vmem:[%s14285_s1 + $0xa8] sm:$0xff] }
  0x14   : > { %v296_v25 = vld [vmem:[%s14285_s1 + $0xd0] sm:$0xff]  ;;  %v295_v26 = vld [vmem:[%s14285_s1 + $0xc8] sm:$0xff]  ;;  %v294_v27 = vld [vmem:[%s14285_s1 + $0xc0] sm:$0xff] }
  0x15   : > { %v299_v28 = vld [vmem:[%s14285_s1 + $0xe8] sm:$0xff]  ;;  %v298_v29 = vld [vmem:[%s14285_s1 + $0xe0] sm:$0xff]  ;;  %v297_v30 = vld [vmem:[%s14285_s1 + $0xd8] sm:$0xff] }
  0x16   : > { %441 = vperm.xlu2 %6726, %v275_v4   ;;  %v302_v31 = vld [vmem:[%s14285_s1 + $0x100] sm:$0xff]  ;;  %v301_v32 = vld [vmem:[%s14285_s1 + $0xf8] sm:$0xff]  ;;  %v300_v33 = vld [vmem:[%s14285_s1 + $0xf0] sm:$0xff] }
  0x17   : > { %431 = vperm.xlu1 %6725, %v273_v5   ;;  %421 = vperm.xlu0 %6724, %v271_v6   ;;  %v305_v34 = vld [vmem:[%s14285_s1 + $0x118] sm:$0xff]  ;;  %v304_v35 = vld [vmem:[%s14285_s1 + $0x110] sm:$0xff]  ;;  %v303_v36 = vld [vmem:[%s14285_s1 + $0x108] sm:$0xff] }
  0x18   : > { %v308_v38 = vld [vmem:[%s14285_s1 + $0x130] sm:$0xff]  ;;  %v307_v39 = vld [vmem:[%s14285_s1 + $0x128] sm:$0xff]  ;;  %v306_v40 = vld [vmem:[%s14285_s1 + $0x120] sm:$0xff] }
  0x19   : > { %v311_v42 = vld [vmem:[%s14285_s1 + $0x148] sm:$0xff]  ;;  %v310_v43 = vld [vmem:[%s14285_s1 + $0x140] sm:$0xff]  ;;  %v309_v44 = vld [vmem:[%s14285_s1 + $0x138] sm:$0xff] }
  0x1a   : > { %v314_v46 = vld [vmem:[%s14285_s1 + $0x160] sm:$0xff]  ;;  %v313_v47 = vld [vmem:[%s14285_s1 + $0x158] sm:$0xff]  ;;  %v312_v48 = vld [vmem:[%s14285_s1 + $0x150] sm:$0xff] }
  0x1b   : > { %v317_v52 = vld [vmem:[%s14285_s1 + $0x178] sm:$0xff]  ;;  %v316_v53 = vld [vmem:[%s14285_s1 + $0x170] sm:$0xff]  ;;  %v315_v54 = vld [vmem:[%s14285_s1 + $0x168] sm:$0xff] }
  0x1c   : > { %v320_v58 = vld [vmem:[%s14285_s1 + $0x190] sm:$0xff]  ;;  %v319_v59 = vld [vmem:[%s14285_s1 + $0x188] sm:$0xff]  ;;  %v318_v60 = vld [vmem:[%s14285_s1 + $0x180] sm:$0xff] }
  0x1d   : > { %v323_v0 = vld [vmem:[%s14285_s1 + $0x1a8] sm:$0xff]  ;;  %v322_v1 = vld [vmem:[%s14285_s1 + $0x1a0] sm:$0xff]  ;;  %v321_v2 = vld [vmem:[%s14285_s1 + $0x198] sm:$0xff] }
  0x1e   : > { %456 = vperm.xlu2 %6726, %v278_v7   ;;  %v326_v7 = vld [vmem:[%s14285_s1 + $0x1c0] sm:$0xff] }
  0x1f   : > { %451 = vperm.xlu1 %6725, %v277_v8   ;;  %446 = vperm.xlu0 %6724, %v276_v9   ;;  %v325_v8 = vld [vmem:[%s14285_s1 + $0x1b8] sm:$0xff]  ;;  %v324_v9 = vld [vmem:[%s14285_s1 + $0x1b0] sm:$0xff] }
  0x26   : > { %471 = vperm.xlu2 %6726, %v281_v10  }
  0x27   : > { %466 = vperm.xlu1 %6725, %v280_v11   ;;  %461 = vperm.xlu0 %6724, %v279_v12  }
  0x2e   : > { %486 = vperm.xlu2 %6726, %v284_v13   ;;  %v329_v13 = vld [vmem:[%s14285_s1 + $0x1d8] sm:$0xff] }
  0x2f   : > { %481 = vperm.xlu1 %6725, %v283_v14   ;;  %476 = vperm.xlu0 %6724, %v282_v15   ;;  %v328_v14 = vld [vmem:[%s14285_s1 + $0x1d0] sm:$0xff]  ;;  %v327_v15 = vld [vmem:[%s14285_s1 + $0x1c8] sm:$0xff] }
  0x36   : > { %501 = vperm.xlu2 %6726, %v287_v16  }
  0x37   : > { %496 = vperm.xlu1 %6725, %v286_v17   ;;  %491 = vperm.xlu0 %6724, %v285_v18  }
  0x3e   : > { %516 = vperm.xlu2 %6726, %v290_v19   ;;  %v332_v19 = vld [vmem:[%s14285_s1 + $0x1f0] sm:$0xff] }
  0x3f   : > { %511 = vperm.xlu1 %6725, %v289_v20   ;;  %506 = vperm.xlu0 %6724, %v288_v21   ;;  %v331_v20 = vld [vmem:[%s14285_s1 + $0x1e8] sm:$0xff]  ;;  %v330_v21 = vld [vmem:[%s14285_s1 + $0x1e0] sm:$0xff] }
  0x46   : > { %531 = vperm.xlu2 %6726, %v293_v22  }
  0x47   : > { %526 = vperm.xlu1 %6725, %v292_v23   ;;  %521 = vperm.xlu0 %6724, %v291_v24  }
  0x4e   : > { %546 = vperm.xlu2 %6726, %v296_v25   ;;  %v335_v25 = vld [vmem:[%s14285_s1 + $0x208] sm:$0xff] }
  0x4f   : > { %541 = vperm.xlu1 %6725, %v295_v26   ;;  %536 = vperm.xlu0 %6724, %v294_v27   ;;  %v334_v26 = vld [vmem:[%s14285_s1 + $0x200] sm:$0xff]  ;;  %v333_v27 = vld [vmem:[%s14285_s1 + $0x1f8] sm:$0xff] }
  0x56   : > { %561 = vperm.xlu2 %6726, %v299_v28  }
  0x57   : > { %556 = vperm.xlu1 %6725, %v298_v29   ;;  %551 = vperm.xlu0 %6724, %v297_v30  }
  0x5e   : > { %576 = vperm.xlu2 %6726, %v302_v31   ;;  %v338_v31 = vld [vmem:[%s14285_s1 + $0x220] sm:$0xff] }
  0x5f   : > { %571 = vperm.xlu1 %6725, %v301_v32   ;;  %566 = vperm.xlu0 %6724, %v300_v33   ;;  %v337_v32 = vld [vmem:[%s14285_s1 + $0x218] sm:$0xff]  ;;  %v336_v33 = vld [vmem:[%s14285_s1 + $0x210] sm:$0xff] }
  0x66   : > { %591 = vperm.xlu2 %6726, %v305_v34  }
  0x67   : > { %586 = vperm.xlu1 %6725, %v304_v35   ;;  %581 = vperm.xlu0 %6724, %v303_v36  }
  0x68   : > { %v7208_v37 = vpop.permute.xlu2 %436 }
  0x6e   : > { %606 = vperm.xlu2 %6726, %v308_v38   ;;  %v341_v38 = vld [vmem:[%s14285_s1 + $0x238] sm:$0xff] }
  0x6f   : > { %601 = vperm.xlu1 %6725, %v307_v39   ;;  %596 = vperm.xlu0 %6724, %v306_v40   ;;  %v340_v39 = vld [vmem:[%s14285_s1 + $0x230] sm:$0xff]  ;;  %v339_v40 = vld [vmem:[%s14285_s1 + $0x228] sm:$0xff] }
  0x70   : > { %v7219_v41 = vpop.permute.xlu2 %441 }
  0x76   : > { %621 = vperm.xlu2 %6726, %v311_v42  }
  0x77   : > { %616 = vperm.xlu1 %6725, %v310_v43   ;;  %611 = vperm.xlu0 %6724, %v309_v44  }
  0x78   : > { %v7230_v45 = vpop.permute.xlu2 %456 }
  0x7e   : > { %636 = vperm.xlu2 %6726, %v314_v46   ;;  %v344_v46 = vld [vmem:[%s14285_s1 + $0x250] sm:$0xff] }
  0x7f   : > { %631 = vperm.xlu1 %6725, %v313_v47   ;;  %626 = vperm.xlu0 %6724, %v312_v48   ;;  %v343_v47 = vld [vmem:[%s14285_s1 + $0x248] sm:$0xff]  ;;  %v342_v48 = vld [vmem:[%s14285_s1 + $0x240] sm:$0xff] }
  0x80   : > { %v7241_v49 = vpop.permute.xlu2 %471 }
  0x81   : > { %v7243_v50 = vpop.permute.xlu1 %426  ;;  %v7245_v51 = vpop.permute.xlu0 %416 }
  0x86   : > { %651 = vperm.xlu2 %6726, %v317_v52  }
  0x87   : > { %646 = vperm.xlu1 %6725, %v316_v53   ;;  %641 = vperm.xlu0 %6724, %v315_v54  }
  0x88   : > { %v7256_v55 = vpop.permute.xlu2 %486 }
  0x89   : > { %v7258_v56 = vpop.permute.xlu1 %431  ;;  %v7260_v57 = vpop.permute.xlu0 %421 }
  0x8e   : > { %666 = vperm.xlu2 %6726, %v320_v58   ;;  %v347_v58 = vld [vmem:[%s14285_s1 + $0x268] sm:$0xff] }
  0x8f   : > { %661 = vperm.xlu1 %6725, %v319_v59   ;;  %656 = vperm.xlu0 %6724, %v318_v60   ;;  %v346_v59 = vld [vmem:[%s14285_s1 + $0x260] sm:$0xff]  ;;  %v345_v60 = vld [vmem:[%s14285_s1 + $0x258] sm:$0xff] }
  0x90   : > { %v7271_v61 = vpop.permute.xlu2 %501 }
  0x91   : > { %v7273_v62 = vpop.permute.xlu1 %451  ;;  %v7275_v63 = vpop.permute.xlu0 %446 }
  0x96   : > { %681 = vperm.xlu2 %6726, %v323_v0  }
  0x97   : > { %676 = vperm.xlu1 %6725, %v322_v1   ;;  %671 = vperm.xlu0 %6724, %v321_v2   ;;  %v264_v1 = vld [vmem:[%s252_s9] sm:$0x77] }
  0x98   : > { %v7286_v4 = vpop.permute.xlu2 %516 }
  0x99   : > { %v7288_v5 = vpop.permute.xlu1 %466  ;;  %v7290_v6 = vpop.permute.xlu0 %461 }
  0x9e   : > { %696 = vperm.xlu2 %6726, %v326_v7  }
  0x9f   : > { %691 = vperm.xlu1 %6725, %v325_v8   ;;  %686 = vperm.xlu0 %6724, %v324_v9   ;;  %v350_v8 = vld [vmem:[%s14285_s1 + $0x280] sm:$0xff]  ;;  %v265_v9 = vmul.f32 31.999968, %v264_v1 }
  0xa0   : > { %v7301_v10 = vpop.permute.xlu2 %531 }
  0xa1   : > { %v7303_v11 = vpop.permute.xlu1 %481  ;;  %v7305_v12 = vpop.permute.xlu0 %476 }
  0xa6   : > { %711 = vperm.xlu2 %6726, %v329_v13   ;;  %v349_v13 = vld [vmem:[%s14285_s1 + $0x278] sm:$0xff] }
  0xa7   : > { %706 = vperm.xlu1 %6725, %v328_v14   ;;  %701 = vperm.xlu0 %6724, %v327_v15   ;;  %v348_v14 = vld [vmem:[%s14285_s1 + $0x270] sm:$0xff]  ;;  %v7431_v15 = vfloor.f32 %v265_v9 }
  0xa8   : > { %v7316_v16 = vpop.permute.xlu2 %546 }
  0xa9   : > { %v7318_v17 = vpop.permute.xlu1 %496  ;;  %v7320_v18 = vpop.permute.xlu0 %491  ;;  %14676 = vst [vmem:[#allocation2_spill] sm:$0xff] %v7431_v15 }
  0xae   : > { %726 = vperm.xlu2 %6726, %v332_v19  }
  0xaf   : > { %721 = vperm.xlu1 %6725, %v331_v20   ;;  %716 = vperm.xlu0 %6724, %v330_v21  }
  0xb0   : > { %v7331_v22 = vpop.permute.xlu2 %561 }
  0xb1   : > { %v7333_v23 = vpop.permute.xlu1 %511  ;;  %v7335_v24 = vpop.permute.xlu0 %506 }
  0xb6   : > { %741 = vperm.xlu2 %6726, %v335_v25   ;;  %v353_v25 = vld [vmem:[%s14285_s1 + $0x298] sm:$0xff] }
  0xb7   : > { %736 = vperm.xlu1 %6725, %v334_v26   ;;  %731 = vperm.xlu0 %6724, %v333_v27   ;;  %v267_v26 = vmul.f32 0.03125003, %v7431_v15  ;;  %v352_v27 = vld [vmem:[%s14285_s1 + $0x290] sm:$0xff] }
  0xb8   : > { %v7346_v28 = vpop.permute.xlu2 %576 }
  0xb9   : > { %v7348_v29 = vpop.permute.xlu1 %526  ;;  %v7350_v30 = vpop.permute.xlu0 %521 }
  0xbe   : > { %756 = vperm.xlu2 %6726, %v338_v31   ;;  %v351_v31 = vld [vmem:[%s14285_s1 + $0x288] sm:$0xff] }
  0xbf   : > { %751 = vperm.xlu1 %6725, %v337_v32   ;;  %746 = vperm.xlu0 %6724, %v336_v33   ;;  %v268_v32 = vsub.f32 %v264_v1, %v267_v26  ;;  %v359_v26 = vld [vmem:[%s14285_s1 + $0x2c8] sm:$0xff] }
  0xc0   : > { %v7361_v34 = vpop.permute.xlu2 %591 }
  0xc1   : > { %v7363_v35 = vpop.permute.xlu1 %541  ;;  %v7365_v36 = vpop.permute.xlu0 %536 }
  0xc6   : > { %771 = vperm.xlu2 %6726, %v341_v38  }
  0xc7   : > { %766 = vperm.xlu1 %6725, %v340_v39   ;;  %761 = vperm.xlu0 %6724, %v339_v40   ;;  %v356_v40 = vld [vmem:[%s14285_s1 + $0x2b0] sm:$0xff] }
  0xc8   : > { %v7376_v42 = vpop.permute.xlu2 %606 }
  0xc9   : > { %v7378_v43 = vpop.permute.xlu1 %556  ;;  %v7380_v44 = vpop.permute.xlu0 %551 }
  0xce   : > { %786 = vperm.xlu2 %6726, %v344_v46   ;;  %v7458_v46 = vmul.f32 31.999968, %v268_v32 }
  0xcf   : > { %781 = vperm.xlu1 %6725, %v343_v47   ;;  %776 = vperm.xlu0 %6724, %v342_v48   ;;  %v1135_v47 = vperm.slane %v7431_v15, 2  ;;  %v355_v48 = vld [vmem:[%s14285_s1 + $0x2a8] sm:$0xff] }
  0xd0   : > { %v7395_v52 = vpop.permute.xlu2 %621  ;;  %14679 = vst [vmem:[#allocation5_spill] sm:$0xff] %v7458_v46  ;;  %v1430_v1 = vperm.slane %v7458_v46, 2 }
  0xd1   : > { %v7397_v53 = vpop.permute.xlu1 %571  ;;  %v7399_v54 = vpop.permute.xlu0 %566 }
  0xd2   : > { %v7490_v32 = vperm.slane %v1430_v1, 2 }
  0xd6   : > { %801 = vperm.xlu2 %6726, %v347_v58   ;;  %v354_v58 = vld [vmem:[%s14285_s1 + $0x2a0] sm:$0xff] }
  0xd7   : > { %796 = vperm.xlu1 %6725, %v346_v59   ;;  %791 = vperm.xlu0 %6724, %v345_v60   ;;  %v7467_v59 = vperm.slane %v1135_v47, 2 }
  0xd8   : > { %v7416_v0 = vpop.permute.xlu2 %636 }
  0xd9   : > { %v7418_v2 = vpop.permute.xlu1 %586  ;;  %v7420_v7 = vpop.permute.xlu0 %581 }
  0xde   : > { %816 = vperm.xlu2 %6726, %v350_v8  }
  0xdf   : > { %811 = vperm.xlu1 %6725, %v349_v13   ;;  %806 = vperm.xlu0 %6724, %v348_v14   ;;  %v1136_v13 = vperm.slane %v7431_v15, 6  ;;  %v1149_v14 = vsub.f32 %v7208_v37, %v7467_v59 }
  0xe0   : > { %v7433_v19 = vpop.permute.xlu2 %651 }
  0xe1   : > { %v7435_v20 = vpop.permute.xlu1 %601  ;;  %v7437_v21 = vpop.permute.xlu0 %596  ;;  %v7494_v47 = vperm.slane %v1136_v13, 2 }
  0xe3   : > { %v1150_v15 = vsub.f32 %v7208_v37, %v7494_v47  ;;  %v1145_v37 = vsub.f32 %v7243_v50, %v7467_v59 }
  0xe6   : > { %831 = vperm.xlu2 %6726, %v353_v25   ;;  %v1151_v25 = vsub.f32 %v7219_v41, %v7467_v59 }
  0xe7   : > { %826 = vperm.xlu1 %6725, %v352_v27   ;;  %821 = vperm.xlu0 %6724, %v351_v31   ;;  %v358_v27 = vld [vmem:[%s14285_s1 + $0x2c0] sm:$0xff]  ;;  %v357_v31 = vld [vmem:[%s14285_s1 + $0x2b8] sm:$0xff] }
  0xe8   : > { %v7449_v33 = vpop.permute.xlu2 %666  ;;  %v1446_v3 = vsub.f32 %v1151_v25, %v7490_v32 }
  0xe9   : > { %14677 = vst [vmem:[#allocation3_spill] sm:$0xff] %v7449_v33  ;;  %v7451_v38 = vpop.permute.xlu1 %616  ;;  %v7453_v39 = vpop.permute.xlu0 %611  ;;  %v1147_v33 = vsub.f32 %v7258_v56, %v7467_v59 }
  0xea   : > { %14678 = vst [vmem:[#allocation4_spill] sm:$0xff] %v7453_v39 }
  0xee   : > { %846 = vperm.xlu2 %6726, %v356_v40   ;;  %v1157_v40 = vsub.f32 %v7230_v45, %v7467_v59 }
  0xef   : > { %841 = vperm.xlu1 %6725, %v355_v48   ;;  %836 = vperm.xlu0 %6724, %v354_v58   ;;  %v1431_v48 = vperm.slane %v7458_v46, 6  ;;  %v1444_v58 = vsub.f32 %v1149_v14, %v7490_v32  ;;  %v1152_v14 = vsub.f32 %v7219_v41, %v7494_v47  ;;  %v360_v41 = vld [vmem:[%s14285_s1 + $0x2d0] sm:$0xff] }
  0xf0   : > { %v7469_v60 = vpop.permute.xlu2 %681  ;;  %v1452_v13 = vsub.f32 %v1157_v40, %v7490_v32  ;;  %v361_v40 = vld [vmem:[%s14285_s1 + $0x2d8] sm:$0xff] }
  0xf1   : > { %14680 = vst [vmem:[#allocation6_spill] sm:$0xff] %v7469_v60  ;;  %v7472_v8 = vpop.permute.xlu1 %631  ;;  %v7474_v9 = vpop.permute.xlu0 %626  ;;  %v1732_v25 = vand.u32 2147483647, %v1444_v58  ;;  %v1141_v58 = vsub.f32 %v7245_v51, %v7467_v59 }
  0xf2   : > { %14681 = vst [vmem:[#allocation7_spill] sm:$0xff] %v7472_v8  ;;  %v7508_v8 = vperm.slane %v1431_v48, 2  ;;  %v1158_v48 = vsub.f32 %v7230_v45, %v7494_v47 }
  0xf3   : > { %14682 = vst [vmem:[#allocation8_spill] sm:$0xff] %v7474_v9 }
  0xf4   : > { %v7520_v46 = vsub.f32 %v1150_v15, %v7508_v8  ;;  %v7553_v39 = vsub.f32 %v1158_v48, %v7508_v8  ;;  %v365_v48 = vld [vmem:[%s14285_s1 + $0x2f8] sm:$0xff] }
  0xf6   : > { %861 = vperm.xlu2 %6726, %v359_v26   ;;  %v1163_v26 = vsub.f32 %v7241_v49, %v7467_v59  ;;  %14686 = vst [vmem:[#allocation12_spill] sm:$0xff] %v7520_v46 }
  0xf7   : > { %856 = vperm.xlu1 %6725, %v358_v27   ;;  %851 = vperm.xlu0 %6724, %v357_v31   ;;  %v362_v27 = vld [vmem:[%s14285_s1 + $0x2e0] sm:$0xff]  ;;  %v1734_v31 = vand.u32 2147483647, %v1446_v3  ;;  %v7533_v3 = vsub.f32 %v1152_v14, %v7508_v8  ;;  %14691 = vst [vmem:[#allocation17_spill] sm:$0xff] %v7553_v39  ;;  %v1436_v14 = vsub.f32 %v1141_v58, %v7490_v32 }
  0xf8   : > { %v7501_v60 = vpop.permute.xlu2 %696  ;;  %v1458_v15 = vsub.f32 %v1163_v26, %v7490_v32  ;;  %v1146_v26 = vsub.f32 %v7243_v50, %v7494_v47  ;;  %v1143_v50 = vsub.f32 %v7260_v57, %v7467_v59  ;;  %v1159_v39 = vsub.f32 %v7290_v6, %v7467_v59 }
  0xf9   : > { %14683 = vst [vmem:[#allocation9_spill] sm:$0xff] %v7501_v60  ;;  %v7503_v1 = vpop.permute.xlu1 %646  ;;  %v7505_v9 = vpop.permute.xlu0 %641  ;;  %v7536_v60 = vsub.f32 1.0, %v1732_v25  ;;  %v7542_v45 = vsub.f32 1.0, %v1734_v31 }
  0xfa   : > { %14684 = vst [vmem:[#allocation10_spill] sm:$0xff] %v7503_v1  ;;  %v1169_v1 = vsub.f32 %v7256_v55, %v7467_v59  ;;  %v1746_v46 = vand.u32 2147483647, %v1458_v15  ;;  %v7576_v58 = vsub.f32 %v1146_v26, %v7508_v8  ;;  %v1170_v15 = vsub.f32 %v7256_v55, %v7494_v47 }
  0xfb   : > { %14685 = vst [vmem:[#allocation11_spill] sm:$0xff] %v7505_v9  ;;  %v1740_v9 = vand.u32 2147483647, %v1452_v13  ;;  %v1440_v13 = vsub.f32 %v1145_v37, %v7490_v32  ;;  %v1148_v55 = vsub.f32 %v7258_v56, %v7494_v47 }
  0xfc   : > { %14687 = vst [vmem:[#allocation13_spill] sm:$0xff] %v7533_v3 }
  0xfd   : > { %14688 = vst [vmem:[#allocation14_spill] sm:$0xff] %v7536_v60  ;;  %v7561_v37 = vsub.f32 1.0, %v1740_v9  ;;  %v1175_v60 = vsub.f32 %v7271_v61, %v7467_v59 }
  0xfe   : > { %876 = vperm.xlu2 %6726, %v362_v27   ;;  %14689 = vst [vmem:[#allocation15_spill] sm:$0xff] %v7542_v45  ;;  %v1164_v27 = vsub.f32 %v7241_v49, %v7494_v47  ;;  %v1144_v49 = vsub.f32 %v7260_v57, %v7494_v47  ;;  %v7599_v45 = vsub.f32 1.0, %v1746_v46  ;;  %v1465_v57 = vsub.f32 %v1170_v15, %v7508_v8 }
  0xff   : > { %871 = vperm.xlu1 %6725, %v361_v40   ;;  %866 = vperm.xlu0 %6724, %v360_v41   ;;  %v1142_v40 = vsub.f32 %v7245_v51, %v7494_v47  ;;  %14694 = vst [vmem:[#allocation20_spill] sm:$0xff] %v7561_v37  ;;  %v1724_v51 = vand.u32 2147483647, %v1436_v14  ;;  %v1438_v46 = vsub.f32 %v1143_v50, %v7490_v32 }
 0x100   : > { %v7550_v25 = vpop.permute.xlu2 %711  ;;  %v7573_v9 = vsub.f32 %v1164_v27, %v7508_v8  ;;  %14696 = vst [vmem:[#allocation22_spill] sm:$0xff] %v7576_v58  ;;  %v7623_v15 = vsub.f32 %v1148_v55, %v7508_v8  ;;  %v7626_v3 = vsub.f32 %v1144_v49, %v7508_v8  ;;  %v1753_v58 = vand.u32 2147483647, %v1465_v57 }
 0x101   : > { %14690 = vst [vmem:[#allocation16_spill] sm:$0xff] %v7550_v25  ;;  %v7557_v31 = vpop.permute.xlu1 %661  ;;  %v7559_v41 = vpop.permute.xlu0 %656  ;;  %v1464_v25 = vsub.f32 %v1169_v1, %v7490_v32  ;;  %v364_v1 = vld [vmem:[%s14285_s1 + $0x2f0] sm:$0xff]  ;;  %v7590_v27 = vsub.f32 %v1142_v40, %v7508_v8  ;;  %v1156_v49 = vsub.f32 %v7273_v62, %v7494_v47  ;;  %v1154_v50 = vsub.f32 %v7275_v63, %v7494_v47 }
 0x102   : > { %14692 = vst [vmem:[#allocation18_spill] sm:$0xff] %v7557_v31  ;;  %v1442_v31 = vsub.f32 %v1147_v33, %v7490_v32  ;;  %v363_v33 = vld [vmem:[%s14285_s1 + $0x2e8] sm:$0xff]  ;;  %v1161_v57 = vsub.f32 %v7288_v5, %v7467_v59 }
 0x103   : > { %14693 = vst [vmem:[#allocation19_spill] sm:$0xff] %v7559_v41  ;;  %v1728_v41 = vand.u32 2147483647, %v1440_v13  ;;  %v1155_v13 = vsub.f32 %v7273_v62, %v7467_v59  ;;  %v1752_v40 = vand.u32 2147483647, %v1464_v25  ;;  %v1153_v25 = vsub.f32 %v7275_v63, %v7467_v59 }
 0x104   : > { %14695 = vst [vmem:[#allocation21_spill] sm:$0xff] %v7573_v9  ;;  %v1730_v26 = vand.u32 2147483647, %v1442_v31  ;;  %v7666_v55 = vsub.f32 %v1154_v50, %v7508_v8  ;;  %v1456_v9 = vsub.f32 %v1161_v57, %v7490_v32  ;;  %v7680_v63 = vsub.f32 1.0, %v1753_v58  ;;  %v371_v58 = vld [vmem:[%s14285_s1 + $0x328] sm:$0xff] }
 0x105   : > { %14697 = vst [vmem:[#allocation23_spill] sm:$0xff] %v7590_v27  ;;  %v7603_v14 = vsub.f32 1.0, %v1728_v41  ;;  %v7633_v56 = vsub.f32 1.0, %v1752_v40  ;;  %v1450_v27 = vsub.f32 %v1155_v13, %v7490_v32  ;;  %v366_v40 = vld [vmem:[%s14285_s1 + $0x300] sm:$0xff]  ;;  %v1726_v13 = vand.u32 2147483647, %v1438_v46 }
 0x106   : > { %891 = vperm.xlu2 %6726, %v365_v48   ;;  %14698 = vst [vmem:[#allocation24_spill] sm:$0xff] %v7599_v45  ;;  %v1470_v48 = vsub.f32 %v1175_v60, %v7490_v32  ;;  %v367_v60 = vld [vmem:[%s14285_s1 + $0x308] sm:$0xff]  ;;  %v1448_v62 = vsub.f32 %v1153_v25, %v7490_v32  ;;  %v7663_v25 = vsub.f32 %v1156_v49, %v7508_v8 }
 0x107   : > { %886 = vperm.xlu1 %6725, %v364_v1   ;;  %881 = vperm.xlu0 %6724, %v363_v33   ;;  %14699 = vst [vmem:[#allocation25_spill] sm:$0xff] %v7603_v14  ;;  %v1176_v1 = vsub.f32 %v7271_v61, %v7494_v47  ;;  %v7620_v33 = vsub.f32 1.0, %v1724_v51  ;;  %v368_v61 = vld [vmem:[%s14285_s1 + $0x310] sm:$0xff]  ;;  %v7636_v51 = vsub.f32 1.0, %v1730_v26  ;;  %v7672_v14 = vsub.f32 1.0, %v1726_v13 }
 0x108   : > { %v7608_v37 = vpop.permute.xlu2 %726  ;;  %14701 = vst [vmem:[#allocation27_spill] sm:$0xff] %v7623_v15  ;;  %v1758_v45 = vand.u32 2147483647, %v1470_v48  ;;  %v1736_v49 = vand.u32 2147483647, %v1448_v62  ;;  %v1182_v50 = vsub.f32 %v7286_v4, %v7494_v47  ;;  %v1167_v46 = vsub.f32 %v7303_v11, %v7467_v59 }
 0x109   : > { %v7616_v31 = vpop.permute.xlu1 %676  ;;  %v7618_v41 = vpop.permute.xlu0 %671  ;;  %14700 = vst [vmem:[#allocation26_spill] sm:$0xff] %v7620_v33  ;;  %v7650_v26 = vsub.f32 %v1176_v1, %v7508_v8  ;;  %v1738_v1 = vand.u32 2147483647, %v1450_v27  ;;  %v1165_v13 = vsub.f32 %v7305_v12, %v7467_v59  ;;  %v1160_v57 = vsub.f32 %v7290_v6, %v7494_v47  ;;  %v369_v6 = vld [vmem:[%s14285_s1 + $0x318] sm:$0xff] }
 0x10a   : > { %14702 = vst [vmem:[#allocation28_spill] sm:$0xff] %v7626_v3  ;;  %v7688_v3 = vsub.f32 1.0, %v1758_v45  ;;  %v1187_v45 = vsub.f32 %v7301_v10, %v7467_v59  ;;  %v7712_v33 = vsub.f32 1.0, %v1736_v49 }
 0x10b   : > { %14703 = vst [vmem:[#allocation29_spill] sm:$0xff] %v7633_v56  ;;  %v7698_v62 = vsub.f32 1.0, %v1738_v1  ;;  %v1744_v1 = vand.u32 2147483647, %v1456_v9  ;;  %v1462_v56 = vsub.f32 %v1167_v46, %v7490_v32  ;;  %v7725_v15 = vsub.f32 %v1160_v57, %v7508_v8 }
 0x10c   : > { %14704 = vst [vmem:[#allocation30_spill] sm:$0xff] %v7636_v51  ;;  %v1168_v46 = vsub.f32 %v7303_v11, %v7494_v47  ;;  %v1166_v57 = vsub.f32 %v7305_v12, %v7494_v47 }
 0x10d   : > { %14705 = vst [vmem:[#allocation31_spill] sm:$0xff] %v7650_v26  ;;  %v1171_v26 = vsub.f32 %v7320_v18, %v7467_v59 }
 0x10e   : > { %906 = vperm.xlu2 %6726, %v368_v61   ;;  %14706 = vst [vmem:[#allocation32_spill] sm:$0xff] %v7663_v25  ;;  %v1181_v61 = vsub.f32 %v7286_v4, %v7467_v59  ;;  %v1454_v4 = vsub.f32 %v1159_v39, %v7490_v32  ;;  %v7716_v25 = vsub.f32 %v1182_v50, %v7508_v8 }
 0x10f   : > { %901 = vperm.xlu1 %6725, %v367_v60   ;;  %896 = vperm.xlu0 %6724, %v366_v40   ;;  %14707 = vst [vmem:[#allocation33_spill] sm:$0xff] %v7666_v55  ;;  %v1162_v60 = vsub.f32 %v7288_v5, %v7494_v47  ;;  %v370_v5 = vld [vmem:[%s14285_s1 + $0x320] sm:$0xff]  ;;  %v1188_v50 = vsub.f32 %v7301_v10, %v7494_v47 }
 0x110   : > { %v7670_v48 = vpop.permute.xlu2 %741  ;;  %14708 = vst [vmem:[#allocation34_spill] sm:$0xff] %v7672_v14  ;;  %v1476_v51 = vsub.f32 %v1181_v61, %v7490_v32  ;;  %v1742_v9 = vand.u32 2147483647, %v1454_v4  ;;  %v1463_v10 = vsub.f32 %v1168_v46, %v7508_v8  ;;  %v7771_v12 = vsub.f32 %v1166_v57, %v7508_v8 }
 0x111   : > { %v7675_v40 = vpop.permute.xlu1 %691  ;;  %v7677_v27 = vpop.permute.xlu0 %686  ;;  %14711 = vst [vmem:[#allocation37_spill] sm:$0xff] %v7680_v63  ;;  %v7722_v61 = vsub.f32 %v1162_v60, %v7508_v8  ;;  %v7759_v11 = vsub.f32 %v1188_v50, %v7508_v8  ;;  %v1466_v57 = vsub.f32 %v1171_v26, %v7490_v32  ;;  %v1185_v55 = vsub.f32 %v7348_v29, %v7467_v59 }
 0x112   : > { %14709 = vst [vmem:[#allocation35_spill] sm:$0xff] %v7675_v40  ;;  %v1764_v60 = vand.u32 2147483647, %v1476_v51  ;;  %v7743_v40 = vsub.f32 1.0, %v1744_v1  ;;  %v1750_v51 = vand.u32 2147483647, %v1462_v56  ;;  %v1222_v63 = vsub.f32 %v7451_v38, %v7494_v47 }
 0x113   : > { %14710 = vst [vmem:[#allocation36_spill] sm:$0xff] %v7677_v27  ;;  %v1460_v27 = vsub.f32 %v1165_v13, %v7490_v32  ;;  %v374_v1 = vld [vmem:[%s14285_s1 + $0x340] sm:$0xff]  ;;  %v373_v56 = vld [vmem:[%s14285_s1 + $0x338] sm:$0xff] }
 0x114   : > { %14712 = vst [vmem:[#allocation38_spill] sm:$0xff] %v7688_v3  ;;  %v7756_v3 = vsub.f32 1.0, %v1742_v9  ;;  %v7768_v39 = vsub.f32 1.0, %v1764_v60  ;;  %v1194_v9 = vsub.f32 %v7316_v16, %v7494_v47  ;;  %v1174_v60 = vsub.f32 %v7318_v17, %v7494_v47 }
 0x115   : > { %14713 = vst [vmem:[#allocation39_spill] sm:$0xff] %v7698_v62  ;;  %v1748_v49 = vand.u32 2147483647, %v1460_v27  ;;  %v372_v27 = vld [vmem:[%s14285_s1 + $0x330] sm:$0xff] }
 0x116   : > { %14714 = vst [vmem:[#allocation40_spill] sm:$0xff] %v7712_v33  ;;  %921 = vperm.xlu2 %6726, %v371_v58   ;;  %v1482_v58 = vsub.f32 %v1187_v45, %v7490_v32  ;;  %v1172_v45 = vsub.f32 %v7320_v18, %v7494_v47  ;;  %v7780_v33 = vsub.f32 1.0, %v1750_v51  ;;  %v7798_v62 = vsub.f32 %v1194_v9, %v7508_v8  ;;  %v377_v9 = vld [vmem:[%s14285_s1 + $0x358] sm:$0xff] }
 0x117   : > { %14715 = vst [vmem:[#allocation41_spill] sm:$0xff] %v7716_v25  ;;  %916 = vperm.xlu1 %6725, %v370_v5   ;;  %911 = vperm.xlu0 %6724, %v369_v6   ;;  %v1193_v5 = vsub.f32 %v7316_v16, %v7467_v59  ;;  %v1173_v25 = vsub.f32 %v7318_v17, %v7467_v59  ;;  %v1749_v17 = vand.u32 2147483647, %v7771_v12 }
 0x118   : > { %14716 = vst [vmem:[#allocation42_spill] sm:$0xff] %v7722_v61  ;;  %v7732_v13 = vpop.permute.xlu2 %756  ;;  %v1770_v18 = vand.u32 2147483647, %v1482_v58  ;;  %v1467_v14 = vsub.f32 %v1172_v45, %v7508_v8  ;;  %v7782_v58 = vsub.f32 1.0, %v1748_v49  ;;  %v1199_v16 = vsub.f32 %v7331_v22, %v7467_v59  ;;  %v375_v49 = vld [vmem:[%s14285_s1 + $0x348] sm:$0xff] }
 0x119   : > { %14717 = vst [vmem:[#allocation43_spill] sm:$0xff] %v7725_v15  ;;  %v7739_v4 = vpop.permute.xlu1 %706  ;;  %v7741_v6 = vpop.permute.xlu0 %701  ;;  %v1488_v46 = vsub.f32 %v1193_v5, %v7490_v32  ;;  %v1751_v45 = vand.u32 2147483647, %v1463_v10  ;;  %v7811_v12 = vsub.f32 %v1174_v60, %v7508_v8  ;;  %v1180_v5 = vsub.f32 %v7333_v23, %v7494_v47  ;;  %v376_v60 = vld [vmem:[%s14285_s1 + $0x350] sm:$0xff] }
 0x11a   : > { %14718 = vst [vmem:[#allocation44_spill] sm:$0xff] %v7743_v40  ;;  %v7793_v51 = vsub.f32 1.0, %v1770_v18  ;;  %v1755_v10 = vand.u32 2147483647, %v1467_v14  ;;  %v1177_v18 = vsub.f32 %v7335_v24, %v7467_v59  ;;  %v1200_v14 = vsub.f32 %v7331_v22, %v7494_v47 }
 0x11b   : > { %14719 = vst [vmem:[#allocation45_spill] sm:$0xff] %v7756_v3  ;;  %v1776_v50 = vand.u32 2147483647, %v1488_v46  ;;  %v1468_v46 = vsub.f32 %v1173_v25, %v7490_v32  ;;  %v7829_v3 = vsub.f32 1.0, %v1751_v45  ;;  %v1205_v22 = vsub.f32 %v7346_v28, %v7467_v59 }
 0x11c   : > { %14720 = vst [vmem:[#allocation46_spill] sm:$0xff] %v7759_v11  ;;  %v1754_v11 = vand.u32 2147483647, %v1466_v57  ;;  %v7837_v15 = vsub.f32 1.0, %v1755_v10  ;;  %v1178_v61 = vsub.f32 %v7335_v24, %v7494_v47  ;;  %v1472_v45 = vsub.f32 %v1177_v18, %v7490_v32  ;;  %v380_v18 = vld [vmem:[%s14285_s1 + $0x370] sm:$0xff] }
 0x11d   : > { %14721 = vst [vmem:[#allocation47_spill] sm:$0xff] %v7768_v39  ;;  %v1494_v39 = vsub.f32 %v1199_v16, %v7490_v32  ;;  %v7834_v16 = vsub.f32 1.0, %v1776_v50  ;;  %v1183_v25 = vsub.f32 %v7350_v30, %v7467_v59  ;;  %v7853_v24 = vsub.f32 %v1180_v5, %v7508_v8 }
 0x11e   : > { %936 = vperm.xlu2 %6726, %v374_v1   ;;  %14722 = vst [vmem:[#allocation48_spill] sm:$0xff] %v7780_v33  ;;  %v7846_v50 = vsub.f32 1.0, %v1754_v11  ;;  %v7868_v5 = vsub.f32 %v1178_v61, %v7508_v8  ;;  %v1480_v10 = vsub.f32 %v1185_v55, %v7490_v32  ;;  %v1206_v55 = vsub.f32 %v7346_v28, %v7494_v47  ;;  %v14795_v33 = vld [vmem:[#allocation18_spill] sm:$0xff] }
 0x11f   : > { %14723 = vst [vmem:[#allocation49_spill] sm:$0xff] %v7782_v58  ;;  %931 = vperm.xlu1 %6725, %v373_v56   ;;  %926 = vperm.xlu0 %6724, %v372_v27   ;;  %v1179_v56 = vsub.f32 %v7333_v23, %v7467_v59  ;;  %v1782_v57 = vand.u32 2147483647, %v1494_v39 }
 0x120   : > { %v7791_v1 = vpop.permute.xlu2 %771  ;;  %14724 = vst [vmem:[#allocation50_spill] sm:$0xff] %v7793_v51 }
 0x121   : > { %14725 = vst [vmem:[#allocation51_spill] sm:$0xff] %v7798_v62  ;;  %v7802_v26 = vpop.permute.xlu1 %721  ;;  %v7804_v27 = vpop.permute.xlu0 %716  ;;  %v1474_v23 = vsub.f32 %v1179_v56, %v7490_v32  ;;  %v1756_v56 = vand.u32 2147483647, %v1468_v46  ;;  %v7850_v62 = vsub.f32 %v1200_v14, %v7508_v8  ;;  %v7864_v46 = vsub.f32 1.0, %v1749_v17  ;;  %v379_v14 = vld [vmem:[%s14285_s1 + $0x368] sm:$0xff] }
 0x122   : > { %14726 = vst [vmem:[#allocation52_spill] sm:$0xff] %v7811_v12  ;;  %v1760_v12 = vand.u32 2147483647, %v1472_v45  ;;  %v7875_v11 = vsub.f32 1.0, %v1782_v57  ;;  %v1186_v45 = vsub.f32 %v7348_v29, %v7494_v47  ;;  %v378_v57 = vld [vmem:[%s14285_s1 + $0x360] sm:$0xff] }
 0x123   : > { %14727 = vst [vmem:[#allocation53_spill] sm:$0xff] %v7829_v3  ;;  %v1762_v39 = vand.u32 2147483647, %v1474_v23  ;;  %v7878_v17 = vsub.f32 1.0, %v1756_v56  ;;  %v1211_v56 = vsub.f32 %v7361_v34, %v7467_v59  ;;  %v1768_v29 = vand.u32 2147483647, %v1480_v10 }
 0x124   : > { %14728 = vst [vmem:[#allocation54_spill] sm:$0xff] %v7834_v16  ;;  %v7899_v3 = vsub.f32 1.0, %v1760_v12  ;;  %v1212_v12 = vsub.f32 %v7361_v34, %v7494_v47  ;;  %v1189_v10 = vsub.f32 %v7365_v36, %v7467_v59  ;;  %v1192_v34 = vsub.f32 %v7363_v35, %v7494_v47  ;;  %v14767_v16 = vld [vmem:[#allocation4_spill] sm:$0xff] }
 0x125   : > { %14729 = vst [vmem:[#allocation55_spill] sm:$0xff] %v7837_v15  ;;  %v7896_v61 = vsub.f32 1.0, %v1762_v39  ;;  %v1190_v39 = vsub.f32 %v7365_v36, %v7494_v47  ;;  %v1217_v36 = vsub.f32 %v7376_v42, %v7467_v59 }
 0x126   : > { %951 = vperm.xlu2 %6726, %v377_v9   ;;  %14730 = vst [vmem:[#allocation56_spill] sm:$0xff] %v7846_v50  ;;  %v1239_v50 = vsub.f32 %v14795_v33, %v7467_v59 }
 0x127   : > { %946 = vperm.xlu1 %6725, %v376_v60   ;;  %941 = vperm.xlu0 %6724, %v375_v49   ;;  %14731 = vst [vmem:[#allocation57_spill] sm:$0xff] %v7850_v62  ;;  %v1500_v49 = vsub.f32 %v1205_v22, %v7490_v32  ;;  %v1478_v22 = vsub.f32 %v1183_v25, %v7490_v32 }
 0x128   : > { %14732 = vst [vmem:[#allocation58_spill] sm:$0xff] %v7853_v24  ;;  %v7855_v9 = vpop.permute.xlu2 %786  ;;  %v1184_v25 = vsub.f32 %v7350_v30, %v7494_v47  ;;  %v1191_v62 = vsub.f32 %v7363_v35, %v7467_v59  ;;  %v7935_v30 = vsub.f32 1.0, %v1768_v29  ;;  %v7949_v29 = vsub.f32 %v1212_v12, %v7508_v8 }
 0x129   : > { %v7858_v51 = vpop.permute.xlu1 %736  ;;  %v7860_v60 = vpop.permute.xlu0 %731  ;;  %14733 = vst [vmem:[#allocation59_spill] sm:$0xff] %v7864_v46  ;;  %v1788_v28 = vand.u32 2147483647, %v1500_v49  ;;  %v1766_v15 = vand.u32 2147483647, %v1478_v22  ;;  %v7907_v49 = vsub.f32 %v1206_v55, %v7508_v8  ;;  %v7963_v12 = vsub.f32 %v1192_v34, %v7508_v8 }
 0x12a   : > { %14734 = vst [vmem:[#allocation60_spill] sm:$0xff] %v7868_v5  ;;  %v1195_v5 = vsub.f32 %v7380_v44, %v7467_v59  ;;  %v1512_v34 = vsub.f32 %v1217_v36, %v7490_v32 }
 0x12b   : > { %14735 = vst [vmem:[#allocation61_spill] sm:$0xff] %v7875_v11  ;;  %v7927_v24 = vsub.f32 1.0, %v1788_v28  ;;  %v1486_v28 = vsub.f32 %v1191_v62, %v7490_v32  ;;  %v7943_v55 = vsub.f32 1.0, %v1766_v15  ;;  %v1484_v15 = vsub.f32 %v1189_v10, %v7490_v32 }
 0x12c   : > { %14736 = vst [vmem:[#allocation62_spill] sm:$0xff] %v7878_v17  ;;  %v382_v17 = vld [vmem:[%s14285_s1 + $0x380] sm:$0xff]  ;;  %v1204_v10 = vsub.f32 %v7397_v53, %v7494_v47 }
 0x12d   : > { %14737 = vst [vmem:[#allocation63_spill] sm:$0xff] %v7896_v61  ;;  %v381_v61 = vld [vmem:[%s14285_s1 + $0x378] sm:$0xff]  ;;  %v1774_v62 = vand.u32 2147483647, %v1486_v28 }
 0x12e   : > { %966 = vperm.xlu2 %6726, %v380_v18   ;;  %14738 = vst [vmem:[#allocation64_spill] sm:$0xff] %v7899_v3  ;;  %v7910_v18 = vsub.f32 %v1186_v45, %v7508_v8  ;;  %v1506_v45 = vsub.f32 %v1211_v56, %v7490_v32  ;;  %v383_v56 = vld [vmem:[%s14285_s1 + $0x388] sm:$0xff]  ;;  %v1772_v3 = vand.u32 2147483647, %v1484_v15  ;;  %v1201_v15 = vsub.f32 %v7399_v54, %v7467_v59 }
 0x12f   : > { %961 = vperm.xlu1 %6725, %v379_v14   ;;  %956 = vperm.xlu0 %6724, %v378_v57   ;;  %14739 = vst [vmem:[#allocation65_spill] sm:$0xff] %v7907_v49  ;;  %v7919_v14 = vsub.f32 %v1184_v25, %v7508_v8  ;;  %v1197_v25 = vsub.f32 %v7378_v43, %v7467_v59 }
 0x130   : > { %14740 = vst [vmem:[#allocation66_spill] sm:$0xff] %v7910_v18  ;;  %v7916_v23 = vpop.permute.xlu2 %801  ;;  %v1794_v35 = vand.u32 2147483647, %v1506_v45  ;;  %v7966_v49 = vsub.f32 %v1190_v39, %v7508_v8  ;;  %v1490_v45 = vsub.f32 %v1195_v5, %v7490_v32  ;;  %v1218_v39 = vsub.f32 %v7376_v42, %v7494_v47 }
 0x131   : > { %14741 = vst [vmem:[#allocation67_spill] sm:$0xff] %v7919_v14  ;;  %v7921_v22 = vpop.permute.xlu1 %751  ;;  %v7923_v57 = vpop.permute.xlu0 %746  ;;  %v1492_v18 = vsub.f32 %v1197_v25, %v7490_v32  ;;  %v1198_v25 = vsub.f32 %v7378_v43, %v7494_v47  ;;  %v1203_v5 = vsub.f32 %v7397_v53, %v7467_v59  ;;  %v1499_v53 = vsub.f32 %v1204_v10, %v7508_v8  ;;  %v386_v14 = vld [vmem:[%s14285_s1 + $0x3a0] sm:$0xff]  ;;  %v385_v10 = vld [vmem:[%s14285_s1 + $0x398] sm:$0xff] }
 0x132   : > { %14742 = vst [vmem:[#allocation68_spill] sm:$0xff] %v7927_v24  ;;  %v7990_v46 = vsub.f32 1.0, %v1794_v35  ;;  %v1778_v36 = vand.u32 2147483647, %v1490_v45  ;;  %v8002_v35 = vsub.f32 1.0, %v1774_v62  ;;  %v8005_v42 = vsub.f32 %v1218_v39, %v7508_v8 }
 0x133   : > { %14743 = vst [vmem:[#allocation69_spill] sm:$0xff] %v7935_v30  ;;  %v8008_v43 = vsub.f32 %v1198_v25, %v7508_v8  ;;  %v8018_v45 = vsub.f32 1.0, %v1772_v3  ;;  %v1498_v39 = vsub.f32 %v1203_v5, %v7490_v32  ;;  %v1800_v25 = vand.u32 2147483647, %v1512_v34 }
 0x134   : > { %14744 = vst [vmem:[#allocation70_spill] sm:$0xff] %v7943_v55  ;;  %v1229_v24 = vsub.f32 %v7416_v0, %v7467_v59  ;;  %v1496_v55 = vsub.f32 %v1201_v15, %v7490_v32  ;;  %v1787_v3 = vand.u32 2147483647, %v1499_v53 }
 0x135   : > { %14745 = vst [vmem:[#allocation71_spill] sm:$0xff] %v7949_v29  ;;  %v1780_v29 = vand.u32 2147483647, %v1492_v18  ;;  %v1224_v18 = vsub.f32 %v7395_v52, %v7494_v47 }
 0x136   : > { %14746 = vst [vmem:[#allocation72_spill] sm:$0xff] %v7963_v12  ;;  %981 = vperm.xlu2 %6726, %v383_v56   ;;  %v1524_v34 = vsub.f32 %v1229_v24, %v7490_v32  ;;  %v1236_v24 = vsub.f32 %v7433_v19, %v7494_v47 }
 0x137   : > { %14747 = vst [vmem:[#allocation73_spill] sm:$0xff] %v7966_v49  ;;  %976 = vperm.xlu1 %6725, %v382_v17   ;;  %971 = vperm.xlu0 %6724, %v381_v61   ;;  %v1196_v17 = vsub.f32 %v7380_v44, %v7494_v47  ;;  %v1223_v44 = vsub.f32 %v7395_v52, %v7467_v59  ;;  %v384_v49 = vld [vmem:[%s14285_s1 + $0x390] sm:$0xff]  ;;  %v8030_v30 = vsub.f32 1.0, %v1780_v29 }
 0x138   : > { %v7979_v56 = vpop.permute.xlu2 %816  ;;  %14748 = vst [vmem:[#allocation74_spill] sm:$0xff] %v7990_v46  ;;  %v1202_v52 = vsub.f32 %v7399_v54, %v7494_v47  ;;  %v8039_v46 = vsub.f32 %v1224_v18, %v7508_v8  ;;  %v1784_v18 = vand.u32 2147483647, %v1496_v55  ;;  %v1230_v55 = vsub.f32 %v7416_v0, %v7494_v47  ;;  %v387_v54 = vld [vmem:[%s14285_s1 + $0x3a8] sm:$0xff] }
 0x139   : > { %v7985_v61 = vpop.permute.xlu1 %766  ;;  %v7987_v28 = vpop.permute.xlu0 %761  ;;  %14749 = vst [vmem:[#allocation75_spill] sm:$0xff] %v8002_v35  ;;  %v8021_v62 = vsub.f32 %v1196_v17, %v7508_v8  ;;  %v8032_v17 = vsub.f32 1.0, %v1778_v36  ;;  %v1518_v5 = vsub.f32 %v1223_v44, %v7490_v32  ;;  %v1786_v36 = vand.u32 2147483647, %v1498_v39  ;;  %v389_v39 = vld [vmem:[%s14285_s1 + $0x3b8] sm:$0xff] }
 0x13a   : > { %14750 = vst [vmem:[#allocation76_spill] sm:$0xff] %v8005_v42  ;;  %v8054_v12 = vsub.f32 %v1202_v52, %v7508_v8  ;;  %v8058_v42 = vsub.f32 1.0, %v1787_v3  ;;  %v388_v3 = vld [vmem:[%s14285_s1 + $0x3b0] sm:$0xff]  ;;  %v1208_v52 = vsub.f32 %v7420_v7, %v7494_v47  ;;  %v1812_v35 = vand.u32 2147483647, %v1524_v34 }
 0x13b   : > { %14751 = vst [vmem:[#allocation77_spill] sm:$0xff] %v8008_v43  ;;  %v1806_v44 = vand.u32 2147483647, %v1518_v5  ;;  %v1210_v5 = vsub.f32 %v7418_v2, %v7494_v47  ;;  %v8082_v0 = vsub.f32 1.0, %v1786_v36  ;;  %v1235_v43 = vsub.f32 %v7433_v19, %v7467_v59 }
 0x13c   : > { %14752 = vst [vmem:[#allocation78_spill] sm:$0xff] %v8018_v45  ;;  %v8088_v45 = vsub.f32 1.0, %v1784_v18  ;;  %v1531_v19 = vsub.f32 %v1236_v24, %v7508_v8  ;;  %v1213_v18 = vsub.f32 %v7437_v21, %v7467_v59 }
 0x13d   : > { %14753 = vst [vmem:[#allocation79_spill] sm:$0xff] %v8021_v62 }
 0x13e   : > { %996 = vperm.xlu2 %6726, %v386_v14   ;;  %14754 = vst [vmem:[#allocation80_spill] sm:$0xff] %v8030_v30  ;;  %v1209_v14 = vsub.f32 %v7418_v2, %v7467_v59  ;;  %v1215_v2 = vsub.f32 %v7435_v20, %v7467_v59 }
 0x13f   : > { %991 = vperm.xlu1 %6725, %v385_v10   ;;  %986 = vperm.xlu0 %6724, %v384_v49   ;;  %14755 = vst [vmem:[#allocation81_spill] sm:$0xff] %v8032_v17  ;;  %v8051_v10 = vsub.f32 1.0, %v1800_v25  ;;  %v1207_v49 = vsub.f32 %v7420_v7, %v7467_v59  ;;  %v8093_v7 = vsub.f32 1.0, %v1806_v44  ;;  %v8121_v25 = vsub.f32 1.0, %v1812_v35 }
 0x140   : > { %14756 = vst [vmem:[#allocation82_spill] sm:$0xff] %v8039_v46  ;;  %v8043_v29 = vpop.permute.xlu2 %831  ;;  %v1504_v62 = vsub.f32 %v1209_v14, %v7490_v32  ;;  %v8097_v46 = vsub.f32 %v1230_v55, %v7508_v8  ;;  %v8105_v14 = vsub.f32 %v1210_v5, %v7508_v8  ;;  %v1530_v5 = vsub.f32 %v1235_v43, %v7490_v32  ;;  %v391_v43 = vld [vmem:[%s14285_s1 + $0x3c8] sm:$0xff] }
 0x141   : > { %v8046_v15 = vpop.permute.xlu1 %781  ;;  %v8048_v53 = vpop.permute.xlu0 %776  ;;  %14757 = vst [vmem:[#allocation83_spill] sm:$0xff] %v8051_v10  ;;  %v1502_v36 = vsub.f32 %v1207_v49, %v7490_v32  ;;  %v1216_v49 = vsub.f32 %v7435_v20, %v7494_v47  ;;  %v392_v20 = vld [vmem:[%s14285_s1 + $0x3d0] sm:$0xff]  ;;  %v1510_v24 = vsub.f32 %v1215_v2, %v7490_v32  ;;  %v1819_v10 = vand.u32 2147483647, %v1531_v19 }
 0x142   : > { %14758 = vst [vmem:[#allocation84_spill] sm:$0xff] %v8054_v12  ;;  %v1508_v35 = vsub.f32 %v1213_v18, %v7490_v32  ;;  %v1818_v40 = vand.u32 2147483647, %v1530_v5 }
 0x143   : > { %14759 = vst [vmem:[#allocation85_spill] sm:$0xff] %v8058_v42  ;;  %v1790_v42 = vand.u32 2147483647, %v1502_v36  ;;  %v8145_v19 = vsub.f32 %v1216_v49, %v7508_v8  ;;  %v1798_v36 = vand.u32 2147483647, %v1510_v24  ;;  %v8158_v12 = vsub.f32 1.0, %v1819_v10 }
 0x144   : > { %14760 = vst [vmem:[#allocation86_spill] sm:$0xff] %v8082_v0 }
 0x145   : > { %14761 = vst [vmem:[#allocation87_spill] sm:$0xff] %v8088_v45  ;;  %v8156_v49 = vsub.f32 1.0, %v1790_v42  ;;  %v14775_v42 = vld [vmem:[#allocation8_spill] sm:$0xff] }
 0x146   : > { %1011 = vperm.xlu2 %6726, %v389_v39   ;;  %14762 = vst [vmem:[#allocation88_spill] sm:$0xff] %v8093_v7  ;;  %v1792_v39 = vand.u32 2147483647, %v1504_v62  ;;  %v1219_v62 = vsub.f32 %v14767_v16, %v7467_v59  ;;  %v14770_v7 = vld [vmem:[#allocation3_spill] sm:$0xff]  ;;  %v1225_v24 = vsub.f32 %v14775_v42, %v7467_v59 }
 0x147   : > { %1006 = vperm.xlu1 %6725, %v388_v3   ;;  %1001 = vperm.xlu0 %6724, %v387_v54   ;;  %14763 = vst [vmem:[#allocation89_spill] sm:$0xff] %v8097_v46  ;;  %v8108_v54 = vsub.f32 %v1208_v52, %v7508_v8  ;;  %v1221_v3 = vsub.f32 %v7451_v38, %v7467_v59  ;;  %v8187_v46 = vsub.f32 1.0, %v1798_v36 }
 0x148   : > { %v8102_v34 = vpop.permute.xlu2 %846  ;;  %14764 = vst [vmem:[#allocation90_spill] sm:$0xff] %v8105_v14  ;;  %v1214_v52 = vsub.f32 %v7437_v21, %v7494_v47  ;;  %v390_v21 = vld [vmem:[%s14285_s1 + $0x3c0] sm:$0xff]  ;;  %v8139_v17 = vsub.f32 1.0, %v1792_v39  ;;  %v1241_v30 = vsub.f32 %v14770_v7, %v7467_v59  ;;  %v1242_v2 = vsub.f32 %v14770_v7, %v7494_v47  ;;  %v14774_v7 = vld [vmem:[#allocation7_spill] sm:$0xff] }
 0x149   : > { %14765 = vst [vmem:[#allocation91_spill] sm:$0xff] %v8108_v54  ;;  %v8112_v44 = vpop.permute.xlu1 %796  ;;  %v8114_v55 = vpop.permute.xlu0 %791  ;;  %v1516_v18 = vsub.f32 %v1221_v3, %v7490_v32  ;;  %v1514_v5 = vsub.f32 %v1219_v62, %v7490_v32  ;;  %v1220_v62 = vsub.f32 %v14767_v16, %v7494_v47  ;;  %v8202_v36 = vsub.f32 %v1222_v63, %v7508_v8 }
 0x14a   : > { %14766 = vst [vmem:[#allocation92_spill] sm:$0xff] %v8121_v25  ;;  %v8152_v39 = vsub.f32 %v1214_v52, %v7508_v8  ;;  %v1536_v52 = vsub.f32 %v1241_v30, %v7490_v32  ;;  %v8182_v14 = vsub.f32 %v1242_v2, %v7508_v8  ;;  %v394_v30 = vld [vmem:[%s14285_s1 + $0x3e0] sm:$0xff]  ;;  %v393_v2 = vld [vmem:[%s14285_s1 + $0x3d8] sm:$0xff]  ;;  %v1228_v63 = vsub.f32 %v14774_v7, %v7494_v47 }
 0x14b   : > { %14768 = vst [vmem:[#allocation4_spill] sm:$0xff] %v8139_v17  ;;  %v1804_v3 = vand.u32 2147483647, %v1516_v18  ;;  %v1802_v38 = vand.u32 2147483647, %v1514_v5 }
 0x14c   : > { %14769 = vst [vmem:[#allocation93_spill] sm:$0xff] %v8145_v19  ;;  %v395_v19 = vld [vmem:[%s14285_s1 + $0x3e8] sm:$0xff]  ;;  %v1824_v5 = vand.u32 2147483647, %v1536_v52  ;;  %v14792_v52 = vld [vmem:[#allocation16_spill] sm:$0xff] }
 0x14d   : > { %14771 = vst [vmem:[#allocation3_spill] sm:$0xff] %v8152_v39  ;;  %v8212_v58 = vsub.f32 1.0, %v1804_v3  ;;  %v8224_v3 = vsub.f32 1.0, %v1802_v38  ;;  %v14787_v38 = vld [vmem:[#allocation9_spill] sm:$0xff] }
 0x14e   : > { %1026 = vperm.xlu2 %6726, %v392_v20   ;;  %14772 = vst [vmem:[#allocation94_spill] sm:$0xff] %v8156_v49  ;;  %v1796_v20 = vand.u32 2147483647, %v1508_v35  ;;  %v8177_v35 = vsub.f32 1.0, %v1818_v40  ;;  %v14779_v40 = vld [vmem:[#allocation6_spill] sm:$0xff]  ;;  %v1520_v49 = vsub.f32 %v1225_v24, %v7490_v32 }
 0x14f   : > { %1021 = vperm.xlu1 %6725, %v391_v43   ;;  %1016 = vperm.xlu0 %6724, %v390_v21   ;;  %14773 = vst [vmem:[#allocation95_spill] sm:$0xff] %v8158_v12  ;;  %v1227_v43 = vsub.f32 %v14774_v7, %v7467_v59  ;;  %v1247_v18 = vsub.f32 %v14779_v40, %v7467_v59  ;;  %v14784_v24 = vld [vmem:[#allocation10_spill] sm:$0xff] }
 0x150   : > { %v8160_v54 = vpop.permute.xlu2 %861  ;;  %14776 = vst [vmem:[#allocation7_spill] sm:$0xff] %v8177_v35  ;;  %v8199_v39 = vsub.f32 1.0, %v1796_v20  ;;  %v1248_v17 = vsub.f32 %v14779_v40, %v7494_v47  ;;  %v8209_v12 = vsub.f32 %v1220_v62, %v7508_v8  ;;  %v1226_v40 = vsub.f32 %v14775_v42, %v7494_v47 }
 0x151   : > { %v8171_v10 = vpop.permute.xlu1 %811  ;;  %v8173_v21 = vpop.permute.xlu0 %806  ;;  %14777 = vst [vmem:[#allocation8_spill] sm:$0xff] %v8182_v14  ;;  %v1522_v16 = vsub.f32 %v1227_v43, %v7490_v32  ;;  %v1542_v20 = vsub.f32 %v1247_v18, %v7490_v32  ;;  %v1808_v43 = vand.u32 2147483647, %v1520_v49  ;;  %v8243_v18 = vsub.f32 %v1228_v63, %v7508_v8  ;;  %v14791_v49 = vld [vmem:[#allocation11_spill] sm:$0xff]  ;;  %v398_v14 = vld [vmem:[%s14285_s1 + $0x400] sm:$0xff]  ;;  %v397_v63 = vld [vmem:[%s14285_s1 + $0x3f8] sm:$0xff] }
 0x152   : > { %14778 = vst [vmem:[#allocation96_spill] sm:$0xff] %v8187_v46  ;;  %v8230_v25 = vsub.f32 %v1248_v17, %v7508_v8  ;;  %v1253_v46 = vsub.f32 %v14787_v38, %v7467_v59  ;;  %v8246_v17 = vsub.f32 %v1226_v40, %v7508_v8  ;;  %v1254_v7 = vsub.f32 %v14787_v38, %v7494_v47  ;;  %v396_v40 = vld [vmem:[%s14285_s1 + $0x3f0] sm:$0xff] }
 0x153   : > { %14780 = vst [vmem:[#allocation6_spill] sm:$0xff] %v8199_v39  ;;  %v8240_v39 = vsub.f32 1.0, %v1824_v5  ;;  %v1259_v5 = vsub.f32 %v14792_v52, %v7467_v59  ;;  %v1234_v35 = vsub.f32 %v14784_v24, %v7494_v47  ;;  %v8270_v45 = vsub.f32 1.0, %v1808_v43 }
 0x154   : > { %14781 = vst [vmem:[#allocation97_spill] sm:$0xff] %v8202_v36  ;;  %v1830_v36 = vand.u32 2147483647, %v1542_v20  ;;  %v1232_v0 = vsub.f32 %v14791_v49, %v7494_v47 }
 0x155   : > { %14782 = vst [vmem:[#allocation98_spill] sm:$0xff] %v8209_v12 }
 0x156   : > { %1041 = vperm.xlu2 %6726, %v395_v19   ;;  %14783 = vst [vmem:[#allocation99_spill] sm:$0xff] %v8212_v58  ;;  %v1233_v19 = vsub.f32 %v14784_v24, %v7467_v59  ;;  %v8281_v24 = vsub.f32 %v1254_v7, %v7508_v8  ;;  %v8289_v20 = vsub.f32 1.0, %v1830_v36  ;;  %v8292_v58 = vsub.f32 %v1234_v35, %v7508_v8  ;;  %v14799_v7 = vld [vmem:[#allocation19_spill] sm:$0xff] }
 0x157   : > { %1036 = vperm.xlu1 %6725, %v394_v30   ;;  %1031 = vperm.xlu0 %6724, %v393_v2   ;;  %14785 = vst [vmem:[#allocation10_spill] sm:$0xff] %v8224_v3  ;;  %v1810_v2 = vand.u32 2147483647, %v1522_v16  ;;  %v1231_v16 = vsub.f32 %v14791_v49, %v7467_v59  ;;  %v1237_v12 = vsub.f32 %v14799_v7, %v7467_v59 }
 0x158   : > { %v8222_v62 = vpop.permute.xlu2 %876  ;;  %14786 = vst [vmem:[#allocation100_spill] sm:$0xff] %v8230_v25  ;;  %v1528_v38 = vsub.f32 %v1233_v19, %v7490_v32  ;;  %v1548_v19 = vsub.f32 %v1253_v46, %v7490_v32  ;;  %v1554_v46 = vsub.f32 %v1259_v5, %v7490_v32  ;;  %v1240_v36 = vsub.f32 %v14795_v33, %v7494_v47 }
 0x159   : > { %v8232_v42 = vpop.permute.xlu1 %826  ;;  %v8234_v30 = vpop.permute.xlu0 %821  ;;  %14788 = vst [vmem:[#allocation9_spill] sm:$0xff] %v8240_v39  ;;  %v8268_v11 = vsub.f32 1.0, %v1810_v2  ;;  %v1526_v43 = vsub.f32 %v1231_v16, %v7490_v32  ;;  %v1260_v2 = vsub.f32 %v14792_v52, %v7494_v47  ;;  %v1534_v35 = vsub.f32 %v1239_v50, %v7490_v32  ;;  %v401_v52 = vld [vmem:[%s14285_s1 + $0x418] sm:$0xff]  ;;  %v400_v50 = vld [vmem:[%s14285_s1 + $0x410] sm:$0xff] }
 0x15a   : > { %14789 = vst [vmem:[#allocation101_spill] sm:$0xff] %v8243_v18  ;;  %v1836_v5 = vand.u32 2147483647, %v1548_v19  ;;  %v1265_v18 = vsub.f32 %v7608_v37, %v7467_v59  ;;  %v1245_v33 = vsub.f32 %v7616_v31, %v7467_v59  ;;  %v399_v19 = vld [vmem:[%s14285_s1 + $0x408] sm:$0xff]  ;;  %v1842_v25 = vand.u32 2147483647, %v1554_v46 }
 0x15b   : > { %14790 = vst [vmem:[#allocation102_spill] sm:$0xff] %v8246_v17  ;;  %v1238_v17 = vsub.f32 %v14799_v7, %v7494_v47  ;;  %v8317_v16 = vsub.f32 %v1260_v2, %v7508_v8  ;;  %v1532_v39 = vsub.f32 %v1237_v12, %v7490_v32 }
 0x15c   : > { %14793 = vst [vmem:[#allocation11_spill] sm:$0xff] %v8268_v11  ;;  %v8338_v11 = vsub.f32 1.0, %v1836_v5  ;;  %v1560_v12 = vsub.f32 %v1265_v18, %v7490_v32  ;;  %v8352_v5 = vsub.f32 1.0, %v1842_v25  ;;  %v1244_v25 = vsub.f32 %v7618_v41, %v7494_v47 }
 0x15d   : > { %14794 = vst [vmem:[#allocation16_spill] sm:$0xff] %v8270_v45  ;;  %v8336_v45 = vsub.f32 %v1240_v36, %v7508_v8  ;;  %v8341_v46 = vsub.f32 %v1238_v17, %v7508_v8  ;;  %v1540_v17 = vsub.f32 %v1245_v33, %v7490_v32  ;;  %v14809_v33 = vld [vmem:[#allocation35_spill] sm:$0xff] }
 0x15e   : > { %1056 = vperm.xlu2 %6726, %v398_v14   ;;  %14796 = vst [vmem:[#allocation18_spill] sm:$0xff] %v8281_v24  ;;  %v1816_v14 = vand.u32 2147483647, %v1528_v38  ;;  %v8303_v38 = vsub.f32 %v1232_v0, %v7508_v8  ;;  %v1814_v0 = vand.u32 2147483647, %v1526_v43  ;;  %v1243_v43 = vsub.f32 %v7618_v41, %v7467_v59 }
 0x15f   : > { %1051 = vperm.xlu1 %6725, %v397_v63   ;;  %1046 = vperm.xlu0 %6724, %v396_v40   ;;  %14797 = vst [vmem:[#allocation103_spill] sm:$0xff] %v8289_v20  ;;  %v1266_v24 = vsub.f32 %v7608_v37, %v7494_v47  ;;  %v1271_v37 = vsub.f32 %v7670_v48, %v7467_v59  ;;  %v1848_v3 = vand.u32 2147483647, %v1560_v12 }
 0x160   : > { %v8286_v49 = vpop.permute.xlu2 %891  ;;  %14798 = vst [vmem:[#allocation104_spill] sm:$0xff] %v8292_v58  ;;  %v8327_v7 = vsub.f32 1.0, %v1816_v14  ;;  %v1822_v14 = vand.u32 2147483647, %v1534_v35  ;;  %v8345_v2 = vsub.f32 1.0, %v1814_v0  ;;  %v1246_v35 = vsub.f32 %v7616_v31, %v7494_v47  ;;  %v402_v31 = vld [vmem:[%s14285_s1 + $0x420] sm:$0xff] }
 0x161   : > { %v8296_v63 = vpop.permute.xlu1 %841  ;;  %v8298_v40 = vpop.permute.xlu0 %836  ;;  %14800 = vst [vmem:[#allocation19_spill] sm:$0xff] %v8303_v38  ;;  %v1538_v18 = vsub.f32 %v1243_v43, %v7490_v32  ;;  %v8373_v38 = vsub.f32 %v1266_v24, %v7508_v8  ;;  %v404_v43 = vld [vmem:[%s14285_s1 + $0x430] sm:$0xff]  ;;  %v1828_v58 = vand.u32 2147483647, %v1540_v17 }
 0x162   : > { %14801 = vst [vmem:[#allocation105_spill] sm:$0xff] %v8317_v16  ;;  %v8369_v16 = vsub.f32 1.0, %v1822_v14  ;;  %v403_v14 = vld [vmem:[%s14285_s1 + $0x428] sm:$0xff]  ;;  %v8390_v20 = vsub.f32 %v1246_v35, %v7508_v8  ;;  %v1252_v35 = vsub.f32 %v14809_v33, %v7494_v47 }
 0x163   : > { %14802 = vst [vmem:[#allocation106_spill] sm:$0xff] %v8327_v7  ;;  %v1826_v12 = vand.u32 2147483647, %v1538_v18  ;;  %v8396_v7 = vsub.f32 %v1244_v25, %v7508_v8  ;;  %v1257_v18 = vsub.f32 %v7739_v4, %v7467_v59 }
 0x164   : > { %14803 = vst [vmem:[#allocation107_spill] sm:$0xff] %v8336_v45  ;;  %v14812_v45 = vld [vmem:[#allocation36_spill] sm:$0xff] }
 0x165   : > { %14804 = vst [vmem:[#allocation108_spill] sm:$0xff] %v8338_v11  ;;  %v1249_v41 = vsub.f32 %v14812_v45, %v7467_v59 }
 0x166   : > { %1071 = vperm.xlu2 %6726, %v401_v52   ;;  %14805 = vst [vmem:[#allocation109_spill] sm:$0xff] %v8341_v46  ;;  %v1251_v52 = vsub.f32 %v14809_v33, %v7467_v59  ;;  %v8435_v33 = vsub.f32 %v1252_v35, %v7508_v8  ;;  %v405_v35 = vld [vmem:[%s14285_s1 + $0x438] sm:$0xff]  ;;  %v1278_v46 = vsub.f32 %v7732_v13, %v7494_v47 }
 0x167   : > { %1066 = vperm.xlu1 %6725, %v400_v50   ;;  %1061 = vperm.xlu0 %6724, %v399_v19   ;;  %14806 = vst [vmem:[#allocation110_spill] sm:$0xff] %v8345_v2  ;;  %v1820_v19 = vand.u32 2147483647, %v1532_v39  ;;  %v1566_v2 = vsub.f32 %v1271_v37, %v7490_v32  ;;  %v8407_v37 = vsub.f32 1.0, %v1848_v3  ;;  %v1544_v25 = vsub.f32 %v1249_v41, %v7490_v32  ;;  %v14819_v41 = vld [vmem:[#allocation21_spill] sm:$0xff] }
 0x168   : > { %v8349_v36 = vpop.permute.xlu2 %906  ;;  %14808 = vst [vmem:[#allocation112_spill] sm:$0xff] %v8352_v5  ;;  %v1546_v24 = vsub.f32 %v1251_v52, %v7490_v32  ;;  %v1255_v52 = vsub.f32 %v7741_v6, %v7467_v59  ;;  %v8423_v3 = vsub.f32 1.0, %v1826_v12  ;;  %v1277_v12 = vsub.f32 %v7732_v13, %v7467_v59 }
 0x169   : > { %14807 = vst [vmem:[#allocation111_spill] sm:$0xff] %v8349_v36  ;;  %v8359_v0 = vpop.permute.xlu1 %856  ;;  %v8361_v50 = vpop.permute.xlu0 %851  ;;  %v8392_v39 = vsub.f32 1.0, %v1820_v19  ;;  %v1272_v36 = vsub.f32 %v7670_v48, %v7494_v47  ;;  %v1250_v48 = vsub.f32 %v14812_v45, %v7494_v47  ;;  %v1854_v45 = vand.u32 2147483647, %v1566_v2  ;;  %v407_v2 = vld [vmem:[%s14285_s1 + $0x448] sm:$0xff] }
 0x16a   : > { %14810 = vst [vmem:[#allocation35_spill] sm:$0xff] %v8369_v16  ;;  %v1834_v16 = vand.u32 2147483647, %v1546_v24  ;;  %v1258_v5 = vsub.f32 %v7739_v4, %v7494_v47  ;;  %v1289_v13 = vsub.f32 %v7855_v9, %v7467_v59 }
 0x16b   : > { %14811 = vst [vmem:[#allocation113_spill] sm:$0xff] %v8373_v38  ;;  %v8428_v38 = vsub.f32 %v1272_v36, %v7508_v8  ;;  %v1552_v36 = vsub.f32 %v1257_v18, %v7490_v32  ;;  %v8445_v24 = vsub.f32 %v1250_v48, %v7508_v8  ;;  %v1263_v18 = vsub.f32 %v7802_v26, %v7467_v59 }
 0x16c   : > { %14813 = vst [vmem:[#allocation36_spill] sm:$0xff] %v8390_v20  ;;  %v8460_v20 = vsub.f32 1.0, %v1854_v45  ;;  %v1572_v48 = vsub.f32 %v1277_v12, %v7490_v32 }
 0x16d   : > { %14814 = vst [vmem:[#allocation114_spill] sm:$0xff] %v8392_v39  ;;  %v1840_v45 = vand.u32 2147483647, %v1552_v36  ;;  %v1558_v12 = vsub.f32 %v1263_v18, %v7490_v32  ;;  %v410_v18 = vld [vmem:[%s14285_s1 + $0x460] sm:$0xff]  ;;  %v409_v39 = vld [vmem:[%s14285_s1 + $0x458] sm:$0xff] }
 0x16e   : > { %14815 = vst [vmem:[#allocation115_spill] sm:$0xff] %v8396_v7  ;;  %1086 = vperm.xlu2 %6726, %v404_v43   ;;  %v8416_v43 = vsub.f32 1.0, %v1828_v58  ;;  %v14820_v58 = vand.u32 2147483647, %v14819_v41  ;;  %v406_v41 = vld [vmem:[%s14285_s1 + $0x440] sm:$0xff]  ;;  %v1261_v7 = vsub.f32 %v7804_v27, %v7467_v59 }
 0x16f   : > { %1081 = vperm.xlu1 %6725, %v403_v14   ;;  %1076 = vperm.xlu0 %6724, %v402_v31   ;;  %14817 = vst [vmem:[#allocation117_spill] sm:$0xff] %v8423_v3  ;;  %v1832_v31 = vand.u32 2147483647, %v1544_v25  ;;  %v8467_v25 = vsub.f32 1.0, %v1834_v16  ;;  %v8480_v16 = vsub.f32 %v1278_v46, %v7508_v8  ;;  %v1284_v46 = vsub.f32 %v7791_v1, %v7494_v47 }
 0x170   : > { %v8413_v19 = vpop.permute.xlu2 %921  ;;  %14816 = vst [vmem:[#allocation116_spill] sm:$0xff] %v8416_v43  ;;  %v8432_v11 = vsub.f32 1.0, %v14820_v58  ;;  %v1550_v58 = vsub.f32 %v1255_v52, %v7490_v32  ;;  %v1256_v52 = vsub.f32 %v7741_v6, %v7494_v47  ;;  %v1556_v6 = vsub.f32 %v1261_v7, %v7490_v32 }
 0x171   : > { %v8419_v17 = vpop.permute.xlu1 %871  ;;  %v8421_v14 = vpop.permute.xlu0 %866  ;;  %14818 = vst [vmem:[#allocation118_spill] sm:$0xff] %v8428_v38  ;;  %v8476_v3 = vsub.f32 1.0, %v1832_v31  ;;  %v8527_v43 = vsub.f32 %v1284_v46, %v7508_v8  ;;  %v1295_v46 = vsub.f32 %v7916_v23, %v7467_v59 }
 0x172   : > { %14821 = vst [vmem:[#allocation21_spill] sm:$0xff] %v8432_v11  ;;  %v1838_v4 = vand.u32 2147483647, %v1550_v58  ;;  %v8491_v58 = vsub.f32 %v1258_v5, %v7508_v8  ;;  %v8494_v31 = vsub.f32 %v1256_v52, %v7508_v8  ;;  %v1860_v5 = vand.u32 2147483647, %v1572_v48 }
 0x173   : > { %14822 = vst [vmem:[#allocation119_spill] sm:$0xff] %v8435_v33  ;;  %v1264_v52 = vsub.f32 %v7802_v26, %v7494_v47  ;;  %v1268_v26 = vsub.f32 %v7860_v60, %v7494_v47  ;;  %v1844_v48 = vand.u32 2147483647, %v1556_v6  ;;  %v1270_v11 = vsub.f32 %v7858_v51, %v7494_v47 }
 0x174   : > { %14823 = vst [vmem:[#allocation120_spill] sm:$0xff] %v8445_v24  ;;  %v408_v24 = vld [vmem:[%s14285_s1 + $0x450] sm:$0xff]  ;;  %v8517_v33 = vsub.f32 1.0, %v1838_v4  ;;  %v1267_v4 = vsub.f32 %v7860_v60, %v7467_v59 }
 0x175   : > { %14824 = vst [vmem:[#allocation121_spill] sm:$0xff] %v8460_v20 }
 0x176   : > { %1101 = vperm.xlu2 %6726, %v407_v2   ;;  %14825 = vst [vmem:[#allocation122_spill] sm:$0xff] %v8467_v25  ;;  %v1283_v2 = vsub.f32 %v7791_v1, %v7467_v59  ;;  %v1262_v1 = vsub.f32 %v7804_v27, %v7494_v47  ;;  %v1562_v7 = vsub.f32 %v1267_v4, %v7490_v32  ;;  %v412_v4 = vld [vmem:[%s14285_s1 + $0x470] sm:$0xff] }
 0x177   : > { %1096 = vperm.xlu1 %6725, %v406_v41   ;;  %1091 = vperm.xlu0 %6724, %v405_v35   ;;  %14826 = vst [vmem:[#allocation123_spill] sm:$0xff] %v8476_v3  ;;  %v8505_v35 = vsub.f32 1.0, %v1840_v45  ;;  %v1846_v45 = vand.u32 2147483647, %v1558_v12  ;;  %v1584_v12 = vsub.f32 %v1289_v13, %v7490_v32  ;;  %v1563_v13 = vsub.f32 %v1268_v26, %v7508_v8  ;;  %v413_v26 = vld [vmem:[%s14285_s1 + $0x478] sm:$0xff]  ;;  %v411_v3 = vld [vmem:[%s14285_s1 + $0x468] sm:$0xff] }
 0x178   : > { %v8474_v38 = vpop.permute.xlu2 %936  ;;  %14827 = vst [vmem:[#allocation124_spill] sm:$0xff] %v8480_v16  ;;  %v1578_v27 = vsub.f32 %v1283_v2, %v7490_v32  ;;  %v8533_v16 = vsub.f32 1.0, %v1860_v5  ;;  %v8536_v2 = vsub.f32 %v1264_v52, %v7508_v8  ;;  %v8539_v20 = vsub.f32 %v1262_v1, %v7508_v8 }
 0x179   : > { %v8484_v41 = vpop.permute.xlu1 %886  ;;  %v8486_v36 = vpop.permute.xlu0 %881  ;;  %14828 = vst [vmem:[#allocation125_spill] sm:$0xff] %v8491_v58  ;;  %v8553_v5 = vsub.f32 1.0, %v1846_v45  ;;  %v8566_v45 = vsub.f32 1.0, %v1844_v48  ;;  %v1590_v48 = vsub.f32 %v1295_v46, %v7490_v32  ;;  %v1851_v1 = vand.u32 2147483647, %v1563_v13 }
 0x17a   : > { %14829 = vst [vmem:[#allocation126_spill] sm:$0xff] %v8494_v31  ;;  %v1866_v52 = vand.u32 2147483647, %v1578_v27  ;;  %v1872_v27 = vand.u32 2147483647, %v1584_v12  ;;  %v1276_v46 = vsub.f32 %v7921_v22, %v7494_v47 }
 0x17b   : > { %14830 = vst [vmem:[#allocation127_spill] sm:$0xff] %v8517_v33 }
 0x17c   : > { %14831 = vst [vmem:[#allocation128_spill] sm:$0xff] %v8527_v43  ;;  %v1269_v43 = vsub.f32 %v7858_v51, %v7467_v59  ;;  %v8584_v58 = vsub.f32 1.0, %v1866_v52  ;;  %v8587_v51 = vsub.f32 %v1270_v11, %v7508_v8  ;;  %v8595_v13 = vsub.f32 1.0, %v1872_v27 }
 0x17d   : > { %14832 = vst [vmem:[#allocation129_spill] sm:$0xff] %v8533_v16  ;;  %v1274_v11 = vsub.f32 %v7923_v57, %v7494_v47  ;;  %v1279_v27 = vsub.f32 %v7987_v28, %v7467_v59 }
 0x17e   : > { %1116 = vperm.xlu2 %6726, %v410_v18   ;;  %14833 = vst [vmem:[#allocation130_spill] sm:$0xff] %v8536_v2  ;;  %v1850_v2 = vand.u32 2147483647, %v1562_v7 }
 0x17f   : > { %1111 = vperm.xlu1 %6725, %v409_v39   ;;  %1106 = vperm.xlu0 %6724, %v408_v24   ;;  %14834 = vst [vmem:[#allocation131_spill] sm:$0xff] %v8539_v20  ;;  %v1290_v24 = vsub.f32 %v7855_v9, %v7494_v47  ;;  %v1275_v39 = vsub.f32 %v7921_v22, %v7467_v59 }
 0x180   : > { %v8543_v60 = vpop.permute.xlu2 %951  ;;  %v1273_v9 = vsub.f32 %v7923_v57, %v7467_v59  ;;  %14836 = vst [vmem:[#allocation133_spill] sm:$0xff] %v8584_v58  ;;  %v1296_v20 = vsub.f32 %v7916_v23, %v7494_v47  ;;  %v1281_v23 = vsub.f32 %v7985_v61, %v7467_v59  ;;  %v8626_v25 = vsub.f32 %v1274_v11, %v7508_v8 }
 0x181   : > { %v8549_v6 = vpop.permute.xlu1 %901  ;;  %v8551_v18 = vpop.permute.xlu0 %896  ;;  %v8581_v12 = vsub.f32 %v1290_v24, %v7508_v8  ;;  %14837 = vst [vmem:[#allocation134_spill] sm:$0xff] %v8587_v51  ;;  %v1570_v16 = vsub.f32 %v1275_v39, %v7490_v32  ;;  %v1878_v39 = vand.u32 2147483647, %v1590_v48  ;;  %v8619_v48 = vsub.f32 1.0, %v1850_v2 }
 0x182   : > { %14838 = vst [vmem:[#allocation135_spill] sm:$0xff] %v8595_v13  ;;  %v1568_v52 = vsub.f32 %v1273_v9, %v7490_v32  ;;  %v8617_v31 = vsub.f32 %v1296_v20, %v7508_v8  ;;  %v1576_v57 = vsub.f32 %v1281_v23, %v7490_v32  ;;  %v1301_v2 = vsub.f32 %v7979_v56, %v7467_v59 }
 0x183   : > { %14835 = vst [vmem:[#allocation132_spill] sm:$0xff] %v8581_v12  ;;  %v8628_v33 = vsub.f32 1.0, %v1878_v39  ;;  %v1282_v11 = vsub.f32 %v7985_v61, %v7494_v47  ;;  %v7046_v39 = vmov 1   ;;  %v1280_v22 = vsub.f32 %v7987_v28, %v7494_v47 }
 0x184   : > { %14840 = vst [vmem:[#allocation137_spill] sm:$0xff] %v8617_v31  ;;  %v1856_v12 = vand.u32 2147483647, %v1568_v52  ;;  %v6733_v52 = vld [vmem:[%s14285_s1 + $0x70] sm:$0xff]  ;;  %v1864_v23 = vand.u32 2147483647, %v1576_v57  ;;  %v1285_v61 = vsub.f32 %v8048_v53, %v7467_v59  ;;  %v1596_v57 = vsub.f32 %v1301_v2, %v7490_v32 }
 0x185   : > { %14842 = vst [vmem:[#allocation139_spill] sm:$0xff] %v8626_v25  ;;  %v1288_v20 = vsub.f32 %v8046_v15, %v7494_v47  ;;  %v1307_v31 = vsub.f32 %v8043_v29, %v7467_v59  ;;  %v1293_v58 = vsub.f32 %v8112_v44, %v7467_v59  ;;  %v6736_v2 = vld [vmem:[%s14285_s1 + $0x68] sm:$0xff] }
 0x186   : > { %1131 = vperm.xlu2 %6726, %v413_v26   ;;  %v1564_v26 = vsub.f32 %v1269_v43, %v7490_v32  ;;  %v1858_v43 = vand.u32 2147483647, %v1570_v16  ;;  %v1302_v16 = vsub.f32 %v7979_v56, %v7494_v47  ;;  %v1287_v56 = vsub.f32 %v8046_v15, %v7467_v59 }
 0x187   : > { %1126 = vperm.xlu1 %6725, %v412_v4   ;;  %1121 = vperm.xlu0 %6724, %v411_v3   ;;  %v8606_v3 = vsub.f32 1.0, %v1851_v1  ;;  %v8622_v1 = vsub.f32 %v1276_v46, %v7508_v8  ;;  %v1574_v46 = vsub.f32 %v1279_v27, %v7490_v32  ;;  %v8648_v27 = vsub.f32 1.0, %v1856_v12 }
 0x188   : > { %v8602_v7 = vpop.permute.xlu2 %966  ;;  %v1852_v24 = vand.u32 2147483647, %v1564_v26  ;;  %v8641_v26 = vsub.f32 1.0, %v1858_v43  ;;  %v6734_v43 = vld [vmem:[%s14285_s1 + $0x78] sm:$0xff]  ;;  %v8663_v12 = vsub.f32 %v1302_v16, %v7508_v8  ;;  %v1308_v16 = vsub.f32 %v8043_v29, %v7494_v47 }
 0x189   : > { %14839 = vst [vmem:[#allocation136_spill] sm:$0xff] %v8606_v3  ;;  %v8610_v4 = vpop.permute.xlu1 %916  ;;  %v8612_v9 = vpop.permute.xlu0 %911  ;;  %v1862_v25 = vand.u32 2147483647, %v1574_v46  ;;  %v1582_v46 = vsub.f32 %v1287_v56, %v7490_v32  ;;  %v1291_v15 = vsub.f32 %v8114_v55, %v7467_v59  ;;  %v1884_v56 = vand.u32 2147483647, %v1596_v57 }
 0x18a   : > { %14841 = vst [vmem:[#allocation138_spill] sm:$0xff] %v8622_v1  ;;  %v8696_v1 = vsub.f32 1.0, %v1864_v23  ;;  %v8708_v3 = vsub.f32 %v1288_v20, %v7508_v8  ;;  %v1602_v13 = vsub.f32 %v1307_v31, %v7490_v32  ;;  %v6737_v20 = vld [vmem:[%s14285_s1 + $0xf8] sm:$0xff]  ;;  %v1588_v23 = vsub.f32 %v1293_v58, %v7490_v32 }
 0x18b   : > { %14843 = vst [vmem:[#allocation140_spill] sm:$0xff] %v8641_v26  ;;  %v8699_v26 = vsub.f32 1.0, %v1862_v25  ;;  %v1870_v25 = vand.u32 2147483647, %v1582_v46  ;;  %v1586_v46 = vsub.f32 %v1291_v15, %v7490_v32  ;;  %v8738_v58 = vsub.f32 1.0, %v1884_v56 }
 0x18c   : > { %14844 = vst [vmem:[#allocation141_spill] sm:$0xff] %v8648_v27  ;;  %v1299_v15 = vsub.f32 %v8171_v10, %v7467_v59  ;;  %v1876_v31 = vand.u32 2147483647, %v1588_v23  ;;  %v1320_v23 = vsub.f32 %v8160_v54, %v7494_v47 }
 0x18d   : > { %14846 = vst [vmem:[#allocation143_spill] sm:$0xff] %v8663_v12  ;;  %v1890_v12 = vand.u32 2147483647, %v1602_v13 }
 0x18e   : > { %6729 = vset.pattern.permute.xlu2 %v7046_v39  ;;  %14849 = vst [vmem:[#allocation146_spill] sm:$0xff] %v8696_v1 }
 0x18f   : > { %6728 = vset.pattern.permute.xlu1 %v7046_v39  ;;  %6727 = vset.pattern.permute.xlu0 %v7046_v39  ;;  %v8660_v39 = vsub.f32 1.0, %v1852_v24  ;;  %v8676_v24 = vsub.f32 %v1282_v11, %v7508_v8  ;;  %v1286_v11 = vsub.f32 %v8048_v53, %v7494_v47  ;;  %14850 = vst [vmem:[#allocation147_spill] sm:$0xff] %v8699_v26  ;;  %v8774_v56 = vsub.f32 1.0, %v1890_v12 }
 0x190   : > { %2645 = vperm.xlu2 %6729, %v6733_v52   ;;  %2649 = vperm.xlu1 %6728, %v6734_v43   ;;  %v8657_v28 = vpop.permute.xlu2 %981  ;;  %v6735_v52 = vld [vmem:[%s14285_s1] sm:$0xff]  ;;  %v8705_v53 = vsub.f32 %v1308_v16, %v7508_v8  ;;  %14852 = vst [vmem:[#allocation149_spill] sm:$0xff] %v8708_v3 }
 0x191   : > { %14845 = vst [vmem:[#allocation142_spill] sm:$0xff] %v8660_v39  ;;  %2589 = vperm.xlu0 %6727, %v6735_v52   ;;  %v8670_v51 = vpop.permute.xlu1 %931  ;;  %v8672_v43 = vpop.permute.xlu0 %926  ;;  %v8684_v52 = vsub.f32 %v1280_v22, %v7508_v8  ;;  %v1580_v22 = vsub.f32 %v1285_v61, %v7490_v32  ;;  %v1313_v61 = vsub.f32 %v8102_v34, %v7467_v59 }
 0x192   : > { %14847 = vst [vmem:[#allocation144_spill] sm:$0xff] %v8676_v24  ;;  %v8715_v57 = vsub.f32 %v1286_v11, %v7508_v8  ;;  %v1314_v11 = vsub.f32 %v8102_v34, %v7494_v47  ;;  %v1294_v34 = vsub.f32 %v8112_v44, %v7494_v47  ;;  %v8748_v24 = vsub.f32 1.0, %v1870_v25  ;;  %v6740_v25 = vld [vmem:[%s14285_s1 + $0x60] sm:$0xff] }
 0x193   : > { %14848 = vst [vmem:[#allocation145_spill] sm:$0xff] %v8684_v52  ;;  %v1292_v52 = vsub.f32 %v8114_v55, %v7494_v47  ;;  %v1297_v55 = vsub.f32 %v8173_v21, %v7467_v59 }
 0x194   : > { %14851 = vst [vmem:[#allocation148_spill] sm:$0xff] %v8705_v53  ;;  %v1874_v53 = vand.u32 2147483647, %v1586_v46  ;;  %v8755_v44 = vsub.f32 %v1314_v11, %v7508_v8  ;;  %v1325_v11 = vsub.f32 %v8222_v62, %v7467_v59 }
 0x195   : > { %14853 = vst [vmem:[#allocation150_spill] sm:$0xff] %v8715_v57  ;;  %v8766_v13 = vsub.f32 %v1292_v52, %v7508_v8  ;;  %v6739_v52 = vld [vmem:[%s14285_s1 + $0xe8] sm:$0xff] }
 0x196   : > { %14854 = vst [vmem:[#allocation151_spill] sm:$0xff] %v8738_v58  ;;  %v8789_v12 = vsub.f32 1.0, %v1874_v53 }
 0x197   : > { %14855 = vst [vmem:[#allocation152_spill] sm:$0xff] %v8748_v24 }
 0x198   : > { %2641 = vperm.xlu2 %6729, %v6736_v2   ;;  %2713 = vperm.xlu1 %6728, %v6737_v20   ;;  %v8723_v16 = vpop.permute.xlu2 %996  ;;  %v6738_v2 = vld [vmem:[%s14285_s1 + $0xf0] sm:$0xff]  ;;  %v1868_v20 = vand.u32 2147483647, %v1580_v22  ;;  %v1608_v22 = vsub.f32 %v1313_v61, %v7490_v32  ;;  %14856 = vst [vmem:[#allocation153_spill] sm:$0xff] %v8755_v44  ;;  %v8763_v61 = vsub.f32 %v1294_v34, %v7508_v8 }
 0x199   : > { %2709 = vperm.xlu0 %6727, %v6738_v2   ;;  %v8733_v27 = vpop.permute.xlu1 %946  ;;  %v8735_v29 = vpop.permute.xlu0 %941  ;;  %v1300_v2 = vsub.f32 %v8171_v10, %v7494_v47  ;;  %14859 = vst [vmem:[#allocation156_spill] sm:$0xff] %v8766_v13  ;;  %v1319_v10 = vsub.f32 %v8160_v54, %v7467_v59  ;;  %v1298_v34 = vsub.f32 %v8173_v21, %v7494_v47 }
 0x19a   : > { %v8759_v3 = vsub.f32 1.0, %v1868_v20  ;;  %14858 = vst [vmem:[#allocation155_spill] sm:$0xff] %v8763_v61  ;;  %v1896_v20 = vand.u32 2147483647, %v1608_v22  ;;  %v8787_v22 = vsub.f32 1.0, %v1876_v31  ;;  %v8806_v44 = vsub.f32 %v1320_v23, %v7508_v8 }
 0x19b   : > { %v1595_v46 = vsub.f32 %v1300_v2, %v7508_v8  ;;  %14860 = vst [vmem:[#allocation157_spill] sm:$0xff] %v8774_v56  ;;  %v1594_v2 = vsub.f32 %v1299_v15, %v7490_v32  ;;  %v1592_v15 = vsub.f32 %v1297_v55, %v7490_v32  ;;  %v1614_v58 = vsub.f32 %v1319_v10, %v7490_v32 }
 0x19c   : > { %14857 = vst [vmem:[#allocation154_spill] sm:$0xff] %v8759_v3  ;;  %v8811_v26 = vsub.f32 1.0, %v1896_v20  ;;  %v8815_v55 = vsub.f32 %v1298_v34, %v7508_v8  ;;  %v1303_v23 = vsub.f32 %v8234_v30, %v7467_v59  ;;  %v1332_v10 = vsub.f32 %v8286_v49, %v7494_v47 }
 0x19d   : > { %14861 = vst [vmem:[#allocation158_spill] sm:$0xff] %v8787_v22  ;;  %v1883_v39 = vand.u32 2147483647, %v1595_v46  ;;  %v1882_v31 = vand.u32 2147483647, %v1594_v2  ;;  %v1620_v20 = vsub.f32 %v1325_v11, %v7490_v32  ;;  %v1326_v34 = vsub.f32 %v8222_v62, %v7494_v47  ;;  %v6742_v62 = vld [vmem:[%s14285_s1 + $0x50] sm:$0xff] }
 0x19e   : > { %14862 = vst [vmem:[#allocation159_spill] sm:$0xff] %v8789_v12  ;;  %v1880_v46 = vand.u32 2147483647, %v1592_v15  ;;  %v1331_v2 = vsub.f32 %v8286_v49, %v7467_v59  ;;  %v1902_v1 = vand.u32 2147483647, %v1614_v58  ;;  %v1306_v21 = vsub.f32 %v8232_v42, %v7494_v47  ;;  %v6743_v49 = vld [vmem:[%s14285_s1 + $0xe0] sm:$0xff] }
 0x19f   : > { %14863 = vst [vmem:[#allocation160_spill] sm:$0xff] %v8806_v44  ;;  %v8829_v53 = vsub.f32 1.0, %v1883_v39  ;;  %v1311_v61 = vsub.f32 %v8296_v63, %v7467_v59  ;;  %v1304_v13 = vsub.f32 %v8234_v30, %v7494_v47  ;;  %v8847_v39 = vsub.f32 1.0, %v1882_v31  ;;  %v6744_v30 = vld [vmem:[%s14285_s1 + $0xd8] sm:$0xff] }
 0x1a0   : > { %2705 = vperm.xlu2 %6729, %v6739_v52   ;;  %2637 = vperm.xlu1 %6728, %v6740_v25   ;;  %v8784_v54 = vpop.permute.xlu2 %1011  ;;  %v6741_v52 = vld [vmem:[%s14285_s1 + $0x58] sm:$0xff]  ;;  %14864 = vst [vmem:[#allocation161_spill] sm:$0xff] %v8811_v26  ;;  %v8858_v44 = vsub.f32 1.0, %v1880_v46  ;;  %v8862_v31 = vsub.f32 %v1326_v34, %v7508_v8  ;;  %v1626_v58 = vsub.f32 %v1331_v2, %v7490_v32  ;;  %v8867_v56 = vsub.f32 1.0, %v1902_v1 }
 0x1a1   : > { %2633 = vperm.xlu0 %6727, %v6741_v52   ;;  %v8797_v57 = vpop.permute.xlu1 %961  ;;  %v8799_v25 = vpop.permute.xlu0 %956  ;;  %v1305_v52 = vsub.f32 %v8232_v42, %v7467_v59  ;;  %14865 = vst [vmem:[#allocation162_spill] sm:$0xff] %v8815_v55  ;;  %v1598_v55 = vsub.f32 %v1303_v23, %v7490_v32  ;;  %v8871_v26 = vsub.f32 %v1306_v21, %v7508_v8 }
 0x1a2   : > { %14866 = vst [vmem:[#allocation163_spill] sm:$0xff] %v8829_v53  ;;  %v1606_v46 = vsub.f32 %v1311_v61, %v7490_v32  ;;  %v8875_v23 = vsub.f32 %v1304_v13, %v7508_v8  ;;  %v1312_v34 = vsub.f32 %v8296_v63, %v7494_v47  ;;  %v1310_v3 = vsub.f32 %v8298_v40, %v7494_v47  ;;  %v6747_v63 = vld [vmem:[%s14285_s1 + $0x40] sm:$0xff] }
 0x1a3   : > { %v1600_v15 = vsub.f32 %v1305_v52, %v7490_v32  ;;  %v1627_v52 = vsub.f32 %v1332_v10, %v7508_v8  ;;  %14867 = vst [vmem:[#allocation164_spill] sm:$0xff] %v8862_v31  ;;  %v1309_v10 = vsub.f32 %v8298_v40, %v7467_v59  ;;  %v1886_v21 = vand.u32 2147483647, %v1598_v55 }
 0x1a4   : > { %14868 = vst [vmem:[#allocation165_spill] sm:$0xff] %v8867_v56  ;;  %v1317_v40 = vsub.f32 %v8359_v0, %v7467_v59  ;;  %v1894_v12 = vand.u32 2147483647, %v1606_v46  ;;  %v8898_v55 = vsub.f32 %v1310_v3, %v7508_v8  ;;  %v6746_v46 = vld [vmem:[%s14285_s1 + $0x48] sm:$0xff] }
 0x1a5   : > { %14869 = vst [vmem:[#allocation166_spill] sm:$0xff] %v8871_v26  ;;  %v1915_v2 = vand.u32 2147483647, %v1627_v52  ;;  %v1604_v24 = vsub.f32 %v1309_v10, %v7490_v32  ;;  %v6745_v10 = vld [vmem:[%s14285_s1 + $0xd0] sm:$0xff]  ;;  %v14876_v3 = vld [vmem:[#allocation111_spill] sm:$0xff] }
 0x1a6   : > { %14870 = vst [vmem:[#allocation167_spill] sm:$0xff] %v8875_v23  ;;  %v1337_v52 = vsub.f32 %v14876_v3, %v7467_v59  ;;  %v1612_v31 = vsub.f32 %v1317_v40, %v7490_v32  ;;  %v8933_v56 = vsub.f32 1.0, %v1894_v12  ;;  %v1316_v12 = vsub.f32 %v8361_v50, %v7494_v47 }
 0x1a7   : > { %14874 = vst [vmem:[#allocation171_spill] sm:$0xff] %v8898_v55  ;;  %v1892_v26 = vand.u32 2147483647, %v1604_v24  ;;  %v1327_v40 = vsub.f32 %v8486_v36, %v7467_v59 }
 0x1a8   : > { %2629 = vperm.xlu2 %6729, %v6742_v62   ;;  %2701 = vperm.xlu1 %6728, %v6743_v49   ;;  %v8845_v42 = vpop.permute.xlu2 %1026  ;;  %v1908_v49 = vand.u32 2147483647, %v1620_v20  ;;  %v1888_v20 = vand.u32 2147483647, %v1600_v15  ;;  %v1914_v15 = vand.u32 2147483647, %v1626_v58  ;;  %v1315_v58 = vsub.f32 %v8361_v50, %v7467_v59 }
 0x1a9   : > { %2697 = vperm.xlu0 %6727, %v6744_v30   ;;  %v8854_v11 = vpop.permute.xlu1 %976  ;;  %v8856_v62 = vpop.permute.xlu0 %971  ;;  %v8922_v30 = vsub.f32 1.0, %v1886_v21  ;;  %14878 = vst [vmem:[#allocation173_spill] sm:$0xff] %v8933_v56  ;;  %v8943_v22 = vsub.f32 %v1337_v52, %v7490_v32  ;;  %v1900_v24 = vand.u32 2147483647, %v1612_v31  ;;  %v6749_v31 = vld [vmem:[%s14285_s1 + $0xc8] sm:$0xff]  ;;  %v8976_v55 = vsub.f32 %v1316_v12, %v7508_v8 }
 0x1aa   : > { %v8883_v53 = vsub.f32 1.0, %v1908_v49  ;;  %v8891_v1 = vsub.f32 1.0, %v1888_v20  ;;  %v8895_v49 = vsub.f32 %v1312_v34, %v7508_v8  ;;  %v8910_v34 = vsub.f32 1.0, %v1915_v2 }
 0x1ab   : > { %14877 = vst [vmem:[#allocation111_spill] sm:$0xff] %v8922_v30  ;;  %v1338_v2 = vsub.f32 %v14876_v3, %v7494_v47  ;;  %v8928_v23 = vsub.f32 1.0, %v1914_v15  ;;  %v1318_v3 = vsub.f32 %v8359_v0, %v7494_v47  ;;  %v1610_v15 = vsub.f32 %v1315_v58, %v7490_v32 }
 0x1ac   : > { %14871 = vst [vmem:[#allocation168_spill] sm:$0xff] %v8883_v53  ;;  %v8953_v0 = vsub.f32 1.0, %v1892_v26  ;;  %v1329_v58 = vsub.f32 %v8484_v41, %v7467_v59  ;;  %v6748_v26 = vld [vmem:[%s14285_s1 + $0x38] sm:$0xff]  ;;  %v1344_v53 = vsub.f32 %v8413_v19, %v7494_v47  ;;  %v1322_v12 = vsub.f32 %v8421_v14, %v7494_v47 }
 0x1ad   : > { %14872 = vst [vmem:[#allocation169_spill] sm:$0xff] %v8891_v1  ;;  %v8949_v13 = vsub.f32 %v1338_v2, %v7508_v8  ;;  %v8960_v50 = vsub.f32 %v1318_v3, %v7508_v8  ;;  %v1343_v2 = vsub.f32 %v8413_v19, %v7467_v59  ;;  %v8996_v1 = vsub.f32 1.0, %v1900_v24 }
 0x1ae   : > { %14873 = vst [vmem:[#allocation170_spill] sm:$0xff] %v8895_v49  ;;  %v1324_v49 = vsub.f32 %v8419_v17, %v7494_v47  ;;  %v9008_v19 = vsub.f32 %v1344_v53, %v7508_v8  ;;  %v1330_v24 = vsub.f32 %v8484_v41, %v7494_v47 }
 0x1af   : > { %14875 = vst [vmem:[#allocation172_spill] sm:$0xff] %v8910_v34 }
 0x1b0   : > { %2693 = vperm.xlu2 %6729, %v6745_v10   ;;  %2625 = vperm.xlu1 %6728, %v6746_v46   ;;  %v8908_v20 = vpop.permute.xlu2 %1041  ;;  %v1323_v46 = vsub.f32 %v8419_v17, %v7467_v59  ;;  %14879 = vst [vmem:[#allocation174_spill] sm:$0xff] %v8943_v22  ;;  %v1349_v17 = vsub.f32 %v8474_v38, %v7467_v59 }
 0x1b1   : > { %2621 = vperm.xlu0 %6727, %v6747_v63   ;;  %v8917_v61 = vpop.permute.xlu1 %991  ;;  %v8919_v10 = vpop.permute.xlu0 %986  ;;  %v1321_v63 = vsub.f32 %v8421_v14, %v7467_v59  ;;  %14880 = vst [vmem:[#allocation175_spill] sm:$0xff] %v8949_v13  ;;  %v1624_v22 = vsub.f32 %v1329_v58, %v7490_v32  ;;  %v1622_v13 = vsub.f32 %v1327_v40, %v7490_v32 }
 0x1b2   : > { %v1618_v21 = vsub.f32 %v1323_v46, %v7490_v32  ;;  %14881 = vst [vmem:[#allocation176_spill] sm:$0xff] %v8953_v0  ;;  %v9011_v58 = vsub.f32 %v1324_v49, %v7508_v8  ;;  %v9045_v41 = vsub.f32 %v1330_v24, %v7508_v8  ;;  %v6753_v49 = vld [vmem:[%s14285_s1 + $0x28] sm:$0xff]  ;;  %v1356_v24 = vsub.f32 %v8543_v60, %v7494_v47 }
 0x1b3   : > { %v1616_v52 = vsub.f32 %v1321_v63, %v7490_v32  ;;  %14882 = vst [vmem:[#allocation177_spill] sm:$0xff] %v8960_v50  ;;  %v1898_v63 = vand.u32 2147483647, %v1610_v15  ;;  %v1350_v15 = vsub.f32 %v8474_v38, %v7494_v47  ;;  %v1328_v38 = vsub.f32 %v8486_v36, %v7494_v47  ;;  %v6752_v36 = vld [vmem:[%s14285_s1 + $0x30] sm:$0xff] }
 0x1b4   : > { %14883 = vst [vmem:[#allocation178_spill] sm:$0xff] %v8976_v55  ;;  %v1906_v3 = vand.u32 2147483647, %v1618_v21  ;;  %v1912_v53 = vand.u32 2147483647, %v1624_v22  ;;  %v1335_v55 = vsub.f32 %v8549_v6, %v7467_v59  ;;  %v1361_v50 = vsub.f32 %v8602_v7, %v7467_v59 }
 0x1b5   : > { %v1904_v34 = vand.u32 2147483647, %v1616_v52  ;;  %v9004_v14 = vsub.f32 1.0, %v1898_v63  ;;  %14885 = vst [vmem:[#allocation180_spill] sm:$0xff] %v9008_v19  ;;  %v9024_v63 = vsub.f32 %v1349_v17, %v7490_v32  ;;  %v9031_v52 = vsub.f32 %v1350_v15, %v7508_v8 }
 0x1b6   : > { %14886 = vst [vmem:[#allocation181_spill] sm:$0xff] %v9011_v58  ;;  %v9021_v40 = vsub.f32 1.0, %v1906_v3  ;;  %v9058_v17 = vsub.f32 %v1328_v38, %v7508_v8  ;;  %v1336_v38 = vsub.f32 %v8549_v6, %v7494_v47  ;;  %v1333_v3 = vsub.f32 %v8551_v18, %v7467_v59 }
 0x1b7   : > { %14888 = vst [vmem:[#allocation183_spill] sm:$0xff] %v9024_v63  ;;  %v9026_v21 = vsub.f32 1.0, %v1904_v34  ;;  %v1910_v34 = vand.u32 2147483647, %v1622_v13  ;;  %v9086_v6 = vsub.f32 %v1356_v24, %v7508_v8  ;;  %v1341_v15 = vsub.f32 %v8610_v4, %v7467_v59  ;;  %v6757_v63 = vld [vmem:[%s14285_s1 + $0xa0] sm:$0xff] }
 0x1b8   : > { %2617 = vperm.xlu2 %6729, %v6748_v26   ;;  %2689 = vperm.xlu1 %6728, %v6749_v31   ;;  %v8972_v46 = vpop.permute.xlu2 %1056  ;;  %v6750_v26 = vld [vmem:[%s14285_s1 + $0xc0] sm:$0xff]  ;;  %14889 = vst [vmem:[#allocation184_spill] sm:$0xff] %v9031_v52  ;;  %v1339_v52 = vsub.f32 %v8612_v9, %v7467_v59  ;;  %v9101_v24 = vsub.f32 %v1336_v38, %v7508_v8 }
 0x1b9   : > { %2685 = vperm.xlu0 %6727, %v6750_v26   ;;  %v8985_v31 = vpop.permute.xlu1 %1006  ;;  %v8987_v30 = vpop.permute.xlu0 %1001  ;;  %v8999_v26 = vsub.f32 %v1343_v2, %v7490_v32  ;;  %v9017_v2 = vsub.f32 %v1322_v12, %v7508_v8  ;;  %v6751_v12 = vld [vmem:[%s14285_s1 + $0xb8] sm:$0xff]  ;;  %14890 = vst [vmem:[#allocation185_spill] sm:$0xff] %v9045_v41  ;;  %v6756_v41 = vld [vmem:[%s14285_s1 + $0xa8] sm:$0xff]  ;;  %v1348_v38 = vsub.f32 %v8670_v51, %v7494_v47 }
 0x1ba   : > { %14891 = vst [vmem:[#allocation186_spill] sm:$0xff] %v9058_v17  ;;  %v9149_v0 = vsub.f32 %v1339_v52, %v7490_v32  ;;  %v1346_v52 = vsub.f32 %v8672_v43, %v7494_v47 }
 0x1bb   : > { %14884 = vst [vmem:[#allocation179_spill] sm:$0xff] %v8999_v26 }
 0x1bc   : > { %14887 = vst [vmem:[#allocation182_spill] sm:$0xff] %v9017_v2  ;;  %v9104_v2 = vsub.f32 %v1333_v3, %v7490_v32 }
 0x1bd   : > { %14893 = vst [vmem:[#allocation188_spill] sm:$0xff] %v9086_v6 }
 0x1be   : > { %14895 = vst [vmem:[#allocation190_spill] sm:$0xff] %v9101_v24  ;;  %v9171_v24 = vsub.f32 %v1348_v38, %v7508_v8  ;;  %v1354_v38 = vsub.f32 %v8733_v27, %v7494_v47 }
 0x1bf   : > { %14896 = vst [vmem:[#allocation191_spill] sm:$0xff] %v9104_v2 }
 0x1c0   : > { %2681 = vperm.xlu2 %6729, %v6751_v12   ;;  %2613 = vperm.xlu1 %6728, %v6752_v36   ;;  %v9039_v22 = vpop.permute.xlu2 %1071  ;;  %v1355_v12 = vsub.f32 %v8543_v60, %v7467_v59  ;;  %v9074_v60 = vsub.f32 1.0, %v1910_v34  ;;  %v1362_v34 = vsub.f32 %v8602_v7, %v7494_v47  ;;  %v1340_v7 = vsub.f32 %v8612_v9, %v7494_v47 }
 0x1c1   : > { %2609 = vperm.xlu0 %6727, %v6753_v49   ;;  %v9052_v36 = vpop.permute.xlu1 %1021  ;;  %v9054_v13 = vpop.permute.xlu0 %1016  ;;  %v9066_v49 = vsub.f32 1.0, %v1912_v53  ;;  %v1334_v53 = vsub.f32 %v8551_v18, %v7494_v47  ;;  %v1342_v18 = vsub.f32 %v8610_v4, %v7494_v47  ;;  %v6755_v4 = vld [vmem:[%s14285_s1 + $0xb0] sm:$0xff]  ;;  %v9122_v9 = vsub.f32 %v1361_v50, %v7490_v32  ;;  %14902 = vst [vmem:[#allocation197_spill] sm:$0xff] %v9149_v0 }
 0x1c2   : > { %v9078_v19 = vsub.f32 %v1355_v12, %v7490_v32  ;;  %v9093_v12 = vsub.f32 %v1335_v55, %v7490_v32  ;;  %v6754_v55 = vld [vmem:[%s14285_s1 + $0x20] sm:$0xff]  ;;  %v9134_v3 = vsub.f32 %v1362_v34, %v7508_v8  ;;  %v1347_v50 = vsub.f32 %v8670_v51, %v7467_v59  ;;  %14906 = vst [vmem:[#allocation201_spill] sm:$0xff] %v9171_v24 }
 0x1c3   : > { %v9119_v17 = vsub.f32 %v1334_v53, %v7508_v8  ;;  %14898 = vst [vmem:[#allocation193_spill] sm:$0xff] %v9122_v9  ;;  %v9137_v53 = vsub.f32 %v1341_v15, %v7490_v32  ;;  %v9154_v56 = vsub.f32 %v1340_v7, %v7508_v8  ;;  %v1345_v51 = vsub.f32 %v8672_v43, %v7467_v59 }
 0x1c4   : > { %14892 = vst [vmem:[#allocation187_spill] sm:$0xff] %v9078_v19  ;;  %v9146_v19 = vsub.f32 %v1342_v18, %v7508_v8  ;;  %v9168_v7 = vsub.f32 %v1347_v50, %v7490_v32  ;;  %v1374_v43 = vsub.f32 %v8723_v16, %v7494_v47  ;;  %v1353_v50 = vsub.f32 %v8733_v27, %v7467_v59 }
 0x1c5   : > { %14894 = vst [vmem:[#allocation189_spill] sm:$0xff] %v9093_v12  ;;  %v9181_v15 = vsub.f32 %v1345_v51, %v7490_v32  ;;  %v1351_v27 = vsub.f32 %v8735_v29, %v7467_v59  ;;  %v1359_v12 = vsub.f32 %v8797_v57, %v7467_v59 }
 0x1c6   : > { %14897 = vst [vmem:[#allocation192_spill] sm:$0xff] %v9119_v17  ;;  %v9199_v17 = vsub.f32 %v1346_v52, %v7508_v8  ;;  %v1352_v52 = vsub.f32 %v8735_v29, %v7494_v47  ;;  %v9228_v24 = vsub.f32 %v1353_v50, %v7490_v32  ;;  %v9231_v29 = vsub.f32 %v1354_v38, %v7508_v8 }
 0x1c7   : > { %14899 = vst [vmem:[#allocation194_spill] sm:$0xff] %v9134_v3  ;;  %v9220_v3 = vsub.f32 %v1374_v43, %v7508_v8  ;;  %v9237_v2 = vsub.f32 %v1351_v27, %v7490_v32  ;;  %v1357_v38 = vsub.f32 %v8799_v25, %v7467_v59  ;;  %v9273_v51 = vsub.f32 %v1359_v12, %v7490_v32 }
 0x1c8   : > { %2605 = vperm.xlu2 %6729, %v6754_v55   ;;  %2677 = vperm.xlu1 %6728, %v6755_v4   ;;  %v9114_v58 = vpop.permute.xlu2 %1086  ;;  %v1367_v55 = vsub.f32 %v8657_v28, %v7467_v59  ;;  %14900 = vst [vmem:[#allocation195_spill] sm:$0xff] %v9137_v53  ;;  %v9244_v50 = vsub.f32 %v1352_v52, %v7508_v8 }
 0x1c9   : > { %2673 = vperm.xlu0 %6727, %v6756_v41   ;;  %v9129_v4 = vpop.permute.xlu1 %1036  ;;  %v9131_v26 = vpop.permute.xlu0 %1031  ;;  %14901 = vst [vmem:[#allocation196_spill] sm:$0xff] %v9146_v19  ;;  %v1363_v41 = vsub.f32 %v8856_v62, %v7467_v59  ;;  %v1364_v19 = vsub.f32 %v8856_v62, %v7494_v47  ;;  %v1360_v62 = vsub.f32 %v8797_v57, %v7494_v47 }
 0x1ca   : > { %14903 = vst [vmem:[#allocation198_spill] sm:$0xff] %v9154_v56  ;;  %v9161_v18 = vsub.f32 %v1367_v55, %v7490_v32  ;;  %v1373_v55 = vsub.f32 %v8723_v16, %v7467_v59  ;;  %v6758_v16 = vld [vmem:[%s14285_s1 + $0x18] sm:$0xff]  ;;  %v1365_v27 = vsub.f32 %v8854_v11, %v7467_v59 }
 0x1cb   : > { %14905 = vst [vmem:[#allocation200_spill] sm:$0xff] %v9168_v7  ;;  %v1658_v43 = vsub.f32 %v1363_v41, %v7490_v32  ;;  %v1659_v57 = vsub.f32 %v1364_v19, %v7508_v8  ;;  %v6760_v41 = vld [vmem:[%s14285_s1 + $0x98] sm:$0xff] }
 0x1cc   : > { %14904 = vst [vmem:[#allocation199_spill] sm:$0xff] %v9161_v18  ;;  %v9217_v6 = vsub.f32 %v1373_v55, %v7490_v32  ;;  %v1380_v55 = vsub.f32 %v8784_v54, %v7494_v47  ;;  %v1386_v18 = vsub.f32 %v8845_v42, %v7494_v47 }
 0x1cd   : > { %14907 = vst [vmem:[#allocation202_spill] sm:$0xff] %v9181_v15  ;;  %v1397_v15 = vsub.f32 %v8972_v46, %v7467_v59 }
 0x1ce   : > { %14908 = vst [vmem:[#allocation203_spill] sm:$0xff] %v9199_v17  ;;  %v9260_v0 = vsub.f32 %v1380_v55, %v7508_v8  ;;  %v9276_v55 = vsub.f32 %v1360_v62, %v7508_v8  ;;  %v9291_v62 = vsub.f32 %v1357_v38, %v7490_v32  ;;  %v1391_v38 = vsub.f32 %v8908_v20, %v7467_v59 }
 0x1cf   : > { %14909 = vst [vmem:[#allocation204_spill] sm:$0xff] %v9217_v6  ;;  %v1947_v6 = vand.u32 2147483647, %v1659_v57  ;;  %v9311_v53 = vsub.f32 %v1386_v18, %v7508_v8  ;;  %v14924_v57 = vsub.f32 %v8657_v28, %v7494_v47  ;;  %v1370_v28 = vsub.f32 %v8919_v10, %v7494_v47 }
 0x1d0   : > { %2669 = vperm.xlu2 %6729, %v6757_v63   ;;  %2601 = vperm.xlu1 %6728, %v6758_v16   ;;  %v9193_v34 = vpop.permute.xlu2 %1101  ;;  %v6759_v63 = vld [vmem:[%s14285_s1 + $0x10] sm:$0xff]  ;;  %14910 = vst [vmem:[#allocation205_spill] sm:$0xff] %v9220_v3 }
 0x1d1   : > { %2597 = vperm.xlu0 %6727, %v6759_v63   ;;  %v9206_v56 = vpop.permute.xlu1 %1051  ;;  %v9208_v16 = vpop.permute.xlu0 %1046  ;;  %v1379_v63 = vsub.f32 %v8784_v54, %v7467_v59  ;;  %14911 = vst [vmem:[#allocation206_spill] sm:$0xff] %v9228_v24  ;;  %v1358_v54 = vsub.f32 %v8799_v25, %v7494_v47  ;;  %v1385_v25 = vsub.f32 %v8845_v42, %v7467_v59  ;;  %v1946_v42 = vand.u32 2147483647, %v1658_v43 }
 0x1d2   : > { %14912 = vst [vmem:[#allocation207_spill] sm:$0xff] %v9231_v29  ;;  %v9329_v18 = vsub.f32 1.0, %v1947_v6  ;;  %v1372_v43 = vsub.f32 %v8917_v61, %v7494_v47  ;;  %v6763_v6 = vld [vmem:[%s14285_s1 + $0x88] sm:$0xff] }
 0x1d3   : > { %14913 = vst [vmem:[#allocation208_spill] sm:$0xff] %v9237_v2  ;;  %v9254_v17 = vsub.f32 %v1379_v63, %v7490_v32  ;;  %v6761_v63 = vld [vmem:[%s14285_s1 + $0x8] sm:$0xff]  ;;  %v9294_v3 = vsub.f32 %v1358_v54, %v7508_v8  ;;  %v9302_v7 = vsub.f32 %v1385_v25, %v7490_v32  ;;  %v1392_v54 = vsub.f32 %v8908_v20, %v7494_v47 }
 0x1d4   : > { %14914 = vst [vmem:[#allocation209_spill] sm:$0xff] %v9244_v50  ;;  %v9320_v25 = vsub.f32 %v14924_v57, %v7508_v8  ;;  %v9324_v12 = vsub.f32 1.0, %v1946_v42  ;;  %v9337_v57 = vsub.f32 %v1391_v38, %v7490_v32  ;;  %v1369_v42 = vsub.f32 %v8919_v10, %v7467_v59 }
 0x1d5   : > { %14915 = vst [vmem:[#allocation210_spill] sm:$0xff] %v9254_v17  ;;  %v9340_v20 = vsub.f32 %v1392_v54, %v7508_v8  ;;  %v1398_v38 = vsub.f32 %v8972_v46, %v7494_v47  ;;  %v1377_v10 = vsub.f32 %v8985_v31, %v7467_v59  ;;  %v1378_v54 = vsub.f32 %v8985_v31, %v7494_v47  ;;  %v14953_v17 = vld [vmem:[#allocation5_spill] sm:$0xff] }
 0x1d6   : > { %14916 = vst [vmem:[#allocation211_spill] sm:$0xff] %v9260_v0  ;;  %v9386_v31 = vsub.f32 %v1369_v42, %v7490_v32  ;;  %v9389_v0 = vsub.f32 %v1370_v28, %v7508_v8  ;;  %v1383_v28 = vsub.f32 %v9052_v36, %v7467_v59  ;;  %v3458_v2 = vperm.slane %v14953_v17, 1 }
 0x1d7   : > { %14917 = vst [vmem:[#allocation212_spill] sm:$0xff] %v9273_v51  ;;  %v9399_v46 = vsub.f32 %v1398_v38, %v7508_v8  ;;  %v9405_v42 = vsub.f32 %v1378_v54, %v7508_v8  ;;  %v1381_v54 = vsub.f32 %v9054_v13, %v7467_v59 }
 0x1d8   : > { %2665 = vperm.xlu1 %6728, %v6760_v41   ;;  %2593 = vperm.xlu2 %6729, %v6761_v63   ;;  %v9270_v19 = vpop.permute.xlu2 %1116  ;;  %14918 = vst [vmem:[#allocation213_spill] sm:$0xff] %v9276_v55  ;;  %v6762_v41 = vld [vmem:[%s14285_s1 + $0x90] sm:$0xff]  ;;  %v1403_v55 = vsub.f32 %v9039_v22, %v7467_v59 }
 0x1d9   : > { %2661 = vperm.xlu0 %6727, %v6762_v41   ;;  %v9285_v63 = vpop.permute.xlu1 %1066  ;;  %v9287_v52 = vpop.permute.xlu0 %1061  ;;  %14919 = vst [vmem:[#allocation214_spill] sm:$0xff] %v9291_v62  ;;  %v1366_v41 = vsub.f32 %v8854_v11, %v7494_v47  ;;  %v9314_v11 = vsub.f32 %v1365_v27, %v7490_v32  ;;  %v1371_v27 = vsub.f32 %v8917_v61, %v7467_v59  ;;  %v6764_v61 = vld [vmem:[%s14285_s1 + $0x80] sm:$0xff] }
 0x1da   : > { %14920 = vst [vmem:[#allocation215_spill] sm:$0xff] %v9294_v3  ;;  %v9383_v3 = vsub.f32 %v1372_v43, %v7508_v8  ;;  %v9402_v43 = vsub.f32 %v1377_v10, %v7490_v32  ;;  %v9433_v10 = vsub.f32 %v1403_v55, %v7490_v32  ;;  %v9449_v55 = vsub.f32 %v1383_v28, %v7490_v32 }
 0x1db   : > { %14921 = vst [vmem:[#allocation216_spill] sm:$0xff] %v9302_v7  ;;  %v9327_v29 = vsub.f32 %v1366_v41, %v7508_v8  ;;  %v1410_v28 = vsub.f32 %v9114_v58, %v7494_v47 }
 0x1dc   : > { %14922 = vst [vmem:[#allocation217_spill] sm:$0xff] %v9311_v53  ;;  %v9374_v53 = vsub.f32 %v1371_v27, %v7490_v32  ;;  %v9392_v27 = vsub.f32 %v1397_v15, %v7490_v32 }
 0x1dd   : > { %14923 = vst [vmem:[#allocation218_spill] sm:$0xff] %v9314_v11  ;;  %v1382_v11 = vsub.f32 %v9054_v13, %v7494_v47  ;;  %v6768_v13 = vld [vmem:[%s14285_s1 + $0x168] sm:$0xff] }
 0x1de   : > { %14925 = vst [vmem:[#allocation219_spill] sm:$0xff] %v9320_v25  ;;  %v1376_v25 = vsub.f32 %v8987_v30, %v7494_v47 }
 0x1df   : > { %14926 = vst [vmem:[#allocation220_spill] sm:$0xff] %v9327_v29  ;;  %v9464_v38 = vsub.f32 %v1382_v11, %v7508_v8  ;;  %v1388_v11 = vsub.f32 %v9131_v26, %v7494_v47 }
 0x1e0   : > { %14927 = vst [vmem:[#allocation221_spill] sm:$0xff] %v9329_v18  ;;  %2657 = vperm.xlu1 %6728, %v6763_v6   ;;  %2653 = vperm.xlu2 %6729, %v6764_v61   ;;  %v9350_v41 = vpop.permute.xlu2 %1131  ;;  %v6765_v6 = vld [vmem:[%s14285_s1 + $0x178] sm:$0xff]  ;;  %v1421_v18 = vsub.f32 %v9270_v19, %v7467_v59 }
 0x1e1   : > { %14928 = vst [vmem:[#allocation222_spill] sm:$0xff] %v9337_v57  ;;  %2777 = vperm.xlu0 %6727, %v6765_v6   ;;  %v9361_v29 = vpop.permute.xlu1 %1081  ;;  %v9363_v61 = vpop.permute.xlu0 %1076  ;;  %v1375_v6 = vsub.f32 %v8987_v30, %v7467_v59  ;;  %v1404_v30 = vsub.f32 %v9039_v22, %v7494_v47  ;;  %v1384_v22 = vsub.f32 %v9052_v36, %v7494_v47 }
 0x1e2   : > { %14929 = vst [vmem:[#allocation223_spill] sm:$0xff] %v9340_v20  ;;  %v9414_v20 = vsub.f32 %v1376_v25, %v7508_v8  ;;  %v6767_v25 = vld [vmem:[%s14285_s1 + $0x1f8] sm:$0xff]  ;;  %v1390_v36 = vsub.f32 %v9129_v4, %v7494_v47 }
 0x1e3   : > { %14930 = vst [vmem:[#allocation224_spill] sm:$0xff] %v9374_v53  ;;  %v9411_v50 = vsub.f32 %v1375_v6, %v7490_v32  ;;  %v6766_v6 = vld [vmem:[%s14285_s1 + $0x170] sm:$0xff]  ;;  %v9436_v15 = vsub.f32 %v1404_v30, %v7508_v8 }
 0x1e4   : > { %14931 = vst [vmem:[#allocation225_spill] sm:$0xff] %v9383_v3 }
 0x1e5   : > { %14932 = vst [vmem:[#allocation226_spill] sm:$0xff] %v9386_v31  ;;  %v1409_v31 = vsub.f32 %v9114_v58, %v7467_v59  ;;  %v1395_v58 = vsub.f32 %v9206_v56, %v7467_v59 }
 0x1e6   : > { %14933 = vst [vmem:[#allocation227_spill] sm:$0xff] %v9389_v0  ;;  %v1389_v0 = vsub.f32 %v9129_v4, %v7467_v59  ;;  %v14947_v4 = vld [vmem:[#allocation2_spill] sm:$0xff] }
 0x1e7   : > { %14934 = vst [vmem:[#allocation228_spill] sm:$0xff] %v9392_v27  ;;  %v9504_v27 = vsub.f32 %v1390_v36, %v7508_v8  ;;  %v9521_v36 = vsub.f32 %v1388_v11, %v7508_v8 }
 0x1e8   : > { %14935 = vst [vmem:[#allocation229_spill] sm:$0xff] %v9399_v46  ;;  %2773 = vperm.xlu1 %6728, %v6766_v6   ;;  %2841 = vperm.xlu2 %6729, %v6767_v25   ;;  %v9461_v25 = vsub.f32 %v1381_v54, %v7490_v32  ;;  %v1387_v54 = vsub.f32 %v9131_v26, %v7467_v59  ;;  %v3164_v46 = vperm.slane %v14947_v4, 1 }
 0x1e9   : > { %14936 = vst [vmem:[#allocation230_spill] sm:$0xff] %v9402_v43  ;;  %2769 = vperm.xlu0 %6727, %v6768_v13   ;;  %v9441_v6 = vpop.permute.xlu1 %1096  ;;  %v9443_v3 = vpop.permute.xlu0 %1091  ;;  %v9456_v13 = vsub.f32 %v1384_v22, %v7508_v8  ;;  %v9485_v22 = vsub.f32 %v1409_v31, %v7490_v32  ;;  %v9492_v26 = vsub.f32 %v1410_v28, %v7508_v8  ;;  %v6770_v31 = vld [vmem:[%s14285_s1 + $0x160] sm:$0xff] }
 0x1ea   : > { %14937 = vst [vmem:[#allocation231_spill] sm:$0xff] %v9405_v42  ;;  %v9451_v30 = vpop.permute.xlu2 %2645  ;;  %v1396_v42 = vsub.f32 %v9206_v56, %v7494_v47  ;;  %v9495_v53 = vsub.f32 %v1389_v0, %v7490_v32  ;;  %v6769_v56 = vld [vmem:[%s14285_s1 + $0x1f0] sm:$0xff]  ;;  %v1415_v0 = vsub.f32 %v9193_v34, %v7467_v59  ;;  %v1416_v28 = vsub.f32 %v9193_v34, %v7494_v47 }
 0x1eb   : > { %14938 = vst [vmem:[#allocation232_spill] sm:$0xff] %v9411_v50  ;;  %v9532_v50 = vperm.slane %v3164_v46, 1  ;;  %v1401_v46 = vsub.f32 %v9285_v63, %v7467_v59 }
 0x1ec   : > { %14939 = vst [vmem:[#allocation233_spill] sm:$0xff] %v9414_v20 }
 0x1ed   : > { %14940 = vst [vmem:[#allocation234_spill] sm:$0xff] %v9433_v10  ;;  %v9507_v10 = vsub.f32 %v1387_v54, %v7490_v32  ;;  %v1690_v54 = vsub.f32 %v1395_v58, %v7490_v32 }
 0x1ee   : > { %14941 = vst [vmem:[#allocation235_spill] sm:$0xff] %v9436_v15  ;;  %v3165_v15 = vperm.slane %v14947_v4, 5  ;;  %v1691_v4 = vsub.f32 %v1396_v42, %v7508_v8  ;;  %v3459_v42 = vperm.slane %v14953_v17, 5 }
 0x1ef   : > { %14942 = vst [vmem:[#allocation236_spill] sm:$0xff] %v9449_v55  ;;  %v6776_v55 = vld [vmem:[%s14285_s1 + $0x278] sm:$0xff] }
 0x1f0   : > { %14943 = vst [vmem:[#allocation237_spill] sm:$0xff] %v9456_v13  ;;  %2837 = vperm.xlu1 %6728, %v6769_v56   ;;  %2765 = vperm.xlu2 %6729, %v6770_v31   ;;  %v6771_v56 = vld [vmem:[%s14285_s1 + $0x1e8] sm:$0xff]  ;;  %v9534_v43 = vperm.slane %v3165_v15, 1  ;;  %v9543_v13 = vsub.f32 %v1415_v0, %v7490_v32  ;;  %v1978_v15 = vand.u32 2147483647, %v1690_v54  ;;  %v1422_v0 = vsub.f32 %v9270_v19, %v7494_v47  ;;  %v6772_v54 = vld [vmem:[%s14285_s1 + $0x158] sm:$0xff] }
 0x1f1   : > { %14944 = vst [vmem:[#allocation238_spill] sm:$0xff] %v9461_v25  ;;  %2833 = vperm.xlu0 %6727, %v6771_v56   ;;  %v9516_v20 = vpop.permute.xlu1 %1111  ;;  %v9518_v31 = vpop.permute.xlu0 %1106  ;;  %v1394_v56 = vsub.f32 %v9208_v16, %v7494_v47  ;;  %v1979_v11 = vand.u32 2147483647, %v1691_v4  ;;  %v1428_v4 = vsub.f32 %v9350_v41, %v7494_v47  ;;  %v6773_v19 = vld [vmem:[%s14285_s1 + $0x1e0] sm:$0xff] }
 0x1f2   : > { %14945 = vst [vmem:[#allocation239_spill] sm:$0xff] %v9464_v38  ;;  %v1393_v38 = vsub.f32 %v9208_v16, %v7467_v59  ;;  %v9527_v34 = vpop.permute.xlu2 %2641  ;;  %v9546_v16 = vsub.f32 %v1416_v28, %v7508_v8  ;;  %v1427_v28 = vsub.f32 %v9350_v41, %v7467_v59  ;;  %v1402_v41 = vsub.f32 %v9285_v63, %v7494_v47 }
 0x1f3   : > { %14946 = vst [vmem:[#allocation240_spill] sm:$0xff] %v9485_v22  ;;  %v9590_v25 = vsub.f32 1.0, %v1979_v11  ;;  %v1400_v63 = vsub.f32 %v9287_v52, %v7494_v47  ;;  %v9599_v22 = vsub.f32 %v1421_v18, %v7490_v32  ;;  %v9606_v11 = vsub.f32 %v1401_v46, %v7490_v32 }
 0x1f4   : > { %14948 = vst [vmem:[#allocation241_spill] sm:$0xff] %v9492_v26  ;;  %v9550_v58 = vsub.f32 %v1393_v38, %v7490_v32  ;;  %v9553_v26 = vsub.f32 %v1394_v56, %v7508_v8  ;;  %v9565_v38 = vperm.slane %v3459_v42, 1  ;;  %v9573_v56 = vperm.slane %v3458_v2, 1 }
 0x1f5   : > { %14949 = vst [vmem:[#allocation242_spill] sm:$0xff] %v9495_v53  ;;  %v1399_v42 = vsub.f32 %v9287_v52, %v7467_v59  ;;  %v9588_v2 = vsub.f32 1.0, %v1978_v15  ;;  %v1722_v15 = vsub.f32 %v1427_v28, %v7490_v32  ;;  %v1723_v17 = vsub.f32 %v1428_v4, %v7508_v8 }
 0x1f6   : > { %14950 = vst [vmem:[#allocation243_spill] sm:$0xff] %v9504_v27  ;;  %v1407_v52 = vsub.f32 %v9361_v29, %v7467_v59  ;;  %v1405_v46 = vsub.f32 %v9363_v61, %v7467_v59 }
 0x1f7   : > { %14951 = vst [vmem:[#allocation244_spill] sm:$0xff] %v9507_v10  ;;  %v9617_v18 = vsub.f32 %v1399_v42, %v7490_v32  ;;  %v2010_v24 = vand.u32 2147483647, %v1722_v15  ;;  %v2011_v10 = vand.u32 2147483647, %v1723_v17 }
 0x1f8   : > { %14952 = vst [vmem:[#allocation245_spill] sm:$0xff] %v9521_v36  ;;  %2761 = vperm.xlu1 %6728, %v6772_v54   ;;  %2829 = vperm.xlu2 %6729, %v6773_v19   ;;  %v6774_v54 = vld [vmem:[%s14285_s1 + $0x150] sm:$0xff]  ;;  %v9636_v28 = vsub.f32 %v1407_v52, %v7490_v32  ;;  %v9651_v52 = vsub.f32 %v1405_v46, %v7490_v32 }
 0x1f9   : > { %14954 = vst [vmem:[#allocation246_spill] sm:$0xff] %v9543_v13  ;;  %2757 = vperm.xlu0 %6727, %v6774_v54   ;;  %v9584_v36 = vpop.permute.xlu1 %1126  ;;  %v9586_v19 = vpop.permute.xlu0 %1121  ;;  %v9602_v54 = vsub.f32 %v1422_v0, %v7508_v8  ;;  %v3198_v13 = vsub.f32 %v9451_v30, %v9532_v50  ;;  %v1408_v0 = vsub.f32 %v9361_v29, %v7494_v47  ;;  %v9666_v42 = vsub.f32 1.0, %v2010_v24 }
 0x1fa   : > { %14955 = vst [vmem:[#allocation247_spill] sm:$0xff] %v9546_v16  ;;  %v9595_v27 = vpop.permute.xlu2 %2705  ;;  %v9614_v16 = vsub.f32 %v1402_v41, %v7508_v8  ;;  %v3196_v41 = vsub.f32 %v9527_v34, %v9532_v50  ;;  %v1406_v29 = vsub.f32 %v9363_v61, %v7494_v47 }
 0x1fb   : > { %14956 = vst [vmem:[#allocation248_spill] sm:$0xff] %v9550_v58  ;;  %v3492_v15 = vsub.f32 %v3198_v13, %v9573_v56  ;;  %v9648_v17 = vsub.f32 %v1408_v0, %v7508_v8  ;;  %v1414_v13 = vsub.f32 %v9441_v6, %v7494_v47  ;;  %v15057_v58 = vld [vmem:[#allocation27_spill] sm:$0xff] }
 0x1fc   : > { %14957 = vst [vmem:[#allocation249_spill] sm:$0xff] %v9553_v26  ;;  %v9626_v26 = vsub.f32 %v1400_v63, %v7508_v8  ;;  %v6775_v63 = vld [vmem:[%s14285_s1 + $0x1d8] sm:$0xff]  ;;  %v3490_v46 = vsub.f32 %v3196_v41, %v9573_v56  ;;  %v9669_v4 = vsub.f32 %v1406_v29, %v7508_v8  ;;  %v1411_v41 = vsub.f32 %v9443_v3, %v7467_v59 }
 0x1fd   : > { %14958 = vst [vmem:[#allocation250_spill] sm:$0xff] %v9590_v25  ;;  %v3780_v24 = vand.u32 2147483647, %v3492_v15  ;;  %v14978_v25 = vld [vmem:[#allocation56_spill] sm:$0xff] }
 0x1fe   : > { %14959 = vst [vmem:[#allocation251_spill] sm:$0xff] %v9599_v22  ;;  %v1418_v22 = vsub.f32 %v9518_v31, %v7494_v47 }
 0x1ff   : > { %14960 = vst [vmem:[#allocation252_spill] sm:$0xff] %v9602_v54 }
 0x200   : > { %14961 = vst [vmem:[#allocation253_spill] sm:$0xff] %v9606_v11  ;;  %2825 = vperm.xlu1 %6728, %v6775_v63   ;;  %2905 = vperm.xlu2 %6729, %v6776_v55   ;;  %v6777_v63 = vld [vmem:[%s14285_s1 + $0x148] sm:$0xff]  ;;  %v1413_v55 = vsub.f32 %v9441_v6, %v7467_v59  ;;  %v9677_v6 = vsub.f32 1.0, %v2011_v10  ;;  %v9691_v10 = vsub.f32 %v1414_v13, %v7508_v8  ;;  %v6779_v13 = vld [vmem:[%s14285_s1 + $0x270] sm:$0xff] }
 0x201   : > { %14962 = vst [vmem:[#allocation254_spill] sm:$0xff] %v9614_v16  ;;  %2753 = vperm.xlu0 %6727, %v6777_v63   ;;  %v3199_v63 = vsub.f32 %v9451_v30, %v9534_v43  ;;  %v3228_v30 = vsub.f32 %v9595_v27, %v9532_v50  ;;  %v1412_v16 = vsub.f32 %v9443_v3, %v7494_v47  ;;  %v6778_v3 = vld [vmem:[%s14285_s1 + $0x1d0] sm:$0xff] }
 0x202   : > { %14963 = vst [vmem:[#allocation255_spill] sm:$0xff] %v9617_v18  ;;  %v9661_v61 = vpop.permute.xlu2 %2629  ;;  %v9663_v0 = vpop.permute.xlu1 %2649  ;;  %v9688_v11 = vsub.f32 %v1413_v55, %v7490_v32  ;;  %v1419_v55 = vsub.f32 %v9516_v20, %v7467_v59 }
 0x203   : > { %14964 = vst [vmem:[#allocation256_spill] sm:$0xff] %v9626_v26  ;;  %v3200_v7 = vsub.f32 %v9663_v0, %v9532_v50  ;;  %v9675_v26 = vpop.permute.xlu0 %2589  ;;  %v3493_v29 = vsub.f32 %v3199_v63, %v9565_v38  ;;  %v1417_v63 = vsub.f32 %v9518_v31, %v7467_v59 }
 0x204   : > { %14965 = vst [vmem:[#allocation257_spill] sm:$0xff] %v9636_v28  ;;  %v3778_v28 = vand.u32 2147483647, %v3490_v46  ;;  %v4068_v46 = vsub.f32 1.0, %v3780_v24  ;;  %v9721_v24 = vsub.f32 %v1412_v16, %v7508_v8  ;;  %v9736_v16 = vsub.f32 %v1419_v55, %v7490_v32 }
 0x205   : > { %14966 = vst [vmem:[#allocation258_spill] sm:$0xff] %v9648_v17  ;;  %v3494_v18 = vsub.f32 %v3200_v7, %v9573_v56  ;;  %v9700_v7 = vsub.f32 %v1411_v41, %v7490_v32  ;;  %v6780_v41 = vld [vmem:[%s14285_s1 + $0x2f8] sm:$0xff]  ;;  %v9744_v31 = vsub.f32 %v1417_v63, %v7490_v32  ;;  %v14979_v55 = vmax.f32 %v14978_v25, 0.0 }
 0x206   : > { %14967 = vst [vmem:[#allocation259_spill] sm:$0xff] %v9651_v52 }
 0x207   : > { %14968 = vst [vmem:[#allocation260_spill] sm:$0xff] %v9666_v42  ;;  %v3782_v17 = vand.u32 2147483647, %v3494_v18  ;;  %v1420_v18 = vsub.f32 %v9516_v20, %v7494_v47 }
 0x208   : > { %14969 = vst [vmem:[#allocation261_spill] sm:$0xff] %v9669_v4  ;;  %2821 = vperm.xlu1 %6728, %v6778_v3   ;;  %2901 = vperm.xlu2 %6729, %v6779_v13   ;;  %v3522_v3 = vsub.f32 %v3228_v30, %v9573_v56  ;;  %v4066_v4 = vsub.f32 1.0, %v3778_v28  ;;  %v4356_v28 = vmax.f32 %v4068_v46, 0.0 }
 0x209   : > { %14970 = vst [vmem:[#allocation262_spill] sm:$0xff] %v9677_v6  ;;  %2969 = vperm.xlu0 %6727, %v6780_v41   ;;  %v4070_v54 = vsub.f32 1.0, %v3782_v17  ;;  %v3781_v6 = vand.u32 2147483647, %v3493_v29  ;;  %v3197_v17 = vsub.f32 %v9527_v34, %v9534_v43  ;;  %v9741_v29 = vsub.f32 %v1420_v18, %v7508_v8 }
 0x20a   : > { %14971 = vst [vmem:[#allocation263_spill] sm:$0xff] %v9688_v11  ;;  %v9723_v13 = vpop.permute.xlu2 %2693  ;;  %v9725_v20 = vpop.permute.xlu1 %2713  ;;  %v3190_v11 = vsub.f32 %v9661_v61, %v9532_v50  ;;  %v4354_v53 = vmax.f32 %v4066_v4, 0.0  ;;  %v9755_v18 = vsub.f32 %v1418_v22, %v7508_v8  ;;  %v6781_v22 = vld [vmem:[%s14285_s1 + $0x140] sm:$0xff] }
 0x20b   : > { %14972 = vst [vmem:[#allocation264_spill] sm:$0xff] %v9691_v10  ;;  %v3232_v30 = vsub.f32 %v9725_v20, %v9532_v50  ;;  %v9733_v41 = vpop.permute.xlu0 %2709  ;;  %v4358_v52 = vmax.f32 %v4070_v54, 0.0  ;;  %v3810_v10 = vand.u32 2147483647, %v3522_v3  ;;  %v14981_v3 = vld [vmem:[#allocation29_spill] sm:$0xff] }
 0x20c   : > { %14973 = vst [vmem:[#allocation265_spill] sm:$0xff] %v9700_v7  ;;  %v3230_v15 = vsub.f32 %v9733_v41, %v9532_v50  ;;  %v14982_v62 = vmax.f32 %v14981_v3, 0.0 }
 0x20d   : > { %14974 = vst [vmem:[#allocation266_spill] sm:$0xff] %v9721_v24  ;;  %v3526_v34 = vsub.f32 %v3232_v30, %v9573_v56  ;;  %v4646_v42 = vmul.f32 %v4358_v52, %v14979_v55  ;;  %v3491_v30 = vsub.f32 %v3197_v17, %v9565_v38  ;;  %v9760_v52 = vsub.f32 1.0, %v3781_v6  ;;  %v6782_v17 = vld [vmem:[%s14285_s1 + $0x1c8] sm:$0xff]  ;;  %v14983_v55 = vld [vmem:[#allocation48_spill] sm:$0xff] }
 0x20e   : > { %14975 = vst [vmem:[#allocation267_spill] sm:$0xff] %v9736_v16  ;;  %v3524_v57 = vsub.f32 %v3230_v15, %v9573_v56  ;;  %v4644_v51 = vmul.f32 %v4356_v28, %v14982_v62  ;;  %v14984_v3 = vmax.f32 %v14983_v55, 0.0  ;;  %v14985_v62 = vld [vmem:[#allocation86_spill] sm:$0xff] }
 0x20f   : > { %14976 = vst [vmem:[#allocation268_spill] sm:$0xff] %v9741_v29  ;;  %v3814_v63 = vand.u32 2147483647, %v3526_v34  ;;  %5048 = vmatpush.msra.mxu0 %v4646_v42  ;;  %6666 = vmatpush.msra.mxu2 %v4646_v42  ;;  %v4098_v34 = vsub.f32 1.0, %v3810_v10  ;;  %v1425_v10 = vsub.f32 %v9584_v36, %v7467_v59  ;;  %v14986_v4 = vmax.f32 %v14985_v62, 0.0 }
 0x210   : > { %14977 = vst [vmem:[#allocation269_spill] sm:$0xff] %v9744_v31  ;;  %v3812_v25 = vand.u32 2147483647, %v3524_v57  ;;  %2749 = vperm.xlu1 %6728, %v6781_v22   ;;  %2817 = vperm.xlu2 %6729, %v6782_v17   ;;  %v6783_v57 = vld [vmem:[%s14285_s1 + $0x268] sm:$0xff]  ;;  %v4642_v22 = vmul.f32 %v4354_v53, %v14984_v3  ;;  %v3484_v17 = vsub.f32 %v3190_v11, %v9573_v56 }
 0x211   : > { %14980 = vst [vmem:[#allocation56_spill] sm:$0xff] %v9755_v18  ;;  %v4102_v42 = vsub.f32 1.0, %v3814_v63  ;;  %2897 = vperm.xlu0 %6727, %v6783_v57   ;;  %5049 = vmatpush.msra.mxu0 %v4644_v51  ;;  %v1426_v63 = vsub.f32 %v9584_v36, %v7494_v47  ;;  %v1423_v57 = vsub.f32 %v9586_v19, %v7467_v59  ;;  %v3779_v36 = vand.u32 2147483647, %v3491_v30 }
 0x212   : > { %v9774_v6 = vpop.permute.xlu2 %2617  ;;  %v9776_v28 = vpop.permute.xlu1 %2637  ;;  %v4100_v46 = vsub.f32 1.0, %v3812_v25  ;;  %6667 = vmatpush.msra.mxu2 %v4644_v51  ;;  %v1424_v11 = vsub.f32 %v9586_v19, %v7494_v47  ;;  %v3229_v59 = vsub.f32 %v9595_v27, %v9534_v43  ;;  %v4386_v3 = vmax.f32 %v4098_v34, 0.0 }
 0x213   : > { %v3194_v15 = vsub.f32 %v9776_v28, %v9532_v50  ;;  %v9789_v54 = vpop.permute.xlu0 %2633  ;;  %5050 = vmatpush.msra.mxu0 %v4642_v22  ;;  %v4390_v55 = vmax.f32 %v4102_v42, 0.0  ;;  %v3772_v47 = vand.u32 2147483647, %v3484_v17  ;;  %v9803_v19 = vsub.f32 %v1425_v10, %v7490_v32 }
 0x214   : > { %v3192_v25 = vsub.f32 %v9789_v54, %v9532_v50  ;;  %6668 = vmatpush.msra.mxu2 %v4642_v22  ;;  %v4388_v51 = vmax.f32 %v4100_v46, 0.0  ;;  %v9806_v42 = vsub.f32 %v1426_v63, %v7508_v8  ;;  %v9809_v30 = vsub.f32 %v1423_v57, %v7490_v32  ;;  %v6784_v32 = vld [vmem:[%s14285_s1 + $0x2f0] sm:$0xff]  ;;  %v14994_v63 = vld [vmem:[#allocation17_spill] sm:$0xff] }
 0x215   : > { %v4678_v24 = vmul.f32 %v4390_v55, %v14986_v4  ;;  %v3488_v53 = vsub.f32 %v3194_v15, %v9573_v56  ;;  %14987 = vst [vmem:[#allocation29_spill] sm:$0xff] %v9803_v19  ;;  %v3222_v27 = vsub.f32 %v9723_v13, %v9532_v50  ;;  %v9814_v46 = vsub.f32 %v1424_v11, %v7508_v8  ;;  %v14991_v4 = vld [vmem:[#allocation87_spill] sm:$0xff]  ;;  %v6785_v8 = vld [vmem:[%s14285_s1 + $0x138] sm:$0xff] }
 0x216   : > { %v3486_v18 = vsub.f32 %v3192_v25, %v9573_v56  ;;  %14988 = vst [vmem:[#allocation48_spill] sm:$0xff] %v9806_v42  ;;  %v14992_v15 = vmax.f32 %v14991_v4, 0.0  ;;  %v9819_v17 = vsub.f32 %v3229_v59, %v9565_v38  ;;  %v4067_v10 = vsub.f32 1.0, %v3779_v36  ;;  %v14997_v55 = vld [vmem:[#allocation61_spill] sm:$0xff] }
 0x217   : > { %14989 = vst [vmem:[#allocation86_spill] sm:$0xff] %v9809_v30  ;;  %5113 = vmatpush.msra.mxu1 %v4678_v24  ;;  %6682 = vmatpush.msra.mxu3 %v4678_v24  ;;  %v3776_v62 = vand.u32 2147483647, %v3488_v53  ;;  %v4357_v24 = vmax.f32 %v9760_v52, 0.0  ;;  %v14995_v57 = vand.u32 2147483647, %v14994_v63 }
 0x218   : > { %14990 = vst [vmem:[#allocation270_spill] sm:$0xff] %v9814_v46  ;;  %v4676_v34 = vmul.f32 %v4388_v51, %v14992_v15  ;;  %v3774_v22 = vand.u32 2147483647, %v3486_v18  ;;  %2965 = vperm.xlu1 %6728, %v6784_v32   ;;  %2745 = vperm.xlu2 %6729, %v6785_v8   ;;  %v6786_v18 = vld [vmem:[%s14285_s1 + $0x1c0] sm:$0xff]  ;;  %v14998_v59 = vmax.f32 %v14997_v55, 0.0  ;;  %v4060_v36 = vsub.f32 1.0, %v3772_v47 }
 0x219   : > { %14993 = vst [vmem:[#allocation87_spill] sm:$0xff] %v9819_v17  ;;  %v9830_v53 = vsub.f32 1.0, %v14995_v57  ;;  %2813 = vperm.xlu0 %6727, %v6786_v18   ;;  %v4064_v4 = vsub.f32 1.0, %v3776_v62  ;;  %v3516_v57 = vsub.f32 %v3222_v27, %v9573_v56  ;;  %v3201_v62 = vsub.f32 %v9663_v0, %v9534_v43  ;;  %v14999_v18 = vld [vmem:[#allocation49_spill] sm:$0xff]  ;;  %v15004_v0 = vld [vmem:[#allocation32_spill] sm:$0xff] }
 0x21a   : > { %5114 = vmatpush.msra.mxu1 %v4676_v34  ;;  %v9835_v11 = vpop.permute.xlu2 %2681  ;;  %v9837_v25 = vpop.permute.xlu1 %2701  ;;  %v4674_v51 = vmul.f32 %v4386_v3, %v14998_v59  ;;  %v4062_v52 = vsub.f32 1.0, %v3774_v22  ;;  %6683 = vmatpush.msra.mxu3 %v4676_v34  ;;  %v4355_v59 = vmax.f32 %v4067_v10, 0.0  ;;  %v3170_v27 = vsub.f32 %v9675_v26, %v9532_v50 }
 0x21b   : > { %14996 = vst [vmem:[#allocation17_spill] sm:$0xff] %v9830_v53  ;;  %v3226_v8 = vsub.f32 %v9837_v25, %v9532_v50  ;;  %v9845_v63 = vpop.permute.xlu0 %2697  ;;  %v4352_v47 = vmax.f32 %v4064_v4, 0.0  ;;  %v15000_v55 = vmax.f32 %v14999_v18, 0.0  ;;  %v4348_v29 = vmax.f32 %v4060_v36, 0.0  ;;  %v15001_v4 = vld [vmem:[#allocation37_spill] sm:$0xff]  ;;  %v15007_v36 = vld [vmem:[#allocation24_spill] sm:$0xff] }
 0x21c   : > { %v3224_v3 = vsub.f32 %v9845_v63, %v9532_v50  ;;  %5115 = vmatpush.msra.mxu1 %v4674_v51  ;;  %6684 = vmatpush.msra.mxu3 %v4674_v51  ;;  %v4350_v34 = vmax.f32 %v4062_v52, 0.0  ;;  %v3804_v42 = vand.u32 2147483647, %v3516_v57  ;;  %v15002_v7 = vmax.f32 %v15001_v4, 0.0 }
 0x21d   : > { %v3520_v22 = vsub.f32 %v3226_v8, %v9573_v56  ;;  %v4640_v15 = vmul.f32 %v4352_v47, %v15000_v55  ;;  %v15005_v51 = vand.u32 2147483647, %v15004_v0  ;;  %v3191_v10 = vsub.f32 %v9661_v61, %v9534_v43  ;;  %v6788_v61 = vld [vmem:[%s14285_s1 + $0x2e8] sm:$0xff] }
 0x21e   : > { %v3518_v32 = vsub.f32 %v3224_v3, %v9573_v56  ;;  %v9862_v31 = vmul.f32 %v4357_v24, %v15002_v7  ;;  %v3171_v8 = vsub.f32 %v9675_v26, %v9534_v43  ;;  %v15008_v18 = vmax.f32 %v15007_v36, 0.0  ;;  %v6787_v24 = vld [vmem:[%s14285_s1 + $0x260] sm:$0xff]  ;;  %v15011_v36 = vld [vmem:[#allocation53_spill] sm:$0xff] }
 0x21f   : > { %v3808_v46 = vand.u32 2147483647, %v3520_v22  ;;  %v9866_v52 = vsub.f32 1.0, %v15005_v51  ;;  %5051 = vmatpush.msra.mxu0 %v4640_v15  ;;  %6669 = vmatpush.msra.mxu2 %v4640_v15  ;;  %v3495_v7 = vsub.f32 %v3201_v62, %v9565_v38  ;;  %v3464_v51 = vsub.f32 %v3170_v27, %v9573_v56  ;;  %v15014_v15 = vld [vmem:[#allocation33_spill] sm:$0xff] }
 0x220   : > { %15003 = vst [vmem:[#allocation61_spill] sm:$0xff] %v9862_v31  ;;  %v3806_v3 = vand.u32 2147483647, %v3518_v32  ;;  %v4638_v57 = vmul.f32 %v4350_v34, %v15008_v18  ;;  %2893 = vperm.xlu1 %6728, %v6787_v24   ;;  %2961 = vperm.xlu2 %6729, %v6788_v61   ;;  %v6789_v32 = vld [vmem:[%s14285_s1 + $0x130] sm:$0xff]  ;;  %v3184_v24 = vsub.f32 %v9774_v6, %v9532_v50  ;;  %v4092_v55 = vsub.f32 1.0, %v3804_v42 }
 0x221   : > { %15006 = vst [vmem:[#allocation49_spill] sm:$0xff] %v9866_v52  ;;  %v4096_v26 = vsub.f32 1.0, %v3808_v46  ;;  %2741 = vperm.xlu0 %6727, %v6789_v32   ;;  %v15009_v34 = vld [vmem:[#allocation44_spill] sm:$0xff]  ;;  %v15012_v46 = vmax.f32 %v15011_v36, 0.0  ;;  %v9908_v27 = vsub.f32 %v3191_v10, %v9565_v38  ;;  %v3233_v42 = vsub.f32 %v9725_v20, %v9534_v43 }
 0x222   : > { %5052 = vmatpush.msra.mxu0 %v4638_v57  ;;  %v9886_v47 = vpop.permute.xlu2 %2605  ;;  %v9888_v62 = vpop.permute.xlu1 %2625  ;;  %v15010_v22 = vmax.f32 %v15009_v34, 0.0  ;;  %v4094_v0 = vsub.f32 1.0, %v3806_v3  ;;  %6670 = vmatpush.msra.mxu2 %v4638_v57  ;;  %v15015_v34 = vand.u32 2147483647, %v15014_v15  ;;  %v3223_v10 = vsub.f32 %v9723_v13, %v9534_v43 }
 0x223   : > { %v9895_v18 = vmul.f32 %v4355_v59, %v15012_v46  ;;  %v3188_v61 = vsub.f32 %v9888_v62, %v9532_v50  ;;  %v9901_v32 = vpop.permute.xlu0 %2621  ;;  %15017 = vst [vmem:[#allocation24_spill] sm:$0xff] %v9908_v27  ;;  %v9911_v59 = vsub.f32 %v3171_v8, %v9565_v38  ;;  %v4384_v15 = vmax.f32 %v4096_v26, 0.0  ;;  %v15030_v26 = vld [vmem:[#allocation43_spill] sm:$0xff] }
 0x224   : > { %v4636_v4 = vmul.f32 %v4348_v29, %v15010_v22  ;;  %v9905_v29 = vsub.f32 1.0, %v15015_v34  ;;  %v3186_v3 = vsub.f32 %v9901_v32, %v9532_v50  ;;  %v3783_v22 = vand.u32 2147483647, %v3495_v7  ;;  %v15019_v7 = vld [vmem:[#allocation80_spill] sm:$0xff] }
 0x225   : > { %15013 = vst [vmem:[#allocation37_spill] sm:$0xff] %v9895_v18  ;;  %v4382_v36 = vmax.f32 %v4094_v0, 0.0  ;;  %v3482_v8 = vsub.f32 %v3188_v61, %v9573_v56  ;;  %v3752_v34 = vand.u32 2147483647, %v3464_v51  ;;  %v3231_v17 = vsub.f32 %v9733_v41, %v9534_v43  ;;  %v15021_v41 = vld [vmem:[#allocation81_spill] sm:$0xff] }
 0x226   : > { %15016 = vst [vmem:[#allocation32_spill] sm:$0xff] %v9905_v29  ;;  %5053 = vmatpush.msra.mxu0 %v4636_v4  ;;  %6671 = vmatpush.msra.mxu2 %v4636_v4  ;;  %v3480_v46 = vsub.f32 %v3186_v3, %v9573_v56  ;;  %v3478_v57 = vsub.f32 %v3184_v24, %v9573_v56  ;;  %v15020_v16 = vmax.f32 %v15019_v7, 0.0  ;;  %v4380_v20 = vmax.f32 %v4092_v55, 0.0 }
 0x227   : > { %15018 = vst [vmem:[#allocation44_spill] sm:$0xff] %v9911_v59  ;;  %v3216_v13 = vsub.f32 %v9835_v11, %v9532_v50  ;;  %v3527_v51 = vsub.f32 %v3233_v42, %v9565_v38  ;;  %v15022_v24 = vmax.f32 %v15021_v41, 0.0  ;;  %v3770_v7 = vand.u32 2147483647, %v3482_v8  ;;  %v6791_v42 = vld [vmem:[%s14285_s1 + $0x258] sm:$0xff] }
 0x228   : > { %v4672_v30 = vmul.f32 %v4384_v15, %v15020_v16  ;;  %v3768_v61 = vand.u32 2147483647, %v3480_v46  ;;  %v9935_v16 = vsub.f32 1.0, %v3783_v22  ;;  %v9938_v55 = vsub.f32 %v3223_v10, %v9565_v38  ;;  %v6790_v15 = vld [vmem:[%s14285_s1 + $0x1b8] sm:$0xff]  ;;  %2889 = vperm.xlu2 %6729, %v6791_v42   ;;  %v15024_v22 = vld [vmem:[#allocation42_spill] sm:$0xff] }
 0x229   : > { %v4670_v3 = vmul.f32 %v4382_v36, %v15022_v24  ;;  %2809 = vperm.xlu1 %6728, %v6790_v15   ;;  %v9950_v36 = vsub.f32 1.0, %v3752_v34  ;;  %v15025_v8 = vand.u32 2147483647, %v15024_v22  ;;  %v9957_v41 = vsub.f32 %v3231_v17, %v9565_v38  ;;  %v6792_v15 = vld [vmem:[%s14285_s1 + $0x2e0] sm:$0xff] }
 0x22a   : > { %5116 = vmatpush.msra.mxu1 %v4672_v30  ;;  %6685 = vmatpush.msra.mxu3 %v4672_v30  ;;  %15023 = vst [vmem:[#allocation53_spill] sm:$0xff] %v9938_v55  ;;  %v9946_v30 = vpop.permute.xlu2 %2669  ;;  %v9948_v46 = vpop.permute.xlu1 %2689  ;;  %v3766_v24 = vand.u32 2147483647, %v3478_v57  ;;  %v15028_v34 = vld [vmem:[#allocation54_spill] sm:$0xff]  ;;  %v3510_v17 = vsub.f32 %v3216_v13, %v9573_v56  ;;  %v3815_v59 = vand.u32 2147483647, %v3527_v51  ;;  %v3195_v13 = vsub.f32 %v9776_v28, %v9534_v43 }
 0x22b   : > { %v9954_v10 = vsub.f32 1.0, %v15025_v8  ;;  %15027 = vst [vmem:[#allocation80_spill] sm:$0xff] %v9957_v41  ;;  %2957 = vperm.xlu0 %6727, %v6792_v15   ;;  %v3220_v42 = vsub.f32 %v9948_v46, %v9532_v50  ;;  %v9964_v4 = vpop.permute.xlu0 %2685  ;;  %v15029_v0 = vmax.f32 %v15028_v34, 0.0  ;;  %v3185_v8 = vsub.f32 %v9774_v6, %v9534_v43 }
 0x22c   : > { %5117 = vmatpush.msra.mxu1 %v4670_v3  ;;  %6686 = vmatpush.msra.mxu3 %v4670_v3  ;;  %v3218_v57 = vsub.f32 %v9964_v4, %v9532_v50  ;;  %v15031_v15 = vand.u32 2147483647, %v15030_v26  ;;  %v4058_v52 = vsub.f32 1.0, %v3770_v7  ;;  %v4056_v34 = vsub.f32 1.0, %v3768_v61 }
 0x22d   : > { %15026 = vst [vmem:[#allocation33_spill] sm:$0xff] %v9954_v10  ;;  %v4668_v22 = vmul.f32 %v4380_v20, %v15029_v0  ;;  %v3514_v29 = vsub.f32 %v3220_v42, %v9573_v56  ;;  %v4328_v51 = vmax.f32 %v9950_v36, 0.0  ;;  %v3479_v42 = vsub.f32 %v3185_v8, %v9565_v38  ;;  %v6793_v36 = vld [vmem:[%s14285_s1 + $0x128] sm:$0xff] }
 0x22e   : > { %v9975_v19 = vsub.f32 1.0, %v15031_v15  ;;  %v3512_v0 = vsub.f32 %v3218_v57, %v9573_v56  ;;  %v4054_v15 = vsub.f32 1.0, %v3766_v24  ;;  %v3193_v61 = vsub.f32 %v9789_v54, %v9534_v43  ;;  %v6794_v54 = vld [vmem:[%s14285_s1 + $0x1b0] sm:$0xff] }
 0x22f   : > { %5118 = vmatpush.msra.mxu1 %v4668_v22  ;;  %6687 = vmatpush.msra.mxu3 %v4668_v22  ;;  %v3802_v3 = vand.u32 2147483647, %v3514_v29  ;;  %v3798_v7 = vand.u32 2147483647, %v3510_v17  ;;  %v9988_v6 = vsub.f32 1.0, %v3815_v59  ;;  %v4346_v55 = vmax.f32 %v4058_v52, 0.0 }
 0x230   : > { %15032 = vst [vmem:[#allocation81_spill] sm:$0xff] %v9975_v19  ;;  %v3800_v20 = vand.u32 2147483647, %v3512_v0  ;;  %v4344_v28 = vmax.f32 %v4056_v34, 0.0  ;;  %v9991_v22 = vsub.f32 %v3195_v13, %v9565_v38  ;;  %v3178_v29 = vsub.f32 %v9886_v47, %v9532_v50  ;;  %2805 = vperm.xlu2 %6729, %v6794_v54   ;;  %v15034_v17 = vld [vmem:[#allocation45_spill] sm:$0xff]  ;;  %v6795_v13 = vld [vmem:[%s14285_s1 + $0x250] sm:$0xff] }
 0x231   : > { %15033 = vst [vmem:[#allocation42_spill] sm:$0xff] %v9988_v6  ;;  %v4090_v53 = vsub.f32 1.0, %v3802_v3  ;;  %2737 = vperm.xlu1 %6728, %v6793_v36   ;;  %v15035_v57 = vmax.f32 %v15034_v17, 0.0  ;;  %v4342_v36 = vmax.f32 %v4054_v15, 0.0  ;;  %v3767_v26 = vand.u32 2147483647, %v3479_v42 }
 0x232   : > { %v10001_v59 = vpop.permute.xlu1 %2613  ;;  %v10003_v52 = vpop.permute.xlu2 %2593  ;;  %v4088_v24 = vsub.f32 1.0, %v3800_v20  ;;  %v10017_v20 = vsub.f32 %v3193_v61, %v9565_v38  ;;  %v4086_v17 = vsub.f32 1.0, %v3798_v7  ;;  %v3472_v54 = vsub.f32 %v3178_v29, %v9573_v56 }
 0x233   : > { %v4634_v34 = vmul.f32 %v4346_v55, %v15035_v57  ;;  %2885 = vperm.xlu0 %6727, %v6795_v13   ;;  %v3182_v0 = vsub.f32 %v10001_v59, %v9532_v50  ;;  %v10013_v3 = vpop.permute.xlu0 %2609  ;;  %v3217_v55 = vsub.f32 %v9835_v11, %v9534_v43  ;;  %v15037_v57 = vld [vmem:[#allocation20_spill] sm:$0xff]  ;;  %v4378_v10 = vmax.f32 %v4090_v53, 0.0 }
 0x234   : > { %15036 = vst [vmem:[#allocation54_spill] sm:$0xff] %v10017_v20  ;;  %v15038_v13 = vmax.f32 %v15037_v57, 0.0  ;;  %v3180_v15 = vsub.f32 %v10013_v3, %v9532_v50  ;;  %v4376_v19 = vmax.f32 %v4088_v24, 0.0  ;;  %v3225_v11 = vsub.f32 %v9845_v63, %v9534_v43  ;;  %v15041_v57 = vld [vmem:[#allocation75_spill] sm:$0xff] }
 0x235   : > { %5054 = vmatpush.msra.mxu0 %v4634_v34  ;;  %6672 = vmatpush.msra.mxu2 %v4634_v34  ;;  %v3476_v41 = vsub.f32 %v3182_v0, %v9573_v56  ;;  %v3210_v42 = vsub.f32 %v9946_v30, %v9532_v50  ;;  %v4374_v24 = vmax.f32 %v4086_v17, 0.0  ;;  %v10039_v61 = vsub.f32 1.0, %v3767_v26 }
 0x236   : > { %v4632_v8 = vmul.f32 %v4344_v28, %v15038_v13  ;;  %v15039_v28 = vld [vmem:[#allocation39_spill] sm:$0xff]  ;;  %v15042_v13 = vmax.f32 %v15041_v57, 0.0  ;;  %v3474_v29 = vsub.f32 %v3180_v15, %v9573_v56  ;;  %v3511_v63 = vsub.f32 %v3217_v55, %v9565_v38 }
 0x237   : > { %v3764_v7 = vand.u32 2147483647, %v3476_v41  ;;  %v15040_v34 = vmax.f32 %v15039_v28, 0.0  ;;  %15043 = vst [vmem:[#allocation43_spill] sm:$0xff] %v10039_v61  ;;  %v3227_v41 = vsub.f32 %v9837_v25, %v9534_v43  ;;  %v3760_v28 = vand.u32 2147483647, %v3472_v54 }
 0x238   : > { %5055 = vmatpush.msra.mxu0 %v4632_v8  ;;  %6673 = vmatpush.msra.mxu2 %v4632_v8  ;;  %v4666_v27 = vmul.f32 %v4378_v10, %v15042_v13  ;;  %v15044_v8 = vld [vmem:[#allocation26_spill] sm:$0xff]  ;;  %v15048_v13 = vld [vmem:[#allocation13_spill] sm:$0xff]  ;;  %v3799_v6 = vand.u32 2147483647, %v3511_v63  ;;  %v15058_v31 = vand.u32 2147483647, %v15057_v58 }
 0x239   : > { %v4630_v0 = vmul.f32 %v4342_v36, %v15040_v34  ;;  %v15045_v36 = vmax.f32 %v15044_v8, 0.0  ;;  %v15046_v34 = vld [vmem:[#allocation78_spill] sm:$0xff]  ;;  %v4052_v55 = vsub.f32 1.0, %v3764_v7  ;;  %v15049_v53 = vand.u32 2147483647, %v15048_v13 }
 0x23a   : > { %5119 = vmatpush.msra.mxu1 %v4666_v27  ;;  %6688 = vmatpush.msra.mxu3 %v4666_v27  ;;  %v15047_v57 = vmax.f32 %v15046_v34, 0.0  ;;  %v10050_v17 = vpop.permute.xlu1 %2677  ;;  %v10052_v26 = vpop.permute.xlu2 %2653  ;;  %v6796_v27 = vld [vmem:[%s14285_s1 + $0x2d8] sm:$0xff]  ;;  %v6798_v34 = vld [vmem:[%s14285_s1 + $0x1a8] sm:$0xff]  ;;  %v15054_v13 = vld [vmem:[#allocation50_spill] sm:$0xff]  ;;  %v4048_v18 = vsub.f32 1.0, %v3760_v28  ;;  %v10092_v9 = vsub.f32 1.0, %v15058_v31 }
 0x23b   : > { %5056 = vmatpush.msra.mxu0 %v4630_v0  ;;  %6674 = vmatpush.msra.mxu2 %v4630_v0  ;;  %v10046_v10 = vmul.f32 %v4328_v51, %v15045_v36  ;;  %v10056_v25 = vsub.f32 1.0, %v15049_v53  ;;  %v3519_v0 = vsub.f32 %v3225_v11, %v9565_v38  ;;  %v3179_v51 = vsub.f32 %v9886_v47, %v9534_v43  ;;  %v10069_v7 = vpop.permute.xlu0 %2673  ;;  %v15051_v53 = vld [vmem:[#allocation12_spill] sm:$0xff] }
 0x23c   : > { %v4664_v15 = vmul.f32 %v4376_v19, %v15047_v57  ;;  %2953 = vperm.xlu1 %6728, %v6796_v27   ;;  %v6797_v19 = vld [vmem:[%s14285_s1 + $0x120] sm:$0xff]  ;;  %v3214_v54 = vsub.f32 %v10050_v17, %v9532_v50  ;;  %v15052_v11 = vand.u32 2147483647, %v15051_v53  ;;  %v3504_v47 = vsub.f32 %v3210_v42, %v9573_v56  ;;  %2801 = vperm.xlu0 %6727, %v6798_v34  }
 0x23d   : > { %15050 = vst [vmem:[#allocation45_spill] sm:$0xff] %v10056_v25  ;;  %2733 = vperm.xlu2 %6729, %v6797_v19   ;;  %v3762_v36 = vand.u32 2147483647, %v3474_v29  ;;  %v3212_v57 = vsub.f32 %v10069_v7, %v9532_v50  ;;  %v15055_v27 = vmax.f32 %v15054_v13, 0.0  ;;  %v10084_v53 = vsub.f32 %v3227_v41, %v9565_v38 }
 0x23e   : > { %v10073_v8 = vsub.f32 1.0, %v15052_v11  ;;  %5120 = vmatpush.msra.mxu1 %v4664_v15  ;;  %v3187_v42 = vsub.f32 %v9901_v32, %v9534_v43  ;;  %6689 = vmatpush.msra.mxu3 %v4664_v15  ;;  %v3508_v29 = vsub.f32 %v3214_v54, %v9573_v56  ;;  %v4340_v34 = vmax.f32 %v4052_v55, 0.0  ;;  %15059 = vst [vmem:[#allocation75_spill] sm:$0xff] %v10092_v9  ;;  %v15060_v54 = vld [vmem:[#allocation40_spill] sm:$0xff] }
 0x23f   : > { %v4662_v19 = vmul.f32 %v4374_v24, %v15055_v27  ;;  %15056 = vst [vmem:[#allocation39_spill] sm:$0xff] %v10084_v53  ;;  %v3506_v11 = vsub.f32 %v3212_v57, %v9573_v56  ;;  %v3807_v24 = vand.u32 2147483647, %v3519_v0  ;;  %v3473_v63 = vsub.f32 %v3179_v51, %v9565_v38 }
 0x240   : > { %15053 = vst [vmem:[#allocation20_spill] sm:$0xff] %v10073_v8  ;;  %v3189_v41 = vsub.f32 %v9888_v62, %v9534_v43  ;;  %v3796_v13 = vand.u32 2147483647, %v3508_v29  ;;  %v3792_v32 = vand.u32 2147483647, %v3504_v47  ;;  %v15061_v27 = vmax.f32 %v15060_v54, 0.0 }
 0x241   : > { %5121 = vmatpush.msra.mxu1 %v4662_v19  ;;  %6690 = vmatpush.msra.mxu3 %v4662_v19  ;;  %v3794_v15 = vand.u32 2147483647, %v3506_v11  ;;  %v4050_v20 = vsub.f32 1.0, %v3762_v36  ;;  %v10100_v55 = vsub.f32 1.0, %v3799_v6  ;;  %v3481_v31 = vsub.f32 %v3187_v42, %v9565_v38  ;;  %v6799_v6 = vld [vmem:[%s14285_s1 + $0x248] sm:$0xff]  ;;  %v6800_v42 = vld [vmem:[%s14285_s1 + $0x2d0] sm:$0xff] }
 0x242   : > { %v4628_v57 = vmul.f32 %v4340_v34, %v15061_v27  ;;  %v3172_v0 = vsub.f32 %v10003_v52, %v9532_v50  ;;  %v10106_v51 = vpop.permute.xlu1 %2601  ;;  %v10108_v47 = vpop.permute.xlu2 %2841  ;;  %v4336_v19 = vmax.f32 %v4048_v18, 0.0  ;;  %v4084_v36 = vsub.f32 1.0, %v3796_v13  ;;  %v6801_v27 = vld [vmem:[%s14285_s1 + $0x118] sm:$0xff] }
 0x243   : > { %15062 = vst [vmem:[#allocation26_spill] sm:$0xff] %v10100_v55  ;;  %v4338_v62 = vmax.f32 %v4050_v20, 0.0  ;;  %v10110_v29 = vsub.f32 1.0, %v3807_v24  ;;  %v3176_v20 = vsub.f32 %v10106_v51, %v9532_v50  ;;  %v10120_v11 = vpop.permute.xlu0 %2597  ;;  %v4082_v34 = vsub.f32 1.0, %v3794_v15 }
 0x244   : > { %5057 = vmatpush.msra.mxu0 %v4628_v57  ;;  %6675 = vmatpush.msra.mxu2 %v4628_v57  ;;  %v15064_v18 = vand.u32 2147483647, %v9991_v22  ;;  %v3761_v13 = vand.u32 2147483647, %v3473_v63  ;;  %v10127_v54 = vsub.f32 %v3189_v41, %v9565_v38  ;;  %v15066_v57 = vld [vmem:[#allocation15_spill] sm:$0xff]  ;;  %v4080_v58 = vsub.f32 1.0, %v3792_v32 }
 0x245   : > { %15063 = vst [vmem:[#allocation78_spill] sm:$0xff] %v10110_v29  ;;  %2881 = vperm.xlu1 %6728, %v6799_v6   ;;  %2949 = vperm.xlu2 %6729, %v6800_v42   ;;  %v15067_v6 = vmax.f32 %v15066_v57, 0.0  ;;  %v3769_v28 = vand.u32 2147483647, %v3481_v31  ;;  %v3211_v15 = vsub.f32 %v9946_v30, %v9534_v43  ;;  %v3470_v22 = vsub.f32 %v3176_v20, %v9573_v56  ;;  %v15079_v29 = vld [vmem:[#allocation30_spill] sm:$0xff] }
 0x246   : > { %v10124_v24 = vsub.f32 1.0, %v15064_v18  ;;  %15065 = vst [vmem:[#allocation13_spill] sm:$0xff] %v10127_v54  ;;  %2729 = vperm.xlu0 %6727, %v6801_v27   ;;  %v3174_v63 = vsub.f32 %v10120_v11, %v9532_v50  ;;  %v3221_v41 = vsub.f32 %v9948_v46, %v9534_v43  ;;  %v3466_v18 = vsub.f32 %v3172_v0, %v9573_v56  ;;  %v15068_v27 = vld [vmem:[#allocation14_spill] sm:$0xff]  ;;  %v15070_v46 = vld [vmem:[#allocation69_spill] sm:$0xff] }
 0x247   : > { %v4626_v42 = vmul.f32 %v4338_v62, %v15067_v6  ;;  %v15069_v57 = vmax.f32 %v15068_v27, 0.0  ;;  %v4372_v32 = vmax.f32 %v4084_v36, 0.0  ;;  %v3219_v30 = vsub.f32 %v9964_v4, %v9534_v43 }
 0x248   : > { %v4370_v20 = vmax.f32 %v4082_v34, 0.0  ;;  %v3758_v53 = vand.u32 2147483647, %v3470_v22  ;;  %v3468_v9 = vsub.f32 %v3174_v63, %v9573_v56  ;;  %v15071_v0 = vmax.f32 %v15070_v46, 0.0  ;;  %v15074_v63 = vld [vmem:[#allocation70_spill] sm:$0xff] }
 0x249   : > { %5058 = vmatpush.msra.mxu0 %v4626_v42  ;;  %6676 = vmatpush.msra.mxu2 %v4626_v42  ;;  %v4624_v62 = vmul.f32 %v4336_v19, %v15069_v57  ;;  %v4368_v61 = vmax.f32 %v4080_v58, 0.0  ;;  %v10152_v36 = vsub.f32 1.0, %v3761_v13  ;;  %v3505_v4 = vsub.f32 %v3211_v15, %v9565_v38  ;;  %v6803_v15 = vld [vmem:[%s14285_s1 + $0x240] sm:$0xff] }
 0x24a   : > { %v4660_v42 = vmul.f32 %v4372_v32, %v15071_v0  ;;  %v10156_v34 = vsub.f32 1.0, %v3769_v28  ;;  %v3515_v22 = vsub.f32 %v3221_v41, %v9565_v38  ;;  %v3754_v57 = vand.u32 2147483647, %v3466_v18  ;;  %v10161_v32 = vpop.permute.xlu1 %2665  ;;  %v10163_v58 = vpop.permute.xlu2 %2765  ;;  %v6802_v28 = vld [vmem:[%s14285_s1 + $0x1a0] sm:$0xff] }
 0x24b   : > { %5059 = vmatpush.msra.mxu0 %v4624_v62  ;;  %6677 = vmatpush.msra.mxu2 %v4624_v62  ;;  %15072 = vst [vmem:[#allocation12_spill] sm:$0xff] %v10152_v36  ;;  %v15075_v62 = vmax.f32 %v15074_v63, 0.0  ;;  %v3513_v13 = vsub.f32 %v3219_v30, %v9565_v38  ;;  %v3202_v0 = vsub.f32 %v10052_v26, %v9532_v50  ;;  %v10176_v18 = vpop.permute.xlu0 %2661  ;;  %v4046_v31 = vsub.f32 1.0, %v3758_v53 }
 0x24c   : > { %15073 = vst [vmem:[#allocation50_spill] sm:$0xff] %v10156_v34  ;;  %5122 = vmatpush.msra.mxu1 %v4660_v42  ;;  %6691 = vmatpush.msra.mxu3 %v4660_v42  ;;  %v3208_v41 = vsub.f32 %v10161_v32, %v9532_v50  ;;  %v6804_v42 = vld [vmem:[%s14285_s1 + $0x2c8] sm:$0xff]  ;;  %v3206_v63 = vsub.f32 %v10176_v18, %v9532_v50  ;;  %v3793_v19 = vand.u32 2147483647, %v3505_v4  ;;  %v4042_v55 = vsub.f32 1.0, %v3754_v57 }
 0x24d   : > { %v4658_v46 = vmul.f32 %v4370_v20, %v15075_v62  ;;  %2797 = vperm.xlu1 %6728, %v6802_v28   ;;  %2877 = vperm.xlu2 %6729, %v6803_v15   ;;  %v3756_v20 = vand.u32 2147483647, %v3468_v9  ;;  %v15076_v62 = vld [vmem:[#allocation47_spill] sm:$0xff]  ;;  %v3183_v6 = vsub.f32 %v10001_v59, %v9534_v43  ;;  %v3173_v9 = vsub.f32 %v10003_v52, %v9534_v43 }
 0x24e   : > { %2945 = vperm.xlu0 %6727, %v6804_v42   ;;  %v15077_v28 = vmax.f32 %v15076_v62, 0.0  ;;  %v3502_v27 = vsub.f32 %v3208_v41, %v9573_v56  ;;  %v3500_v30 = vsub.f32 %v3206_v63, %v9573_v56  ;;  %v3803_v53 = vand.u32 2147483647, %v3515_v22 }
 0x24f   : > { %5123 = vmatpush.msra.mxu1 %v4658_v46  ;;  %6692 = vmatpush.msra.mxu3 %v4658_v46  ;;  %v3181_v59 = vsub.f32 %v10013_v3, %v9534_v43  ;;  %v3496_v52 = vsub.f32 %v3202_v0, %v9573_v56  ;;  %v4334_v41 = vmax.f32 %v4046_v31, 0.0  ;;  %v10198_v42 = vsub.f32 1.0, %v3793_v19 }
 0x250   : > { %v4656_v15 = vmul.f32 %v4368_v61, %v15077_v28  ;;  %v3790_v4 = vand.u32 2147483647, %v3502_v27  ;;  %v3788_v46 = vand.u32 2147483647, %v3500_v30  ;;  %v4044_v28 = vsub.f32 1.0, %v3756_v20 }
 0x251   : > { %15078 = vst [vmem:[#allocation27_spill] sm:$0xff] %v10198_v42  ;;  %v3801_v63 = vand.u32 2147483647, %v3513_v13  ;;  %v3477_v57 = vsub.f32 %v3183_v6, %v9565_v38  ;;  %v3467_v62 = vsub.f32 %v3173_v9, %v9565_v38  ;;  %v15080_v61 = vmax.f32 %v15079_v29, 0.0  ;;  %v6805_v6 = vld [vmem:[%s14285_s1 + $0x110] sm:$0xff]  ;;  %v6806_v29 = vld [vmem:[%s14285_s1 + $0x198] sm:$0xff] }
 0x252   : > { %5124 = vmatpush.msra.mxu1 %v4656_v15  ;;  %6693 = vmatpush.msra.mxu3 %v4656_v15  ;;  %v4332_v36 = vmax.f32 %v4044_v28, 0.0  ;;  %v10204_v8 = vpop.permute.xlu1 %2657  ;;  %v10206_v3 = vpop.permute.xlu2 %2829  ;;  %v4330_v27 = vmax.f32 %v4042_v55, 0.0  ;;  %v4078_v0 = vsub.f32 1.0, %v3790_v4  ;;  %v10208_v30 = vsub.f32 1.0, %v3803_v53  ;;  %v6807_v28 = vld [vmem:[%s14285_s1 + $0x238] sm:$0xff]  ;;  %v15095_v42 = vld [vmem:[#allocation62_spill] sm:$0xff] }
 0x253   : > { %v4622_v22 = vmul.f32 %v4334_v41, %v15080_v61  ;;  %v3475_v31 = vsub.f32 %v3181_v59, %v9565_v38  ;;  %v3204_v19 = vsub.f32 %v10204_v8, %v9532_v50  ;;  %v10219_v13 = vpop.permute.xlu0 %2777  ;;  %v4076_v55 = vsub.f32 1.0, %v3788_v46  ;;  %v15082_v61 = vld [vmem:[#allocation25_spill] sm:$0xff] }
 0x254   : > { %15081 = vst [vmem:[#allocation40_spill] sm:$0xff] %v10208_v30  ;;  %v3215_v20 = vsub.f32 %v10050_v17, %v9534_v43  ;;  %v3784_v15 = vand.u32 2147483647, %v3496_v52  ;;  %v3296_v9 = vsub.f32 %v10108_v47, %v9532_v50  ;;  %v15083_v53 = vmax.f32 %v15082_v61, 0.0 }
 0x255   : > { %2725 = vperm.xlu1 %6728, %v6805_v6   ;;  %2793 = vperm.xlu2 %6729, %v6806_v29   ;;  %v10227_v4 = vsub.f32 1.0, %v3801_v63  ;;  %v3765_v41 = vand.u32 2147483647, %v3477_v57  ;;  %v3498_v46 = vsub.f32 %v3204_v19, %v9573_v56  ;;  %v3264_v17 = vsub.f32 %v10219_v13, %v9532_v50  ;;  %v15092_v29 = vld [vmem:[#allocation38_spill] sm:$0xff] }
 0x256   : > { %5060 = vmatpush.msra.mxu0 %v4622_v22  ;;  %6678 = vmatpush.msra.mxu2 %v4622_v22  ;;  %v4620_v59 = vmul.f32 %v4332_v36, %v15083_v53  ;;  %v3755_v52 = vand.u32 2147483647, %v3467_v62  ;;  %v3203_v22 = vsub.f32 %v10052_v26, %v9534_v43  ;;  %v15085_v36 = vld [vmem:[#allocation34_spill] sm:$0xff]  ;;  %v4366_v57 = vmax.f32 %v4078_v0, 0.0  ;;  %v15087_v62 = vld [vmem:[#allocation63_spill] sm:$0xff] }
 0x257   : > { %15084 = vst [vmem:[#allocation15_spill] sm:$0xff] %v10227_v4  ;;  %2873 = vperm.xlu0 %6727, %v6807_v28   ;;  %v15086_v63 = vmax.f32 %v15085_v36, 0.0  ;;  %v3763_v61 = vand.u32 2147483647, %v3475_v31  ;;  %v3786_v53 = vand.u32 2147483647, %v3498_v46  ;;  %v3509_v19 = vsub.f32 %v3215_v20, %v9565_v38 }
 0x258   : > { %5061 = vmatpush.msra.mxu0 %v4620_v59  ;;  %6679 = vmatpush.msra.mxu2 %v4620_v59  ;;  %v4364_v28 = vmax.f32 %v4076_v55, 0.0  ;;  %v3590_v25 = vsub.f32 %v3296_v9, %v9573_v56  ;;  %v15088_v34 = vmax.f32 %v15087_v62, 0.0  ;;  %v4072_v54 = vsub.f32 1.0, %v3784_v15 }
 0x259   : > { %v4618_v6 = vmul.f32 %v4330_v27, %v15086_v63  ;;  %v3558_v0 = vsub.f32 %v3264_v17, %v9573_v56  ;;  %v4074_v36 = vsub.f32 1.0, %v3786_v53  ;;  %v10247_v31 = vsub.f32 1.0, %v3765_v41  ;;  %v15090_v41 = vld [vmem:[#allocation64_spill] sm:$0xff] }
 0x25a   : > { %v4654_v26 = vmul.f32 %v4366_v57, %v15088_v34  ;;  %v10249_v55 = vsub.f32 1.0, %v3755_v52  ;;  %v3497_v20 = vsub.f32 %v3203_v22, %v9565_v38  ;;  %v3213_v9 = vsub.f32 %v10069_v7, %v9534_v43  ;;  %v10256_v34 = vpop.permute.xlu1 %2773  ;;  %v10258_v15 = vpop.permute.xlu2 %2905  ;;  %v6808_v57 = vld [vmem:[%s14285_s1 + $0x2c0] sm:$0xff] }
 0x25b   : > { %5062 = vmatpush.msra.mxu0 %v4618_v6  ;;  %6680 = vmatpush.msra.mxu2 %v4618_v6  ;;  %v10260_v46 = vsub.f32 1.0, %v3763_v61  ;;  %v15091_v17 = vmax.f32 %v15090_v41, 0.0  ;;  %v3262_v22 = vsub.f32 %v10256_v34, %v9532_v50  ;;  %v3328_v7 = vsub.f32 %v10258_v15, %v9532_v50  ;;  %v10268_v63 = vpop.permute.xlu0 %2769  ;;  %v6809_v61 = vld [vmem:[%s14285_s1 + $0x108] sm:$0xff] }
 0x25c   : > { %15089 = vst [vmem:[#allocation14_spill] sm:$0xff] %v10249_v55  ;;  %5125 = vmatpush.msra.mxu1 %v4654_v26  ;;  %6694 = vmatpush.msra.mxu3 %v4654_v26  ;;  %v3878_v6 = vand.u32 2147483647, %v3590_v25  ;;  %v3260_v53 = vsub.f32 %v10268_v63, %v9532_v50  ;;  %v3846_v62 = vand.u32 2147483647, %v3558_v0  ;;  %v4362_v41 = vmax.f32 %v4074_v36, 0.0 }
 0x25d   : > { %5063 = vmatpush.msra.mxu0 %v10046_v10  ;;  %6681 = vmatpush.msra.mxu2 %v10046_v10  ;;  %v4652_v52 = vmul.f32 %v4364_v28, %v15091_v17  ;;  %v3797_v10 = vand.u32 2147483647, %v3509_v19  ;;  %v4360_v28 = vmax.f32 %v4072_v54, 0.0  ;;  %v6810_v19 = vld [vmem:[%s14285_s1 + $0x190] sm:$0xff]  ;;  %v3556_v25 = vsub.f32 %v3262_v22, %v9573_v56 }
 0x25e   : > { %2941 = vperm.xlu1 %6728, %v6808_v57   ;;  %2721 = vperm.xlu2 %6729, %v6809_v61   ;;  %v3622_v26 = vsub.f32 %v3328_v7, %v9573_v56  ;;  %v3785_v17 = vand.u32 2147483647, %v3497_v20  ;;  %v3507_v57 = vsub.f32 %v3213_v9, %v9565_v38  ;;  %v3258_v61 = vsub.f32 %v10163_v58, %v9532_v50 }
 0x25f   : > { %2789 = vperm.xlu0 %6727, %v6810_v19   ;;  %5126 = vmatpush.msra.mxu1 %v4652_v52  ;;  %v3554_v54 = vsub.f32 %v3260_v53, %v9573_v56  ;;  %v3177_v19 = vsub.f32 %v10106_v51, %v9534_v43  ;;  %v3297_v22 = vsub.f32 %v10108_v47, %v9534_v43  ;;  %v15093_v7 = vmax.f32 %v15092_v29, 0.0 }
 0x260   : > { %6695 = vmatpush.msra.mxu3 %v4652_v52  ;;  %v10295_v9 = vsub.f32 1.0, %v3797_v10  ;;  %v3844_v27 = vand.u32 2147483647, %v3556_v25  ;;  %v4166_v59 = vsub.f32 1.0, %v3878_v6  ;;  %v3910_v53 = vand.u32 2147483647, %v3622_v26 }
 0x261   : > { %v4650_v36 = vmul.f32 %v4362_v41, %v15093_v7  ;;  %v4134_v0 = vsub.f32 1.0, %v3846_v62  ;;  %v15096_v51 = vmax.f32 %v15095_v42, 0.0  ;;  %v10300_v30 = vsub.f32 1.0, %v3785_v17 }
 0x262   : > { %15094 = vst [vmem:[#allocation69_spill] sm:$0xff] %v10295_v9  ;;  %v3795_v47 = vand.u32 2147483647, %v3507_v57  ;;  %v3552_v29 = vsub.f32 %v3258_v61, %v9573_v56  ;;  %v3842_v41 = vand.u32 2147483647, %v3554_v54  ;;  %v10303_v7 = vpop.permute.xlu1 %2837  ;;  %v10305_v10 = vpop.permute.xlu2 %2901  ;;  %v3471_v6 = vsub.f32 %v3177_v19, %v9565_v38  ;;  %v6811_v57 = vld [vmem:[%s14285_s1 + $0x230] sm:$0xff] }
 0x263   : > { %5127 = vmatpush.msra.mxu1 %v4650_v36  ;;  %6696 = vmatpush.msra.mxu3 %v4650_v36  ;;  %v4648_v4 = vmul.f32 %v4360_v28, %v15096_v51  ;;  %15097 = vst [vmem:[#allocation70_spill] sm:$0xff] %v10300_v30  ;;  %v3591_v25 = vsub.f32 %v3297_v22, %v9565_v38  ;;  %v4422_v26 = vmax.f32 %v4134_v0, 0.0  ;;  %v10311_v42 = vpop.permute.xlu0 %2833  ;;  %v6812_v61 = vld [vmem:[%s14285_s1 + $0x2b8] sm:$0xff]  ;;  %v4132_v54 = vsub.f32 1.0, %v3844_v27  ;;  %v6813_v22 = vld [vmem:[%s14285_s1 + $0x100] sm:$0xff] }
 0x264   : > { %v3175_v62 = vsub.f32 %v10120_v11, %v9534_v43  ;;  %v3209_v17 = vsub.f32 %v10161_v32, %v9534_v43  ;;  %v4454_v11 = vmax.f32 %v4166_v59, 0.0  ;;  %v3294_v32 = vsub.f32 %v10303_v7, %v9532_v50 }
 0x265   : > { %5128 = vmatpush.msra.mxu1 %v4648_v4  ;;  %6697 = vmatpush.msra.mxu3 %v4648_v4  ;;  %v15098_v4 = vld [vmem:[#allocation7_spill] sm:$0xff]  ;;  %v3326_v36 = vsub.f32 %v10305_v10, %v9532_v50  ;;  %v4198_v51 = vsub.f32 1.0, %v3910_v53  ;;  %v3292_v59 = vsub.f32 %v10311_v42, %v9532_v50  ;;  %v4130_v27 = vsub.f32 1.0, %v3842_v41 }
 0x266   : > { %2869 = vperm.xlu1 %6728, %v6811_v57   ;;  %2937 = vperm.xlu2 %6729, %v6812_v61   ;;  %v15099_v0 = vmax.f32 %v15098_v4, 0.0  ;;  %v10331_v57 = vsub.f32 1.0, %v3795_v47  ;;  %v3840_v61 = vand.u32 2147483647, %v3552_v29  ;;  %v3879_v4 = vand.u32 2147483647, %v3591_v25 }
 0x267   : > { %2717 = vperm.xlu0 %6727, %v6813_v22   ;;  %v3259_v22 = vsub.f32 %v10163_v58, %v9534_v43  ;;  %v3503_v28 = vsub.f32 %v3209_v17, %v9565_v38  ;;  %v3290_v53 = vsub.f32 %v10206_v3, %v9532_v50  ;;  %v15101_v47 = vmax.f32 %v8619_v48, 0.0 }
 0x268   : > { %v4710_v19 = vmul.f32 %v4422_v26, %v15099_v0  ;;  %15100 = vst [vmem:[#allocation47_spill] sm:$0xff] %v10331_v57  ;;  %v3759_v26 = vand.u32 2147483647, %v3471_v6  ;;  %v3469_v0 = vsub.f32 %v3175_v62, %v9565_v38  ;;  %v4420_v20 = vmax.f32 %v4132_v54, 0.0 }
 0x269   : > { %v4742_v29 = vmul.f32 %v4454_v11, %v15101_v47  ;;  %v3207_v41 = vsub.f32 %v10176_v18, %v9534_v43  ;;  %v3588_v6 = vsub.f32 %v3294_v32, %v9573_v56  ;;  %v3620_v25 = vsub.f32 %v3326_v36, %v9573_v56 }
 0x26a   : > { %5178 = vmatpush.msrb.mxu2 %v4710_v19  ;;  %v4486_v62 = vmax.f32 %v4198_v51, 0.0  ;;  %v3586_v58 = vsub.f32 %v3292_v59, %v9573_v56  ;;  %v15102_v19 = vld [vmem:[#allocation106_spill] sm:$0xff]  ;;  %v4418_v9 = vmax.f32 %v4130_v27, 0.0  ;;  %v10350_v55 = vpop.permute.xlu1 %2761  ;;  %v4128_v48 = vsub.f32 1.0, %v3840_v61  ;;  %v10357_v36 = vpop.permute.xlu2 %2817  ;;  %v6814_v61 = vld [vmem:[%s14285_s1 + $0x188] sm:$0xff] }
 0x26b   : > { %5243 = vmatpush.msrb.mxu3 %v4742_v29  ;;  %v15103_v17 = vmax.f32 %v15102_v19, 0.0  ;;  %v10352_v11 = vsub.f32 1.0, %v3759_v26  ;;  %v3757_v54 = vand.u32 2147483647, %v3469_v0  ;;  %v3553_v18 = vsub.f32 %v3259_v22, %v9565_v38  ;;  %v10359_v51 = vpop.permute.xlu0 %2757  ;;  %v15105_v27 = vld [vmem:[#allocation110_spill] sm:$0xff] }
 0x26c   : > { %v15104_v32 = vmax.f32 %v8847_v39, 0.0  ;;  %v15106_v26 = vmax.f32 %v15105_v27, 0.0  ;;  %v3256_v39 = vsub.f32 %v10350_v55, %v9532_v50  ;;  %v10370_v22 = vsub.f32 1.0, %v3879_v4  ;;  %v6816_v4 = vld [vmem:[%s14285_s1 + $0x2b0] sm:$0xff] }
 0x26d   : > { %v4708_v52 = vmul.f32 %v4420_v20, %v15103_v17  ;;  %v3584_v20 = vsub.f32 %v3290_v53, %v9573_v56  ;;  %v3876_v29 = vand.u32 2147483647, %v3588_v6  ;;  %v3254_v53 = vsub.f32 %v10359_v51, %v9532_v50 }
 0x26e   : > { %v4774_v47 = vmul.f32 %v4486_v62, %v15104_v32  ;;  %2785 = vperm.xlu1 %6728, %v6814_v61   ;;  %v4706_v0 = vmul.f32 %v4418_v9, %v15106_v26  ;;  %v3908_v62 = vand.u32 2147483647, %v3620_v25  ;;  %v3791_v19 = vand.u32 2147483647, %v3503_v28 }
 0x26f   : > { %5179 = vmatpush.msrb.mxu2 %v4708_v52  ;;  %v6815_v52 = vld [vmem:[%s14285_s1 + $0x228] sm:$0xff]  ;;  %v3501_v17 = vsub.f32 %v3207_v41, %v9565_v38  ;;  %v3874_v9 = vand.u32 2147483647, %v3586_v58  ;;  %2933 = vperm.xlu0 %6727, %v6816_v4   ;;  %v4416_v6 = vmax.f32 %v4128_v48, 0.0  ;;  %v3841_v61 = vand.u32 2147483647, %v3553_v18 }
 0x270   : > { %5308 = vmatpush.msrb.mxu0 %v4774_v47  ;;  %2865 = vperm.xlu2 %6729, %v6815_v52   ;;  %v10383_v47 = vsub.f32 1.0, %v3757_v54  ;;  %v3205_v28 = vsub.f32 %v10204_v8, %v9534_v43  ;;  %v3872_v27 = vand.u32 2147483647, %v3584_v20  ;;  %v3550_v41 = vsub.f32 %v3256_v39, %v9573_v56  ;;  %v15107_v58 = vld [vmem:[#allocation92_spill] sm:$0xff]  ;;  %v6818_v39 = vld [vmem:[%s14285_s1 + $0x220] sm:$0xff] }
 0x271   : > { %5180 = vmatpush.msrb.mxu2 %v4706_v0  ;;  %v15108_v26 = vmax.f32 %v15107_v58, 0.0  ;;  %v3548_v48 = vsub.f32 %v3254_v53, %v9573_v56  ;;  %v4164_v0 = vsub.f32 1.0, %v3876_v29  ;;  %v4196_v59 = vsub.f32 1.0, %v3908_v62 }
 0x272   : > { %v10392_v25 = vsub.f32 1.0, %v3791_v19  ;;  %v3789_v54 = vand.u32 2147483647, %v3501_v17  ;;  %v3291_v18 = vsub.f32 %v10206_v3, %v9534_v43  ;;  %v4162_v8 = vsub.f32 1.0, %v3874_v9  ;;  %v10396_v20 = vpop.permute.xlu1 %2825  ;;  %v10401_v32 = vpop.permute.xlu2 %2745  ;;  %v6817_v3 = vld [vmem:[%s14285_s1 + $0x180] sm:$0xff] }
 0x273   : > { %v4704_v52 = vmul.f32 %v4416_v6, %v15108_v26  ;;  %v10399_v58 = vsub.f32 1.0, %v3841_v61  ;;  %v4452_v6 = vmax.f32 %v4164_v0, 0.0  ;;  %v4484_v26 = vmax.f32 %v4196_v59, 0.0  ;;  %v10403_v29 = vpop.permute.xlu0 %2753 }
 0x274   : > { %15109 = vst [vmem:[#allocation30_spill] sm:$0xff] %v10392_v25  ;;  %v3499_v62 = vsub.f32 %v3205_v28, %v9565_v38  ;;  %v3838_v53 = vand.u32 2147483647, %v3550_v41  ;;  %v4450_v19 = vmax.f32 %v4162_v8, 0.0  ;;  %v4160_v17 = vsub.f32 1.0, %v3872_v27 }
 0x275   : > { %5181 = vmatpush.msrb.mxu2 %v4704_v52  ;;  %15110 = vst [vmem:[#allocation25_spill] sm:$0xff] %v10399_v58  ;;  %v3836_v9 = vand.u32 2147483647, %v3548_v48  ;;  %v15111_v61 = vmax.f32 %v8407_v37, 0.0  ;;  %v15112_v59 = vmax.f32 %v8858_v44, 0.0  ;;  %v3288_v28 = vsub.f32 %v10396_v20, %v9532_v50  ;;  %v6819_v44 = vld [vmem:[%s14285_s1 + $0x2a8] sm:$0xff] }
 0x276   : > { %2781 = vperm.xlu1 %6728, %v6817_v3   ;;  %v10419_v3 = vsub.f32 1.0, %v3789_v54  ;;  %v3585_v27 = vsub.f32 %v3291_v18, %v9565_v38  ;;  %v3265_v37 = vsub.f32 %v10219_v13, %v9534_v43  ;;  %v3284_v8 = vsub.f32 %v10357_v36, %v9532_v50 }
 0x277   : > { %v4740_v52 = vmul.f32 %v4452_v6, %v15111_v61  ;;  %v4772_v0 = vmul.f32 %v4484_v26, %v15112_v59  ;;  %2929 = vperm.xlu0 %6727, %v6819_v44   ;;  %v15114_v54 = vmax.f32 %v8553_v5, 0.0  ;;  %v3252_v18 = vsub.f32 %v10403_v29, %v9532_v50 }
 0x278   : > { %2861 = vperm.xlu2 %6729, %v6818_v39   ;;  %15113 = vst [vmem:[#allocation34_spill] sm:$0xff] %v10419_v3  ;;  %v3263_v13 = vsub.f32 %v10256_v34, %v9534_v43  ;;  %v3329_v6 = vsub.f32 %v10258_v15, %v9534_v43  ;;  %v4448_v26 = vmax.f32 %v4160_v17, 0.0  ;;  %v4126_v61 = vsub.f32 1.0, %v3838_v53 }
 0x279   : > { %5244 = vmatpush.msrb.mxu3 %v4740_v52  ;;  %5309 = vmatpush.msrb.mxu0 %v4772_v0  ;;  %v4738_v39 = vmul.f32 %v4450_v19, %v15114_v54  ;;  %v3787_v59 = vand.u32 2147483647, %v3499_v62  ;;  %v3582_v44 = vsub.f32 %v3288_v28, %v9573_v56  ;;  %v3546_v52 = vsub.f32 %v3252_v18, %v9573_v56 }
 0x27a   : > { %v4124_v0 = vsub.f32 1.0, %v3836_v9  ;;  %v3873_v5 = vand.u32 2147483647, %v3585_v27  ;;  %v3261_v19 = vsub.f32 %v10268_v63, %v9534_v43  ;;  %v15115_v54 = vmax.f32 %v8566_v45, 0.0  ;;  %v10444_v48 = vpop.permute.xlu1 %2821  ;;  %v10450_v28 = vpop.permute.xlu2 %2961  ;;  %v15116_v27 = vld [vmem:[#allocation11_spill] sm:$0xff] }
 0x27b   : > { %5245 = vmatpush.msrb.mxu3 %v4738_v39  ;;  %v4414_v34 = vmax.f32 %v4126_v61, 0.0  ;;  %v3559_v15 = vsub.f32 %v3265_v37, %v9565_v38  ;;  %v3578_v62 = vsub.f32 %v3284_v8, %v9573_v56  ;;  %v3834_v53 = vand.u32 2147483647, %v3546_v52  ;;  %v10452_v9 = vpop.permute.xlu0 %2969  ;;  %v6820_v37 = vld [vmem:[%s14285_s1 + $0x218] sm:$0xff] }
 0x27c   : > { %v4736_v41 = vmul.f32 %v4448_v26, %v15115_v54  ;;  %v3286_v17 = vsub.f32 %v10444_v48, %v9532_v50  ;;  %v3557_v63 = vsub.f32 %v3263_v13, %v9565_v38  ;;  %v3623_v45 = vsub.f32 %v3329_v6, %v9565_v38  ;;  %v6821_v13 = vld [vmem:[%s14285_s1 + $0x2a0] sm:$0xff] }
 0x27d   : > { %v15117_v39 = vmax.f32 %v15116_v27, 0.0  ;;  %v4412_v8 = vmax.f32 %v4124_v0, 0.0  ;;  %v10461_v26 = vsub.f32 1.0, %v3787_v59  ;;  %v3295_v61 = vsub.f32 %v10303_v7, %v9534_v43  ;;  %v6822_v59 = vld [vmem:[%s14285_s1 + $0x210] sm:$0xff] }
 0x27e   : > { %5246 = vmatpush.msrb.mxu3 %v4736_v41  ;;  %2857 = vperm.xlu1 %6728, %v6820_v37   ;;  %v3870_v52 = vand.u32 2147483647, %v3582_v44  ;;  %v3580_v41 = vsub.f32 %v3286_v17, %v9573_v56  ;;  %v10469_v6 = vsub.f32 1.0, %v3873_v5  ;;  %v3555_v54 = vsub.f32 %v3261_v19, %v9565_v38  ;;  %v15120_v0 = vld [vmem:[#allocation16_spill] sm:$0xff] }
 0x27f   : > { %v4702_v18 = vmul.f32 %v4414_v34, %v15117_v39  ;;  %15118 = vst [vmem:[#allocation63_spill] sm:$0xff] %v10461_v26  ;;  %2853 = vperm.xlu0 %6727, %v6822_v59   ;;  %v15121_v7 = vmax.f32 %v15120_v0, 0.0  ;;  %v4122_v34 = vsub.f32 1.0, %v3834_v53  ;;  %v3327_v39 = vsub.f32 %v10305_v10, %v9534_v43 }
 0x280   : > { %2925 = vperm.xlu2 %6729, %v6821_v13   ;;  %15119 = vst [vmem:[#allocation64_spill] sm:$0xff] %v10469_v6  ;;  %v3866_v17 = vand.u32 2147483647, %v3578_v62  ;;  %v3868_v5 = vand.u32 2147483647, %v3580_v41  ;;  %v3589_v59 = vsub.f32 %v3295_v61, %v9565_v38  ;;  %v4158_v0 = vsub.f32 1.0, %v3870_v52 }
 0x281   : > { %5182 = vmatpush.msrb.mxu2 %v4702_v18  ;;  %v4700_v44 = vmul.f32 %v4412_v8, %v15121_v7  ;;  %v3847_v37 = vand.u32 2147483647, %v3559_v15  ;;  %v3845_v13 = vand.u32 2147483647, %v3557_v63  ;;  %v3911_v19 = vand.u32 2147483647, %v3623_v45 }
 0x282   : > { %v3360_v18 = vsub.f32 %v10452_v9, %v9532_v50  ;;  %v4410_v4 = vmax.f32 %v4122_v34, 0.0  ;;  %v4156_v8 = vsub.f32 1.0, %v3868_v5  ;;  %v3843_v27 = vand.u32 2147483647, %v3555_v54  ;;  %v15122_v62 = vld [vmem:[#allocation88_spill] sm:$0xff]  ;;  %v6823_v54 = vld [vmem:[%s14285_s1 + $0x298] sm:$0xff] }
 0x283   : > { %5183 = vmatpush.msrb.mxu2 %v4700_v44  ;;  %v3621_v15 = vsub.f32 %v3327_v39, %v9565_v38  ;;  %v15123_v63 = vmax.f32 %v15122_v62, 0.0  ;;  %v4446_v41 = vmax.f32 %v4158_v0, 0.0  ;;  %v10489_v44 = vpop.permute.xlu1 %2749  ;;  %v4154_v30 = vsub.f32 1.0, %v3866_v17  ;;  %v10500_v39 = vpop.permute.xlu2 %2889 }
 0x284   : > { %v3654_v10 = vsub.f32 %v3360_v18, %v9573_v56  ;;  %v10491_v61 = vsub.f32 1.0, %v3847_v37  ;;  %v10493_v52 = vsub.f32 1.0, %v3845_v13  ;;  %v3293_v34 = vsub.f32 %v10311_v42, %v9534_v43  ;;  %v10502_v5 = vpop.permute.xlu0 %2897  ;;  %v15125_v37 = vld [vmem:[#allocation112_spill] sm:$0xff]  ;;  %v6824_v42 = vld [vmem:[%s14285_s1 + $0x208] sm:$0xff] }
 0x285   : > { %v4698_v45 = vmul.f32 %v4410_v4, %v15123_v63  ;;  %v4444_v4 = vmax.f32 %v4156_v8, 0.0  ;;  %v10504_v18 = vsub.f32 1.0, %v3911_v19  ;;  %v3877_v17 = vand.u32 2147483647, %v3589_v59 }
 0x286   : > { %15124 = vst [vmem:[#allocation38_spill] sm:$0xff] %v10493_v52  ;;  %2921 = vperm.xlu1 %6728, %v6823_v54   ;;  %v15126_v13 = vmax.f32 %v15125_v37, 0.0  ;;  %v3250_v62 = vsub.f32 %v10489_v44, %v9532_v50  ;;  %v10513_v63 = vsub.f32 1.0, %v3843_v27  ;;  %v3257_v8 = vsub.f32 %v10350_v55, %v9534_v43 }
 0x287   : > { %5184 = vmatpush.msrb.mxu2 %v4698_v45  ;;  %v3248_v19 = vsub.f32 %v10401_v32, %v9532_v50  ;;  %v3942_v59 = vand.u32 2147483647, %v3654_v10  ;;  %v6825_v45 = vld [vmem:[%s14285_s1 + $0x290] sm:$0xff]  ;;  %v3285_v54 = vsub.f32 %v10357_v36, %v9534_v43  ;;  %v3324_v27 = vsub.f32 %v10502_v5, %v9532_v50 }
 0x288   : > { %v4734_v0 = vmul.f32 %v4446_v41, %v15126_v13  ;;  %2849 = vperm.xlu2 %6729, %v6824_v42   ;;  %15127 = vst [vmem:[#allocation62_spill] sm:$0xff] %v10513_v63  ;;  %2917 = vperm.xlu0 %6727, %v6825_v45   ;;  %v3909_v41 = vand.u32 2147483647, %v3621_v15  ;;  %v4442_v37 = vmax.f32 %v4154_v30, 0.0  ;;  %v3587_v13 = vsub.f32 %v3293_v34, %v9565_v38 }
 0x289   : > { %v3544_v10 = vsub.f32 %v3250_v62, %v9573_v56  ;;  %v15128_v42 = vmax.f32 %v8505_v35, 0.0  ;;  %v10532_v15 = vsub.f32 1.0, %v3877_v17  ;;  %v3255_v36 = vsub.f32 %v10359_v51, %v9534_v43 }
 0x28a   : > { %5247 = vmatpush.msrb.mxu3 %v4734_v0  ;;  %v3618_v0 = vsub.f32 %v3324_v27, %v9573_v56  ;;  %v3551_v7 = vsub.f32 %v3257_v8, %v9565_v38  ;;  %v3542_v34 = vsub.f32 %v3248_v19, %v9573_v56  ;;  %v4230_v62 = vsub.f32 1.0, %v3942_v59  ;;  %v6826_v8 = vld [vmem:[%s14285_s1 + $0x200] sm:$0xff] }
 0x28b   : > { %v4732_v53 = vmul.f32 %v4444_v4, %v15128_v42  ;;  %15129 = vst [vmem:[#allocation7_spill] sm:$0xff] %v10532_v15  ;;  %v10541_v4 = vsub.f32 1.0, %v3909_v41  ;;  %v3579_v17 = vsub.f32 %v3285_v54, %v9565_v38  ;;  %v15130_v42 = vld [vmem:[#allocation127_spill] sm:$0xff]  ;;  %v10546_v51 = vpop.permute.xlu1 %2965  ;;  %v3875_v27 = vand.u32 2147483647, %v3587_v13  ;;  %v10553_v19 = vpop.permute.xlu2 %2805  ;;  %v6828_v41 = vld [vmem:[%s14285_s1 + $0x280] sm:$0xff] }
 0x28c   : > { %v15131_v45 = vmax.f32 %v15130_v42, 0.0  ;;  %v3832_v26 = vand.u32 2147483647, %v3544_v10  ;;  %v4518_v30 = vmax.f32 %v4230_v62, 0.0  ;;  %v10555_v59 = vpop.permute.xlu0 %2813  ;;  %v3549_v54 = vsub.f32 %v3255_v36, %v9565_v38  ;;  %v6827_v10 = vld [vmem:[%s14285_s1 + $0x288] sm:$0xff] }
 0x28d   : > { %5248 = vmatpush.msrb.mxu3 %v4732_v53  ;;  %v3358_v53 = vsub.f32 %v10546_v51, %v9532_v50  ;;  %v3906_v13 = vand.u32 2147483647, %v3618_v0  ;;  %v3830_v62 = vand.u32 2147483647, %v3542_v34  ;;  %v15132_v42 = vmax.f32 %v8928_v23, 0.0 }
 0x28e   : > { %v4730_v55 = vmul.f32 %v4442_v37, %v15131_v45  ;;  %2845 = vperm.xlu1 %6728, %v6826_v8   ;;  %v3289_v37 = vsub.f32 %v10396_v20, %v9534_v43  ;;  %v3839_v45 = vand.u32 2147483647, %v3551_v7  ;;  %v3867_v20 = vand.u32 2147483647, %v3579_v17 }
 0x28f   : > { %v4806_v8 = vmul.f32 %v4518_v30, %v15132_v42  ;;  %v3652_v36 = vsub.f32 %v3358_v53, %v9573_v56  ;;  %v3249_v0 = vsub.f32 %v10401_v32, %v9534_v43  ;;  %v3282_v7 = vsub.f32 %v10555_v59, %v9532_v50  ;;  %v4985_v42 = vld [vmem:[%s14284_s0 + $0x288] sm:$0xff] }
 0x290   : > { %2913 = vperm.xlu2 %6729, %v6827_v10   ;;  %5249 = vmatpush.msrb.mxu3 %v4730_v55  ;;  %v3356_v10 = vsub.f32 %v10450_v28, %v9532_v50  ;;  %v10577_v55 = vsub.f32 1.0, %v3875_v27  ;;  %v3253_v30 = vsub.f32 %v10403_v29, %v9534_v43  ;;  %v4120_v34 = vsub.f32 1.0, %v3832_v26 }
 0x291   : > { %2909 = vperm.xlu0 %6727, %v6828_v41   ;;  %5373 = vmatpush.msrb.mxu1 %v4806_v8  ;;  %v3837_v53 = vand.u32 2147483647, %v3549_v54  ;;  %v3583_v17 = vsub.f32 %v3289_v37, %v9565_v38  ;;  %v3576_v32 = vsub.f32 %v3282_v7, %v9573_v56  ;;  %v4194_v41 = vsub.f32 1.0, %v3906_v13  ;;  %v15136_v7 = vld [vmem:[#allocation99_spill] sm:$0xff] }
 0x292   : > { %15133 = vst [vmem:[#allocation106_spill] sm:$0xff] %v10577_v55  ;;  %v10586_v35 = vsub.f32 1.0, %v3839_v45  ;;  %v3940_v23 = vand.u32 2147483647, %v3652_v36  ;;  %v4408_v27 = vmax.f32 %v4120_v34, 0.0  ;;  %v4118_v6 = vsub.f32 1.0, %v3830_v62  ;;  %5091 = vmatmul.f32.vlgmr.msra.gmra.mxu2 %v4985_v42 }
 0x293   : > { %v10588_v3 = vsub.f32 1.0, %v3867_v20  ;;  %v3543_v29 = vsub.f32 %v3249_v0, %v9565_v38  ;;  %v3650_v26 = vsub.f32 %v3356_v10, %v9573_v56  ;;  %v4482_v54 = vmax.f32 %v4194_v41, 0.0  ;;  %v10592_v37 = vpop.permute.xlu1 %2893  ;;  %v6829_v62 = vld [vmem:[%s14285_s1 + $0x378] sm:$0xff] }
 0x294   : > { %15134 = vst [vmem:[#allocation110_spill] sm:$0xff] %v10586_v35  ;;  %v3547_v13 = vsub.f32 %v3253_v30, %v9565_v38  ;;  %v3864_v8 = vand.u32 2147483647, %v3576_v32  ;;  %v15137_v25 = vmax.f32 %v15136_v7, 0.0  ;;  %v4406_v36 = vmax.f32 %v4118_v6, 0.0  ;;  %v10600_v20 = vpop.permute.xlu0 %2741  ;;  %v6830_v30 = vld [vmem:[%s14285_s1 + $0x370] sm:$0xff] }
 0x295   : > { %15135 = vst [vmem:[#allocation92_spill] sm:$0xff] %v10588_v3  ;;  %v10602_v0 = vsub.f32 1.0, %v3837_v53  ;;  %v3871_v10 = vand.u32 2147483647, %v3583_v17  ;;  %v15139_v34 = vmax.f32 %v8628_v33, 0.0  ;;  %v3287_v6 = vsub.f32 %v10444_v48, %v9534_v43  ;;  %v6831_v33 = vld [vmem:[%s14285_s1 + $0x3f8] sm:$0xff] }
 0x296   : > { %v4696_v45 = vmul.f32 %v4408_v27, %v15137_v25  ;;  %3033 = vperm.xlu1 %6728, %v6829_v62   ;;  %v3322_v25 = vsub.f32 %v10592_v37, %v9532_v50  ;;  %v3320_v53 = vsub.f32 %v10500_v39, %v9532_v50  ;;  %v15140_v17 = vld [vmem:[#allocation10_spill] sm:$0xff]  ;;  %v3831_v7 = vand.u32 2147483647, %v3543_v29 }
 0x297   : > { %15138 = vst [vmem:[#allocation11_spill] sm:$0xff] %v10602_v0  ;;  %v4770_v41 = vmul.f32 %v4482_v54, %v15139_v34  ;;  %v10611_v32 = vpop.permute.xlu2 %2733  ;;  %v15141_v42 = vmax.f32 %v15140_v17, 0.0  ;;  %v4228_v54 = vsub.f32 1.0, %v3940_v23  ;;  %v3938_v62 = vand.u32 2147483647, %v3650_v26  ;;  %v4994_v26 = vld [vmem:[%s14284_s0 + $0x2d0] sm:$0xff] }
 0x298   : > { %3029 = vperm.xlu2 %6729, %v6830_v30   ;;  %5185 = vmatpush.msrb.mxu2 %v4696_v45  ;;  %v3616_v34 = vsub.f32 %v3322_v25, %v9573_v56  ;;  %v3246_v48 = vsub.f32 %v10600_v20, %v9532_v50  ;;  %v3835_v45 = vand.u32 2147483647, %v3547_v13  ;;  %v3357_v15 = vsub.f32 %v10450_v28, %v9534_v43  ;;  %v15145_v30 = vld [vmem:[#allocation108_spill] sm:$0xff] }
 0x299   : > { %3097 = vperm.xlu0 %6727, %v6831_v33   ;;  %v4694_v27 = vmul.f32 %v4406_v36, %v15141_v42  ;;  %5310 = vmatpush.msrb.mxu0 %v4770_v41  ;;  %v4152_v33 = vsub.f32 1.0, %v3864_v8  ;;  %v10629_v36 = vsub.f32 1.0, %v3871_v10  ;;  %v3581_v41 = vsub.f32 %v3287_v6, %v9565_v38 }
 0x29a   : > { %v3904_v23 = vand.u32 2147483647, %v3616_v34  ;;  %v3540_v29 = vsub.f32 %v3246_v48, %v9573_v56  ;;  %v3614_v13 = vsub.f32 %v3320_v53, %v9573_v56  ;;  %v4516_v42 = vmax.f32 %v4228_v54, 0.0  ;;  %5094 = vmatmul.f32.gmra.mxu2 %v4994_v26  ;;  %v6832_v54 = vld [vmem:[%s14285_s1 + $0x368] sm:$0xff] }
 0x29b   : > { %5186 = vmatpush.msrb.mxu2 %v4694_v27  ;;  %15142 = vst [vmem:[#allocation16_spill] sm:$0xff] %v10629_v36  ;;  %v4440_v25 = vmax.f32 %v4152_v33, 0.0  ;;  %v10639_v10 = vsub.f32 1.0, %v3831_v7  ;;  %v4226_v27 = vsub.f32 1.0, %v3938_v62  ;;  %v10641_v34 = vsub.f32 1.0, %v3835_v45  ;;  %v10651_v33 = vpop.permute.xlu1 %2809  ;;  %v6833_v62 = vld [vmem:[%s14285_s1 + $0x3f0] sm:$0xff] }
 0x29c   : > { %v3651_v48 = vsub.f32 %v3357_v15, %v9565_v38  ;;  %v15146_v17 = vmax.f32 %v15145_v30, 0.0  ;;  %v15147_v6 = vmax.f32 %v9066_v49, 0.0  ;;  %v3828_v7 = vand.u32 2147483647, %v3540_v29 }
 0x29d   : > { %15143 = vst [vmem:[#allocation88_spill] sm:$0xff] %v10639_v10  ;;  %v4514_v15 = vmax.f32 %v4226_v27, 0.0  ;;  %v3280_v30 = vsub.f32 %v10651_v33, %v9532_v50  ;;  %v10660_v49 = vpop.permute.xlu0 %2957  ;;  %v3361_v29 = vsub.f32 %v10452_v9, %v9534_v43  ;;  %v3278_v27 = vsub.f32 %v10553_v19, %v9532_v50 }
 0x29e   : > { %15144 = vst [vmem:[#allocation112_spill] sm:$0xff] %v10641_v34  ;;  %v4728_v55 = vmul.f32 %v4440_v25, %v15146_v17  ;;  %v4804_v53 = vmul.f32 %v4516_v42, %v15147_v6  ;;  %3025 = vperm.xlu1 %6728, %v6832_v54   ;;  %v4192_v17 = vsub.f32 1.0, %v3904_v23  ;;  %v3869_v25 = vand.u32 2147483647, %v3581_v41  ;;  %v6834_v6 = vld [vmem:[%s14285_s1 + $0x360] sm:$0xff] }
 0x29f   : > { %v10658_v45 = vpop.permute.xlu2 %2949  ;;  %v3902_v42 = vand.u32 2147483647, %v3614_v13  ;;  %v15148_v54 = vmax.f32 %v9074_v60, 0.0  ;;  %v3354_v41 = vsub.f32 %v10660_v49, %v9532_v50  ;;  %v3939_v13 = vand.u32 2147483647, %v3651_v48 }
 0x2a0   : > { %3093 = vperm.xlu2 %6729, %v6833_v62   ;;  %5250 = vmatpush.msrb.mxu3 %v4728_v55  ;;  %v3574_v62 = vsub.f32 %v3280_v30, %v9573_v56  ;;  %v3321_v28 = vsub.f32 %v10500_v39, %v9534_v43  ;;  %v4116_v60 = vsub.f32 1.0, %v3828_v7  ;;  %v5003_v30 = vld [vmem:[%s14284_s0 + $0x318] sm:$0xff]  ;;  %v10687_v26 = vsub.f32 1.0, %v3869_v25 }
 0x2a1   : > { %5374 = vmatpush.msrb.mxu1 %v4804_v53  ;;  %3021 = vperm.xlu0 %6727, %v6834_v6   ;;  %v4802_v23 = vmul.f32 %v4514_v15, %v15148_v54  ;;  %v3251_v53 = vsub.f32 %v10489_v44, %v9534_v43  ;;  %v4480_v15 = vmax.f32 %v4192_v17, 0.0  ;;  %v4986_v54 = vld [vmem:[%s14284_s0 + $0x290] sm:$0xff]  ;;  %v3655_v48 = vsub.f32 %v3361_v29, %v9565_v38 }
 0x2a2   : > { %v3862_v6 = vand.u32 2147483647, %v3574_v62  ;;  %15149 = vst [vmem:[#allocation127_spill] sm:$0xff] %v10687_v26  ;;  %v3325_v44 = vsub.f32 %v10502_v5, %v9534_v43  ;;  %v3648_v39 = vsub.f32 %v3354_v41, %v9573_v56  ;;  %5097 = vmatmul.f32.gmra.mxu2 %v5003_v30  ;;  %5156 = vmatmul.f32.vlgmr.msra.gmra.mxu3 %v4986_v54  ;;  %v4404_v17 = vmax.f32 %v4116_v60, 0.0  ;;  %v6835_v5 = vld [vmem:[%s14285_s1 + $0x3e8] sm:$0xff] }
 0x2a3   : > { %5375 = vmatpush.msrb.mxu1 %v4802_v23  ;;  %v3572_v7 = vsub.f32 %v3278_v27, %v9573_v56  ;;  %v15150_v23 = vld [vmem:[#allocation158_spill] sm:$0xff]  ;;  %v4190_v55 = vsub.f32 1.0, %v3902_v42  ;;  %v10696_v8 = vsub.f32 1.0, %v3939_v13  ;;  %v3545_v25 = vsub.f32 %v3251_v53, %v9565_v38  ;;  %v10704_v41 = vpop.permute.xlu1 %2737  ;;  %v15153_v30 = vld [vmem:[#allocation83_spill] sm:$0xff]  ;;  %v6836_v13 = vld [vmem:[%s14285_s1 + $0x358] sm:$0xff] }
 0x2a4   : > { %v15151_v62 = vmax.f32 %v15150_v23, 0.0  ;;  %v3242_v29 = vsub.f32 %v10611_v32, %v9532_v50  ;;  %v4150_v27 = vsub.f32 1.0, %v3862_v6  ;;  %v3615_v60 = vsub.f32 %v3321_v28, %v9565_v38 }
 0x2a5   : > { %15152 = vst [vmem:[#allocation99_spill] sm:$0xff] %v10696_v8  ;;  %v4478_v53 = vmax.f32 %v4190_v55, 0.0  ;;  %v3244_v54 = vsub.f32 %v10704_v41, %v9532_v50  ;;  %v3943_v28 = vand.u32 2147483647, %v3655_v48  ;;  %v15155_v55 = vld [vmem:[#allocation159_spill] sm:$0xff]  ;;  %v3350_v10 = vsub.f32 %v10658_v45, %v9532_v50 }
 0x2a6   : > { %v4768_v9 = vmul.f32 %v4480_v15, %v15151_v62  ;;  %3089 = vperm.xlu1 %6728, %v6835_v5   ;;  %v15154_v15 = vmax.f32 %v15153_v30, 0.0  ;;  %v10716_v62 = vpop.permute.xlu0 %2885  ;;  %v3619_v5 = vsub.f32 %v3325_v44, %v9565_v38  ;;  %v6837_v30 = vld [vmem:[%s14285_s1 + $0x3e0] sm:$0xff]  ;;  %v4438_v36 = vmax.f32 %v4150_v27, 0.0 }
 0x2a7   : > { %v10714_v23 = vpop.permute.xlu2 %2877  ;;  %v3538_v3 = vsub.f32 %v3244_v54, %v9573_v56  ;;  %v3833_v6 = vand.u32 2147483647, %v3545_v25  ;;  %v3536_v48 = vsub.f32 %v3242_v29, %v9573_v56  ;;  %v3318_v44 = vsub.f32 %v10716_v62, %v9532_v50  ;;  %v4904_v27 = vld [vmem:[%s14284_s0] sm:$0xff] }
 0x2a8   : > { %v4692_v42 = vmul.f32 %v4404_v17, %v15154_v15  ;;  %5311 = vmatpush.msrb.mxu0 %v4768_v9  ;;  %3017 = vperm.xlu2 %6729, %v6836_v13   ;;  %v3936_v17 = vand.u32 2147483647, %v3648_v39  ;;  %v3860_v9 = vand.u32 2147483647, %v3572_v7  ;;  %v15156_v15 = vmax.f32 %v15155_v55, 0.0  ;;  %v5012_v25 = vld [vmem:[%s14284_s0 + $0x360] sm:$0xff] }
 0x2a9   : > { %3085 = vperm.xlu0 %6727, %v6837_v30   ;;  %v3903_v39 = vand.u32 2147483647, %v3615_v60  ;;  %v3359_v7 = vsub.f32 %v10546_v51, %v9534_v43  ;;  %v15157_v30 = vld [vmem:[#allocation122_spill] sm:$0xff]  ;;  %v10740_v29 = vsub.f32 1.0, %v3943_v28  ;;  %v3907_v54 = vand.u32 2147483647, %v3619_v5  ;;  %5064 = vmatmul.f32.vlgmr.msra.gmra.mxu0 %v4904_v27 }
 0x2aa   : > { %5187 = vmatpush.msrb.mxu2 %v4692_v42  ;;  %v4766_v13 = vmul.f32 %v4478_v53, %v15156_v15  ;;  %v3826_v42 = vand.u32 2147483647, %v3538_v3  ;;  %v15158_v55 = vmax.f32 %v15157_v30, 0.0  ;;  %v4224_v60 = vsub.f32 1.0, %v3936_v17  ;;  %v4905_v3 = vld [vmem:[%s14284_s0 + $0x8] sm:$0xff]  ;;  %v4995_v51 = vld [vmem:[%s14284_s0 + $0x2d8] sm:$0xff] }
 0x2ab   : > { %5100 = vmatmul.f32.gmra.mxu2 %v5012_v25  ;;  %v3279_v28 = vsub.f32 %v10553_v19, %v9534_v43  ;;  %v3612_v5 = vsub.f32 %v3318_v44, %v9573_v56  ;;  %v4148_v17 = vsub.f32 1.0, %v3860_v9  ;;  %5129 = vmatmul.f32.vlgmr.msra.gmra.mxu1 %v4905_v3  ;;  %v10757_v27 = vsub.f32 1.0, %v3833_v6  ;;  %v6839_v6 = vld [vmem:[%s14285_s1 + $0x3d8] sm:$0xff] }
 0x2ac   : > { %5312 = vmatpush.msrb.mxu0 %v4766_v13  ;;  %v4726_v53 = vmul.f32 %v4438_v36, %v15158_v55  ;;  %v15159_v36 = vld [vmem:[#allocation55_spill] sm:$0xff]  ;;  %v15161_v13 = vmax.f32 %v9935_v16, 0.0  ;;  %v4114_v55 = vsub.f32 1.0, %v3826_v42  ;;  %v3824_v25 = vand.u32 2147483647, %v3536_v48  ;;  %v6838_v16 = vld [vmem:[%s14285_s1 + $0x350] sm:$0xff]  ;;  %5159 = vmatmul.f32.gmra.mxu3 %v4995_v51 }
 0x2ad   : > { %v15160_v15 = vmax.f32 %v15159_v36, 0.0  ;;  %15162 = vst [vmem:[#allocation10_spill] sm:$0xff] %v10757_v27  ;;  %v4512_v36 = vmax.f32 %v4224_v60, 0.0  ;;  %v10764_v19 = vsub.f32 1.0, %v3903_v39  ;;  %v3653_v44 = vsub.f32 %v3359_v7, %v9565_v38  ;;  %v15163_v39 = vld [vmem:[#allocation168_spill] sm:$0xff] }
 0x2ae   : > { %5251 = vmatpush.msrb.mxu3 %v4726_v53  ;;  %3013 = vperm.xlu1 %6728, %v6838_v16   ;;  %v3283_v9 = vsub.f32 %v10555_v59, %v9534_v43  ;;  %v4436_v48 = vmax.f32 %v4148_v17, 0.0  ;;  %v10772_v42 = vpop.permute.xlu1 %2953  ;;  %v3323_v60 = vsub.f32 %v10592_v37, %v9534_v43  ;;  %v15164_v3 = vmax.f32 %v15163_v39, 0.0  ;;  %v10782_v59 = vpop.permute.xlu0 %2801  ;;  %v15165_v37 = vld [vmem:[#allocation123_spill] sm:$0xff] }
 0x2af   : > { %v10752_v30 = vmul.f32 %v15161_v13, %v15160_v15  ;;  %v10774_v53 = vpop.permute.xlu2 %2793  ;;  %v3352_v7 = vsub.f32 %v10772_v42, %v9532_v50  ;;  %v4402_v15 = vmax.f32 %v4114_v55, 0.0  ;;  %v10784_v13 = vsub.f32 1.0, %v3907_v54 }
 0x2b0   : > { %3081 = vperm.xlu2 %6729, %v6839_v6   ;;  %v4800_v51 = vmul.f32 %v4512_v36, %v15164_v3  ;;  %v3573_v17 = vsub.f32 %v3279_v28, %v9565_v38  ;;  %v3900_v16 = vand.u32 2147483647, %v3612_v5  ;;  %v6840_v6 = vld [vmem:[%s14285_s1 + $0x478] sm:$0xff]  ;;  %v15166_v8 = vmax.f32 %v15165_v37, 0.0  ;;  %v5004_v37 = vld [vmem:[%s14284_s0 + $0x320] sm:$0xff] }
 0x2b1   : > { %3161 = vperm.xlu0 %6727, %v6840_v6   ;;  %v3644_v36 = vsub.f32 %v3350_v10, %v9573_v56  ;;  %v3646_v3 = vsub.f32 %v3352_v7, %v9573_v56  ;;  %v3276_v54 = vsub.f32 %v10782_v59, %v9532_v50  ;;  %v4112_v55 = vsub.f32 1.0, %v3824_v25  ;;  %v5021_v10 = vld [vmem:[%s14284_s0 + $0x3a8] sm:$0xff]  ;;  %v4914_v25 = vld [vmem:[%s14284_s0 + $0x50] sm:$0xff] }
 0x2b2   : > { %v4724_v39 = vmul.f32 %v4436_v48, %v15166_v8  ;;  %5376 = vmatpush.msrb.mxu1 %v4800_v51  ;;  %v3941_v5 = vand.u32 2147483647, %v3653_v44  ;;  %v3577_v26 = vsub.f32 %v3283_v9, %v9565_v38  ;;  %v3243_v6 = vsub.f32 %v10611_v32, %v9534_v43  ;;  %v4913_v8 = vld [vmem:[%s14284_s0 + $0x48] sm:$0xff]  ;;  %v15167_v32 = vld [vmem:[#allocation96_spill] sm:$0xff] }
 0x2b3   : > { %v3617_v9 = vsub.f32 %v3323_v60, %v9565_v38  ;;  %v3570_v48 = vsub.f32 %v3276_v54, %v9573_v56  ;;  %v15168_v51 = vmax.f32 %v15167_v32, 0.0  ;;  %5067 = vmatmul.f32.gmra.mxu0 %v4913_v8  ;;  %5103 = vmatmul.f32.gmra.mxu2 %v5021_v10  ;;  %v3247_v28 = vsub.f32 %v10600_v20, %v9534_v43 }
 0x2b4   : > { %5252 = vmatpush.msrb.mxu3 %v4724_v39  ;;  %v3934_v34 = vand.u32 2147483647, %v3646_v3  ;;  %v4188_v44 = vsub.f32 1.0, %v3900_v16  ;;  %5132 = vmatmul.f32.gmra.mxu1 %v4914_v25  ;;  %v3861_v54 = vand.u32 2147483647, %v3573_v17  ;;  %v4400_v8 = vmax.f32 %v4112_v55, 0.0 }
 0x2b5   : > { %v4690_v7 = vmul.f32 %v4402_v15, %v15168_v51  ;;  %v3932_v27 = vand.u32 2147483647, %v3644_v36  ;;  %v6841_v15 = vld [vmem:[%s14285_s1 + $0x348] sm:$0xff]  ;;  %v10824_v10 = vsub.f32 1.0, %v3941_v5  ;;  %v3537_v32 = vsub.f32 %v3243_v6, %v9565_v38  ;;  %v6842_v16 = vld [vmem:[%s14285_s1 + $0x3d0] sm:$0xff]  ;;  %5162 = vmatmul.f32.gmra.mxu3 %v5004_v37  ;;  %v15170_v25 = vld [vmem:[#allocation6_spill] sm:$0xff] }
 0x2b6   : > { %3009 = vperm.xlu1 %6728, %v6841_v15   ;;  %v3858_v51 = vand.u32 2147483647, %v3570_v48  ;;  %v4476_v20 = vmax.f32 %v4188_v44, 0.0  ;;  %v3865_v36 = vand.u32 2147483647, %v3577_v26  ;;  %v3541_v44 = vsub.f32 %v3247_v28, %v9565_v38  ;;  %v6843_v26 = vld [vmem:[%s14285_s1 + $0x470] sm:$0xff] }
 0x2b7   : > { %5188 = vmatpush.msrb.mxu2 %v4690_v7  ;;  %15169 = vst [vmem:[#allocation108_spill] sm:$0xff] %v10824_v10  ;;  %v10830_v17 = vpop.permute.xlu1 %2881  ;;  %v3905_v3 = vand.u32 2147483647, %v3617_v9  ;;  %v15171_v7 = vmax.f32 %v15170_v25, 0.0  ;;  %v3281_v48 = vsub.f32 %v10651_v33, %v9534_v43  ;;  %v4222_v9 = vsub.f32 1.0, %v3934_v34 }
 0x2b8   : > { %3077 = vperm.xlu2 %6729, %v6842_v16   ;;  %v3316_v55 = vsub.f32 %v10830_v17, %v9532_v50  ;;  %v10836_v5 = vpop.permute.xlu2 %2721  ;;  %v10838_v6 = vpop.permute.xlu0 %2729  ;;  %v15172_v16 = vld [vmem:[#allocation135_spill] sm:$0xff]  ;;  %v10853_v33 = vsub.f32 1.0, %v3861_v54  ;;  %v5030_v54 = vld [vmem:[%s14284_s0 + $0x3f0] sm:$0xff]  ;;  %v3355_v34 = vsub.f32 %v10660_v49, %v9534_v43 }
 0x2b9   : > { %v4688_v15 = vmul.f32 %v4400_v8, %v15171_v7  ;;  %v15173_v39 = vmax.f32 %v15172_v16, 0.0  ;;  %3157 = vperm.xlu0 %6727, %v6843_v26   ;;  %v3351_v8 = vsub.f32 %v10658_v45, %v9534_v43  ;;  %v3240_v28 = vsub.f32 %v10838_v6, %v9532_v50  ;;  %v6845_v49 = vld [vmem:[%s14285_s1 + $0x3c8] sm:$0xff] }
 0x2ba   : > { %v3610_v25 = vsub.f32 %v3316_v55, %v9573_v56  ;;  %v4220_v7 = vsub.f32 1.0, %v3932_v27  ;;  %15174 = vst [vmem:[#allocation158_spill] sm:$0xff] %v10853_v33  ;;  %v3825_v16 = vand.u32 2147483647, %v3537_v32  ;;  %v10858_v26 = vsub.f32 1.0, %v3865_v36  ;;  %v4922_v27 = vld [vmem:[%s14284_s0 + $0x90] sm:$0xff] }
 0x2bb   : > { %v4764_v37 = vmul.f32 %v4476_v20, %v15173_v39  ;;  %5189 = vmatpush.msrb.mxu2 %v4688_v15  ;;  %v3314_v39 = vsub.f32 %v10714_v23, %v9532_v50  ;;  %v4146_v20 = vsub.f32 1.0, %v3858_v51  ;;  %v10860_v45 = vsub.f32 1.0, %v3905_v3  ;;  %5070 = vmatmul.f32.gmra.mxu0 %v4922_v27  ;;  %v4923_v36 = vld [vmem:[%s14284_s0 + $0x98] sm:$0xff]  ;;  %v5013_v3 = vld [vmem:[%s14284_s0 + $0x368] sm:$0xff] }
 0x2bc   : > { %15175 = vst [vmem:[#allocation83_spill] sm:$0xff] %v10858_v26  ;;  %v3534_v15 = vsub.f32 %v3240_v28, %v9573_v56  ;;  %v3829_v32 = vand.u32 2147483647, %v3541_v44  ;;  %v3575_v55 = vsub.f32 %v3281_v48, %v9565_v38  ;;  %5106 = vmatmul.f32.gmra.mxu2 %v5030_v54  ;;  %v3645_v28 = vsub.f32 %v3351_v8, %v9565_v38  ;;  %v6844_v48 = vld [vmem:[%s14285_s1 + $0x340] sm:$0xff]  ;;  %v15177_v54 = vld [vmem:[#allocation103_spill] sm:$0xff] }
 0x2bd   : > { %5313 = vmatpush.msrb.mxu0 %v4764_v37  ;;  %v4434_v51 = vmax.f32 %v4146_v20, 0.0  ;;  %v4510_v37 = vmax.f32 %v4222_v9, 0.0  ;;  %v3898_v44 = vand.u32 2147483647, %v3610_v25  ;;  %v4508_v9 = vmax.f32 %v4220_v7, 0.0  ;;  %5135 = vmatmul.f32.gmra.mxu1 %v4923_v36 }
 0x2be   : > { %3005 = vperm.xlu1 %6728, %v6844_v48   ;;  %v10882_v20 = vsub.f32 1.0, %v3825_v16  ;;  %v3608_v27 = vsub.f32 %v3314_v39, %v9573_v56  ;;  %v15178_v60 = vmax.f32 %v15177_v54, 0.0  ;;  %v15179_v8 = vmax.f32 %v9021_v40, 0.0  ;;  %5165 = vmatmul.f32.gmra.mxu3 %v5013_v3 }
 0x2bf   : > { %v10892_v25 = vpop.permute.xlu1 %2797  ;;  %v3822_v36 = vand.u32 2147483647, %v3534_v15  ;;  %v3863_v48 = vand.u32 2147483647, %v3575_v55  ;;  %v15181_v3 = vmax.f32 %v9026_v21, 0.0  ;;  %v3272_v15 = vsub.f32 %v10774_v53, %v9532_v50 }
 0x2c0   : > { %15176 = vst [vmem:[#allocation159_spill] sm:$0xff] %v10882_v20  ;;  %v4722_v10 = vmul.f32 %v4434_v51, %v15178_v60  ;;  %v4798_v57 = vmul.f32 %v4510_v37, %v15179_v8  ;;  %3073 = vperm.xlu2 %6729, %v6845_v49   ;;  %v3274_v39 = vsub.f32 %v10892_v25, %v9532_v50  ;;  %v10898_v60 = vpop.permute.xlu2 %2937  ;;  %v10900_v40 = vpop.permute.xlu0 %2945  ;;  %v10903_v37 = vsub.f32 1.0, %v3829_v32  ;;  %v6846_v8 = vld [vmem:[%s14285_s1 + $0x468] sm:$0xff] }
 0x2c1   : > { %v4796_v54 = vmul.f32 %v4508_v9, %v15181_v3  ;;  %3153 = vperm.xlu0 %6727, %v6846_v8   ;;  %v3348_v32 = vsub.f32 %v10900_v40, %v9532_v50  ;;  %v4186_v7 = vsub.f32 1.0, %v3898_v44  ;;  %v3649_v21 = vsub.f32 %v3355_v34, %v9565_v38  ;;  %v15182_v9 = vld [vmem:[#allocation136_spill] sm:$0xff]  ;;  %v15186_v8 = vld [vmem:[#allocation95_spill] sm:$0xff]  ;;  %v4931_v34 = vld [vmem:[%s14284_s0 + $0xd8] sm:$0xff] }
 0x2c2   : > { %15180 = vst [vmem:[#allocation122_spill] sm:$0xff] %v10903_v37  ;;  %5253 = vmatpush.msrb.mxu3 %v4722_v10  ;;  %5377 = vmatpush.msrb.mxu1 %v4798_v57  ;;  %v3568_v49 = vsub.f32 %v3274_v39, %v9573_v56  ;;  %v3933_v57 = vand.u32 2147483647, %v3645_v28  ;;  %v3896_v55 = vand.u32 2147483647, %v3608_v27  ;;  %v15183_v3 = vmax.f32 %v15182_v9, 0.0 }
 0x2c3   : > { %v15184_v16 = vmax.f32 %v10370_v22, 0.0  ;;  %v15187_v33 = vmax.f32 %v15186_v8, 0.0  ;;  %v15188_v39 = vmax.f32 %v10491_v61, 0.0  ;;  %v4110_v0 = vsub.f32 1.0, %v3822_v36  ;;  %v5039_v28 = vld [vmem:[%s14284_s0 + $0x438] sm:$0xff]  ;;  %v4932_v22 = vld [vmem:[%s14284_s0 + $0xe0] sm:$0xff]  ;;  %5073 = vmatmul.f32.gmra.mxu0 %v4931_v34 }
 0x2c4   : > { %5378 = vmatpush.msrb.mxu1 %v4796_v54  ;;  %v3856_v44 = vand.u32 2147483647, %v3568_v49  ;;  %v3245_v61 = vsub.f32 %v10704_v41, %v9534_v43  ;;  %5109 = vmatmul.f32.gmra.mxu2 %v5039_v28  ;;  %v3315_v36 = vsub.f32 %v10714_v23, %v9534_v43  ;;  %v3566_v54 = vsub.f32 %v3272_v15, %v9573_v56  ;;  %v6848_v23 = vld [vmem:[%s14285_s1 + $0x3c0] sm:$0xff]  ;;  %v15194_v34 = vld [vmem:[#allocation152_spill] sm:$0xff] }
 0x2c5   : > { %v10921_v51 = vmul.f32 %v15184_v16, %v15183_v3  ;;  %v10927_v26 = vmul.f32 %v15188_v39, %v15187_v33  ;;  %v10939_v16 = vsub.f32 1.0, %v3863_v48  ;;  %v3642_v33 = vsub.f32 %v3348_v32, %v9573_v56  ;;  %v6847_v3 = vld [vmem:[%s14285_s1 + $0x338] sm:$0xff]  ;;  %5138 = vmatmul.f32.gmra.mxu1 %v4932_v22  ;;  %v15192_v8 = vld [vmem:[#allocation74_spill] sm:$0xff] }
 0x2c6   : > { %v4398_v49 = vmax.f32 %v4110_v0, 0.0  ;;  %v4474_v9 = vmax.f32 %v4186_v7, 0.0  ;;  %3001 = vperm.xlu1 %6728, %v6847_v3   ;;  %v10950_v48 = vsub.f32 1.0, %v3933_v57  ;;  %v3937_v41 = vand.u32 2147483647, %v3649_v21  ;;  %v5022_v7 = vld [vmem:[%s14284_s0 + $0x3b0] sm:$0xff] }
 0x2c7   : > { %15185 = vst [vmem:[#allocation55_spill] sm:$0xff] %v10921_v51  ;;  %v3236_v32 = vsub.f32 %v10836_v5, %v9532_v50  ;;  %v4184_v15 = vsub.f32 1.0, %v3896_v55  ;;  %v10957_v0 = vpop.permute.xlu1 %2725  ;;  %v15193_v39 = vmax.f32 %v15192_v8, 0.0  ;;  %v15195_v21 = vmax.f32 %v15194_v34, 0.0  ;;  %5168 = vmatmul.f32.gmra.mxu3 %v5022_v7 }
 0x2c8   : > { %15189 = vst [vmem:[#allocation168_spill] sm:$0xff] %v10927_v26  ;;  %3069 = vperm.xlu2 %6729, %v6848_v23   ;;  %v3238_v22 = vsub.f32 %v10957_v0, %v9532_v50  ;;  %v4144_v3 = vsub.f32 1.0, %v3856_v44  ;;  %v3539_v55 = vsub.f32 %v3245_v61, %v9565_v38  ;;  %v3930_v10 = vand.u32 2147483647, %v3642_v33  ;;  %v6849_v33 = vld [vmem:[%s14285_s1 + $0x460] sm:$0xff] }
 0x2c9   : > { %15190 = vst [vmem:[#allocation123_spill] sm:$0xff] %v10939_v16  ;;  %v4686_v57 = vmul.f32 %v4398_v49, %v15193_v39  ;;  %v4762_v28 = vmul.f32 %v4474_v9, %v15195_v21  ;;  %v4472_v27 = vmax.f32 %v4184_v15, 0.0  ;;  %v10972_v37 = vpop.permute.xlu0 %2873  ;;  %v3609_v49 = vsub.f32 %v3315_v36, %v9565_v38  ;;  %3149 = vperm.xlu0 %6727, %v6849_v33   ;;  %v15196_v15 = vld [vmem:[#allocation154_spill] sm:$0xff]  ;;  %v4941_v21 = vld [vmem:[%s14284_s0 + $0x128] sm:$0xff] }
 0x2ca   : > { %15191 = vst [vmem:[#allocation96_spill] sm:$0xff] %v10950_v48  ;;  %v10970_v20 = vpop.permute.xlu2 %2865  ;;  %v3319_v9 = vsub.f32 %v10716_v62, %v9534_v43  ;;  %v3854_v8 = vand.u32 2147483647, %v3566_v54  ;;  %v3532_v44 = vsub.f32 %v3238_v22, %v9573_v56  ;;  %v3353_v7 = vsub.f32 %v10772_v42, %v9534_v43  ;;  %v6850_v54 = vld [vmem:[%s14285_s1 + $0x330] sm:$0xff] }
 0x2cb   : > { %5190 = vmatpush.msrb.mxu2 %v4686_v57  ;;  %5314 = vmatpush.msrb.mxu0 %v4762_v28  ;;  %v3530_v61 = vsub.f32 %v3236_v32, %v9573_v56  ;;  %v15197_v36 = vmax.f32 %v15196_v15, 0.0  ;;  %v3312_v62 = vsub.f32 %v10972_v37, %v9532_v50  ;;  %v3273_v57 = vsub.f32 %v10774_v53, %v9534_v43  ;;  %v4940_v32 = vld [vmem:[%s14284_s0 + $0x120] sm:$0xff] }
 0x2cc   : > { %v3820_v34 = vand.u32 2147483647, %v3532_v44  ;;  %v4432_v42 = vmax.f32 %v4144_v3, 0.0  ;;  %v10997_v28 = vsub.f32 1.0, %v3937_v41  ;;  %v4218_v33 = vsub.f32 1.0, %v3930_v10  ;;  %v15199_v44 = vld [vmem:[#allocation116_spill] sm:$0xff]  ;;  %5076 = vmatmul.f32.gmra.mxu0 %v4940_v32 }
 0x2cd   : > { %v4760_v39 = vmul.f32 %v4472_v27, %v15197_v36  ;;  %v3827_v27 = vand.u32 2147483647, %v3539_v55  ;;  %v3606_v22 = vsub.f32 %v3312_v62, %v9573_v56  ;;  %v3897_v15 = vand.u32 2147483647, %v3609_v49  ;;  %v5031_v41 = vld [vmem:[%s14284_s0 + $0x3f8] sm:$0xff]  ;;  %5141 = vmatmul.f32.gmra.mxu1 %v4941_v21 }
 0x2ce   : > { %15198 = vst [vmem:[#allocation6_spill] sm:$0xff] %v10997_v28  ;;  %v3613_v53 = vsub.f32 %v3319_v9, %v9565_v38  ;;  %v15200_v3 = vmax.f32 %v15199_v44, 0.0  ;;  %2997 = vperm.xlu1 %6728, %v6850_v54   ;;  %v4142_v23 = vsub.f32 1.0, %v3854_v8  ;;  %v3647_v55 = vsub.f32 %v3353_v7, %v9565_v38 }
 0x2cf   : > { %5315 = vmatpush.msrb.mxu0 %v4760_v39  ;;  %v3818_v10 = vand.u32 2147483647, %v3530_v61  ;;  %v3344_v49 = vsub.f32 %v10898_v60, %v9532_v50  ;;  %v4506_v9 = vmax.f32 %v4218_v33, 0.0  ;;  %v6851_v39 = vld [vmem:[%s14285_s1 + $0x3b8] sm:$0xff]  ;;  %v3567_v8 = vsub.f32 %v3273_v57, %v9565_v38  ;;  %5171 = vmatmul.f32.gmra.mxu3 %v5031_v41 }
 0x2d0   : > { %v4720_v36 = vmul.f32 %v4432_v42, %v15200_v3  ;;  %3065 = vperm.xlu2 %6729, %v6851_v39   ;;  %v3277_v62 = vsub.f32 %v10782_v59, %v9534_v43  ;;  %v4430_v54 = vmax.f32 %v4142_v23, 0.0  ;;  %v11018_v42 = vpop.permute.xlu1 %2941  ;;  %v4108_v7 = vsub.f32 1.0, %v3820_v34  ;;  %v15202_v33 = vld [vmem:[#allocation165_spill] sm:$0xff] }
 0x2d1   : > { %v11020_v61 = vsub.f32 1.0, %v3827_v27  ;;  %v3894_v32 = vand.u32 2147483647, %v3606_v22  ;;  %v15203_v44 = vmax.f32 %v15202_v33, 0.0  ;;  %v3346_v39 = vsub.f32 %v11018_v42, %v9532_v50  ;;  %v11028_v57 = vpop.permute.xlu0 %2789  ;;  %v15204_v27 = vld [vmem:[#allocation117_spill] sm:$0xff] }
 0x2d2   : > { %5254 = vmatpush.msrb.mxu3 %v4720_v36  ;;  %v11026_v21 = vpop.permute.xlu2 %2861  ;;  %v11030_v59 = vsub.f32 1.0, %v3897_v15  ;;  %v3901_v23 = vand.u32 2147483647, %v3613_v53  ;;  %v3317_v34 = vsub.f32 %v10830_v17, %v9534_v43  ;;  %v15205_v36 = vmax.f32 %v15204_v27, 0.0 }
 0x2d3   : > { %15201 = vst [vmem:[#allocation135_spill] sm:$0xff] %v11020_v61  ;;  %v4794_v3 = vmul.f32 %v4506_v9, %v15203_v44  ;;  %v3638_v33 = vsub.f32 %v3344_v49, %v9573_v56  ;;  %v6852_v9 = vld [vmem:[%s14285_s1 + $0x458] sm:$0xff]  ;;  %v3640_v44 = vsub.f32 %v3346_v39, %v9573_v56  ;;  %v3270_v15 = vsub.f32 %v11028_v57, %v9532_v50  ;;  %v4949_v39 = vld [vmem:[%s14284_s0 + $0x168] sm:$0xff] }
 0x2d4   : > { %v4718_v22 = vmul.f32 %v4430_v54, %v15205_v36  ;;  %3145 = vperm.xlu0 %6727, %v6852_v9   ;;  %v4106_v53 = vsub.f32 1.0, %v3818_v10  ;;  %v3935_v41 = vand.u32 2147483647, %v3647_v55  ;;  %v3855_v48 = vand.u32 2147483647, %v3567_v8  ;;  %v4950_v55 = vld [vmem:[%s14284_s0 + $0x170] sm:$0xff]  ;;  %5079 = vmatmul.f32.gmra.mxu0 %v4949_v39 }
 0x2d5   : > { %5379 = vmatpush.msrb.mxu1 %v4794_v3  ;;  %v3571_v17 = vsub.f32 %v3277_v62, %v9565_v38  ;;  %v4396_v54 = vmax.f32 %v4108_v7, 0.0  ;;  %v3564_v27 = vsub.f32 %v3270_v15, %v9573_v56  ;;  %v4182_v36 = vsub.f32 1.0, %v3894_v32  ;;  %v15206_v7 = vld [vmem:[#allocation4_spill] sm:$0xff]  ;;  %v6853_v32 = vld [vmem:[%s14285_s1 + $0x328] sm:$0xff]  ;;  %v5040_v15 = vld [vmem:[%s14284_s0 + $0x440] sm:$0xff] }
 0x2d6   : > { %5255 = vmatpush.msrb.mxu3 %v4718_v22  ;;  %v11053_v10 = vsub.f32 1.0, %v3901_v23  ;;  %v3611_v8 = vsub.f32 %v3317_v34, %v9565_v38  ;;  %v3928_v62 = vand.u32 2147483647, %v3640_v44  ;;  %v15207_v22 = vmax.f32 %v15206_v7, 0.0  ;;  %2993 = vperm.xlu1 %6728, %v6853_v32   ;;  %v6854_v34 = vld [vmem:[%s14285_s1 + $0x3b0] sm:$0xff]  ;;  %v15210_v49 = vld [vmem:[#allocation133_spill] sm:$0xff] }
 0x2d7   : > { %v3926_v23 = vand.u32 2147483647, %v3638_v33  ;;  %v4470_v3 = vmax.f32 %v4182_v36, 0.0  ;;  %v4394_v44 = vmax.f32 %v4106_v53, 0.0  ;;  %5144 = vmatmul.f32.gmra.mxu1 %v4950_v55  ;;  %v11070_v7 = vsub.f32 1.0, %v3855_v48  ;;  %5174 = vmatmul.f32.gmra.mxu3 %v5040_v15  ;;  %v15212_v55 = vld [vmem:[#allocation94_spill] sm:$0xff] }
 0x2d8   : > { %v4684_v9 = vmul.f32 %v4396_v54, %v15207_v22  ;;  %3061 = vperm.xlu2 %6729, %v6854_v34   ;;  %v11068_v54 = vsub.f32 1.0, %v3935_v41  ;;  %v3859_v39 = vand.u32 2147483647, %v3571_v17  ;;  %v3237_v22 = vsub.f32 %v10836_v5, %v9534_v43  ;;  %v11074_v32 = vpop.permute.xlu1 %2869 }
 0x2d9   : > { %15209 = vst [vmem:[#allocation136_spill] sm:$0xff] %v11070_v7  ;;  %v3241_v33 = vsub.f32 %v10838_v6, %v9534_v43  ;;  %v3852_v36 = vand.u32 2147483647, %v3564_v27  ;;  %v15211_v28 = vmax.f32 %v15210_v49, 0.0  ;;  %v3310_v53 = vsub.f32 %v11074_v32, %v9532_v50  ;;  %v11084_v48 = vpop.permute.xlu0 %2717 }
 0x2da   : > { %15208 = vst [vmem:[#allocation103_spill] sm:$0xff] %v11068_v54  ;;  %5191 = vmatpush.msrb.mxu2 %v4684_v9  ;;  %v11082_v41 = vpop.permute.xlu2 %2925  ;;  %v3899_v17 = vand.u32 2147483647, %v3611_v8  ;;  %v15213_v9 = vmax.f32 %v15212_v55, 0.0  ;;  %v4216_v61 = vsub.f32 1.0, %v3928_v62  ;;  %v3308_v6 = vsub.f32 %v10970_v20, %v9532_v50  ;;  %v15216_v54 = vld [vmem:[#allocation9_spill] sm:$0xff] }
 0x2db   : > { %v4758_v34 = vmul.f32 %v4470_v3, %v15211_v28  ;;  %v6855_v28 = vld [vmem:[%s14285_s1 + $0x450] sm:$0xff]  ;;  %v3604_v49 = vsub.f32 %v3310_v53, %v9573_v56  ;;  %v3234_v3 = vsub.f32 %v11084_v48, %v9532_v50  ;;  %v4214_v27 = vsub.f32 1.0, %v3926_v23 }
 0x2dc   : > { %v4682_v16 = vmul.f32 %v4394_v44, %v15213_v9  ;;  %3141 = vperm.xlu0 %6727, %v6855_v28   ;;  %v11099_v62 = vsub.f32 1.0, %v3859_v39  ;;  %v3531_v44 = vsub.f32 %v3237_v22, %v9565_v38  ;;  %v3306_v55 = vsub.f32 %v11026_v21, %v9532_v50  ;;  %v4958_v23 = vld [vmem:[%s14284_s0 + $0x1b0] sm:$0xff]  ;;  %v4959_v39 = vld [vmem:[%s14284_s0 + $0x1b8] sm:$0xff] }
 0x2dd   : > { %5316 = vmatpush.msrb.mxu0 %v4758_v34  ;;  %v3535_v34 = vsub.f32 %v3241_v33, %v9565_v38  ;;  %v3528_v53 = vsub.f32 %v3234_v3, %v9573_v56  ;;  %v4140_v9 = vsub.f32 1.0, %v3852_v36  ;;  %v11112_v28 = vsub.f32 1.0, %v3899_v17  ;;  %v6856_v3 = vld [vmem:[%s14285_s1 + $0x320] sm:$0xff]  ;;  %v6857_v17 = vld [vmem:[%s14285_s1 + $0x3a8] sm:$0xff] }
 0x2de   : > { %15214 = vst [vmem:[#allocation95_spill] sm:$0xff] %v11099_v62  ;;  %5192 = vmatpush.msrb.mxu2 %v4682_v16  ;;  %v3275_v16 = vsub.f32 %v10892_v25, %v9534_v43  ;;  %v3892_v22 = vand.u32 2147483647, %v3604_v49  ;;  %v4504_v33 = vmax.f32 %v4216_v61, 0.0  ;;  %2989 = vperm.xlu1 %6728, %v6856_v3   ;;  %v3345_v36 = vsub.f32 %v10898_v60, %v9534_v43 }
 0x2df   : > { %5082 = vmatmul.f32.gmra.mxu0 %v4958_v23  ;;  %v3602_v15 = vsub.f32 %v3308_v6, %v9573_v56  ;;  %v4428_v8 = vmax.f32 %v4140_v9, 0.0  ;;  %v4502_v25 = vmax.f32 %v4214_v27, 0.0  ;;  %5147 = vmatmul.f32.gmra.mxu1 %v4959_v39  ;;  %v3819_v49 = vand.u32 2147483647, %v3531_v44 }
 0x2e0   : > { %3057 = vperm.xlu2 %6729, %v6857_v17   ;;  %v3349_v3 = vsub.f32 %v10900_v40, %v9534_v43  ;;  %v15215_v23 = vmax.f32 %v8996_v1, 0.0  ;;  %v11130_v60 = vpop.permute.xlu1 %2785  ;;  %v3823_v6 = vand.u32 2147483647, %v3535_v34  ;;  %v3600_v9 = vsub.f32 %v3306_v55, %v9573_v56  ;;  %v4906_v55 = vld [vmem:[%s14284_s0 + $0x10] sm:$0xff] }
 0x2e1   : > { %v3816_v7 = vand.u32 2147483647, %v3528_v53  ;;  %v15217_v51 = vmax.f32 %v15216_v54, 0.0  ;;  %v3569_v39 = vsub.f32 %v3275_v16, %v9565_v38  ;;  %v15218_v44 = vmax.f32 %v9004_v14, 0.0 }
 0x2e2   : > { %v4792_v5 = vmul.f32 %v4504_v33, %v15215_v23  ;;  %v11135_v27 = vpop.permute.xlu2 %2849  ;;  %v3268_v1 = vsub.f32 %v11130_v60, %v9532_v50  ;;  %v11142_v33 = vpop.permute.xlu0 %2933  ;;  %v4180_v34 = vsub.f32 1.0, %v3892_v22  ;;  %v3639_v53 = vsub.f32 %v3345_v36, %v9565_v38 }
 0x2e3   : > { %v4716_v17 = vmul.f32 %v4428_v8, %v15217_v51  ;;  %v4790_v40 = vmul.f32 %v4502_v25, %v15218_v44  ;;  %v3890_v54 = vand.u32 2147483647, %v3602_v15  ;;  %v6858_v51 = vld [vmem:[%s14285_s1 + $0x448] sm:$0xff]  ;;  %v3342_v14 = vsub.f32 %v11142_v33, %v9532_v50 }
 0x2e4   : > { %5380 = vmatpush.msrb.mxu1 %v4792_v5  ;;  %3137 = vperm.xlu0 %6727, %v6858_v51   ;;  %v11151_v5 = vsub.f32 1.0, %v3819_v49  ;;  %v3643_v8 = vsub.f32 %v3349_v3, %v9565_v38  ;;  %v3239_v16 = vsub.f32 %v10957_v0, %v9534_v43  ;;  %v3309_v22 = vsub.f32 %v10970_v20, %v9534_v43  ;;  %v15220_v15 = vld [vmem:[#allocation163_spill] sm:$0xff]  ;;  %v4967_v3 = vld [vmem:[%s14284_s0 + $0x1f8] sm:$0xff]  ;;  %v4968_v0 = vld [vmem:[%s14284_s0 + $0x200] sm:$0xff] }
 0x2e5   : > { %5256 = vmatpush.msrb.mxu3 %v4716_v17  ;;  %v15221_v36 = vmax.f32 %v15220_v15, 0.0  ;;  %v15222_v25 = vmax.f32 %v10504_v18, 0.0  ;;  %v11164_v17 = vsub.f32 1.0, %v3823_v6  ;;  %v3888_v44 = vand.u32 2147483647, %v3600_v9  ;;  %v6859_v6 = vld [vmem:[%s14285_s1 + $0x318] sm:$0xff] }
 0x2e6   : > { %15219 = vst [vmem:[#allocation74_spill] sm:$0xff] %v11151_v5  ;;  %5381 = vmatpush.msrb.mxu1 %v4790_v40  ;;  %v4104_v49 = vsub.f32 1.0, %v3816_v7  ;;  %v3857_v20 = vand.u32 2147483647, %v3569_v39  ;;  %v3313_v40 = vsub.f32 %v10972_v37, %v9534_v43  ;;  %v3562_v18 = vsub.f32 %v3268_v1, %v9573_v56  ;;  %2985 = vperm.xlu1 %6728, %v6859_v6   ;;  %v6860_v39 = vld [vmem:[%s14285_s1 + $0x3a0] sm:$0xff] }
 0x2e7   : > { %v11162_v23 = vmul.f32 %v15222_v25, %v15221_v36  ;;  %15223 = vst [vmem:[#allocation152_spill] sm:$0xff] %v11164_v17  ;;  %v4468_v51 = vmax.f32 %v4180_v34, 0.0  ;;  %5085 = vmatmul.f32.gmra.mxu0 %v4967_v3  ;;  %v3927_v7 = vand.u32 2147483647, %v3639_v53  ;;  %v3636_v9 = vsub.f32 %v3342_v14, %v9573_v56  ;;  %5150 = vmatmul.f32.gmra.mxu1 %v4968_v0  ;;  %v15224_v25 = vld [vmem:[#allocation146_spill] sm:$0xff]  ;;  %v15226_v53 = vld [vmem:[#allocation68_spill] sm:$0xff] }
 0x2e8   : > { %v4392_v15 = vmax.f32 %v4104_v49, 0.0  ;;  %3053 = vperm.xlu2 %6729, %v6860_v39   ;;  %v4178_v36 = vsub.f32 1.0, %v3890_v54  ;;  %v3931_v37 = vand.u32 2147483647, %v3643_v8  ;;  %v3533_v1 = vsub.f32 %v3239_v16, %v9565_v38  ;;  %v11186_v3 = vpop.permute.xlu1 %2781 }
 0x2e9   : > { %v3603_v34 = vsub.f32 %v3309_v22, %v9565_v38  ;;  %v15225_v61 = vmax.f32 %v15224_v25, 0.0  ;;  %v15227_v14 = vmax.f32 %v15226_v53, 0.0  ;;  %v3266_v54 = vsub.f32 %v11186_v3, %v9532_v50 }
 0x2ea   : > { %v4466_v39 = vmax.f32 %v4178_v36, 0.0  ;;  %v4176_v8 = vsub.f32 1.0, %v3888_v44  ;;  %v11196_v22 = vsub.f32 1.0, %v3857_v20  ;;  %v3850_v0 = vand.u32 2147483647, %v3562_v18  ;;  %v6861_v44 = vld [vmem:[%s14285_s1 + $0x440] sm:$0xff] }
 0x2eb   : > { %v4756_v6 = vmul.f32 %v4468_v51, %v15225_v61  ;;  %v4680_v49 = vmul.f32 %v4392_v15, %v15227_v14  ;;  %v3607_v61 = vsub.f32 %v3313_v40, %v9565_v38  ;;  %v11199_v51 = vpop.permute.xlu2 %2913  ;;  %v11201_v15 = vpop.permute.xlu0 %2929  ;;  %v3338_v25 = vsub.f32 %v11082_v41, %v9532_v50  ;;  %v15229_v20 = vld [vmem:[#allocation147_spill] sm:$0xff] }
 0x2ec   : > { %15228 = vst [vmem:[#allocation154_spill] sm:$0xff] %v11196_v22  ;;  %v3924_v36 = vand.u32 2147483647, %v3636_v9  ;;  %3133 = vperm.xlu0 %6727, %v6861_v44   ;;  %v15230_v53 = vmax.f32 %v15229_v20, 0.0  ;;  %v3560_v40 = vsub.f32 %v3266_v54, %v9573_v56  ;;  %v3821_v16 = vand.u32 2147483647, %v3533_v1 }
 0x2ed   : > { %5317 = vmatpush.msrb.mxu0 %v4756_v6  ;;  %5193 = vmatpush.msrb.mxu2 %v4680_v49  ;;  %v11212_v6 = vsub.f32 1.0, %v3927_v7  ;;  %v3340_v9 = vsub.f32 %v11201_v15, %v9532_v50  ;;  %v11216_v49 = vsub.f32 1.0, %v3931_v37  ;;  %v3891_v62 = vand.u32 2147483647, %v3603_v34  ;;  %v4976_v7 = vld [vmem:[%s14284_s0 + $0x240] sm:$0xff]  ;;  %v15233_v34 = vld [vmem:[#allocation129_spill] sm:$0xff] }
 0x2ee   : > { %v4754_v14 = vmul.f32 %v4466_v39, %v15230_v53  ;;  %5194 = vmatmul.f32.vlgmr.msrb.gmra.mxu2 %v4906_v55  ;;  %v3848_v5 = vand.u32 2147483647, %v3560_v40  ;;  %v4464_v44 = vmax.f32 %v4176_v8, 0.0  ;;  %v3895_v39 = vand.u32 2147483647, %v3607_v61  ;;  %v6862_v55 = vld [vmem:[%s14285_s1 + $0x310] sm:$0xff] }
 0x2ef   : > { %15231 = vst [vmem:[#allocation116_spill] sm:$0xff] %v11212_v6  ;;  %v3347_v54 = vsub.f32 %v11018_v42, %v9534_v43  ;;  %v4138_v53 = vsub.f32 1.0, %v3850_v0  ;;  %2981 = vperm.xlu1 %6728, %v6862_v55   ;;  %v3632_v37 = vsub.f32 %v3338_v25, %v9573_v56  ;;  %v3634_v1 = vsub.f32 %v3340_v9, %v9573_v56  ;;  %v6863_v42 = vld [vmem:[%s14285_s1 + $0x398] sm:$0xff]  ;;  %v4977_v0 = vld [vmem:[%s14284_s0 + $0x248] sm:$0xff] }
 0x2f0   : > { %15232 = vst [vmem:[#allocation165_spill] sm:$0xff] %v11216_v49  ;;  %5318 = vmatpush.msrb.mxu0 %v4754_v14  ;;  %v15234_v8 = vmax.f32 %v15233_v34, 0.0  ;;  %v4212_v14 = vsub.f32 1.0, %v3924_v36  ;;  %3049 = vperm.xlu2 %6729, %v6863_v42   ;;  %v3307_v25 = vsub.f32 %v11026_v21, %v9534_v43  ;;  %v11240_v55 = vpop.permute.xlu1 %2857  ;;  %v11242_v36 = vsub.f32 1.0, %v3821_v16  ;;  %v15238_v20 = vld [vmem:[#allocation161_spill] sm:$0xff] }
 0x2f1   : > { %5088 = vmatmul.f32.gmra.mxu0 %v4976_v7  ;;  %v4426_v9 = vmax.f32 %v4138_v53, 0.0  ;;  %5153 = vmatmul.f32.gmra.mxu1 %v4977_v0  ;;  %v11244_v34 = vsub.f32 1.0, %v3891_v62  ;;  %v3304_v42 = vsub.f32 %v11240_v55, %v9532_v50  ;;  %v11252_v53 = vsub.f32 1.0, %v3895_v39  ;;  %v15236_v0 = vld [vmem:[#allocation35_spill] sm:$0xff]  ;;  %v6864_v22 = vld [vmem:[%s14285_s1 + $0x438] sm:$0xff] }
 0x2f2   : > { %v4752_v61 = vmul.f32 %v4464_v44, %v15234_v8  ;;  %v4136_v44 = vsub.f32 1.0, %v3848_v5  ;;  %15235 = vst [vmem:[#allocation117_spill] sm:$0xff] %v11242_v36  ;;  %v4500_v7 = vmax.f32 %v4212_v14, 0.0  ;;  %v4915_v8 = vld [vmem:[%s14284_s0 + $0x58] sm:$0xff]  ;;  %v3641_v5 = vsub.f32 %v3347_v54, %v9565_v38 }
 0x2f3   : > { %v15237_v16 = vmax.f32 %v15236_v0, 0.0  ;;  %v11257_v62 = vpop.permute.xlu0 %2853  ;;  %v3922_v14 = vand.u32 2147483647, %v3634_v1  ;;  %v15239_v18 = vmax.f32 %v15238_v20, 0.0  ;;  %v3598_v39 = vsub.f32 %v3304_v42, %v9573_v56  ;;  %v6865_v42 = vld [vmem:[%s14285_s1 + $0x308] sm:$0xff] }
 0x2f4   : > { %5319 = vmatpush.msrb.mxu0 %v4752_v61  ;;  %v3920_v61 = vand.u32 2147483647, %v3632_v37  ;;  %3129 = vperm.xlu0 %6727, %v6864_v22   ;;  %v3601_v21 = vsub.f32 %v3307_v25, %v9565_v38  ;;  %v3271_v54 = vsub.f32 %v11028_v57, %v9534_v43  ;;  %v11270_v37 = vpop.permute.xlu2 %3029  ;;  %v3339_v22 = vsub.f32 %v11082_v41, %v9534_v43  ;;  %v4907_v41 = vld [vmem:[%s14284_s0 + $0x18] sm:$0xff] }
 0x2f5   : > { %v4714_v40 = vmul.f32 %v4426_v9, %v15237_v16  ;;  %v4788_v6 = vmul.f32 %v4500_v7, %v15239_v18  ;;  %v3311_v9 = vsub.f32 %v11074_v32, %v9534_v43  ;;  %v4424_v18 = vmax.f32 %v4136_v44, 0.0  ;;  %v15240_v7 = vld [vmem:[#allocation114_spill] sm:$0xff]  ;;  %v6866_v16 = vld [vmem:[%s14285_s1 + $0x390] sm:$0xff] }
 0x2f6   : > { %5197 = vmatmul.f32.gmra.mxu2 %v4915_v8  ;;  %v3302_v25 = vsub.f32 %v11257_v62, %v9532_v50  ;;  %v3235_v57 = vsub.f32 %v11084_v48, %v9534_v43  ;;  %v3300_v32 = vsub.f32 %v11135_v27, %v9532_v50  ;;  %v15241_v44 = vmax.f32 %v15240_v7, 0.0 }
 0x2f7   : > { %5257 = vmatpush.msrb.mxu3 %v4714_v40  ;;  %5382 = vmatpush.msrb.mxu1 %v4788_v6  ;;  %v3886_v40 = vand.u32 2147483647, %v3598_v39  ;;  %v3929_v6 = vand.u32 2147483647, %v3641_v5  ;;  %v4210_v48 = vsub.f32 1.0, %v3922_v14  ;;  %v4208_v39 = vsub.f32 1.0, %v3920_v61 }
 0x2f8   : > { %v4712_v8 = vmul.f32 %v4424_v18, %v15241_v44  ;;  %2977 = vperm.xlu1 %6728, %v6865_v42   ;;  %v3596_v0 = vsub.f32 %v3302_v25, %v9573_v56  ;;  %3045 = vperm.xlu2 %6729, %v6866_v16   ;;  %v3889_v7 = vand.u32 2147483647, %v3601_v21  ;;  %v3565_v44 = vsub.f32 %v3271_v54, %v9565_v38  ;;  %v11297_v20 = vpop.permute.xlu1 %2921  ;;  %v4924_v61 = vld [vmem:[%s14284_s0 + $0xa0] sm:$0xff] }
 0x2f9   : > { %v3605_v42 = vsub.f32 %v3311_v9, %v9565_v38  ;;  %v3633_v5 = vsub.f32 %v3339_v22, %v9565_v38  ;;  %v3269_v14 = vsub.f32 %v11130_v60, %v9534_v43  ;;  %v4498_v25 = vmax.f32 %v4210_v48, 0.0  ;;  %v15243_v48 = vld [vmem:[#allocation173_spill] sm:$0xff] }
 0x2fa   : > { %5258 = vmatpush.msrb.mxu3 %v4712_v8  ;;  %v4496_v16 = vmax.f32 %v4208_v39, 0.0  ;;  %v3529_v21 = vsub.f32 %v3235_v57, %v9565_v38  ;;  %v3301_v54 = vsub.f32 %v11135_v27, %v9534_v43  ;;  %v3594_v9 = vsub.f32 %v3300_v32, %v9573_v56 }
 0x2fb   : > { %5259 = vmatmul.f32.vlgmr.msrb.gmra.mxu3 %v4907_v41  ;;  %v11309_v8 = vpop.permute.xlu0 %2917  ;;  %v4174_v22 = vsub.f32 1.0, %v3886_v40  ;;  %v11311_v1 = vsub.f32 1.0, %v3929_v6  ;;  %v3884_v60 = vand.u32 2147483647, %v3596_v0  ;;  %v15244_v18 = vmax.f32 %v15243_v48, 0.0  ;;  %v6867_v41 = vld [vmem:[%s14285_s1 + $0x430] sm:$0xff] }
 0x2fc   : > { %3125 = vperm.xlu0 %6727, %v6867_v41   ;;  %v3336_v57 = vsub.f32 %v11297_v20, %v9532_v50  ;;  %v11320_v27 = vsub.f32 1.0, %v3889_v7  ;;  %v3853_v32 = vand.u32 2147483647, %v3565_v44  ;;  %v3893_v39 = vand.u32 2147483647, %v3605_v42  ;;  %v11330_v44 = vpop.permute.xlu2 %3093 }
 0x2fd   : > { %15242 = vst [vmem:[#allocation4_spill] sm:$0xff] %v11311_v1  ;;  %v4786_v49 = vmul.f32 %v4498_v25, %v15244_v18  ;;  %v3343_v40 = vsub.f32 %v11142_v33, %v9534_v43  ;;  %v3921_v6 = vand.u32 2147483647, %v3633_v5  ;;  %v3563_v0 = vsub.f32 %v3269_v14, %v9565_v38  ;;  %v15245_v18 = vld [vmem:[#allocation176_spill] sm:$0xff]  ;;  %v6868_v33 = vld [vmem:[%s14285_s1 + $0x300] sm:$0xff] }
 0x2fe   : > { %5200 = vmatmul.f32.gmra.mxu2 %v4924_v61  ;;  %v15246_v25 = vmax.f32 %v15245_v18, 0.0  ;;  %v3334_v41 = vsub.f32 %v11309_v8, %v9532_v50  ;;  %v3817_v36 = vand.u32 2147483647, %v3529_v21  ;;  %v3595_v7 = vsub.f32 %v3301_v54, %v9565_v38  ;;  %v15248_v18 = vld [vmem:[#allocation140_spill] sm:$0xff] }
 0x2ff   : > { %5383 = vmatpush.msrb.mxu1 %v4786_v49  ;;  %v3882_v17 = vand.u32 2147483647, %v3594_v9  ;;  %v4462_v42 = vmax.f32 %v4174_v22, 0.0  ;;  %v4916_v49 = vld [vmem:[%s14284_s0 + $0x60] sm:$0xff]  ;;  %v3267_v14 = vsub.f32 %v11186_v3, %v9534_v43  ;;  %v3630_v61 = vsub.f32 %v3336_v57, %v9573_v56 }
 0x300   : > { %v4784_v48 = vmul.f32 %v4496_v16, %v15246_v25  ;;  %2973 = vperm.xlu1 %6728, %v6868_v33   ;;  %v6869_v16 = vld [vmem:[%s14285_s1 + $0x388] sm:$0xff]  ;;  %v4172_v21 = vsub.f32 1.0, %v3884_v60  ;;  %v11345_v54 = vsub.f32 1.0, %v3853_v32  ;;  %v3637_v9 = vsub.f32 %v3343_v40, %v9565_v38  ;;  %v11351_v5 = vpop.permute.xlu1 %2845 }
 0x301   : > { %3041 = vperm.xlu2 %6729, %v6869_v16   ;;  %v3628_v22 = vsub.f32 %v3334_v41, %v9573_v56  ;;  %v15249_v25 = vmax.f32 %v15248_v18, 0.0  ;;  %v11353_v3 = vsub.f32 1.0, %v3893_v39  ;;  %v3851_v57 = vand.u32 2147483647, %v3563_v0  ;;  %v4933_v60 = vld [vmem:[%s14284_s0 + $0xe8] sm:$0xff] }
 0x302   : > { %5384 = vmatpush.msrb.mxu1 %v4784_v48  ;;  %15247 = vst [vmem:[#allocation133_spill] sm:$0xff] %v11345_v54  ;;  %v3333_v48 = vsub.f32 %v11199_v51, %v9534_v43  ;;  %v4460_v32 = vmax.f32 %v4172_v21, 0.0  ;;  %v11360_v40 = vsub.f32 1.0, %v3921_v6  ;;  %v11362_v41 = vsub.f32 1.0, %v3817_v36  ;;  %v15252_v6 = vld [vmem:[#allocation141_spill] sm:$0xff] }
 0x303   : > { %v4750_v33 = vmul.f32 %v4462_v42, %v15249_v25  ;;  %5262 = vmatmul.f32.gmra.mxu3 %v4916_v49  ;;  %v3883_v16 = vand.u32 2147483647, %v3595_v7  ;;  %v11364_v42 = vpop.permute.xlu0 %2909  ;;  %v4170_v39 = vsub.f32 1.0, %v3882_v17  ;;  %v3561_v0 = vsub.f32 %v3267_v14, %v9565_v38  ;;  %v6870_v49 = vld [vmem:[%s14285_s1 + $0x428] sm:$0xff]  ;;  %v15257_v14 = vld [vmem:[#allocation121_spill] sm:$0xff] }
 0x304   : > { %15250 = vst [vmem:[#allocation94_spill] sm:$0xff] %v11360_v40  ;;  %v3332_v18 = vsub.f32 %v11199_v51, %v9532_v50  ;;  %v3918_v25 = vand.u32 2147483647, %v3630_v61  ;;  %3121 = vperm.xlu0 %6727, %v6870_v49   ;;  %v15253_v21 = vmax.f32 %v15252_v6, 0.0  ;;  %v3916_v1 = vand.u32 2147483647, %v3628_v22 }
 0x305   : > { %15251 = vst [vmem:[#allocation9_spill] sm:$0xff] %v11362_v41  ;;  %5320 = vmatpush.msrb.mxu0 %v4750_v33  ;;  %v3925_v33 = vand.u32 2147483647, %v3637_v9  ;;  %v3298_v17 = vsub.f32 %v11351_v5, %v9532_v50  ;;  %v11379_v61 = vsub.f32 1.0, %v3851_v57  ;;  %v3627_v35 = vsub.f32 %v3333_v48, %v9565_v38  ;;  %v4925_v57 = vld [vmem:[%s14284_s0 + $0xa8] sm:$0xff] }
 0x306   : > { %v4748_v36 = vmul.f32 %v4460_v32, %v15253_v21  ;;  %5203 = vmatmul.f32.gmra.mxu2 %v4933_v60  ;;  %v3341_v9 = vsub.f32 %v11201_v15, %v9534_v43  ;;  %v4458_v22 = vmax.f32 %v4170_v39, 0.0  ;;  %v6871_v60 = vld [vmem:[%s14285_s1 + $0x380] sm:$0xff]  ;;  %v11392_v6 = vsub.f32 1.0, %v3883_v16 }
 0x307   : > { %15254 = vst [vmem:[#allocation163_spill] sm:$0xff] %v11379_v61  ;;  %v3849_v48 = vand.u32 2147483647, %v3561_v0  ;;  %v3626_v21 = vsub.f32 %v3332_v18, %v9573_v56  ;;  %v6872_v15 = vld [vmem:[%s14285_s1 + $0x420] sm:$0xff]  ;;  %v11398_v39 = vsub.f32 1.0, %v3925_v33  ;;  %v3592_v49 = vsub.f32 %v3298_v17, %v9573_v56  ;;  %v4942_v33 = vld [vmem:[%s14284_s0 + $0x130] sm:$0xff] }
 0x308   : > { %5321 = vmatpush.msrb.mxu0 %v4748_v36  ;;  %3037 = vperm.xlu1 %6728, %v6871_v60   ;;  %15255 = vst [vmem:[#allocation146_spill] sm:$0xff] %v11392_v6  ;;  %v4206_v36 = vsub.f32 1.0, %v3918_v25  ;;  %v11401_v60 = vpop.permute.xlu2 %3017  ;;  %v15258_v32 = vmax.f32 %v15257_v14, 0.0  ;;  %v4204_v16 = vsub.f32 1.0, %v3916_v1  ;;  %v11405_v51 = vpop.permute.xlu1 %3033  ;;  %v3915_v18 = vand.u32 2147483647, %v3627_v35 }
 0x309   : > { %3117 = vperm.xlu2 %6729, %v6872_v15   ;;  %15256 = vst [vmem:[#allocation68_spill] sm:$0xff] %v11398_v39  ;;  %v3330_v25 = vsub.f32 %v11364_v42, %v9532_v50  ;;  %v11414_v17 = vsub.f32 %v3341_v9, %v9565_v38  ;;  %v3305_v1 = vsub.f32 %v11240_v55, %v9534_v43  ;;  %v6873_v55 = vld [vmem:[%s14285_s1 + $0x418] sm:$0xff]  ;;  %v3880_v61 = vand.u32 2147483647, %v3592_v49 }
 0x30a   : > { %v4746_v7 = vmul.f32 %v4458_v22, %v15258_v32  ;;  %v4494_v40 = vmax.f32 %v4206_v36, 0.0  ;;  %v4492_v14 = vmax.f32 %v4204_v16, 0.0  ;;  %v3392_v35 = vsub.f32 %v11405_v51, %v9532_v50 }
 0x30b   : > { %5265 = vmatmul.f32.gmra.mxu3 %v4925_v57  ;;  %v11420_v32 = vpop.permute.xlu0 %3097  ;;  %v11422_v22 = vsub.f32 1.0, %v3849_v48  ;;  %v3914_v36 = vand.u32 2147483647, %v3626_v21  ;;  %v3390_v15 = vsub.f32 %v11270_v37, %v9532_v50  ;;  %v15260_v57 = vld [vmem:[#allocation157_spill] sm:$0xff]  ;;  %v11434_v21 = vsub.f32 1.0, %v3915_v18  ;;  %v6874_v18 = vld [vmem:[%s14285_s1 + $0x410] sm:$0xff] }
 0x30c   : > { %5322 = vmatpush.msrb.mxu0 %v4746_v7  ;;  %v15261_v0 = vmax.f32 %v15260_v57, 0.0  ;;  %3113 = vperm.xlu0 %6727, %v6873_v55   ;;  %v3686_v48 = vsub.f32 %v3392_v35, %v9573_v56  ;;  %v3624_v54 = vsub.f32 %v3330_v25, %v9573_v56  ;;  %v15263_v57 = vld [vmem:[#allocation169_spill] sm:$0xff]  ;;  %v3424_v41 = vsub.f32 %v11420_v32, %v9532_v50  ;;  %v4934_v25 = vld [vmem:[%s14284_s0 + $0xf0] sm:$0xff] }
 0x30d   : > { %15259 = vst [vmem:[#allocation147_spill] sm:$0xff] %v11422_v22  ;;  %v3923_v55 = vand.u32 2147483647, %v11414_v17  ;;  %v3599_v7 = vsub.f32 %v3305_v1, %v9565_v38  ;;  %v3391_v49 = vsub.f32 %v11270_v37, %v9534_v43  ;;  %v3684_v35 = vsub.f32 %v3390_v15, %v9573_v56  ;;  %v6875_v37 = vld [vmem:[%s14285_s1 + $0x408] sm:$0xff] }
 0x30e   : > { %v4782_v9 = vmul.f32 %v4494_v40, %v15261_v0  ;;  %5206 = vmatmul.f32.gmra.mxu2 %v4942_v33  ;;  %15262 = vst [vmem:[#allocation129_spill] sm:$0xff] %v11434_v21  ;;  %v15264_v40 = vmax.f32 %v15263_v57, 0.0  ;;  %v3974_v33 = vand.u32 2147483647, %v3686_v48  ;;  %v3718_v17 = vsub.f32 %v3424_v41, %v9573_v56 }
 0x30f   : > { %v4202_v1 = vsub.f32 1.0, %v3914_v36  ;;  %v3422_v48 = vsub.f32 %v11330_v44, %v9532_v50  ;;  %v15267_v15 = vmax.f32 %v10740_v29, 0.0  ;;  %v3912_v41 = vand.u32 2147483647, %v3624_v54  ;;  %v15269_v54 = vld [vmem:[#allocation111_spill] sm:$0xff] }
 0x310   : > { %5385 = vmatpush.msrb.mxu1 %v4782_v9  ;;  %v4780_v0 = vmul.f32 %v4492_v14, %v15264_v40  ;;  %3109 = vperm.xlu1 %6728, %v6874_v18   ;;  %v3303_v9 = vsub.f32 %v11257_v62, %v9534_v43  ;;  %v4262_v57 = vsub.f32 1.0, %v3974_v33  ;;  %v4168_v40 = vsub.f32 1.0, %v3880_v61  ;;  %v15265_v18 = vld [vmem:[#allocation172_spill] sm:$0xff]  ;;  %v11471_v33 = vpop.permute.xlu2 %3081 }
 0x311   : > { %3105 = vperm.xlu2 %6729, %v6875_v37   ;;  %v15266_v14 = vmax.f32 %v15265_v18, 0.0  ;;  %v4006_v36 = vand.u32 2147483647, %v3718_v17  ;;  %v4490_v16 = vmax.f32 %v4202_v1, 0.0  ;;  %v4951_v37 = vld [vmem:[%s14284_s0 + $0x178] sm:$0xff]  ;;  %v3685_v22 = vsub.f32 %v3391_v49, %v9565_v38 }
 0x312   : > { %5386 = vmatpush.msrb.mxu1 %v4780_v0  ;;  %v3887_v62 = vand.u32 2147483647, %v3599_v7  ;;  %v4550_v39 = vmax.f32 %v4262_v57, 0.0  ;;  %v4456_v61 = vmax.f32 %v4168_v40, 0.0  ;;  %v3972_v18 = vand.u32 2147483647, %v3684_v35 }
 0x313   : > { %v11465_v0 = vmul.f32 %v15267_v15, %v15266_v14  ;;  %5268 = vmatmul.f32.gmra.mxu3 %v4934_v25  ;;  %v3337_v29 = vsub.f32 %v11297_v20, %v9534_v43  ;;  %v4294_v14 = vsub.f32 1.0, %v4006_v36  ;;  %v15270_v17 = vmax.f32 %v15269_v54, 0.0  ;;  %v6876_v15 = vld [vmem:[%s14285_s1 + $0x400] sm:$0xff]  ;;  %v11493_v54 = vpop.permute.xlu1 %3025 }
 0x314   : > { %3101 = vperm.xlu0 %6727, %v6876_v15   ;;  %v3597_v7 = vsub.f32 %v3303_v9, %v9565_v38  ;;  %v3716_v49 = vsub.f32 %v3422_v48, %v9573_v56  ;;  %v15271_v25 = vmax.f32 %v9324_v12, 0.0  ;;  %v15272_v35 = vld [vmem:[#allocation142_spill] sm:$0xff]  ;;  %v3335_v36 = vsub.f32 %v11309_v8, %v9534_v43  ;;  %v11495_v12 = vpop.permute.xlu0 %3021 }
 0x315   : > { %15268 = vst [vmem:[#allocation35_spill] sm:$0xff] %v11465_v0  ;;  %v4778_v1 = vmul.f32 %v4490_v16, %v15270_v17  ;;  %v15273_v40 = vmax.f32 %v15272_v35, 0.0  ;;  %v4908_v20 = vld [vmem:[%s14284_s0 + $0x20] sm:$0xff]  ;;  %v3423_v16 = vsub.f32 %v11330_v44, %v9534_v43  ;;  %v4582_v9 = vmax.f32 %v4294_v14, 0.0 }
 0x316   : > { %v4838_v57 = vmul.f32 %v4550_v39, %v15271_v25  ;;  %5209 = vmatmul.f32.gmra.mxu2 %v4951_v37  ;;  %v4200_v48 = vsub.f32 1.0, %v3912_v41  ;;  %v11498_v37 = vsub.f32 1.0, %v3923_v55  ;;  %v3299_v17 = vsub.f32 %v11351_v5, %v9534_v43  ;;  %v4943_v55 = vld [vmem:[%s14284_s0 + $0x138] sm:$0xff] }
 0x317   : > { %v4744_v0 = vmul.f32 %v4456_v61, %v15273_v40  ;;  %5387 = vmatpush.msrb.mxu1 %v4778_v1  ;;  %v3973_v61 = vand.u32 2147483647, %v3685_v22  ;;  %v11502_v44 = vsub.f32 1.0, %v3887_v62  ;;  %v3631_v8 = vsub.f32 %v3337_v29, %v9565_v38 }
 0x318   : > { %15274 = vst [vmem:[#allocation161_spill] sm:$0xff] %v11498_v37  ;;  %5438 = vmatpush.msra.mxu2 %v4838_v57  ;;  %v15276_v41 = vmax.f32 %v9588_v2, 0.0  ;;  %v4488_v1 = vmax.f32 %v4200_v48, 0.0  ;;  %v15277_v15 = vmov 0   ;;  %v4260_v22 = vsub.f32 1.0, %v3972_v18  ;;  %v15278_v57 = vld [vmem:[#allocation151_spill] sm:$0xff]  ;;  %v11539_v39 = vpop.permute.xlu2 %3077 }
 0x319   : > { %5323 = vmatpush.msrb.mxu0 %v4744_v0  ;;  %15275 = vst [vmem:[#allocation114_spill] sm:$0xff] %v11502_v44  ;;  %6730 = vset.pattern.permute.xlu1 %v15277_v15  ;;  %v3885_v25 = vand.u32 2147483647, %v3597_v7  ;;  %v4004_v5 = vand.u32 2147483647, %v3716_v49  ;;  %v3388_v0 = vsub.f32 %v11493_v54, %v9532_v50  ;;  %v3717_v62 = vsub.f32 %v3423_v16, %v9565_v38  ;;  %v4909_v18 = vld [vmem:[%s14284_s0 + $0x28] sm:$0xff] }
 0x31a   : > { %v4870_v14 = vmul.f32 %v4582_v9, %v15276_v41  ;;  %5324 = vmatmul.f32.vlgmr.msrb.gmra.mxu0 %v4908_v20  ;;  %6731 = vset.pattern.permute.xlu2 %v15277_v15  ;;  %v3629_v2 = vsub.f32 %v3335_v36, %v9565_v38  ;;  %v3384_v29 = vsub.f32 %v11401_v60, %v9532_v50  ;;  %v15279_v35 = vmax.f32 %v15278_v57, 0.0  ;;  %v4960_v7 = vld [vmem:[%s14284_s0 + $0x1c0] sm:$0xff] }
 0x31b   : > { %v11527_v20 = vsub.f32 1.0, %v3973_v61  ;;  %v3593_v16 = vsub.f32 %v3299_v17, %v9565_v38  ;;  %v3386_v36 = vsub.f32 %v11495_v12, %v9532_v50  ;;  %5271 = vmatmul.f32.gmra.mxu3 %v4943_v55  ;;  %v3919_v48 = vand.u32 2147483647, %v3631_v8  ;;  %v4917_v8 = vld [vmem:[%s14284_s0 + $0x68] sm:$0xff]  ;;  %v15283_v55 = vld [vmem:[#allocation193_spill] sm:$0xff] }
 0x31c   : > { %v4776_v40 = vmul.f32 %v4488_v1, %v15279_v35  ;;  %5503 = vmatpush.msra.mxu3 %v4870_v14  ;;  %v3385_v41 = vsub.f32 %v11401_v60, %v9534_v43  ;;  %v15281_v14 = vld [vmem:[#allocation54_spill] sm:$0xff]  ;;  %6732 = vset.pattern.permute.xlu0 %v15277_v15  ;;  %v4548_v61 = vmax.f32 %v4260_v22, 0.0  ;;  %v4292_v35 = vsub.f32 1.0, %v4004_v5 }
 0x31d   : > { %15280 = vst [vmem:[#allocation173_spill] sm:$0xff] %v11527_v20  ;;  %v15282_v1 = vand.u32 2147483647, %v15281_v14  ;;  %v3682_v17 = vsub.f32 %v3388_v0, %v9573_v56  ;;  %v15284_v60 = vand.u32 2147483647, %v15283_v55  ;;  %v11546_v49 = vsub.f32 1.0, %v3885_v25 }
 0x31e   : > { %5388 = vmatpush.msrb.mxu1 %v4776_v40  ;;  %5212 = vmatmul.f32.gmra.mxu2 %v4960_v7  ;;  %v4005_v14 = vand.u32 2147483647, %v3717_v62  ;;  %v3678_v15 = vsub.f32 %v3384_v29, %v9573_v56  ;;  %v3881_v5 = vand.u32 2147483647, %v3593_v16  ;;  %v3680_v0 = vsub.f32 %v3386_v36, %v9573_v56  ;;  %v15287_v55 = vld [vmem:[#allocation61_spill] sm:$0xff] }
 0x31f   : > { %v4063_v57 = vsub.f32 1.0, %v15282_v1  ;;  %5389 = vmatmul.f32.vlgmr.msrb.gmra.mxu1 %v4909_v18  ;;  %v2232_v40 = vsub.f32 1.0, %v15284_v60  ;;  %15285 = vst [vmem:[#allocation176_spill] sm:$0xff] %v11546_v49  ;;  %v3917_v1 = vand.u32 2147483647, %v3629_v2  ;;  %v11552_v7 = vsub.f32 1.0, %v3919_v48  ;;  %v11558_v2 = vpop.permute.xlu0 %3085 }
 0x320   : > { %5633 = vmatpush.msra.mxu1 %v10752_v30  ;;  %v3679_v9 = vsub.f32 %v3385_v41, %v9565_v38  ;;  %v3331_v25 = vsub.f32 %v11364_v42, %v9534_v43  ;;  %v4952_v30 = vld [vmem:[%s14284_s0 + $0x180] sm:$0xff]  ;;  %v4580_v29 = vmax.f32 %v4292_v35, 0.0  ;;  %v3970_v16 = vand.u32 2147483647, %v3682_v17  ;;  %v15288_v48 = vld [vmem:[#allocation248_spill] sm:$0xff]  ;;  %v4969_v17 = vld [vmem:[%s14284_s0 + $0x208] sm:$0xff] }
 0x321   : > { %v2520_v18 = vmax.f32 %v2232_v40, 0.0  ;;  %15286 = vst [vmem:[#allocation140_spill] sm:$0xff] %v11552_v7  ;;  %v4351_v62 = vmax.f32 %v4063_v57, 0.0  ;;  %v15289_v60 = vand.u32 2147483647, %v15288_v48  ;;  %v11565_v41 = vsub.f32 1.0, %v4005_v14 }
 0x322   : > { %5634 = vmatpush.msra.mxu1 %v15287_v55  ;;  %5327 = vmatmul.f32.gmra.mxu0 %v4917_v8  ;;  %v11567_v22 = vsub.f32 1.0, %v3917_v1  ;;  %v3966_v42 = vand.u32 2147483647, %v3678_v15  ;;  %v15292_v55 = vld [vmem:[#allocation37_spill] sm:$0xff]  ;;  %v15293_v57 = vld [vmem:[#allocation59_spill] sm:$0xff]  ;;  %v15295_v21 = vmax.f32 %v10124_v24, 0.0 }
 0x323   : > { %v4836_v36 = vmul.f32 %v4548_v61, %v2520_v18  ;;  %v2264_v40 = vsub.f32 1.0, %v15289_v60  ;;  %15290 = vst [vmem:[#allocation141_spill] sm:$0xff] %v11565_v41  ;;  %v15294_v8 = vmax.f32 %v15293_v57, 0.0  ;;  %v4918_v35 = vld [vmem:[%s14284_s0 + $0x70] sm:$0xff]  ;;  %v11577_v61 = vpop.permute.xlu1 %3089  ;;  %v11583_v1 = vsub.f32 1.0, %v3881_v5  ;;  %5274 = vmatmul.f32.gmra.mxu3 %v4952_v30  ;;  %v15297_v48 = vld [vmem:[#allocation21_spill] sm:$0xff] }
 0x324   : > { %15291 = vst [vmem:[#allocation121_spill] sm:$0xff] %v11567_v22  ;;  %5635 = vmatpush.msra.mxu1 %v15292_v55  ;;  %v3968_v15 = vand.u32 2147483647, %v3680_v0  ;;  %v3967_v24 = vand.u32 2147483647, %v3679_v9  ;;  %v15298_v60 = vmax.f32 %v15297_v48, 0.0  ;;  %v3420_v0 = vsub.f32 %v11577_v61, %v9532_v50 }
 0x325   : > { %v4641_v37 = vmul.f32 %v15295_v21, %v15294_v8  ;;  %15296 = vst [vmem:[#allocation157_spill] sm:$0xff] %v11583_v1  ;;  %5439 = vmatpush.msra.mxu2 %v4836_v36  ;;  %v2552_v18 = vmax.f32 %v2264_v40, 0.0  ;;  %v3625_v21 = vsub.f32 %v3331_v25, %v9565_v38  ;;  %v15299_v57 = vld [vmem:[#allocation24_spill] sm:$0xff]  ;;  %v4258_v63 = vsub.f32 1.0, %v3970_v16  ;;  %v11603_v36 = vpop.permute.xlu2 %3073  ;;  %v15302_v48 = vld [vmem:[#allocation13_spill] sm:$0xff] }
 0x326   : > { %v4639_v55 = vmul.f32 %v4351_v62, %v15298_v60  ;;  %v15300_v8 = vand.u32 2147483647, %v15299_v57  ;;  %5215 = vmatmul.f32.gmra.mxu2 %v4969_v17  ;;  %v4926_v9 = vld [vmem:[%s14284_s0 + $0xb0] sm:$0xff]  ;;  %v11598_v62 = vsub.f32 1.0, %v3966_v42  ;;  %v3393_v30 = vsub.f32 %v11405_v51, %v9534_v43  ;;  %v15311_v14 = vld [vmem:[#allocation81_spill] sm:$0xff] }
 0x327   : > { %5636 = vmatpush.msra.mxu1 %v4641_v37  ;;  %v4868_v5 = vmul.f32 %v4580_v29, %v2552_v18  ;;  %v4256_v16 = vsub.f32 1.0, %v3968_v15  ;;  %v3418_v40 = vsub.f32 %v11558_v2, %v9532_v50  ;;  %v11607_v17 = vsub.f32 1.0, %v3967_v24  ;;  %v4961_v15 = vld [vmem:[%s14284_s0 + $0x1c8] sm:$0xff]  ;;  %v15306_v24 = vld [vmem:[#allocation212_spill] sm:$0xff] }
 0x328   : > { %v4061_v20 = vsub.f32 1.0, %v15300_v8  ;;  %5392 = vmatmul.f32.gmra.mxu1 %v4918_v35  ;;  %v3913_v18 = vand.u32 2147483647, %v3625_v21  ;;  %v3416_v42 = vsub.f32 %v11471_v33, %v9532_v50  ;;  %v15303_v60 = vand.u32 2147483647, %v15302_v48  ;;  %v15304_v8 = vld [vmem:[#allocation33_spill] sm:$0xff] }
 0x329   : > { %5637 = vmatpush.msra.mxu1 %v4639_v55  ;;  %5504 = vmatpush.msra.mxu3 %v4868_v5  ;;  %15301 = vst [vmem:[#allocation169_spill] sm:$0xff] %v11607_v17  ;;  %v4546_v55 = vmax.f32 %v4258_v63, 0.0  ;;  %v3714_v57 = vsub.f32 %v3420_v0, %v9573_v56  ;;  %v15305_v5 = vmax.f32 %v15304_v8, 0.0  ;;  %v15307_v25 = vand.u32 2147483647, %v15306_v24  ;;  %v4927_v63 = vld [vmem:[%s14284_s0 + $0xb8] sm:$0xff] }
 0x32a   : > { %v4349_v35 = vmax.f32 %v4061_v20, 0.0  ;;  %v4059_v51 = vsub.f32 1.0, %v15303_v60  ;;  %5330 = vmatmul.f32.gmra.mxu0 %v4926_v9  ;;  %v3687_v37 = vsub.f32 %v3393_v30, %v9565_v38  ;;  %v3417_v9 = vsub.f32 %v11471_v33, %v9534_v43  ;;  %v11628_v60 = vpop.permute.xlu0 %3161  ;;  %v4978_v0 = vld [vmem:[%s14284_s0 + $0x250] sm:$0xff]  ;;  %v15308_v30 = vld [vmem:[#allocation214_spill] sm:$0xff] }
 0x32b   : > { %v2230_v21 = vsub.f32 1.0, %v15307_v25  ;;  %v3712_v25 = vsub.f32 %v3418_v40, %v9573_v56  ;;  %5277 = vmatmul.f32.gmra.mxu3 %v4961_v15  ;;  %v11636_v33 = vsub.f32 1.0, %v3913_v18  ;;  %v3425_v29 = vsub.f32 %v11420_v32, %v9534_v43  ;;  %v4935_v18 = vld [vmem:[%s14284_s0 + $0xf8] sm:$0xff] }
 0x32c   : > { %v4637_v20 = vmul.f32 %v4349_v35, %v15305_v5  ;;  %v4347_v48 = vmax.f32 %v4059_v51, 0.0  ;;  %v4544_v35 = vmax.f32 %v4256_v16, 0.0  ;;  %v15309_v5 = vand.u32 2147483647, %v15308_v30 }
 0x32d   : > { %v2518_v8 = vmax.f32 %v2230_v21, 0.0  ;;  %15310 = vst [vmem:[#allocation172_spill] sm:$0xff] %v11636_v33  ;;  %v11639_v51 = vsub.f32 %v3416_v42, %v9573_v56  ;;  %v15312_v58 = vmax.f32 %v15311_v14, 0.0  ;;  %v4002_v16 = vand.u32 2147483647, %v3714_v57  ;;  %v15313_v14 = vld [vmem:[#allocation17_spill] sm:$0xff] }
 0x32e   : > { %5638 = vmatpush.msra.mxu1 %v4637_v20  ;;  %v2228_v24 = vsub.f32 1.0, %v15309_v5  ;;  %v11645_v20 = vpop.permute.xlu1 %3013  ;;  %v3456_v15 = vsub.f32 %v11628_v60, %v9532_v50  ;;  %5218 = vmatmul.f32.gmra.mxu2 %v4978_v0  ;;  %v3975_v42 = vand.u32 2147483647, %v3687_v37  ;;  %v11653_v32 = vsub.f32 %v3417_v9, %v9565_v38  ;;  %v15315_v57 = vld [vmem:[#allocation50_spill] sm:$0xff]  ;;  %v15317_v5 = vld [vmem:[#allocation49_spill] sm:$0xff] }
 0x32f   : > { %v4635_v22 = vmul.f32 %v4347_v48, %v15312_v58  ;;  %v4834_v7 = vmul.f32 %v4546_v55, %v2518_v8  ;;  %v3414_v58 = vsub.f32 %v11539_v39, %v9532_v50  ;;  %v15314_v55 = vmax.f32 %v15313_v14, 0.0 }
 0x330   : > { %5395 = vmatmul.f32.gmra.mxu1 %v4927_v63  ;;  %v2516_v40 = vmax.f32 %v2228_v24, 0.0  ;;  %v15316_v21 = vmax.f32 %v15315_v57, 0.0  ;;  %v3412_v63 = vsub.f32 %v11603_v36, %v9532_v50  ;;  %v4000_v0 = vand.u32 2147483647, %v3712_v25  ;;  %v15319_v24 = vld [vmem:[#allocation43_spill] sm:$0xff] }
 0x331   : > { %5639 = vmatpush.msra.mxu1 %v4635_v22  ;;  %5440 = vmatpush.msra.mxu2 %v4834_v7  ;;  %v3750_v37 = vsub.f32 %v3456_v15, %v9573_v56  ;;  %v3998_v30 = vand.u32 2147483647, %v11639_v51  ;;  %v15318_v22 = vmax.f32 %v15317_v5, 0.0  ;;  %v15320_v14 = vmax.f32 %v15319_v24, 0.0  ;;  %v4970_v7 = vld [vmem:[%s14284_s0 + $0x210] sm:$0xff]  ;;  %v11678_v51 = vpop.permute.xlu2 %3069  ;;  %v15321_v15 = vld [vmem:[#allocation187_spill] sm:$0xff] }
 0x332   : > { %v4633_v48 = vmul.f32 %v15316_v21, %v15314_v55  ;;  %v4832_v8 = vmul.f32 %v4544_v35, %v2516_v40  ;;  %v3382_v55 = vsub.f32 %v11645_v20, %v9532_v50  ;;  %5333 = vmatmul.f32.gmra.mxu0 %v4935_v18  ;;  %v11676_v35 = vsub.f32 %v3425_v29, %v9565_v38 }
 0x333   : > { %v4631_v41 = vmul.f32 %v15320_v14, %v15318_v22  ;;  %v4290_v25 = vsub.f32 1.0, %v4002_v16  ;;  %v4038_v40 = vand.u32 2147483647, %v3750_v37  ;;  %v15322_v57 = vand.u32 2147483647, %v15321_v15  ;;  %v15323_v22 = vld [vmem:[#allocation32_spill] sm:$0xff]  ;;  %5280 = vmatmul.f32.gmra.mxu3 %v4970_v7 }
 0x334   : > { %5640 = vmatpush.msra.mxu1 %v4633_v48  ;;  %5441 = vmatpush.msra.mxu2 %v4832_v8  ;;  %v11682_v48 = vsub.f32 1.0, %v3975_v42  ;;  %v3999_v5 = vand.u32 2147483647, %v11653_v32  ;;  %v3708_v18 = vsub.f32 %v3414_v58, %v9573_v56  ;;  %v15324_v24 = vmax.f32 %v15323_v22, 0.0  ;;  %v4936_v16 = vld [vmem:[%s14284_s0 + $0x100] sm:$0xff]  ;;  %v4987_v8 = vld [vmem:[%s14284_s0 + $0x298] sm:$0xff] }
 0x335   : > { %v2226_v21 = vsub.f32 1.0, %v15322_v57  ;;  %v15325_v29 = vmax.f32 %v10247_v31, 0.0  ;;  %v3706_v42 = vsub.f32 %v3412_v63, %v9573_v56  ;;  %v4288_v37 = vsub.f32 1.0, %v4000_v0  ;;  %v15326_v57 = vld [vmem:[#allocation45_spill] sm:$0xff]  ;;  %v15330_v7 = vld [vmem:[#allocation222_spill] sm:$0xff] }
 0x336   : > { %5641 = vmatpush.msra.mxu1 %v4631_v41  ;;  %v4326_v32 = vsub.f32 1.0, %v4038_v40  ;;  %v3389_v41 = vsub.f32 %v11493_v54, %v9534_v43  ;;  %v3676_v31 = vsub.f32 %v3382_v55, %v9573_v56  ;;  %v3410_v58 = vsub.f32 %v11678_v51, %v9532_v50  ;;  %5221 = vmatmul.f32.gmra.mxu2 %v4987_v8  ;;  %v4944_v54 = vld [vmem:[%s14284_s0 + $0x140] sm:$0xff] }
 0x337   : > { %v4629_v14 = vmul.f32 %v15325_v29, %v15324_v24  ;;  %v2514_v15 = vmax.f32 %v2226_v21, 0.0  ;;  %v15327_v22 = vmax.f32 %v15326_v57, 0.0  ;;  %v15328_v24 = vmax.f32 %v10260_v46, 0.0  ;;  %v15334_v46 = vld [vmem:[#allocation12_spill] sm:$0xff] }
 0x338   : > { %v4578_v9 = vmax.f32 %v4290_v25, 0.0  ;;  %v4614_v63 = vmax.f32 %v4326_v32, 0.0  ;;  %v15329_v0 = vmax.f32 %v11598_v62, 0.0  ;;  %v15331_v21 = vand.u32 2147483647, %v15330_v7  ;;  %5398 = vmatmul.f32.gmra.mxu1 %v4936_v16  ;;  %v15336_v32 = vld [vmem:[#allocation75_spill] sm:$0xff] }
 0x339   : > { %5642 = vmatpush.msra.mxu1 %v4629_v14  ;;  %v4627_v29 = vmul.f32 %v15328_v24, %v15327_v22  ;;  %v3996_v55 = vand.u32 2147483647, %v3708_v18  ;;  %v15332_v14 = vld [vmem:[#allocation20_spill] sm:$0xff]  ;;  %v15335_v22 = vmax.f32 %v15334_v46, 0.0  ;;  %v2307_v24 = vmax.f32 %v15336_v32, 0.0  ;;  %v15337_v62 = vld [vmem:[#allocation242_spill] sm:$0xff] }
 0x33a   : > { %v4830_v40 = vmul.f32 %v15329_v0, %v2514_v15  ;;  %v2262_v17 = vsub.f32 1.0, %v15331_v21  ;;  %v15333_v57 = vmax.f32 %v15332_v14, 0.0  ;;  %v15338_v15 = vand.u32 2147483647, %v15337_v62  ;;  %v15339_v16 = vld [vmem:[#allocation260_spill] sm:$0xff]  ;;  %5336 = vmatmul.f32.gmra.mxu0 %v4944_v54 }
 0x33b   : > { %5643 = vmatpush.msra.mxu1 %v4627_v29  ;;  %v3994_v7 = vand.u32 2147483647, %v3706_v42  ;;  %v4576_v21 = vmax.f32 %v4288_v37, 0.0  ;;  %v15340_v8 = vmax.f32 %v15339_v16, 0.0  ;;  %v4286_v1 = vsub.f32 1.0, %v3998_v30 }
 0x33c   : > { %v4625_v25 = vmul.f32 %v15335_v22, %v15333_v57  ;;  %v2260_v0 = vsub.f32 1.0, %v15338_v15  ;;  %5442 = vmatpush.msra.mxu2 %v4830_v40  ;;  %v2550_v26 = vmax.f32 %v2262_v17, 0.0  ;;  %v3964_v18 = vand.u32 2147483647, %v3676_v31  ;;  %v4979_v17 = vld [vmem:[%s14284_s0 + $0x258] sm:$0xff]  ;;  %v11747_v40 = vpop.permute.xlu0 %3157  ;;  %v15344_v15 = vld [vmem:[#allocation244_spill] sm:$0xff] }
 0x33d   : > { %v4902_v52 = vmul.f32 %v4614_v63, %v15340_v8  ;;  %v3704_v29 = vsub.f32 %v3410_v58, %v9573_v56  ;;  %v15341_v14 = vmax.f32 %v10352_v11, 0.0  ;;  %v4007_v46 = vand.u32 2147483647, %v11676_v35  ;;  %v11738_v35 = vpop.permute.xlu1 %3009  ;;  %v11745_v63 = vpop.permute.xlu2 %3065  ;;  %5283 = vmatmul.f32.gmra.mxu3 %v4979_v17 }
 0x33e   : > { %5644 = vmatpush.msra.mxu1 %v4625_v25  ;;  %v3415_v42 = vsub.f32 %v11539_v39, %v9534_v43  ;;  %v4866_v37 = vmul.f32 %v4578_v9, %v2550_v26  ;;  %v2548_v22 = vmax.f32 %v2260_v0, 0.0  ;;  %v11733_v58 = vsub.f32 1.0, %v3999_v5  ;;  %v15342_v5 = vld [vmem:[#allocation22_spill] sm:$0xff] }
 0x33f   : > { %v4623_v57 = vmul.f32 %v15341_v14, %v2307_v24  ;;  %5568 = vmatpush.msra.mxu0 %v4902_v52  ;;  %v11736_v11 = vsub.f32 %v3389_v41, %v9565_v38  ;;  %v4945_v52 = vld [vmem:[%s14284_s0 + $0x148] sm:$0xff]  ;;  %v4284_v26 = vsub.f32 1.0, %v3996_v55  ;;  %v11743_v39 = vsub.f32 1.0, %v3994_v7  ;;  %v4996_v25 = vld [vmem:[%s14284_s0 + $0x2e0] sm:$0xff] }
 0x340   : > { %5505 = vmatpush.msra.mxu3 %v4866_v37  ;;  %v4864_v9 = vmul.f32 %v4576_v21, %v2548_v22  ;;  %v15343_v54 = vand.u32 2147483647, %v15342_v5  ;;  %v4574_v32 = vmax.f32 %v4286_v1, 0.0  ;;  %v4252_v24 = vsub.f32 1.0, %v3964_v18  ;;  %5401 = vmatmul.f32.gmra.mxu1 %v4945_v52  ;;  %v4953_v1 = vld [vmem:[%s14284_s0 + $0x188] sm:$0xff] }
 0x341   : > { %5645 = vmatpush.msra.mxu1 %v4623_v57  ;;  %v3992_v62 = vand.u32 2147483647, %v3704_v29  ;;  %v15345_v55 = vand.u32 2147483647, %v15344_v15  ;;  %v11756_v7 = vsub.f32 1.0, %v4007_v46  ;;  %v11759_v21 = vsub.f32 %v3415_v42, %v9565_v38  ;;  %5224 = vmatmul.f32.gmra.mxu2 %v4996_v25 }
 0x342   : > { %v2017_v41 = vsub.f32 1.0, %v15343_v54  ;;  %5506 = vmatpush.msra.mxu3 %v4864_v9  ;;  %v3380_v16 = vsub.f32 %v11738_v35, %v9532_v50  ;;  %v3387_v18 = vsub.f32 %v11495_v12, %v9534_v43  ;;  %v3408_v29 = vsub.f32 %v11745_v63, %v9532_v50  ;;  %v15347_v12 = vld [vmem:[#allocation28_spill] sm:$0xff]  ;;  %5339 = vmatmul.f32.gmra.mxu0 %v4953_v1 }
 0x343   : > { %v2258_v0 = vsub.f32 1.0, %v15345_v55  ;;  %v3454_v14 = vsub.f32 %v11747_v40, %v9532_v50  ;;  %v3971_v46 = vand.u32 2147483647, %v11736_v11  ;;  %v4572_v42 = vmax.f32 %v4284_v26, 0.0  ;;  %v15349_v55 = vld [vmem:[#allocation216_spill] sm:$0xff]  ;;  %v15351_v11 = vld [vmem:[#allocation23_spill] sm:$0xff] }
 0x344   : > { %v2305_v8 = vmax.f32 %v2017_v41, 0.0  ;;  %v4570_v37 = vmax.f32 %v11743_v39, 0.0  ;;  %v15346_v22 = vmax.f32 %v10383_v47, 0.0  ;;  %v4540_v52 = vmax.f32 %v4252_v24, 0.0  ;;  %v15353_v39 = vld [vmem:[#allocation44_spill] sm:$0xff] }
 0x345   : > { %v2546_v57 = vmax.f32 %v2258_v0, 0.0  ;;  %v4280_v9 = vsub.f32 1.0, %v3992_v62  ;;  %v15348_v54 = vand.u32 2147483647, %v15347_v12  ;;  %v3674_v15 = vsub.f32 %v3380_v16, %v9573_v56  ;;  %v4954_v16 = vld [vmem:[%s14284_s0 + $0x190] sm:$0xff] }
 0x346   : > { %v4621_v17 = vmul.f32 %v15346_v22, %v2305_v8  ;;  %v15350_v25 = vand.u32 2147483647, %v15349_v55  ;;  %v15352_v26 = vand.u32 2147483647, %v15351_v11  ;;  %v15354_v31 = vand.u32 2147483647, %v15353_v39 }
 0x347   : > { %v4862_v5 = vmul.f32 %v4574_v32, %v2546_v57  ;;  %v2015_v41 = vsub.f32 1.0, %v15348_v54  ;;  %v3702_v24 = vsub.f32 %v3408_v29, %v9573_v56  ;;  %v3748_v32 = vsub.f32 %v3454_v14, %v9573_v56  ;;  %v15355_v8 = vld [vmem:[#allocation206_spill] sm:$0xff]  ;;  %v15357_v54 = vld [vmem:[#allocation236_spill] sm:$0xff] }
 0x348   : > { %5646 = vmatpush.msra.mxu1 %v4621_v17  ;;  %v2256_v0 = vsub.f32 1.0, %v15350_v25  ;;  %v2013_v30 = vsub.f32 1.0, %v15352_v26  ;;  %v4041_v47 = vsub.f32 1.0, %v15354_v31  ;;  %v15356_v1 = vand.u32 2147483647, %v15355_v8  ;;  %v5005_v31 = vld [vmem:[%s14284_s0 + $0x328] sm:$0xff] }
 0x349   : > { %5507 = vmatpush.msra.mxu3 %v4862_v5  ;;  %v2303_v62 = vmax.f32 %v2015_v41, 0.0  ;;  %v15358_v55 = vand.u32 2147483647, %v15357_v54  ;;  %v4988_v29 = vld [vmem:[%s14284_s0 + $0x2a0] sm:$0xff]  ;;  %v4568_v54 = vmax.f32 %v4280_v9, 0.0  ;;  %5404 = vmatmul.f32.gmra.mxu1 %v4954_v16 }
 0x34a   : > { %v2224_v57 = vsub.f32 1.0, %v15356_v1  ;;  %v2544_v22 = vmax.f32 %v2256_v0, 0.0  ;;  %v2301_v17 = vmax.f32 %v2013_v30, 0.0  ;;  %v4329_v12 = vmax.f32 %v4041_v47, 0.0  ;;  %v15359_v14 = vld [vmem:[#allocation14_spill] sm:$0xff]  ;;  %5286 = vmatmul.f32.gmra.mxu3 %v4988_v29  ;;  %5227 = vmatmul.f32.gmra.mxu2 %v5005_v31  ;;  %v4962_v29 = vld [vmem:[%s14284_s0 + $0x1d0] sm:$0xff] }
 0x34b   : > { %v2254_v25 = vsub.f32 1.0, %v15358_v55  ;;  %v15360_v5 = vmax.f32 %v15359_v14, 0.0  ;;  %v15361_v26 = vld [vmem:[#allocation238_spill] sm:$0xff]  ;;  %v3997_v1 = vand.u32 2147483647, %v11759_v21  ;;  %v15365_v21 = vld [vmem:[#allocation221_spill] sm:$0xff]  ;;  %5342 = vmatmul.f32.gmra.mxu0 %v4962_v29 }
 0x34c   : > { %v2512_v11 = vmax.f32 %v2224_v57, 0.0  ;;  %v15362_v39 = vand.u32 2147483647, %v15361_v26  ;;  %v15363_v30 = vld [vmem:[#allocation162_spill] sm:$0xff]  ;;  %v4860_v55 = vmul.f32 %v4572_v42, %v2544_v22  ;;  %v3962_v6 = vand.u32 2147483647, %v3674_v15 }
 0x34d   : > { %v4619_v41 = vmul.f32 %v15360_v5, %v2303_v62  ;;  %v15364_v47 = vand.u32 2147483647, %v15363_v30  ;;  %v2542_v33 = vmax.f32 %v2254_v25, 0.0  ;;  %v3990_v49 = vand.u32 2147483647, %v3702_v24  ;;  %v15368_v24 = vld [vmem:[#allocation137_spill] sm:$0xff] }
 0x34e   : > { %v2252_v0 = vsub.f32 1.0, %v15362_v39  ;;  %v4617_v44 = vmul.f32 %v4329_v12, %v2301_v17  ;;  %v4828_v14 = vmul.f32 %v4540_v52, %v2512_v11  ;;  %v4036_v62 = vand.u32 2147483647, %v3748_v32  ;;  %5508 = vmatpush.msra.mxu3 %v4860_v55  ;;  %v15372_v39 = vld [vmem:[#allocation155_spill] sm:$0xff]  ;;  %v15426_v15 = vld [vmem:[#allocation232_spill] sm:$0xff] }
 0x34f   : > { %v2169_v8 = vsub.f32 1.0, %v15364_v47  ;;  %5647 = vmatpush.msra.mxu1 %v4619_v41  ;;  %v4858_v57 = vmul.f32 %v4570_v37, %v2542_v33  ;;  %v15366_v9 = vmax.f32 %v15365_v21, 0.0  ;;  %v15367_v42 = vmax.f32 %v11682_v48, 0.0  ;;  %v11820_v33 = vpop.permute.xlu1 %3005  ;;  %v11822_v37 = vpop.permute.xlu2 %3061 }
 0x350   : > { %v2540_v5 = vmax.f32 %v2252_v0, 0.0  ;;  %v11818_v52 = vsub.f32 %v3387_v18, %v9565_v38  ;;  %5443 = vmatpush.msra.mxu2 %v4828_v14  ;;  %v15369_v32 = vand.u32 2147483647, %v15368_v24  ;;  %v11826_v17 = vsub.f32 1.0, %v3971_v46  ;;  %v4963_v46 = vld [vmem:[%s14284_s0 + $0x1d8] sm:$0xff] }
 0x351   : > { %v2457_v26 = vmax.f32 %v2169_v8, 0.0  ;;  %v11814_v16 = vmul.f32 %v15367_v42, %v15366_v9  ;;  %5648 = vmatpush.msra.mxu1 %v4617_v44  ;;  %v11828_v12 = vsub.f32 1.0, %v3997_v1  ;;  %5509 = vmatpush.msra.mxu3 %v4858_v57  ;;  %v15371_v18 = vmax.f32 %v10541_v4, 0.0  ;;  %v11833_v44 = vpop.permute.xlu0 %3153 }
 0x352   : > { %v2167_v22 = vsub.f32 1.0, %v15369_v32  ;;  %v4856_v48 = vmul.f32 %v4568_v54, %v2540_v5  ;;  %v4250_v31 = vsub.f32 1.0, %v3962_v6  ;;  %v4278_v41 = vsub.f32 1.0, %v3990_v49  ;;  %5407 = vmatmul.f32.gmra.mxu1 %v4963_v46 }
 0x353   : > { %15370 = vst [vmem:[#allocation111_spill] sm:$0xff] %v11828_v12  ;;  %5893 = vmatpush.msrb.mxu1 %v11162_v23  ;;  %v4773_v25 = vmul.f32 %v15371_v18, %v2457_v26  ;;  %v15373_v0 = vand.u32 2147483647, %v15372_v39  ;;  %v4583_v47 = vmax.f32 %v11756_v7, 0.0  ;;  %v4324_v23 = vsub.f32 1.0, %v4036_v62 }
 0x354   : > { %v2455_v11 = vmax.f32 %v2167_v22, 0.0  ;;  %5510 = vmatpush.msra.mxu3 %v4856_v48  ;;  %v3378_v4 = vsub.f32 %v11820_v33, %v9532_v50  ;;  %v3406_v6 = vsub.f32 %v11822_v37, %v9532_v50  ;;  %v3969_v49 = vand.u32 2147483647, %v11818_v52  ;;  %v15378_v48 = vld [vmem:[#allocation210_spill] sm:$0xff] }
 0x355   : > { %v2165_v30 = vsub.f32 1.0, %v15373_v0  ;;  %5894 = vmatpush.msrb.mxu1 %v4773_v25  ;;  %v3452_v8 = vsub.f32 %v11833_v44, %v9532_v50  ;;  %v15374_v1 = vmax.f32 %v10784_v13, 0.0  ;;  %v3421_v57 = vsub.f32 %v11577_v61, %v9534_v43  ;;  %v15376_v13 = vld [vmem:[#allocation208_spill] sm:$0xff] }
 0x356   : > { %v3413_v5 = vsub.f32 %v11603_v36, %v9534_v43  ;;  %v4538_v26 = vmax.f32 %v4250_v31, 0.0  ;;  %v4566_v29 = vmax.f32 %v4278_v41, 0.0  ;;  %v15375_v21 = vmax.f32 %v10860_v45, 0.0  ;;  %v15380_v31 = vld [vmem:[#allocation29_spill] sm:$0xff]  ;;  %v15382_v45 = vld [vmem:[#allocation156_spill] sm:$0xff] }
 0x357   : > { %v4771_v54 = vmul.f32 %v15374_v1, %v2455_v11  ;;  %v2453_v55 = vmax.f32 %v2165_v30, 0.0  ;;  %v15377_v42 = vand.u32 2147483647, %v15376_v13  ;;  %v4612_v24 = vmax.f32 %v4324_v23, 0.0 }
 0x358   : > { %v3672_v32 = vsub.f32 %v3378_v4, %v9573_v56  ;;  %v3700_v22 = vsub.f32 %v3406_v6, %v9573_v56  ;;  %v15379_v61 = vand.u32 2147483647, %v15378_v48  ;;  %v3746_v36 = vsub.f32 %v3452_v8, %v9573_v56  ;;  %v15384_v4 = vld [vmem:[#allocation132_spill] sm:$0xff] }
 0x359   : > { %5895 = vmatpush.msrb.mxu1 %v4771_v54  ;;  %v4769_v9 = vmul.f32 %v15375_v21, %v2453_v55  ;;  %v2222_v52 = vsub.f32 1.0, %v15377_v42  ;;  %v15381_v41 = vand.u32 2147483647, %v15380_v31  ;;  %v15383_v39 = vand.u32 2147483647, %v15382_v45  ;;  %v5014_v8 = vld [vmem:[%s14284_s0 + $0x370] sm:$0xff]  ;;  %v11888_v42 = vpop.permute.xlu1 %3001  ;;  %v11898_v45 = vpop.permute.xlu0 %3149 }
 0x35a   : > { %v2250_v18 = vsub.f32 1.0, %v15379_v61  ;;  %v3419_v30 = vsub.f32 %v11558_v2, %v9534_v43  ;;  %v3383_v46 = vsub.f32 %v11645_v20, %v9534_v43  ;;  %v15385_v6 = vand.u32 2147483647, %v15384_v4  ;;  %v4997_v54 = vld [vmem:[%s14284_s0 + $0x2e8] sm:$0xff]  ;;  %v4971_v55 = vld [vmem:[%s14284_s0 + $0x218] sm:$0xff]  ;;  %v11886_v20 = vpop.f32.mrf.mxu2  ;;  %5230 = vmatmul.f32.gmra.mxu2 %v5014_v8 }
 0x35b   : > { %5896 = vmatpush.msrb.mxu1 %v4769_v9  ;;  %v2510_v25 = vmax.f32 %v2222_v52, 0.0  ;;  %v2296_v11 = vsub.f32 1.0, %v15381_v41  ;;  %v2163_v0 = vsub.f32 1.0, %v15383_v39  ;;  %v3411_v2 = vsub.f32 %v11678_v51, %v9534_v43  ;;  %15386 = vst [vmem:[#allocation142_spill] sm:$0xff] %v11886_v20  ;;  %5289 = vmatmul.f32.gmra.mxu3 %v4997_v54  ;;  %v4972_v52 = vld [vmem:[%s14284_s0 + $0x220] sm:$0xff] }
 0x35c   : > { %v2538_v23 = vmax.f32 %v2250_v18, 0.0  ;;  %v2161_v1 = vsub.f32 1.0, %v15385_v6  ;;  %v11894_v48 = vsub.f32 %v3421_v57, %v9565_v38  ;;  %v3960_v61 = vand.u32 2147483647, %v3672_v32  ;;  %5345 = vmatmul.f32.gmra.mxu0 %v4971_v55  ;;  %v11911_v32 = vpop.permute.xlu2 %3057  ;;  %5410 = vmatmul.f32.gmra.mxu1 %v4972_v52 }
 0x35d   : > { %v4826_v21 = vmul.f32 %v4538_v26, %v2510_v25  ;;  %v2584_v9 = vmax.f32 %v2296_v11, 0.0  ;;  %v2451_v13 = vmax.f32 %v2163_v0, 0.0  ;;  %v3988_v18 = vand.u32 2147483647, %v3700_v22  ;;  %v15389_v22 = vld [vmem:[#allocation149_spill] sm:$0xff] }
 0x35e   : > { %v4854_v31 = vmul.f32 %v4566_v29, %v2538_v23  ;;  %v4034_v51 = vand.u32 2147483647, %v3746_v36  ;;  %v15387_v25 = vmax.f32 %v10764_v19, 0.0  ;;  %v2449_v11 = vmax.f32 %v2161_v1, 0.0  ;;  %v15392_v1 = vld [vmem:[#allocation150_spill] sm:$0xff] }
 0x35f   : > { %5444 = vmatpush.msra.mxu2 %v4826_v21  ;;  %v4900_v26 = vmul.f32 %v4612_v24, %v2584_v9  ;;  %v11900_v39 = vsub.f32 1.0, %v3969_v49  ;;  %v11903_v0 = vsub.f32 %v3413_v5, %v9565_v38  ;;  %v11906_v57 = vsub.f32 %v3419_v30, %v9565_v38 }
 0x360   : > { %v4767_v41 = vmul.f32 %v15387_v25, %v2451_v13  ;;  %v11909_v29 = vsub.f32 %v3383_v46, %v9565_v38  ;;  %5511 = vmatpush.msra.mxu3 %v4854_v31  ;;  %v11914_v19 = vsub.f32 %v3411_v2, %v9565_v38  ;;  %v3457_v49 = vsub.f32 %v11628_v60, %v9534_v43  ;;  %v11922_v46 = vpop.f32.mrf.mxu1 }
 0x361   : > { %5569 = vmatpush.msra.mxu0 %v4900_v26  ;;  %v15388_v5 = vmax.f32 %v11053_v10, 0.0  ;;  %v15390_v36 = vand.u32 2147483647, %v15389_v22  ;;  %15391 = vst [vmem:[#allocation151_spill] sm:$0xff] %v11922_v46  ;;  %v4248_v23 = vsub.f32 1.0, %v3960_v61  ;;  %v4276_v4 = vsub.f32 1.0, %v3988_v18  ;;  %v11936_v61 = vpop.f32.mrf.mxu0 }
 0x362   : > { %5897 = vmatpush.msrb.mxu1 %v4767_v41  ;;  %v3376_v6 = vsub.f32 %v11888_v42, %v9532_v50  ;;  %v15393_v8 = vand.u32 2147483647, %v15392_v1  ;;  %v4003_v60 = vand.u32 2147483647, %v11894_v48  ;;  %v4322_v55 = vsub.f32 1.0, %v4034_v51  ;;  %15394 = vst [vmem:[#allocation54_spill] sm:$0xff] %v11936_v61  ;;  %v11946_v22 = vpop.f32.mrf.mxu2  ;;  %v11952_v1 = vpop.permute.xlu1 %2997 }
 0x363   : > { %v4765_v24 = vmul.f32 %v15388_v5, %v2449_v11  ;;  %v2159_v30 = vsub.f32 1.0, %v15390_v36  ;;  %v3404_v10 = vsub.f32 %v11911_v32, %v9532_v50  ;;  %v3995_v21 = vand.u32 2147483647, %v11903_v0  ;;  %v15396_v0 = vld [vmem:[#allocation183_spill] sm:$0xff]  ;;  %15398 = vst [vmem:[#allocation193_spill] sm:$0xff] %v11946_v22  ;;  %v15400_v36 = vld [vmem:[#allocation230_spill] sm:$0xff] }
 0x364   : > { %v2157_v54 = vsub.f32 1.0, %v15393_v8  ;;  %v4001_v9 = vand.u32 2147483647, %v11906_v57  ;;  %v3965_v13 = vand.u32 2147483647, %v11909_v29  ;;  %v3450_v52 = vsub.f32 %v11898_v45, %v9532_v50  ;;  %v15452_v61 = vld [vmem:[#allocation202_spill] sm:$0xff] }
 0x365   : > { %5898 = vmatpush.msrb.mxu1 %v4765_v24  ;;  %v2447_v2 = vmax.f32 %v2159_v30, 0.0  ;;  %v3993_v18 = vand.u32 2147483647, %v11914_v19  ;;  %v3751_v48 = vsub.f32 %v3457_v49, %v9565_v38  ;;  %v15395_v31 = vmax.f32 %v11112_v28, 0.0 }
 0x366   : > { %v2445_v26 = vmax.f32 %v2157_v54, 0.0  ;;  %v4536_v25 = vmax.f32 %v4248_v23, 0.0  ;;  %v4564_v41 = vmax.f32 %v4276_v4, 0.0  ;;  %v3670_v11 = vsub.f32 %v3376_v6, %v9573_v56  ;;  %v15402_v6 = vld [vmem:[#allocation86_spill] sm:$0xff] }
 0x367   : > { %v4763_v51 = vmul.f32 %v15395_v31, %v2447_v2  ;;  %v15397_v57 = vand.u32 2147483647, %v15396_v0  ;;  %v4610_v5 = vmax.f32 %v4322_v55, 0.0  ;;  %v3698_v24 = vsub.f32 %v3404_v10, %v9573_v56  ;;  %v15404_v55 = vld [vmem:[#allocation128_spill] sm:$0xff]  ;;  %v5023_v31 = vld [vmem:[%s14284_s0 + $0x3b8] sm:$0xff] }
 0x368   : > { %v15399_v19 = vmax.f32 %v11030_v59, 0.0  ;;  %v15401_v28 = vand.u32 2147483647, %v15400_v36  ;;  %v3744_v23 = vsub.f32 %v3450_v52, %v9573_v56  ;;  %v15403_v8 = vand.u32 2147483647, %v15402_v6  ;;  %v5006_v59 = vld [vmem:[%s14284_s0 + $0x330] sm:$0xff]  ;;  %5233 = vmatmul.f32.gmra.mxu2 %v5023_v31 }
 0x369   : > { %v2220_v29 = vsub.f32 1.0, %v15397_v57  ;;  %5899 = vmatpush.msrb.mxu1 %v4763_v51  ;;  %v15405_v2 = vand.u32 2147483647, %v15404_v55  ;;  %v15406_v51 = vld [vmem:[#allocation250_spill] sm:$0xff]  ;;  %v4039_v0 = vand.u32 2147483647, %v3751_v48  ;;  %5292 = vmatmul.f32.gmra.mxu3 %v5006_v59 }
 0x36a   : > { %v4761_v49 = vmul.f32 %v15399_v19, %v2445_v26  ;;  %v2248_v30 = vsub.f32 1.0, %v15401_v28  ;;  %v2294_v54 = vsub.f32 1.0, %v15403_v8  ;;  %v15407_v26 = vmax.f32 %v15406_v51, 0.0  ;;  %v11973_v28 = vpop.permute.xlu0 %3145  ;;  %v4980_v6 = vld [vmem:[%s14284_s0 + $0x260] sm:$0xff]  ;;  %v4981_v8 = vld [vmem:[%s14284_s0 + $0x268] sm:$0xff]  ;;  %v11984_v51 = vpop.f32.mrf.mxu3 }
 0x36b   : > { %v2508_v4 = vmax.f32 %v2220_v29, 0.0  ;;  %v2155_v10 = vsub.f32 1.0, %v15405_v2  ;;  %v15408_v29 = vld [vmem:[#allocation144_spill] sm:$0xff]  ;;  %v3958_v7 = vand.u32 2147483647, %v3670_v11  ;;  %5348 = vmatmul.f32.gmra.mxu0 %v4980_v6  ;;  %15410 = vst [vmem:[#allocation61_spill] sm:$0xff] %v11984_v51  ;;  %5413 = vmatmul.f32.gmra.mxu1 %v4981_v8 }
 0x36c   : > { %v11969_v52 = vmul.f32 %v4583_v47, %v15407_v26  ;;  %5900 = vmatpush.msrb.mxu1 %v4761_v49  ;;  %v2536_v57 = vmax.f32 %v2248_v30, 0.0  ;;  %v15409_v19 = vand.u32 2147483647, %v15408_v29  ;;  %v2582_v55 = vmax.f32 %v2294_v54, 0.0  ;;  %v11986_v26 = vpop.f32.mrf.mxu1  ;;  %v11990_v54 = vpop.permute.xlu2 %3053 }
 0x36d   : > { %v4824_v47 = vmul.f32 %v4536_v25, %v2508_v4  ;;  %v2443_v48 = vmax.f32 %v2155_v10, 0.0  ;;  %v11982_v30 = vsub.f32 1.0, %v4003_v60  ;;  %v3986_v2 = vand.u32 2147483647, %v3698_v24  ;;  %15411 = vst [vmem:[#allocation248_spill] sm:$0xff] %v11986_v26 }
 0x36e   : > { %v2153_v36 = vsub.f32 1.0, %v15409_v19  ;;  %v4852_v31 = vmul.f32 %v4564_v41, %v2536_v57  ;;  %v4032_v29 = vand.u32 2147483647, %v3744_v23  ;;  %v4898_v19 = vmul.f32 %v4610_v5, %v2582_v55 }
 0x36f   : > { %5445 = vmatpush.msra.mxu2 %v4824_v47  ;;  %v15412_v25 = vmax.f32 %v11252_v53, 0.0  ;;  %v11992_v10 = vsub.f32 1.0, %v3995_v21  ;;  %v11994_v60 = vsub.f32 1.0, %v4001_v9  ;;  %v11996_v24 = vsub.f32 1.0, %v3965_v13  ;;  %v12006_v21 = vpop.f32.mrf.mxu0 }
 0x370   : > { %v2441_v4 = vmax.f32 %v2153_v36, 0.0  ;;  %v11998_v41 = vsub.f32 1.0, %v3993_v18  ;;  %5512 = vmatpush.msra.mxu3 %v4852_v31  ;;  %v12000_v59 = vsub.f32 1.0, %v4039_v0  ;;  %v3381_v5 = vsub.f32 %v11738_v35, %v9534_v43  ;;  %5570 = vmatpush.msra.mxu0 %v4898_v19  ;;  %15416 = vst [vmem:[#allocation21_spill] sm:$0xff] %v12006_v21  ;;  %v15417_v36 = vld [vmem:[#allocation145_spill] sm:$0xff]  ;;  %v12022_v19 = vpop.f32.mrf.mxu2  ;;  %v15428_v31 = vld [vmem:[#allocation251_spill] sm:$0xff] }
 0x371   : > { %v4759_v11 = vmul.f32 %v15412_v25, %v2443_v48  ;;  %15413 = vst [vmem:[#allocation37_spill] sm:$0xff] %v11992_v10  ;;  %v4246_v23 = vsub.f32 1.0, %v3958_v7  ;;  %v15415_v53 = vmax.f32 %v11353_v3, 0.0  ;;  %v4274_v13 = vsub.f32 1.0, %v3986_v2  ;;  %v15419_v7 = vld [vmem:[#allocation124_spill] sm:$0xff] }
 0x372   : > { %15414 = vst [vmem:[#allocation59_spill] sm:$0xff] %v11998_v41  ;;  %v3374_v18 = vsub.f32 %v11952_v1, %v9532_v50  ;;  %v15418_v0 = vand.u32 2147483647, %v15417_v36  ;;  %v4320_v8 = vsub.f32 1.0, %v4032_v29  ;;  %v3402_v35 = vsub.f32 %v11990_v54, %v9532_v50  ;;  %v12024_v29 = vpop.permute.xlu1 %2993  ;;  %v5032_v36 = vld [vmem:[%s14284_s0 + $0x400] sm:$0xff]  ;;  %v12035_v62 = vpop.permute.xlu0 %3141 }
 0x373   : > { %5901 = vmatpush.msrb.mxu1 %v4759_v11  ;;  %v4757_v57 = vmul.f32 %v15415_v53, %v2441_v4  ;;  %v3448_v3 = vsub.f32 %v11973_v28, %v9532_v50  ;;  %v15420_v47 = vand.u32 2147483647, %v15419_v7  ;;  %15421 = vst [vmem:[#allocation24_spill] sm:$0xff] %v12022_v19  ;;  %v4615_v4 = vmax.f32 %v12000_v59, 0.0  ;;  %5236 = vmatmul.f32.gmra.mxu2 %v5032_v36  ;;  %v5015_v59 = vld [vmem:[%s14284_s0 + $0x378] sm:$0xff]  ;;  %v12058_v22 = vpop.f32.mrf.mxu3 }
 0x374   : > { %v2151_v6 = vsub.f32 1.0, %v15418_v0  ;;  %v3675_v53 = vsub.f32 %v3381_v5, %v9565_v38  ;;  %v4562_v0 = vmax.f32 %v4274_v13, 0.0  ;;  %v3668_v7 = vsub.f32 %v3374_v18, %v9573_v56  ;;  %v4989_v5 = vld [vmem:[%s14284_s0 + $0x2a8] sm:$0xff]  ;;  %5295 = vmatmul.f32.gmra.mxu3 %v5015_v59  ;;  %15432 = vst [vmem:[#allocation13_spill] sm:$0xff] %v12058_v22 }
 0x375   : > { %5902 = vmatpush.msrb.mxu1 %v4757_v57  ;;  %v2149_v55 = vsub.f32 1.0, %v15420_v47  ;;  %v4534_v57 = vmax.f32 %v4246_v23, 0.0  ;;  %v15422_v47 = vmax.f32 %v11244_v34, 0.0  ;;  %v4990_v23 = vld [vmem:[%s14284_s0 + $0x2b0] sm:$0xff]  ;;  %v4608_v13 = vmax.f32 %v4320_v8, 0.0  ;;  %5351 = vmatmul.f32.gmra.mxu0 %v4989_v5  ;;  %v15430_v8 = vld [vmem:[#allocation138_spill] sm:$0xff]  ;;  %v12068_v5 = vpop.permute.xlu2 %3049 }
 0x376   : > { %v2439_v25 = vmax.f32 %v2151_v6, 0.0  ;;  %v3696_v34 = vsub.f32 %v3402_v35, %v9573_v56  ;;  %v3742_v18 = vsub.f32 %v3448_v3, %v9573_v56  ;;  %v15427_v2 = vand.u32 2147483647, %v15426_v15  ;;  %v12060_v3 = vpop.f32.mrf.mxu1  ;;  %5416 = vmatmul.f32.gmra.mxu1 %v4990_v23  ;;  %v15439_v23 = vld [vmem:[#allocation262_spill] sm:$0xff] }
 0x377   : > { %v2437_v6 = vmax.f32 %v2149_v55, 0.0  ;;  %v15423_v55 = vld [vmem:[#allocation200_spill] sm:$0xff]  ;;  %v15429_v49 = vand.u32 2147483647, %v15428_v31  ;;  %v15431_v19 = vand.u32 2147483647, %v15430_v8  ;;  %v3409_v59 = vsub.f32 %v11745_v63, %v9534_v43  ;;  %v12070_v63 = vpop.f32.mrf.mxu0 }
 0x378   : > { %v4755_v48 = vmul.f32 %v15422_v47, %v2439_v25  ;;  %v15424_v25 = vand.u32 2147483647, %v15423_v55  ;;  %v15425_v47 = vmax.f32 %v11320_v27, 0.0  ;;  %v2246_v9 = vsub.f32 1.0, %v15427_v2  ;;  %15433 = vst [vmem:[#allocation33_spill] sm:$0xff] %v12060_v3 }
 0x379   : > { %v2292_v14 = vsub.f32 1.0, %v15429_v49  ;;  %v2147_v35 = vsub.f32 1.0, %v15431_v19  ;;  %v3455_v27 = vsub.f32 %v11747_v40, %v9534_v43  ;;  %v3963_v49 = vand.u32 2147483647, %v3675_v53  ;;  %15436 = vst [vmem:[#allocation212_spill] sm:$0xff] %v12070_v63  ;;  %v15458_v63 = vld [vmem:[#allocation267_spill] sm:$0xff] }
 0x37a   : > { %v2218_v36 = vsub.f32 1.0, %v15424_v25  ;;  %5903 = vmatpush.msrb.mxu1 %v4755_v48  ;;  %v4753_v11 = vmul.f32 %v15425_v47, %v2437_v6  ;;  %v15434_v6 = vld [vmem:[#allocation139_spill] sm:$0xff]  ;;  %v3956_v31 = vand.u32 2147483647, %v3668_v7  ;;  %v2534_v19 = vmax.f32 %v2246_v9, 0.0 }
 0x37b   : > { %v15435_v15 = vand.u32 2147483647, %v15434_v6  ;;  %v2580_v55 = vmax.f32 %v2292_v14, 0.0  ;;  %v3984_v25 = vand.u32 2147483647, %v3696_v34  ;;  %v2435_v22 = vmax.f32 %v2147_v35, 0.0 }
 0x37c   : > { %v2506_v48 = vmax.f32 %v2218_v36, 0.0  ;;  %5904 = vmatpush.msrb.mxu1 %v4753_v11  ;;  %v4030_v47 = vand.u32 2147483647, %v3742_v18  ;;  %v4850_v46 = vmul.f32 %v4562_v0, %v2534_v19  ;;  %v3372_v36 = vsub.f32 %v12024_v29, %v9532_v50  ;;  %v15437_v14 = vld [vmem:[#allocation114_spill] sm:$0xff] }
 0x37d   : > { %v2145_v2 = vsub.f32 1.0, %v15435_v15  ;;  %v4896_v40 = vmul.f32 %v4608_v13, %v2580_v55  ;;  %v3400_v6 = vsub.f32 %v12068_v5, %v9532_v50  ;;  %v3703_v53 = vsub.f32 %v3409_v59, %v9565_v38  ;;  %v12092_v59 = vpop.f32.mrf.mxu2  ;;  %v15442_v15 = vld [vmem:[#allocation176_spill] sm:$0xff] }
 0x37e   : > { %v4822_v8 = vmul.f32 %v4534_v57, %v2506_v48  ;;  %v12078_v11 = vsub.f32 %v3455_v27, %v9565_v38  ;;  %v15438_v9 = vmax.f32 %v15437_v14, 0.0  ;;  %v15440_v34 = vmax.f32 %v15439_v23, 0.0  ;;  %5513 = vmatpush.msra.mxu3 %v4850_v46  ;;  %15441 = vst [vmem:[#allocation214_spill] sm:$0xff] %v12092_v59  ;;  %v12094_v27 = vpop.permute.xlu1 %2989  ;;  %v12104_v23 = vpop.permute.xlu0 %3137 }
 0x37f   : > { %v2433_v7 = vmax.f32 %v2145_v2, 0.0  ;;  %v12086_v13 = vsub.f32 1.0, %v3963_v49  ;;  %v3379_v18 = vsub.f32 %v11820_v33, %v9534_v43  ;;  %5571 = vmatpush.msra.mxu0 %v4896_v40  ;;  %v3446_v35 = vsub.f32 %v12035_v62, %v9532_v50  ;;  %v15444_v49 = vld [vmem:[#allocation118_spill] sm:$0xff] }
 0x380   : > { %5446 = vmatpush.msra.mxu2 %v4822_v8  ;;  %v4751_v57 = vmul.f32 %v15438_v9, %v2435_v22  ;;  %v12084_v0 = vmul.f32 %v4615_v4, %v15440_v34  ;;  %v4244_v22 = vsub.f32 1.0, %v3956_v31  ;;  %v4272_v48 = vsub.f32 1.0, %v3984_v25  ;;  %v15446_v40 = vld [vmem:[#allocation134_spill] sm:$0xff]  ;;  %v5041_v31 = vld [vmem:[%s14284_s0 + $0x448] sm:$0xff]  ;;  %v4999_v34 = vld [vmem:[%s14284_s0 + $0x2f8] sm:$0xff] }
 0x381   : > { %v15443_v4 = vmax.f32 %v15442_v15, 0.0  ;;  %v15445_v19 = vand.u32 2147483647, %v15444_v49  ;;  %v4318_v8 = vsub.f32 1.0, %v4030_v47  ;;  %v3666_v33 = vsub.f32 %v3372_v36, %v9573_v56  ;;  %v5024_v25 = vld [vmem:[%s14284_s0 + $0x3c0] sm:$0xff]  ;;  %v4998_v47 = vld [vmem:[%s14284_s0 + $0x2f0] sm:$0xff]  ;;  %5239 = vmatmul.f32.gmra.mxu2 %v5041_v31  ;;  %5419 = vmatmul.f32.gmra.mxu1 %v4999_v34 }
 0x382   : > { %5905 = vmatpush.msrb.mxu1 %v4751_v57  ;;  %v3694_v46 = vsub.f32 %v3400_v6, %v9573_v56  ;;  %v15447_v14 = vand.u32 2147483647, %v15446_v40  ;;  %v3991_v36 = vand.u32 2147483647, %v3703_v53  ;;  %v4037_v6 = vand.u32 2147483647, %v12078_v11  ;;  %v12126_v11 = vpop.f32.mrf.mxu3  ;;  %5298 = vmatmul.f32.gmra.mxu3 %v5024_v25 }
 0x383   : > { %v4749_v2 = vmul.f32 %v15443_v4, %v2433_v7  ;;  %v2143_v55 = vsub.f32 1.0, %v15445_v19  ;;  %v3407_v57 = vsub.f32 %v11822_v37, %v9534_v43  ;;  %v3673_v4 = vsub.f32 %v3379_v18, %v9565_v38  ;;  %15448 = vst [vmem:[#allocation81_spill] sm:$0xff] %v12126_v11  ;;  %v12128_v19 = vpop.f32.mrf.mxu1  ;;  %5354 = vmatmul.f32.gmra.mxu0 %v4998_v47  ;;  %v15454_v11 = vld [vmem:[#allocation157_spill] sm:$0xff]  ;;  %v15456_v47 = vld [vmem:[#allocation204_spill] sm:$0xff] }
 0x384   : > { %v2141_v9 = vsub.f32 1.0, %v15447_v14  ;;  %v3453_v49 = vsub.f32 %v11833_v44, %v9534_v43  ;;  %v3740_v53 = vsub.f32 %v3446_v35, %v9573_v56  ;;  %15449 = vst [vmem:[#allocation17_spill] sm:$0xff] %v12128_v19  ;;  %v4532_v37 = vmax.f32 %v4244_v22, 0.0  ;;  %v12134_v35 = vpop.permute.xlu2 %3045 }
 0x385   : > { %5906 = vmatpush.msrb.mxu1 %v4749_v2  ;;  %v2431_v7 = vmax.f32 %v2143_v55, 0.0  ;;  %v4560_v2 = vmax.f32 %v4272_v48, 0.0  ;;  %v15450_v55 = vld [vmem:[#allocation146_spill] sm:$0xff]  ;;  %v4606_v15 = vmax.f32 %v4318_v8, 0.0  ;;  %v3954_v18 = vand.u32 2147483647, %v3666_v33  ;;  %v12144_v33 = vpop.f32.mrf.mxu0 }
 0x386   : > { %v15451_v40 = vmax.f32 %v15450_v55, 0.0  ;;  %v2429_v31 = vmax.f32 %v2141_v9, 0.0  ;;  %v3982_v59 = vand.u32 2147483647, %v3694_v46  ;;  %v15453_v44 = vand.u32 2147483647, %v15452_v61 }
 0x387   : > { %v15455_v19 = vmax.f32 %v15454_v11, 0.0  ;;  %v15457_v22 = vand.u32 2147483647, %v15456_v47  ;;  %v15459_v55 = vand.u32 2147483647, %v15458_v63  ;;  %v3370_v8 = vsub.f32 %v12094_v27, %v9532_v50  ;;  %15460 = vst [vmem:[#allocation50_spill] sm:$0xff] %v12144_v33 }
 0x388   : > { %v4747_v14 = vmul.f32 %v15451_v40, %v2431_v7  ;;  %v2216_v3 = vsub.f32 1.0, %v15453_v44  ;;  %v12146_v46 = vsub.f32 1.0, %v3991_v36  ;;  %v3701_v61 = vsub.f32 %v3407_v57, %v9565_v38  ;;  %v12154_v36 = vpop.f32.mrf.mxu2 }
 0x389   : > { %v4745_v25 = vmul.f32 %v15455_v19, %v2429_v31  ;;  %v2244_v48 = vsub.f32 1.0, %v15457_v22  ;;  %v2290_v7 = vsub.f32 1.0, %v15459_v55  ;;  %v4028_v9 = vand.u32 2147483647, %v3740_v53  ;;  %15462 = vst [vmem:[#allocation43_spill] sm:$0xff] %v12154_v36  ;;  %v12156_v22 = vpop.permute.xlu1 %2985 }
 0x38a   : > { %5907 = vmatpush.msrb.mxu1 %v4747_v14  ;;  %15461 = vst [vmem:[#allocation49_spill] sm:$0xff] %v12146_v46  ;;  %v2504_v34 = vmax.f32 %v2216_v3, 0.0  ;;  %v3961_v40 = vand.u32 2147483647, %v3673_v4  ;;  %v3398_v14 = vsub.f32 %v12134_v35, %v9532_v50  ;;  %v3747_v63 = vsub.f32 %v3453_v49, %v9565_v38  ;;  %v12163_v49 = vpop.permute.xlu0 %3133  ;;  %v15512_v46 = vld [vmem:[#allocation240_spill] sm:$0xff] }
 0x38b   : > { %v2532_v11 = vmax.f32 %v2244_v48, 0.0  ;;  %v2578_v19 = vmax.f32 %v2290_v7, 0.0  ;;  %v3377_v31 = vsub.f32 %v11888_v42, %v9534_v43  ;;  %v4242_v44 = vsub.f32 1.0, %v3954_v18  ;;  %v5008_v7 = vld [vmem:[%s14284_s0 + $0x340] sm:$0xff] }
 0x38c   : > { %5908 = vmatpush.msrb.mxu1 %v4745_v25  ;;  %v4820_v47 = vmul.f32 %v4532_v37, %v2504_v34  ;;  %v4270_v57 = vsub.f32 1.0, %v3982_v59  ;;  %v3664_v53 = vsub.f32 %v3370_v8, %v9573_v56  ;;  %v3989_v25 = vand.u32 2147483647, %v3701_v61  ;;  %v12183_v34 = vpop.f32.mrf.mxu3  ;;  %v12197_v33 = vpop.permute.xlu2 %3041 }
 0x38d   : > { %v4848_v3 = vmul.f32 %v4560_v2, %v2532_v11  ;;  %v4894_v4 = vmul.f32 %v4606_v15, %v2578_v19  ;;  %v3405_v48 = vsub.f32 %v11911_v32, %v9534_v43  ;;  %v4316_v55 = vsub.f32 1.0, %v4028_v9  ;;  %v5033_v32 = vld [vmem:[%s14284_s0 + $0x408] sm:$0xff]  ;;  %v5007_v2 = vld [vmem:[%s14284_s0 + $0x338] sm:$0xff]  ;;  %15463 = vst [vmem:[#allocation187_spill] sm:$0xff] %v12183_v34  ;;  %5422 = vmatmul.f32.gmra.mxu1 %v5008_v7 }
 0x38e   : > { %5447 = vmatpush.msra.mxu2 %v4820_v47  ;;  %v3444_v42 = vsub.f32 %v12104_v23, %v9532_v50  ;;  %v12166_v18 = vsub.f32 1.0, %v4037_v6  ;;  %v12168_v59 = vsub.f32 1.0, %v3961_v40  ;;  %v3692_v15 = vsub.f32 %v3398_v14, %v9573_v56  ;;  %v12185_v40 = vpop.f32.mrf.mxu1  ;;  %5301 = vmatmul.f32.gmra.mxu3 %v5033_v32  ;;  %v15465_v14 = vld [vmem:[#allocation179_spill] sm:$0xff]  ;;  %15472 = vst [vmem:[#allocation222_spill] sm:$0xff] %v12197_v33 }
 0x38f   : > { %5514 = vmatpush.msra.mxu3 %v4848_v3  ;;  %5572 = vmatpush.msra.mxu0 %v4894_v4  ;;  %v4035_v6 = vand.u32 2147483647, %v3747_v63  ;;  %v3671_v8 = vsub.f32 %v3377_v31, %v9565_v38  ;;  %v3451_v61 = vsub.f32 %v11898_v45, %v9534_v43  ;;  %v4530_v9 = vmax.f32 %v4242_v44, 0.0  ;;  %15464 = vst [vmem:[#allocation32_spill] sm:$0xff] %v12185_v40  ;;  %v15467_v4 = vld [vmem:[#allocation224_spill] sm:$0xff] }
 0x390   : > { %5357 = vmatmul.f32.gmra.mxu0 %v5007_v2  ;;  %v4558_v11 = vmax.f32 %v4270_v57, 0.0  ;;  %v3952_v19 = vand.u32 2147483647, %v3664_v53  ;;  %v15466_v47 = vand.u32 2147483647, %v15465_v14  ;;  %v12191_v31 = vsub.f32 1.0, %v3989_v25  ;;  %v12199_v14 = vpop.f32.mrf.mxu0 }
 0x391   : > { %v15468_v37 = vand.u32 2147483647, %v15467_v4  ;;  %v3699_v45 = vsub.f32 %v3405_v48, %v9565_v38  ;;  %v4604_v44 = vmax.f32 %v4316_v55, 0.0  ;;  %v3738_v36 = vsub.f32 %v3444_v42, %v9573_v56  ;;  %v15470_v2 = vld [vmem:[#allocation269_spill] sm:$0xff]  ;;  %15473 = vst [vmem:[#allocation20_spill] sm:$0xff] %v12199_v14 }
 0x392   : > { %v2214_v3 = vsub.f32 1.0, %v15466_v47  ;;  %15469 = vst [vmem:[#allocation45_spill] sm:$0xff] %v12191_v31  ;;  %v3980_v34 = vand.u32 2147483647, %v3692_v15  ;;  %v15471_v57 = vand.u32 2147483647, %v15470_v2  ;;  %v3745_v25 = vsub.f32 %v3451_v61, %v9565_v38 }
 0x393   : > { %v2242_v63 = vsub.f32 1.0, %v15468_v37  ;;  %v12201_v47 = vsub.f32 1.0, %v4035_v6  ;;  %v3959_v37 = vand.u32 2147483647, %v3671_v8  ;;  %v3368_v48 = vsub.f32 %v12156_v22, %v9532_v50  ;;  %v12210_v6 = vpop.f32.mrf.mxu2  ;;  %v12212_v8 = vpop.permute.xlu1 %2981  ;;  %v15510_v31 = vld [vmem:[#allocation189_spill] sm:$0xff] }
 0x394   : > { %v2502_v40 = vmax.f32 %v2214_v3, 0.0  ;;  %v2288_v53 = vsub.f32 1.0, %v15471_v57  ;;  %v4240_v55 = vsub.f32 1.0, %v3952_v19  ;;  %v3987_v3 = vand.u32 2147483647, %v3699_v45  ;;  %15474 = vst [vmem:[#allocation12_spill] sm:$0xff] %v12210_v6  ;;  %v12240_v61 = vpop.f32.mrf.mxu3 }
 0x395   : > { %v2530_v32 = vmax.f32 %v2242_v63, 0.0  ;;  %v3375_v4 = vsub.f32 %v11952_v1, %v9534_v43  ;;  %v4026_v63 = vand.u32 2147483647, %v3738_v36  ;;  %v3396_v2 = vsub.f32 %v12197_v33, %v9532_v50  ;;  %v5042_v1 = vld [vmem:[%s14284_s0 + $0x450] sm:$0xff]  ;;  %v5016_v36 = vld [vmem:[%s14284_s0 + $0x380] sm:$0xff]  ;;  %v5017_v45 = vld [vmem:[%s14284_s0 + $0x388] sm:$0xff] }
 0x396   : > { %v4818_v42 = vmul.f32 %v4530_v9, %v2502_v40  ;;  %v2576_v7 = vmax.f32 %v2288_v53, 0.0  ;;  %v4268_v57 = vsub.f32 1.0, %v3980_v34  ;;  %v15475_v40 = vld [vmem:[#allocation195_spill] sm:$0xff]  ;;  %v3662_v53 = vsub.f32 %v3368_v48, %v9573_v56  ;;  %5304 = vmatmul.f32.gmra.mxu3 %v5042_v1  ;;  %5425 = vmatmul.f32.gmra.mxu1 %v5017_v45  ;;  %15478 = vst [vmem:[#allocation242_spill] sm:$0xff] %v12240_v61  ;;  %v12242_v1 = vpop.f32.mrf.mxu1  ;;  %v15483_v61 = vld [vmem:[#allocation246_spill] sm:$0xff] }
 0x397   : > { %v4846_v15 = vmul.f32 %v4558_v11, %v2530_v32  ;;  %v15476_v11 = vand.u32 2147483647, %v15475_v40  ;;  %v4528_v40 = vmax.f32 %v4240_v55, 0.0  ;;  %v12236_v34 = vsub.f32 1.0, %v3987_v3  ;;  %15479 = vst [vmem:[#allocation260_spill] sm:$0xff] %v12242_v1 }
 0x398   : > { %5448 = vmatpush.msra.mxu2 %v4818_v42  ;;  %v4892_v9 = vmul.f32 %v4604_v44, %v2576_v7  ;;  %v4033_v44 = vand.u32 2147483647, %v3745_v25  ;;  %v12229_v42 = vpop.permute.xlu0 %3129  ;;  %5360 = vmatmul.f32.gmra.mxu0 %v5016_v36  ;;  %v12232_v7 = vsub.f32 1.0, %v3959_v37  ;;  %v3669_v25 = vsub.f32 %v3375_v4, %v9565_v38  ;;  %v15480_v36 = vld [vmem:[#allocation226_spill] sm:$0xff] }
 0x399   : > { %5515 = vmatpush.msra.mxu3 %v4846_v15  ;;  %v2212_v19 = vsub.f32 1.0, %v15476_v11  ;;  %v3442_v11 = vsub.f32 %v12163_v49, %v9532_v50  ;;  %15477 = vst [vmem:[#allocation75_spill] sm:$0xff] %v12236_v34  ;;  %v4314_v32 = vsub.f32 1.0, %v4026_v63  ;;  %v3690_v48 = vsub.f32 %v3396_v2, %v9573_v56  ;;  %v6233_v2 = vld [vmem:[%s14286_s2 + $0x78] sm:$0xff]  ;;  %v6877_v34 = vld [vmem:[%s14284_s0] sm:$0xff] }
 0x39a   : > { %5573 = vmatpush.msra.mxu0 %v4892_v9  ;;  %v3449_v37 = vsub.f32 %v11973_v28, %v9534_v43  ;;  %v4556_v55 = vmax.f32 %v4268_v57, 0.0  ;;  %v15481_v15 = vand.u32 2147483647, %v15480_v36  ;;  %v12248_v45 = vsub.f32 1.0, %v4033_v44  ;;  %v12260_v44 = vpop.f32.mrf.mxu0  ;;  %6311 = vperm.xlu1 %6730, %v6233_v2  }
 0x39b   : > { %v2500_v9 = vmax.f32 %v2212_v19, 0.0  ;;  %v3403_v3 = vsub.f32 %v11990_v54, %v9534_v43  ;;  %v3373_v4 = vsub.f32 %v12024_v29, %v9534_v43  ;;  %v3950_v63 = vand.u32 2147483647, %v3662_v53  ;;  %15482 = vst [vmem:[#allocation22_spill] sm:$0xff] %v12260_v44  ;;  %v5025_v54 = vld [vmem:[%s14284_s0 + $0x3c8] sm:$0xff] }
 0x39c   : > { %v2240_v6 = vsub.f32 1.0, %v15481_v15  ;;  %v3447_v28 = vsub.f32 %v12035_v62, %v9534_v43  ;;  %v3736_v57 = vsub.f32 %v3442_v11, %v9573_v56  ;;  %v3957_v29 = vand.u32 2147483647, %v3669_v25  ;;  %v5026_v11 = vld [vmem:[%s14284_s0 + $0x3d0] sm:$0xff] }
 0x39d   : > { %v4816_v19 = vmul.f32 %v4528_v40, %v2500_v9  ;;  %v4602_v53 = vmax.f32 %v4314_v32, 0.0  ;;  %v3978_v36 = vand.u32 2147483647, %v3690_v48  ;;  %v15484_v1 = vand.u32 2147483647, %v15483_v61 }
 0x39e   : > { %v2528_v15 = vmax.f32 %v2240_v6, 0.0  ;;  %v3743_v62 = vsub.f32 %v3449_v37, %v9565_v38  ;;  %v3371_v6 = vsub.f32 %v12094_v27, %v9534_v43  ;;  %v12275_v25 = vsub.f32 %v3403_v3, %v9565_v38  ;;  %v12281_v37 = vpop.permute.xlu1 %2977  ;;  %5428 = vmatmul.f32.gmra.mxu1 %v5026_v11 }
 0x39f   : > { %v2286_v14 = vsub.f32 1.0, %v15484_v1  ;;  %5449 = vmatpush.msra.mxu2 %v4816_v19  ;;  %v4238_v32 = vsub.f32 1.0, %v3950_v63  ;;  %v3366_v61 = vsub.f32 %v12212_v8, %v9532_v50  ;;  %v12279_v1 = vpop.f32.mrf.mxu2  ;;  %v3667_v27 = vsub.f32 %v3373_v4, %v9565_v38  ;;  %v12301_v63 = vpop.f32.mrf.mxu3 }
 0x3a0   : > { %v4844_v40 = vmul.f32 %v4556_v55, %v2528_v15  ;;  %15485 = vst [vmem:[#allocation244_spill] sm:$0xff] %v12279_v1  ;;  %5363 = vmatmul.f32.gmra.mxu0 %v5025_v54  ;;  %v3741_v55 = vsub.f32 %v3447_v28, %v9565_v38  ;;  %v4024_v9 = vand.u32 2147483647, %v3736_v57  ;;  %v3440_v3 = vsub.f32 %v12229_v42, %v9532_v50  ;;  %v12290_v15 = vpop.permute.xlu0 %3125 }
 0x3a1   : > { %v2574_v48 = vmax.f32 %v2286_v14, 0.0  ;;  %v12288_v14 = vsub.f32 1.0, %v3957_v29  ;;  %v4266_v2 = vsub.f32 1.0, %v3978_v36  ;;  %v4031_v26 = vand.u32 2147483647, %v3743_v62  ;;  %v15486_v36 = vld [vmem:[#allocation197_spill] sm:$0xff]  ;;  %v12303_v62 = vpop.f32.mrf.mxu1 }
 0x3a2   : > { %5516 = vmatpush.msra.mxu3 %v4844_v40  ;;  %v3401_v4 = vsub.f32 %v12068_v5, %v9534_v43  ;;  %v3665_v28 = vsub.f32 %v3371_v6, %v9565_v38  ;;  %v3445_v57 = vsub.f32 %v12104_v23, %v9534_v43  ;;  %v3985_v54 = vand.u32 2147483647, %v12275_v25  ;;  %15488 = vst [vmem:[#allocation28_spill] sm:$0xff] %v12301_v63  ;;  %v15494_v63 = vld [vmem:[#allocation263_spill] sm:$0xff] }
 0x3a3   : > { %v4890_v19 = vmul.f32 %v4602_v53, %v2574_v48  ;;  %v4526_v40 = vmax.f32 %v4238_v32, 0.0  ;;  %v3660_v29 = vsub.f32 %v3366_v61, %v9573_v56  ;;  %v15487_v53 = vand.u32 2147483647, %v15486_v36  ;;  %15489 = vst [vmem:[#allocation216_spill] sm:$0xff] %v12303_v62  ;;  %v15490_v32 = vld [vmem:[#allocation199_spill] sm:$0xff]  ;;  %v6230_v61 = vld [vmem:[%s14286_s2 + $0x60] sm:$0xff] }
 0x3a4   : > { %v3955_v11 = vand.u32 2147483647, %v3667_v27  ;;  %v4029_v5 = vand.u32 2147483647, %v3741_v55  ;;  %v4312_v1 = vsub.f32 1.0, %v4024_v9  ;;  %v3734_v6 = vsub.f32 %v3440_v3, %v9573_v56  ;;  %v5034_v36 = vld [vmem:[%s14284_s0 + $0x410] sm:$0xff]  ;;  %6296 = vperm.xlu1 %6730, %v6230_v61  }
 0x3a5   : > { %5574 = vmatpush.msra.mxu0 %v4890_v19  ;;  %v2210_v48 = vsub.f32 1.0, %v15487_v53  ;;  %v4554_v44 = vmax.f32 %v4266_v2, 0.0  ;;  %v15491_v19 = vand.u32 2147483647, %v15490_v32  ;;  %v12315_v27 = vsub.f32 1.0, %v4031_v26  ;;  %v12321_v2 = vpop.f32.mrf.mxu0  ;;  %v5035_v26 = vld [vmem:[%s14284_s0 + $0x418] sm:$0xff] }
 0x3a6   : > { %v12318_v55 = vsub.f32 %v3401_v4, %v9565_v38  ;;  %v3953_v9 = vand.u32 2147483647, %v3665_v28  ;;  %v3739_v3 = vsub.f32 %v3445_v57, %v9565_v38  ;;  %15493 = vst [vmem:[#allocation44_spill] sm:$0xff] %v12321_v2  ;;  %v3369_v53 = vsub.f32 %v12156_v22, %v9534_v43  ;;  %5431 = vmatmul.f32.gmra.mxu1 %v5035_v26 }
 0x3a7   : > { %v2498_v25 = vmax.f32 %v2210_v48, 0.0  ;;  %v2238_v21 = vsub.f32 1.0, %v15491_v19  ;;  %v3948_v48 = vand.u32 2147483647, %v3660_v29  ;;  %v4600_v23 = vmax.f32 %v4312_v1, 0.0  ;;  %v12340_v29 = vpop.permute.xlu1 %2973 }
 0x3a8   : > { %15492 = vst [vmem:[#allocation23_spill] sm:$0xff] %v12318_v55  ;;  %5366 = vmatmul.f32.gmra.mxu0 %v5034_v36  ;;  %v4022_v4 = vand.u32 2147483647, %v3734_v6  ;;  %v15495_v28 = vand.u32 2147483647, %v15494_v63  ;;  %v3364_v57 = vsub.f32 %v12281_v37, %v9532_v50  ;;  %v12332_v61 = vsub.f32 1.0, %v3955_v11  ;;  %v3118_v6 = vpop.permute.xlu2 %3117 }
 0x3a9   : > { %v4814_v32 = vmul.f32 %v4526_v40, %v2498_v25  ;;  %v2526_v19 = vmax.f32 %v2238_v21, 0.0  ;;  %v12334_v2 = vsub.f32 1.0, %v4029_v5  ;;  %v3399_v21 = vsub.f32 %v12134_v35, %v9534_v43  ;;  %v12338_v40 = vpop.f32.mrf.mxu2 }
 0x3aa   : > { %v2284_v62 = vsub.f32 1.0, %v15495_v28  ;;  %15496 = vst [vmem:[#allocation206_spill] sm:$0xff] %v12338_v40  ;;  %v4027_v1 = vand.u32 2147483647, %v3739_v3  ;;  %v3658_v25 = vsub.f32 %v3364_v57, %v9573_v56  ;;  %v3438_v11 = vsub.f32 %v12290_v15, %v9532_v50 }
 0x3ab   : > { %5450 = vmatpush.msra.mxu2 %v4814_v32  ;;  %v4842_v22 = vmul.f32 %v4554_v44, %v2526_v19  ;;  %v12345_v5 = vsub.f32 1.0, %v3985_v54  ;;  %v12348_v35 = vsub.f32 1.0, %v3953_v9  ;;  %v4236_v44 = vsub.f32 1.0, %v3948_v48  ;;  %v12350_v32 = vpop.permute.xlu0 %3121  ;;  %v12358_v9 = vpop.f32.mrf.mxu3 }
 0x3ac   : > { %v2572_v63 = vmax.f32 %v2284_v62, 0.0  ;;  %v3663_v3 = vsub.f32 %v3369_v53, %v9565_v38  ;;  %v4310_v19 = vsub.f32 1.0, %v4022_v4  ;;  %v3732_v28 = vsub.f32 %v3438_v11, %v9573_v56  ;;  %15499 = vst [vmem:[#allocation238_spill] sm:$0xff] %v12358_v9  ;;  %v12360_v48 = vpop.f32.mrf.mxu1 }
 0x3ad   : > { %15497 = vst [vmem:[#allocation236_spill] sm:$0xff] %v12345_v5  ;;  %5517 = vmatpush.msra.mxu3 %v4842_v22  ;;  %v3443_v54 = vsub.f32 %v12163_v49, %v9534_v43  ;;  %v3946_v36 = vand.u32 2147483647, %v3658_v25  ;;  %v12364_v53 = vsub.f32 %v3399_v21, %v9565_v38  ;;  %v4524_v11 = vmax.f32 %v4236_v44, 0.0  ;;  %v15502_v49 = vld [vmem:[#allocation174_spill] sm:$0xff]  ;;  %v15504_v22 = vld [vmem:[#allocation265_spill] sm:$0xff] }
 0x3ae   : > { %15498 = vst [vmem:[#allocation14_spill] sm:$0xff] %v12348_v35  ;;  %v4888_v62 = vmul.f32 %v4600_v23, %v2572_v63  ;;  %v12366_v23 = vsub.f32 1.0, %v4027_v1  ;;  %v4020_v4 = vand.u32 2147483647, %v3732_v28  ;;  %v3434_v26 = vsub.f32 %v3118_v6, %v9532_v50  ;;  %v6228_v1 = vld [vmem:[%s14286_s2 + $0x50] sm:$0xff]  ;;  %v5044_v28 = vld [vmem:[%s14284_s0 + $0x460] sm:$0xff] }
 0x3af   : > { %15500 = vst [vmem:[#allocation162_spill] sm:$0xff] %v12360_v48  ;;  %v15503_v25 = vand.u32 2147483647, %v15502_v49  ;;  %v3951_v9 = vand.u32 2147483647, %v3663_v3  ;;  %v3435_v40 = vsub.f32 %v3118_v6, %v9534_v43  ;;  %v4598_v51 = vmax.f32 %v4310_v19, 0.0  ;;  %v12375_v48 = vpop.f32.mrf.mxu0  ;;  %6286 = vperm.xlu1 %6730, %v6228_v1   ;;  %5434 = vmatmul.f32.gmra.mxu1 %v5044_v28  ;;  %v12402_v63 = vpop.permute.xlu1 %3037 }
 0x3b0   : > { %15501 = vst [vmem:[#allocation221_spill] sm:$0xff] %v12364_v53  ;;  %5575 = vmatpush.msra.mxu0 %v4888_v62  ;;  %v15505_v20 = vand.u32 2147483647, %v15504_v22  ;;  %v6232_v44 = vld [vmem:[%s14286_s2 + $0x70] sm:$0xff]  ;;  %v3737_v62 = vsub.f32 %v3443_v54, %v9565_v38  ;;  %v3367_v3 = vsub.f32 %v12212_v8, %v9534_v43  ;;  %v4234_v6 = vsub.f32 1.0, %v3946_v36  ;;  %v3106_v22 = vpop.permute.xlu2 %3105 }
 0x3b1   : > { %v2208_v57 = vsub.f32 1.0, %v15503_v25  ;;  %15506 = vst [vmem:[#allocation137_spill] sm:$0xff] %v12375_v48  ;;  %6306 = vperm.xlu2 %6731, %v6232_v44   ;;  %v4308_v49 = vsub.f32 1.0, %v4020_v4  ;;  %v3362_v54 = vsub.f32 %v12340_v29, %v9532_v50  ;;  %v3728_v8 = vsub.f32 %v3434_v26, %v9573_v56  ;;  %v12400_v44 = vpop.f32.mrf.mxu2 }
 0x3b2   : > { %v2282_v21 = vsub.f32 1.0, %v15505_v20  ;;  %v5043_v20 = vld [vmem:[%s14284_s0 + $0x458] sm:$0xff]  ;;  %v3441_v36 = vsub.f32 %v12229_v42, %v9534_v43  ;;  %v3436_v1 = vsub.f32 %v12350_v32, %v9532_v50  ;;  %15507 = vst [vmem:[#allocation155_spill] sm:$0xff] %v12400_v44  ;;  %v12404_v4 = vsub.f32 1.0, %v3951_v9 }
 0x3b3   : > { %v2496_v19 = vmax.f32 %v2208_v57, 0.0  ;;  %5369 = vmatmul.f32.gmra.mxu0 %v5043_v20  ;;  %15508 = vst [vmem:[#allocation208_spill] sm:$0xff] %v12402_v63  ;;  %v3656_v28 = vsub.f32 %v3362_v54, %v9573_v56  ;;  %v4025_v26 = vand.u32 2147483647, %v3737_v62  ;;  %v12409_v48 = vsub.f32 %v3367_v3, %v9565_v38 }
 0x3b4   : > { %v2570_v25 = vmax.f32 %v2282_v21, 0.0  ;;  %15509 = vst [vmem:[#allocation210_spill] sm:$0xff] %v12404_v4  ;;  %v3729_v21 = vsub.f32 %v3435_v40, %v9565_v38  ;;  %v4522_v42 = vmax.f32 %v4234_v6, 0.0  ;;  %v4596_v44 = vmax.f32 %v4308_v49, 0.0 }
 0x3b5   : > { %v4812_v57 = vmul.f32 %v4524_v11, %v2496_v19  ;;  %v3730_v11 = vsub.f32 %v3436_v1, %v9573_v56  ;;  %v12412_v19 = vpop.permute.xlu0 %3113  ;;  %v3944_v9 = vand.u32 2147483647, %v3656_v28  ;;  %v15511_v5 = vand.u32 2147483647, %v15510_v31  ;;  %v12422_v1 = vpop.f32.mrf.mxu1  ;;  %v6225_v28 = vld [vmem:[%s14286_s2 + $0x38] sm:$0xff] }
 0x3b6   : > { %v4886_v20 = vmul.f32 %v4598_v51, %v2570_v25  ;;  %v15513_v51 = vand.u32 2147483647, %v15512_v46  ;;  %v4016_v54 = vand.u32 2147483647, %v3728_v8  ;;  %v3735_v62 = vsub.f32 %v3441_v36, %v9565_v38  ;;  %15515 = vst [vmem:[#allocation156_spill] sm:$0xff] %v12422_v1 }
 0x3b7   : > { %5451 = vmatpush.msra.mxu2 %v4812_v57  ;;  %v2206_v40 = vsub.f32 1.0, %v15511_v5  ;;  %v3428_v3 = vsub.f32 %v3106_v22, %v9532_v50  ;;  %v4018_v6 = vand.u32 2147483647, %v3730_v11  ;;  %v12420_v57 = vpop.f32.mrf.mxu3  ;;  %v4017_v55 = vand.u32 2147483647, %v3729_v21  ;;  %v6229_v21 = vld [vmem:[%s14286_s2 + $0x58] sm:$0xff]  ;;  %6271 = vperm.xlu1 %6730, %v6225_v28  }
 0x3b8   : > { %5576 = vmatpush.msra.mxu0 %v4886_v20  ;;  %v2280_v25 = vsub.f32 1.0, %v15513_v51  ;;  %15514 = vst [vmem:[#allocation29_spill] sm:$0xff] %v12420_v57  ;;  %v3439_v49 = vsub.f32 %v12290_v15, %v9534_v43  ;;  %v4232_v8 = vsub.f32 1.0, %v3944_v9  ;;  %v3394_v36 = vsub.f32 %v12402_v63, %v9532_v50  ;;  %v6231_v15 = vld [vmem:[%s14286_s2 + $0x68] sm:$0xff]  ;;  %5649 = vmatmul.f32.vlgmr.msra.gmra.mxu1 %v6877_v34 }
 0x3b9   : > { %v2494_v20 = vmax.f32 %v2206_v40, 0.0  ;;  %v3429_v11 = vsub.f32 %v3106_v22, %v9534_v43  ;;  %v4306_v40 = vsub.f32 1.0, %v4018_v6  ;;  %6291 = vperm.xlu2 %6731, %v6229_v21   ;;  %v12443_v46 = vsub.f32 1.0, %v4025_v26  ;;  %6301 = vperm.xlu0 %6732, %v6231_v15   ;;  %v12458_v6 = vpop.f32.mrf.mxu2 }
 0x3ba   : > { %v2568_v31 = vmax.f32 %v2280_v25, 0.0  ;;  %v12441_v25 = vpop.f32.mrf.mxu0  ;;  %v3949_v5 = vand.u32 2147483647, %v12409_v48  ;;  %v4023_v57 = vand.u32 2147483647, %v3735_v62  ;;  %v3722_v1 = vsub.f32 %v3428_v3, %v9573_v56  ;;  %15517 = vst [vmem:[#allocation149_spill] sm:$0xff] %v12458_v6  ;;  %6153 = vmatpush.msra.mxu1 %v12084_v0 }
 0x3bb   : > { %v4810_v51 = vmul.f32 %v4522_v42, %v2494_v20  ;;  %15516 = vst [vmem:[#allocation132_spill] sm:$0xff] %v12441_v25  ;;  %v4304_v22 = vsub.f32 1.0, %v4016_v54  ;;  %v12450_v42 = vsub.f32 1.0, %v4017_v55  ;;  %v3432_v26 = vsub.f32 %v12412_v19, %v9532_v50  ;;  %v15518_v20 = vld [vmem:[#allocation191_spill] sm:$0xff]  ;;  %v12462_v55 = vpop.permute.xlu1 %3109 }
 0x3bc   : > { %v4884_v9 = vmul.f32 %v4596_v44, %v2568_v31  ;;  %v3733_v44 = vsub.f32 %v3439_v49, %v9565_v38  ;;  %v4520_v48 = vmax.f32 %v4232_v8, 0.0  ;;  %v3437_v62 = vsub.f32 %v12350_v32, %v9534_v43  ;;  %v15520_v8 = vld [vmem:[#allocation257_spill] sm:$0xff] }
 0x3bd   : > { %5452 = vmatpush.msra.mxu2 %v4810_v51  ;;  %v3688_v3 = vsub.f32 %v3394_v36, %v9573_v56  ;;  %v15519_v34 = vand.u32 2147483647, %v15518_v20  ;;  %v3723_v49 = vsub.f32 %v3429_v11, %v9565_v38  ;;  %v4594_v31 = vmax.f32 %v4306_v40, 0.0 }
 0x3be   : > { %5577 = vmatpush.msra.mxu0 %v4884_v9  ;;  %v3726_v28 = vsub.f32 %v3432_v26, %v9573_v56  ;;  %v15521_v21 = vand.u32 2147483647, %v15520_v8  ;;  %v12469_v32 = vsub.f32 1.0, %v4023_v57  ;;  %v4010_v36 = vand.u32 2147483647, %v3722_v1  ;;  %v15522_v9 = vld [vmem:[#allocation259_spill] sm:$0xff] }
 0x3bf   : > { %v2204_v54 = vsub.f32 1.0, %v15519_v34  ;;  %v15523_v6 = vand.u32 2147483647, %v15522_v9  ;;  %v12473_v34 = vpop.permute.xlu0 %3101  ;;  %v4592_v25 = vmax.f32 %v4304_v22, 0.0  ;;  %v4021_v41 = vand.u32 2147483647, %v3733_v44  ;;  %v12481_v1 = vpop.f32.mrf.mxu3 }
 0x3c0   : > { %v2278_v15 = vsub.f32 1.0, %v15521_v21  ;;  %v3430_v11 = vsub.f32 %v12462_v55, %v9532_v50  ;;  %v3731_v40 = vsub.f32 %v3437_v62, %v9565_v38  ;;  %v3976_v26 = vand.u32 2147483647, %v3688_v3  ;;  %v4910_v57 = vld [vmem:[%s14284_s0 + $0x30] sm:$0xff]  ;;  %15524 = vst [vmem:[#allocation150_spill] sm:$0xff] %v12481_v1 }
 0x3c1   : > { %v2492_v51 = vmax.f32 %v2204_v54, 0.0  ;;  %v2276_v20 = vsub.f32 1.0, %v15523_v6  ;;  %v4014_v8 = vand.u32 2147483647, %v3726_v28  ;;  %v12483_v6 = vpop.f32.mrf.mxu1  ;;  %v4011_v54 = vand.u32 2147483647, %v3723_v49 }
 0x3c2   : > { %v2566_v0 = vmax.f32 %v2278_v15, 0.0  ;;  %15525 = vst [vmem:[#allocation183_spill] sm:$0xff] %v12483_v6  ;;  %v3426_v15 = vsub.f32 %v12473_v34, %v9532_v50  ;;  %v12488_v62 = vsub.f32 1.0, %v4010_v36  ;;  %v15528_v28 = vld [vmem:[#allocation42_spill] sm:$0xff]  ;;  %v3724_v1 = vsub.f32 %v3430_v11, %v9573_v56  ;;  %v6227_v50 = vld [vmem:[%s14286_s2 + $0x48] sm:$0xff] }
 0x3c3   : > { %v4808_v21 = vmul.f32 %v4520_v48, %v2492_v51  ;;  %v2564_v44 = vmax.f32 %v2276_v20, 0.0  ;;  %v15526_v48 = vld [vmem:[#allocation85_spill] sm:$0xff]  ;;  %v15529_v51 = vmax.f32 %v15528_v28, 0.0  ;;  %v6222_v49 = vld [vmem:[%s14286_s2 + $0x20] sm:$0xff]  ;;  %v12503_v36 = vsub.f32 1.0, %v4021_v41  ;;  %6281 = vperm.xlu2 %6731, %v6227_v50  }
 0x3c4   : > { %v4882_v22 = vmul.f32 %v4594_v31, %v2566_v0  ;;  %v15527_v3 = vmax.f32 %v15526_v48, 0.0  ;;  %v12501_v31 = vsub.f32 1.0, %v3949_v5  ;;  %v15530_v0 = vld [vmem:[#allocation84_spill] sm:$0xff]  ;;  %v6226_v11 = vld [vmem:[%s14286_s2 + $0x40] sm:$0xff]  ;;  %v4019_v28 = vand.u32 2147483647, %v3731_v40  ;;  %6256 = vperm.xlu1 %6730, %v6222_v49  }
 0x3c5   : > { %5453 = vmatpush.msra.mxu2 %v4808_v21  ;;  %v4880_v20 = vmul.f32 %v4592_v25, %v2564_v44  ;;  %v15531_v21 = vand.u32 2147483647, %v15530_v0  ;;  %v4302_v9 = vsub.f32 1.0, %v4014_v8  ;;  %v15533_v5 = vld [vmem:[#allocation80_spill] sm:$0xff]  ;;  %v3720_v44 = vsub.f32 %v3426_v15, %v9573_v56  ;;  %6276 = vperm.xlu0 %6732, %v6226_v11   ;;  %v15536_v49 = vld [vmem:[#allocation57_spill] sm:$0xff]  ;;  %v15538_v56 = vld [vmem:[#allocation87_spill] sm:$0xff] }
 0x3c6   : > { %v4679_v10 = vmul.f32 %v15529_v51, %v15527_v3  ;;  %5578 = vmatpush.msra.mxu0 %v4882_v22  ;;  %5454 = vmatmul.f32.vlgmr.msra.gmra.mxu2 %v4910_v57  ;;  %v12507_v3 = vpop.f32.mrf.mxu0  ;;  %v4264_v51 = vsub.f32 1.0, %v3976_v26  ;;  %v15534_v6 = vand.u32 2147483647, %v15533_v5  ;;  %v12516_v22 = vsub.f32 1.0, %v4011_v54  ;;  %v15540_v5 = vld [vmem:[#allocation77_spill] sm:$0xff] }
 0x3c7   : > { %v2073_v48 = vsub.f32 1.0, %v15531_v21  ;;  %15532 = vst [vmem:[#allocation230_spill] sm:$0xff] %v12507_v3  ;;  %v4012_v40 = vand.u32 2147483647, %v3724_v1  ;;  %v15539_v15 = vand.u32 2147483647, %v15538_v56 }
 0x3c8   : > { %5698 = vmatpush.msrb.mxu2 %v4679_v10  ;;  %v4101_v41 = vsub.f32 1.0, %v15534_v6  ;;  %5579 = vmatpush.msra.mxu0 %v4880_v20  ;;  %v12520_v10 = vpop.f32.mrf.mxu2  ;;  %v6878_v6 = vld [vmem:[%s14284_s0 + $0x48] sm:$0xff]  ;;  %v15537_v20 = vand.u32 2147483647, %v15536_v49  ;;  %v15541_v1 = vand.u32 2147483647, %v15540_v5 }
 0x3c9   : > { %v2361_v26 = vmax.f32 %v2073_v48, 0.0  ;;  %15535 = vst [vmem:[#allocation86_spill] sm:$0xff] %v12520_v10  ;;  %5652 = vmatmul.f32.gmra.mxu1 %v6878_v6  ;;  %v4099_v50 = vsub.f32 1.0, %v15539_v15  ;;  %v4552_v57 = vmax.f32 %v4264_v51, 0.0  ;;  %v4590_v11 = vmax.f32 %v4302_v9, 0.0  ;;  %v4919_v6 = vld [vmem:[%s14284_s0 + $0x78] sm:$0xff]  ;;  %v12547_v33 = vpop.f32.mrf.mxu1 }
 0x3ca   : > { %v4389_v8 = vmax.f32 %v4101_v41, 0.0  ;;  %v2071_v21 = vsub.f32 1.0, %v15537_v20  ;;  %v2069_v48 = vsub.f32 1.0, %v15541_v1  ;;  %v12532_v41 = vsub.f32 1.0, %v4019_v28  ;;  %v15542_v49 = vld [vmem:[#allocation39_spill] sm:$0xff]  ;;  %v15544_v5 = vld [vmem:[#allocation218_spill] sm:$0xff] }
 0x3cb   : > { %v4008_v0 = vand.u32 2147483647, %v3720_v44  ;;  %v4387_v3 = vmax.f32 %v4099_v50, 0.0  ;;  %v15543_v20 = vand.u32 2147483647, %v15542_v49  ;;  %v12539_v56 = vsub.f32 1.0, %v4012_v40 }
 0x3cc   : > { %v4677_v25 = vmul.f32 %v4389_v8, %v2361_v26  ;;  %v2359_v54 = vmax.f32 %v2071_v21, 0.0  ;;  %v2357_v15 = vmax.f32 %v2069_v48, 0.0  ;;  %v15545_v28 = vand.u32 2147483647, %v15544_v5  ;;  %v15546_v51 = vld [vmem:[#allocation234_spill] sm:$0xff]  ;;  %v12545_v8 = vpop.f32.mrf.mxu3  ;;  %15549 = vst [vmem:[#allocation250_spill] sm:$0xff] %v12547_v33 }
 0x3cd   : > { %v4097_v10 = vsub.f32 1.0, %v15543_v20  ;;  %v15547_v9 = vand.u32 2147483647, %v15546_v51  ;;  %15548 = vst [vmem:[#allocation128_spill] sm:$0xff] %v12545_v8  ;;  %v15550_v50 = vld [vmem:[#allocation79_spill] sm:$0xff]  ;;  %v15554_v5 = vld [vmem:[#allocation53_spill] sm:$0xff] }
 0x3ce   : > { %5699 = vmatpush.msrb.mxu2 %v4677_v25  ;;  %v2236_v1 = vsub.f32 1.0, %v15545_v28  ;;  %v4675_v44 = vmul.f32 %v4387_v3, %v2359_v54  ;;  %v15551_v49 = vand.u32 2147483647, %v15550_v50  ;;  %v15552_v40 = vld [vmem:[#allocation51_spill] sm:$0xff]  ;;  %v15555_v28 = vand.u32 2147483647, %v15554_v5 }
 0x3cf   : > { %v2274_v26 = vsub.f32 1.0, %v15547_v9  ;;  %v4385_v21 = vmax.f32 %v4097_v10, 0.0  ;;  %5457 = vmatmul.f32.gmra.mxu2 %v4919_v6  ;;  %v15553_v4 = vand.u32 2147483647, %v15552_v40  ;;  %v15556_v51 = vld [vmem:[#allocation104_spill] sm:$0xff]  ;;  %v3433_v3 = vsub.f32 %v12412_v19, %v9534_v43  ;;  %v12560_v6 = vpop.f32.mrf.mxu0  ;;  %v15559_v19 = vld [vmem:[#allocation78_spill] sm:$0xff] }
 0x3d0   : > { %v2067_v20 = vsub.f32 1.0, %v15551_v49  ;;  %v2524_v48 = vmax.f32 %v2236_v1, 0.0  ;;  %v4093_v53 = vsub.f32 1.0, %v15555_v28  ;;  %v15557_v9 = vand.u32 2147483647, %v15556_v51  ;;  %5700 = vmatpush.msrb.mxu2 %v4675_v44  ;;  %15558 = vst [vmem:[#allocation144_spill] sm:$0xff] %v12560_v6  ;;  %v12580_v51 = vpop.f32.mrf.mxu2 }
 0x3d1   : > { %v2065_v25 = vsub.f32 1.0, %v15553_v4  ;;  %v2562_v63 = vmax.f32 %v2274_v26, 0.0  ;;  %v4673_v10 = vmul.f32 %v4385_v21, %v2357_v15  ;;  %v4911_v1 = vld [vmem:[%s14284_s0 + $0x38] sm:$0xff]  ;;  %v6879_v40 = vld [vmem:[%s14284_s0 + $0x90] sm:$0xff]  ;;  %v12568_v5 = vsub.f32 1.0, %v4008_v0  ;;  %15565 = vst [vmem:[#allocation145_spill] sm:$0xff] %v12580_v51 }
 0x3d2   : > { %v2105_v12 = vsub.f32 1.0, %v15557_v9  ;;  %v2355_v54 = vmax.f32 %v2067_v20, 0.0  ;;  %v4840_v50 = vmul.f32 %v4552_v57, %v2524_v48  ;;  %v4381_v49 = vmax.f32 %v4093_v53, 0.0  ;;  %5655 = vmatmul.f32.gmra.mxu1 %v6879_v40  ;;  %v15561_v21 = vld [vmem:[#allocation72_spill] sm:$0xff]  ;;  %v6219_v53 = vld [vmem:[%s14286_s2 + $0x8] sm:$0xff]  ;;  %v15566_v9 = vld [vmem:[#allocation73_spill] sm:$0xff] }
 0x3d3   : > { %v4878_v4 = vmul.f32 %v4590_v11, %v2562_v63  ;;  %v2353_v26 = vmax.f32 %v2065_v25, 0.0  ;;  %5701 = vmatpush.msrb.mxu2 %v4673_v10  ;;  %v15560_v15 = vmax.f32 %v15559_v19, 0.0  ;;  %v15562_v57 = vand.u32 2147483647, %v15561_v21  ;;  %v15563_v11 = vld [vmem:[#allocation19_spill] sm:$0xff]  ;;  %v6224_v40 = vld [vmem:[%s14286_s2 + $0x30] sm:$0xff]  ;;  %6241 = vperm.xlu1 %6730, %v6219_v53  }
 0x3d4   : > { %v15564_v20 = vand.u32 2147483647, %v15563_v11  ;;  %v4588_v25 = vmax.f32 %v12539_v56, 0.0  ;;  %5518 = vmatpush.msra.mxu3 %v4840_v50  ;;  %v2393_v28 = vmax.f32 %v2105_v12, 0.0  ;;  %v15567_v10 = vand.u32 2147483647, %v15566_v9  ;;  %6266 = vperm.xlu2 %6731, %v6224_v40   ;;  %v12615_v35 = vpop.f32.mrf.mxu3 }
 0x3d5   : > { %v4671_v44 = vmul.f32 %v15560_v15, %v2355_v54  ;;  %v2063_v63 = vsub.f32 1.0, %v15562_v57  ;;  %5580 = vmatpush.msra.mxu0 %v4878_v4  ;;  %v4669_v0 = vmul.f32 %v4381_v49, %v2353_v26  ;;  %5519 = vmatmul.f32.vlgmr.msra.gmra.mxu3 %v4911_v1  ;;  %v15568_v21 = vld [vmem:[#allocation89_spill] sm:$0xff]  ;;  %v4928_v12 = vld [vmem:[%s14284_s0 + $0xc0] sm:$0xff]  ;;  %v15572_v49 = vld [vmem:[#allocation168_spill] sm:$0xff] }
 0x3d6   : > { %v2103_v48 = vsub.f32 1.0, %v15564_v20  ;;  %v2061_v54 = vsub.f32 1.0, %v15567_v10  ;;  %v15569_v57 = vand.u32 2147483647, %v15568_v21  ;;  %v15570_v50 = vld [vmem:[#allocation253_spill] sm:$0xff]  ;;  %5763 = vmatpush.msrb.mxu3 %v15572_v49  ;;  %v15573_v11 = vld [vmem:[#allocation38_spill] sm:$0xff] }
 0x3d7   : > { %5702 = vmatpush.msrb.mxu2 %v4671_v44  ;;  %v2351_v19 = vmax.f32 %v2063_v63, 0.0  ;;  %v15571_v4 = vand.u32 2147483647, %v15570_v50  ;;  %v15574_v20 = vmax.f32 %v15573_v11, 0.0  ;;  %v15575_v1 = vld [vmem:[#allocation46_spill] sm:$0xff]  ;;  %v12605_v50 = vsub.f32 %v3433_v3, %v9565_v38  ;;  %v15585_v6 = vld [vmem:[#allocation255_spill] sm:$0xff] }
 0x3d8   : > { %v2391_v15 = vmax.f32 %v2103_v48, 0.0  ;;  %v2101_v56 = vsub.f32 1.0, %v15569_v57  ;;  %v2349_v10 = vmax.f32 %v2061_v54, 0.0  ;;  %v15576_v44 = vand.u32 2147483647, %v15575_v1  ;;  %v15577_v48 = vld [vmem:[#allocation101_spill] sm:$0xff]  ;;  %5460 = vmatmul.f32.gmra.mxu2 %v4928_v12 }
 0x3d9   : > { %v2272_v26 = vsub.f32 1.0, %v15571_v4  ;;  %v4709_v9 = vmul.f32 %v15574_v20, %v2393_v28  ;;  %v15578_v8 = vand.u32 2147483647, %v15577_v48  ;;  %v6223_v57 = vld [vmem:[%s14286_s2 + $0x28] sm:$0xff]  ;;  %5703 = vmatpush.msrb.mxu2 %v4669_v0  ;;  %v15579_v4 = vld [vmem:[#allocation40_spill] sm:$0xff]  ;;  %v15581_v28 = vld [vmem:[#allocation62_spill] sm:$0xff]  ;;  %v12617_v0 = vpop.f32.mrf.mxu1 }
 0x3da   : > { %v2059_v63 = vsub.f32 1.0, %v15576_v44  ;;  %v15580_v49 = vmax.f32 %v15579_v4, 0.0  ;;  %v15582_v54 = vmax.f32 %v15581_v28, 0.0  ;;  %v15583_v44 = vld [vmem:[#allocation15_spill] sm:$0xff]  ;;  %v2389_v48 = vmax.f32 %v2101_v56, 0.0  ;;  %6261 = vperm.xlu0 %6732, %v6223_v57   ;;  %v15591_v12 = vld [vmem:[#allocation25_spill] sm:$0xff] }
 0x3db   : > { %v2099_v21 = vsub.f32 1.0, %v15578_v8  ;;  %v2560_v1 = vmax.f32 %v2272_v26, 0.0  ;;  %5764 = vmatpush.msrb.mxu3 %v4709_v9  ;;  %v15584_v8 = vmax.f32 %v15583_v44, 0.0  ;;  %v15586_v51 = vand.u32 2147483647, %v15585_v6  ;;  %v15589_v9 = vld [vmem:[#allocation102_spill] sm:$0xff] }
 0x3dc   : > { %v4667_v11 = vmul.f32 %v15580_v49, %v2351_v19  ;;  %v4707_v20 = vmul.f32 %v15582_v54, %v2391_v15  ;;  %v2347_v33 = vmax.f32 %v2059_v63, 0.0  ;;  %v15587_v15 = vld [vmem:[#allocation66_spill] sm:$0xff]  ;;  %v15590_v49 = vand.u32 2147483647, %v15589_v9  ;;  %v6880_v54 = vld [vmem:[%s14284_s0 + $0xd8] sm:$0xff] }
 0x3dd   : > { %v4665_v53 = vmul.f32 %v15584_v8, %v2349_v10  ;;  %v2270_v3 = vsub.f32 1.0, %v15586_v51  ;;  %v4876_v19 = vmul.f32 %v4588_v25, %v2560_v1  ;;  %v2387_v4 = vmax.f32 %v2099_v21, 0.0  ;;  %v4920_v10 = vld [vmem:[%s14284_s0 + $0x80] sm:$0xff]  ;;  %v15593_v25 = vld [vmem:[#allocation48_spill] sm:$0xff]  ;;  %5658 = vmatmul.f32.gmra.mxu1 %v6880_v54 }
 0x3de   : > { %5704 = vmatpush.msrb.mxu2 %v4667_v11  ;;  %v15588_v26 = vand.u32 2147483647, %v15587_v15  ;;  %v2097_v28 = vsub.f32 1.0, %v15590_v49  ;;  %v4584_v56 = vmax.f32 %v12568_v5, 0.0  ;;  %5765 = vmatpush.msrb.mxu3 %v4707_v20  ;;  %v15592_v6 = vmax.f32 %v15591_v12, 0.0  ;;  %v15595_v5 = vld [vmem:[#allocation26_spill] sm:$0xff] }
 0x3df   : > { %v2558_v63 = vmax.f32 %v2270_v3, 0.0  ;;  %v15594_v21 = vand.u32 2147483647, %v15593_v25  ;;  %5581 = vmatpush.msra.mxu0 %v4876_v19  ;;  %v15596_v57 = vmax.f32 %v15595_v5, 0.0  ;;  %v15597_v1 = vld [vmem:[#allocation110_spill] sm:$0xff]  ;;  %v15599_v3 = vmax.f32 %v12488_v62, 0.0  ;;  %5522 = vmatmul.f32.gmra.mxu3 %v4920_v10 }
 0x3e0   : > { %v2057_v40 = vsub.f32 1.0, %v15588_v26  ;;  %v4705_v51 = vmul.f32 %v15592_v6, %v2389_v48  ;;  %5705 = vmatpush.msrb.mxu2 %v4665_v53  ;;  %v15598_v44 = vmax.f32 %v15597_v1, 0.0  ;;  %v2385_v15 = vmax.f32 %v2097_v28, 0.0  ;;  %v12638_v26 = vpop.f32.mrf.mxu0  ;;  %v15600_v12 = vld [vmem:[#allocation228_spill] sm:$0xff]  ;;  %v15602_v53 = vld [vmem:[#allocation67_spill] sm:$0xff]  ;;  %v15606_v54 = vld [vmem:[#allocation82_spill] sm:$0xff] }
 0x3e1   : > { %v2297_v11 = vsub.f32 1.0, %v15594_v21  ;;  %v4663_v20 = vmul.f32 %v15596_v57, %v2347_v33  ;;  %v4874_v9 = vmul.f32 %v15599_v3, %v2558_v63  ;;  %v15601_v6 = vand.u32 2147483647, %v15600_v12  ;;  %v15608_v57 = vld [vmem:[#allocation270_spill] sm:$0xff] }
 0x3e2   : > { %v4703_v8 = vmul.f32 %v15598_v44, %v2387_v4  ;;  %v2345_v48 = vmax.f32 %v2057_v40, 0.0  ;;  %5766 = vmatpush.msrb.mxu3 %v4705_v51  ;;  %v15603_v19 = vand.u32 2147483647, %v15602_v53  ;;  %v15604_v4 = vld [vmem:[#allocation69_spill] sm:$0xff]  ;;  %v15607_v5 = vand.u32 2147483647, %v15606_v54 }
 0x3e3   : > { %v2585_v49 = vmax.f32 %v2297_v11, 0.0  ;;  %v2268_v25 = vsub.f32 1.0, %v15601_v6  ;;  %5706 = vmatpush.msrb.mxu2 %v4663_v20  ;;  %v15605_v40 = vmax.f32 %v15604_v4, 0.0  ;;  %v15609_v62 = vand.u32 2147483647, %v15608_v57  ;;  %5582 = vmatpush.msra.mxu0 %v4874_v9  ;;  %v15610_v11 = vld [vmem:[#allocation11_spill] sm:$0xff]  ;;  %v12657_v6 = vpop.f32.mrf.mxu2 }
 0x3e4   : > { %v2055_v21 = vsub.f32 1.0, %v15603_v19  ;;  %v2095_v51 = vsub.f32 1.0, %v15607_v5  ;;  %5767 = vmatpush.msrb.mxu3 %v4703_v8  ;;  %v15611_v1 = vmax.f32 %v15610_v11, 0.0  ;;  %v15612_v3 = vmax.f32 %v12166_v18, 0.0  ;;  %v15613_v4 = vld [vmem:[#allocation41_spill] sm:$0xff] }
 0x3e5   : > { %v4661_v28 = vmul.f32 %v15605_v40, %v2345_v48  ;;  %v2295_v63 = vsub.f32 1.0, %v15609_v62  ;;  %v2556_v10 = vmax.f32 %v2268_v25, 0.0  ;;  %v4937_v48 = vld [vmem:[%s14284_s0 + $0x108] sm:$0xff]  ;;  %v15614_v8 = vand.u32 2147483647, %v15613_v4  ;;  %v15615_v40 = vld [vmem:[#allocation97_spill] sm:$0xff] }
 0x3e6   : > { %v4701_v44 = vmul.f32 %v15611_v1, %v2385_v15  ;;  %v4901_v12 = vmul.f32 %v15612_v3, %v2585_v49  ;;  %v2343_v20 = vmax.f32 %v2055_v21, 0.0  ;;  %v2383_v53 = vmax.f32 %v2095_v51, 0.0  ;;  %v6221_v18 = vld [vmem:[%s14286_s2 + $0x18] sm:$0xff]  ;;  %v4912_v25 = vld [vmem:[%s14284_s0 + $0x40] sm:$0xff]  ;;  %v15617_v21 = vld [vmem:[#allocation47_spill] sm:$0xff]  ;;  %5463 = vmatmul.f32.gmra.mxu2 %v4937_v48 }
 0x3e7   : > { %5707 = vmatpush.msrb.mxu2 %v4661_v28  ;;  %v2583_v19 = vmax.f32 %v2295_v63, 0.0  ;;  %v2053_v9 = vsub.f32 1.0, %v15614_v8  ;;  %v15616_v54 = vand.u32 2147483647, %v15615_v40  ;;  %v4872_v49 = vmul.f32 %v4584_v56, %v2556_v10  ;;  %v15619_v51 = vld [vmem:[#allocation113_spill] sm:$0xff]  ;;  %v15621_v63 = vld [vmem:[#allocation252_spill] sm:$0xff]  ;;  %6251 = vperm.xlu2 %6731, %v6221_v18  }
 0x3e8   : > { %5768 = vmatpush.msrb.mxu3 %v4701_v44  ;;  %6154 = vmatpush.msra.mxu1 %v4901_v12  ;;  %v15618_v28 = vmax.f32 %v15617_v21, 0.0  ;;  %v15620_v57 = vand.u32 2147483647, %v15619_v51  ;;  %v15622_v11 = vand.u32 2147483647, %v15621_v63  ;;  %v3431_v3 = vsub.f32 %v12462_v55, %v9534_v43  ;;  %v15623_v4 = vld [vmem:[#allocation112_spill] sm:$0xff]  ;;  %v12688_v55 = vpop.f32.mrf.mxu1 }
 0x3e9   : > { %v2093_v15 = vsub.f32 1.0, %v15616_v54  ;;  %v15624_v44 = vmax.f32 %v15623_v4, 0.0  ;;  %v2341_v56 = vmax.f32 %v2053_v9, 0.0  ;;  %5583 = vmatpush.msra.mxu0 %v4872_v49  ;;  %v15626_v21 = vld [vmem:[#allocation58_spill] sm:$0xff]  ;;  %v15637_v4 = vld [vmem:[#allocation7_spill] sm:$0xff] }
 0x3ea   : > { %v4659_v5 = vmul.f32 %v15618_v28, %v2343_v20  ;;  %v2137_v62 = vsub.f32 1.0, %v15620_v57  ;;  %v2293_v1 = vsub.f32 1.0, %v15622_v11  ;;  %v15625_v20 = vmax.f32 %v12201_v47, 0.0  ;;  %v12686_v57 = vpop.f32.mrf.mxu3  ;;  %5584 = vmatmul.f32.vlgmr.msra.gmra.mxu0 %v4912_v25 }
 0x3eb   : > { %v4699_v12 = vmul.f32 %v15624_v44, %v2383_v53  ;;  %v2381_v10 = vmax.f32 %v2093_v15, 0.0  ;;  %v15627_v28 = vand.u32 2147483647, %v15626_v21  ;;  %v15628_v53 = vld [vmem:[#allocation27_spill] sm:$0xff]  ;;  %v15630_v15 = vld [vmem:[#allocation10_spill] sm:$0xff]  ;;  %v15638_v44 = vmax.f32 %v15637_v4, 0.0 }
 0x3ec   : > { %5708 = vmatpush.msrb.mxu2 %v4659_v5  ;;  %v4899_v8 = vmul.f32 %v15625_v20, %v2583_v19  ;;  %v2425_v40 = vmax.f32 %v2137_v62, 0.0  ;;  %v2581_v54 = vmax.f32 %v2293_v1, 0.0  ;;  %v15629_v9 = vmax.f32 %v15628_v53, 0.0  ;;  %v15632_v5 = vld [vmem:[#allocation98_spill] sm:$0xff]  ;;  %v15636_v1 = vld [vmem:[#allocation55_spill] sm:$0xff]  ;;  %v15640_v21 = vld [vmem:[#allocation268_spill] sm:$0xff] }
 0x3ed   : > { %v2051_v51 = vsub.f32 1.0, %v15627_v28  ;;  %5769 = vmatpush.msrb.mxu3 %v4699_v12  ;;  %v15631_v18 = vmax.f32 %v15630_v15, 0.0  ;;  %v15633_v47 = vand.u32 2147483647, %v15632_v5  ;;  %v15634_v62 = vld [vmem:[#allocation130_spill] sm:$0xff]  ;;  %5828 = vmatpush.msrb.mxu0 %v15636_v1  ;;  %v15639_v25 = vmax.f32 %v12248_v45, 0.0 }
 0x3ee   : > { %v4657_v48 = vmul.f32 %v15629_v9, %v2341_v56  ;;  %v15635_v63 = vand.u32 2147483647, %v15634_v62  ;;  %6155 = vmatpush.msra.mxu1 %v4899_v8  ;;  %v4741_v20 = vmul.f32 %v15638_v44, %v2425_v40  ;;  %v4929_v56 = vld [vmem:[%s14284_s0 + $0xc8] sm:$0xff]  ;;  %v15641_v28 = vand.u32 2147483647, %v15640_v21  ;;  %v6220_v9 = vld [vmem:[%s14286_s2 + $0x10] sm:$0xff]  ;;  %v12715_v62 = vpop.f32.mrf.mxu0 }
 0x3ef   : > { %v4697_v49 = vmul.f32 %v15631_v18, %v2381_v10  ;;  %v2091_v19 = vsub.f32 1.0, %v15633_v47  ;;  %v4897_v12 = vmul.f32 %v15639_v25, %v2581_v54  ;;  %v2339_v10 = vmax.f32 %v2051_v51, 0.0  ;;  %v15642_v40 = vld [vmem:[#allocation60_spill] sm:$0xff]  ;;  %v15646_v51 = vld [vmem:[#allocation30_spill] sm:$0xff]  ;;  %v15648_v44 = vld [vmem:[#allocation131_spill] sm:$0xff]  ;;  %5525 = vmatmul.f32.gmra.mxu3 %v4929_v56  ;;  %6246 = vperm.xlu0 %6732, %v6220_v9  }
 0x3f0   : > { %v2135_v11 = vsub.f32 1.0, %v15635_v63  ;;  %v2291_v53 = vsub.f32 1.0, %v15641_v28  ;;  %5709 = vmatpush.msrb.mxu2 %v4657_v48  ;;  %v15643_v18 = vand.u32 2147483647, %v15642_v40  ;;  %v15644_v54 = vld [vmem:[#allocation76_spill] sm:$0xff]  ;;  %5829 = vmatpush.msrb.mxu0 %v4741_v20  ;;  %v15647_v63 = vmax.f32 %v15646_v51, 0.0 }
 0x3f1   : > { %5770 = vmatpush.msrb.mxu3 %v4697_v49  ;;  %v2379_v8 = vmax.f32 %v2091_v19, 0.0  ;;  %v15645_v5 = vand.u32 2147483647, %v15644_v54  ;;  %6156 = vmatpush.msra.mxu1 %v4897_v12  ;;  %v15649_v25 = vand.u32 2147483647, %v15648_v44  ;;  %v15650_v49 = vld [vmem:[#allocation56_spill] sm:$0xff]  ;;  %v12736_v44 = vpop.f32.mrf.mxu2 }
 0x3f2   : > { %v2423_v15 = vmax.f32 %v2135_v11, 0.0  ;;  %v2049_v45 = vsub.f32 1.0, %v15643_v18  ;;  %v4655_v1 = vmul.f32 %v15647_v63, %v2339_v10  ;;  %v2579_v4 = vmax.f32 %v2291_v53, 0.0  ;;  %v15652_v21 = vld [vmem:[#allocation88_spill] sm:$0xff]  ;;  %v15654_v18 = vld [vmem:[#allocation106_spill] sm:$0xff] }
 0x3f3   : > { %v2089_v47 = vsub.f32 1.0, %v15645_v5  ;;  %v2133_v48 = vsub.f32 1.0, %v15649_v25  ;;  %v15651_v19 = vand.u32 2147483647, %v15650_v49  ;;  %v15653_v28 = vmax.f32 %v15652_v21, 0.0  ;;  %v4946_v12 = vld [vmem:[%s14284_s0 + $0x150] sm:$0xff] }
 0x3f4   : > { %v15655_v54 = vmax.f32 %v15654_v18, 0.0  ;;  %v2337_v33 = vmax.f32 %v2049_v45, 0.0  ;;  %v15656_v10 = vand.u32 2147483647, %v12605_v50  ;;  %5710 = vmatpush.msrb.mxu2 %v4655_v1  ;;  %v15657_v56 = vmax.f32 %v12315_v27, 0.0  ;;  %v15658_v50 = vld [vmem:[#allocation34_spill] sm:$0xff] }
 0x3f5   : > { %v2289_v11 = vsub.f32 1.0, %v15651_v19  ;;  %v4695_v40 = vmul.f32 %v15653_v28, %v2379_v8  ;;  %v2377_v20 = vmax.f32 %v2089_v47, 0.0  ;;  %v2421_v63 = vmax.f32 %v2133_v48, 0.0  ;;  %v15660_v1 = vld [vmem:[#allocation122_spill] sm:$0xff]  ;;  %v15662_v25 = vld [vmem:[#allocation31_spill] sm:$0xff]  ;;  %v15664_v19 = vld [vmem:[#allocation64_spill] sm:$0xff]  ;;  %5466 = vmatmul.f32.gmra.mxu2 %v4946_v12 }
 0x3f6   : > { %v4739_v5 = vmul.f32 %v15655_v54, %v2423_v15  ;;  %v12732_v53 = vsub.f32 1.0, %v15656_v10  ;;  %v4895_v51 = vmul.f32 %v15657_v56, %v2579_v4  ;;  %v6881_v15 = vld [vmem:[%s14284_s0 + $0x120] sm:$0xff]  ;;  %v12742_v45 = vsub.f32 %v3431_v3, %v9565_v38  ;;  %v4921_v3 = vld [vmem:[%s14284_s0 + $0x88] sm:$0xff]  ;;  %v15677_v12 = vld [vmem:[#allocation125_spill] sm:$0xff] }
 0x3f7   : > { %v2577_v8 = vmax.f32 %v2289_v11, 0.0  ;;  %5661 = vmatmul.f32.gmra.mxu1 %v6881_v15  ;;  %5771 = vmatpush.msrb.mxu3 %v4695_v40  ;;  %v15659_v9 = vmax.f32 %v15658_v50, 0.0  ;;  %v15661_v27 = vmax.f32 %v15660_v1, 0.0  ;;  %v15663_v48 = vand.u32 2147483647, %v15662_v25  ;;  %v15667_v40 = vld [vmem:[#allocation93_spill] sm:$0xff] }
 0x3f8   : > { %5830 = vmatpush.msrb.mxu0 %v4739_v5  ;;  %6157 = vmatpush.msra.mxu1 %v4895_v51  ;;  %v15665_v11 = vmax.f32 %v15664_v19, 0.0  ;;  %v15666_v28 = vmax.f32 %v12334_v2, 0.0  ;;  %v15668_v54 = vand.u32 2147483647, %v15667_v40  ;;  %v15669_v5 = vld [vmem:[#allocation105_spill] sm:$0xff]  ;;  %v3427_v56 = vsub.f32 %v12473_v34, %v9534_v43  ;;  %v15673_v15 = vld [vmem:[#allocation52_spill] sm:$0xff] }
 0x3f9   : > { %v4653_v47 = vmul.f32 %v15659_v9, %v2337_v33  ;;  %v4693_v4 = vmul.f32 %v15661_v27, %v2377_v20  ;;  %v2047_v49 = vsub.f32 1.0, %v15663_v48  ;;  %v15670_v10 = vand.u32 2147483647, %v15669_v5  ;;  %v15675_v25 = vld [vmem:[#allocation3_spill] sm:$0xff]  ;;  %v4938_v34 = vld [vmem:[%s14284_s0 + $0x110] sm:$0xff]  ;;  %5587 = vmatmul.f32.gmra.mxu0 %v4921_v3 }
 0x3fa   : > { %v4737_v21 = vmul.f32 %v15665_v11, %v2421_v63  ;;  %v4893_v18 = vmul.f32 %v15666_v28, %v2577_v8  ;;  %v2087_v33 = vsub.f32 1.0, %v15668_v54  ;;  %v15671_v63 = vld [vmem:[#allocation247_spill] sm:$0xff]  ;;  %v15674_v50 = vand.u32 2147483647, %v15673_v15  ;;  %v15682_v5 = vld [vmem:[#allocation264_spill] sm:$0xff]  ;;  %5528 = vmatmul.f32.gmra.mxu3 %v4938_v34 }
 0x3fb   : > { %v2131_v20 = vsub.f32 1.0, %v15670_v10  ;;  %5711 = vmatpush.msrb.mxu2 %v4653_v47  ;;  %5772 = vmatpush.msrb.mxu3 %v4693_v4  ;;  %v2335_v51 = vmax.f32 %v2047_v49, 0.0  ;;  %v15672_v2 = vand.u32 2147483647, %v15671_v63  ;;  %v15676_v48 = vand.u32 2147483647, %v15675_v25  ;;  %v12774_v47 = vpop.f32.mrf.mxu3  ;;  %v12779_v49 = vpop.f32.mrf.mxu1 }
 0x3fc   : > { %v2045_v9 = vsub.f32 1.0, %v15674_v50  ;;  %5831 = vmatpush.msrb.mxu0 %v4737_v21  ;;  %6158 = vmatpush.msra.mxu1 %v4893_v18  ;;  %v2375_v1 = vmax.f32 %v2087_v33, 0.0  ;;  %v15678_v11 = vand.u32 2147483647, %v15677_v12  ;;  %v6218_v4 = vld [vmem:[%s14286_s2] sm:$0xff]  ;;  %15679 = vst [vmem:[#allocation124_spill] sm:$0xff] %v12779_v49 }
 0x3fd   : > { %v2287_v8 = vsub.f32 1.0, %v15672_v2  ;;  %v2419_v27 = vmax.f32 %v2131_v20, 0.0  ;;  %v2085_v19 = vsub.f32 1.0, %v15676_v48  ;;  %v15680_v21 = vld [vmem:[#allocation63_spill] sm:$0xff]  ;;  %v15683_v10 = vand.u32 2147483647, %v15682_v5  ;;  %6236 = vperm.xlu2 %6731, %v6218_v4   ;;  %v12794_v4 = vpop.f32.mrf.mxu0 }
 0x3fe   : > { %v2129_v28 = vsub.f32 1.0, %v15678_v11  ;;  %v15681_v18 = vmax.f32 %v15680_v21, 0.0  ;;  %v2333_v33 = vmax.f32 %v2045_v9, 0.0  ;;  %v15684_v63 = vld [vmem:[#allocation135_spill] sm:$0xff]  ;;  %v15686_v50 = vld [vmem:[#allocation16_spill] sm:$0xff]  ;;  %v15688_v3 = vmax.f32 %v12366_v23, 0.0 }
 0x3ff   : > { %v2575_v54 = vmax.f32 %v2287_v8, 0.0  ;;  %v2285_v20 = vsub.f32 1.0, %v15683_v10  ;;  %v15685_v2 = vmax.f32 %v15684_v63, 0.0  ;;  %v15687_v25 = vmax.f32 %v15686_v50, 0.0  ;;  %v15689_v8 = vld [vmem:[#allocation70_spill] sm:$0xff] }
 0x400   : > { %v4651_v40 = vmul.f32 %v15681_v18, %v2335_v51  ;;  %v2373_v12 = vmax.f32 %v2085_v19, 0.0  ;;  %v2417_v11 = vmax.f32 %v2129_v28, 0.0  ;;  %v4013_v49 = vand.u32 2147483647, %v12742_v45  ;;  %v15693_v19 = vld [vmem:[#allocation127_spill] sm:$0xff]  ;;  %v15697_v23 = vld [vmem:[#allocation126_spill] sm:$0xff] }
 0x401   : > { %v4691_v15 = vmul.f32 %v15685_v2, %v2375_v1  ;;  %v4735_v48 = vmul.f32 %v15687_v25, %v2419_v27  ;;  %v4891_v51 = vmul.f32 %v15688_v3, %v2575_v54  ;;  %v15690_v9 = vmax.f32 %v15689_v8, 0.0  ;;  %v15691_v1 = vld [vmem:[#allocation159_spill] sm:$0xff]  ;;  %v15702_v25 = vld [vmem:[#allocation185_spill] sm:$0xff]  ;;  %v15704_v3 = vld [vmem:[#allocation90_spill] sm:$0xff] }
 0x402   : > { %5712 = vmatpush.msrb.mxu2 %v4651_v40  ;;  %v2573_v18 = vmax.f32 %v2285_v20, 0.0  ;;  %v15692_v5 = vmax.f32 %v15691_v1, 0.0  ;;  %v15694_v28 = vmax.f32 %v15693_v19, 0.0  ;;  %v15695_v45 = vld [vmem:[#allocation71_spill] sm:$0xff]  ;;  %v15698_v54 = vand.u32 2147483647, %v15697_v23 }
 0x403   : > { %v4649_v21 = vmul.f32 %v15690_v9, %v2333_v33  ;;  %5773 = vmatpush.msrb.mxu3 %v4691_v15  ;;  %5832 = vmatpush.msrb.mxu0 %v4735_v48  ;;  %v15696_v40 = vand.u32 2147483647, %v15695_v45  ;;  %v15699_v34 = vmax.f32 %v12443_v46, 0.0  ;;  %v15700_v20 = vld [vmem:[#allocation266_spill] sm:$0xff]  ;;  %v15703_v48 = vand.u32 2147483647, %v15702_v25  ;;  %v12819_v45 = vpop.f32.mrf.mxu2 }
 0x404   : > { %v4689_v27 = vmul.f32 %v15692_v5, %v2373_v12  ;;  %v4733_v10 = vmul.f32 %v15694_v28, %v2417_v11  ;;  %v2127_v2 = vsub.f32 1.0, %v15698_v54  ;;  %6159 = vmatpush.msra.mxu1 %v4891_v51  ;;  %v15701_v15 = vand.u32 2147483647, %v15700_v20  ;;  %v4955_v9 = vld [vmem:[%s14284_s0 + $0x198] sm:$0xff]  ;;  %v15706_v1 = vld [vmem:[#allocation18_spill] sm:$0xff] }
 0x405   : > { %v2083_v63 = vsub.f32 1.0, %v15696_v40  ;;  %5713 = vmatpush.msrb.mxu2 %v4649_v21  ;;  %v4889_v33 = vmul.f32 %v15699_v34, %v2573_v18  ;;  %v2201_v12 = vsub.f32 1.0, %v15703_v48  ;;  %v15705_v8 = vand.u32 2147483647, %v15704_v3  ;;  %v15708_v5 = vld [vmem:[#allocation241_spill] sm:$0xff]  ;;  %v4930_v40 = vld [vmem:[%s14284_s0 + $0xd0] sm:$0xff] }
 0x406   : > { %v2283_v50 = vsub.f32 1.0, %v15701_v15  ;;  %5774 = vmatpush.msrb.mxu3 %v4689_v27  ;;  %5833 = vmatpush.msrb.mxu0 %v4733_v10  ;;  %v2415_v21 = vmax.f32 %v2127_v2, 0.0  ;;  %v15707_v46 = vand.u32 2147483647, %v15706_v1  ;;  %v15709_v19 = vand.u32 2147483647, %v15708_v5 }
 0x407   : > { %v2081_v11 = vsub.f32 1.0, %v15705_v8  ;;  %v2371_v51 = vmax.f32 %v2083_v63, 0.0  ;;  %v12826_v54 = vsub.f32 %v3427_v56, %v9565_v38  ;;  %6160 = vmatpush.msra.mxu1 %v4889_v33  ;;  %v15710_v27 = vld [vmem:[#allocation35_spill] sm:$0xff]  ;;  %v2489_v63 = vmax.f32 %v2201_v12, 0.0  ;;  %v15711_v2 = vld [vmem:[#allocation152_spill] sm:$0xff]  ;;  %5469 = vmatmul.f32.gmra.mxu2 %v4955_v9 }
 0x408   : > { %v2125_v18 = vsub.f32 1.0, %v15707_v46  ;;  %v2281_v28 = vsub.f32 1.0, %v15709_v19  ;;  %5958 = vmatpush.msra.mxu2 %v15710_v27  ;;  %v2571_v10 = vmax.f32 %v2283_v50, 0.0  ;;  %v15712_v34 = vmax.f32 %v15711_v2, 0.0  ;;  %v15713_v15 = vld [vmem:[#allocation92_spill] sm:$0xff]  ;;  %v6882_v1 = vld [vmem:[%s14284_s0 + $0x168] sm:$0xff]  ;;  %5590 = vmatmul.f32.gmra.mxu0 %v4930_v40  ;;  %v12855_v40 = vpop.f32.mrf.mxu1 }
 0x409   : > { %v15714_v25 = vmax.f32 %v15713_v15, 0.0  ;;  %v2369_v3 = vmax.f32 %v2081_v11, 0.0  ;;  %5664 = vmatmul.f32.gmra.mxu1 %v6882_v1  ;;  %v12836_v56 = vsub.f32 1.0, %v4013_v49  ;;  %v15715_v33 = vmax.f32 %v12469_v32, 0.0  ;;  %v15716_v12 = vld [vmem:[#allocation108_spill] sm:$0xff]  ;;  %v15718_v11 = vld [vmem:[#allocation117_spill] sm:$0xff] }
 0x40a   : > { %v4687_v20 = vmul.f32 %v15712_v34, %v2371_v51  ;;  %v2413_v8 = vmax.f32 %v2125_v18, 0.0  ;;  %v15717_v46 = vmax.f32 %v15716_v12, 0.0  ;;  %v2569_v51 = vmax.f32 %v2281_v28, 0.0  ;;  %v15720_v18 = vld [vmem:[#allocation83_spill] sm:$0xff]  ;;  %v15722_v2 = vld [vmem:[#allocation186_spill] sm:$0xff]  ;;  %v12853_v28 = vpop.f32.mrf.mxu3 }
 0x40b   : > { %v4731_v48 = vmul.f32 %v15714_v25, %v2415_v21  ;;  %v4887_v50 = vmul.f32 %v15715_v33, %v2571_v10  ;;  %v15719_v21 = vmax.f32 %v15718_v11, 0.0  ;;  %v15721_v19 = vmax.f32 %v15720_v18, 0.0  ;;  %v15724_v15 = vld [vmem:[#allocation91_spill] sm:$0xff]  ;;  %v4947_v10 = vld [vmem:[%s14284_s0 + $0x158] sm:$0xff]  ;;  %v15729_v1 = vld [vmem:[#allocation258_spill] sm:$0xff] }
 0x40c   : > { %v4805_v5 = vmul.f32 %v15717_v46, %v2489_v63  ;;  %5775 = vmatpush.msrb.mxu3 %v4687_v20  ;;  %v15723_v34 = vand.u32 2147483647, %v15722_v2  ;;  %v15725_v25 = vand.u32 2147483647, %v15724_v15  ;;  %v15726_v63 = vmax.f32 %v12503_v36, 0.0  ;;  %v15731_v46 = vld [vmem:[#allocation164_spill] sm:$0xff] }
 0x40d   : > { %5834 = vmatpush.msrb.mxu0 %v4731_v48  ;;  %v4685_v9 = vmul.f32 %v15719_v21, %v2369_v3  ;;  %v4729_v27 = vmul.f32 %v15721_v19, %v2413_v8  ;;  %6161 = vmatpush.msra.mxu1 %v4887_v50  ;;  %v15727_v48 = vld [vmem:[#allocation119_spill] sm:$0xff]  ;;  %v15730_v33 = vand.u32 2147483647, %v15729_v1  ;;  %v15732_v11 = vand.u32 2147483647, %v15731_v46  ;;  %v15733_v2 = vld [vmem:[#allocation65_spill] sm:$0xff] }
 0x40e   : > { %v2199_v49 = vsub.f32 1.0, %v15723_v34  ;;  %v2079_v32 = vsub.f32 1.0, %v15725_v25  ;;  %5959 = vmatpush.msra.mxu2 %v4805_v5  ;;  %v4885_v20 = vmul.f32 %v15726_v63, %v2569_v51  ;;  %v15728_v3 = vand.u32 2147483647, %v15727_v48  ;;  %v15735_v5 = vld [vmem:[#allocation120_spill] sm:$0xff]  ;;  %v15737_v48 = vld [vmem:[#allocation261_spill] sm:$0xff]  ;;  %5531 = vmatmul.f32.gmra.mxu3 %v4947_v10 }
 0x40f   : > { %v2279_v12 = vsub.f32 1.0, %v15730_v33  ;;  %v2197_v21 = vsub.f32 1.0, %v15732_v11  ;;  %5776 = vmatpush.msrb.mxu3 %v4685_v9  ;;  %5835 = vmatpush.msrb.mxu0 %v4729_v27  ;;  %v15734_v34 = vand.u32 2147483647, %v15733_v2  ;;  %v15736_v15 = vand.u32 2147483647, %v15735_v5  ;;  %v12871_v33 = vpop.f32.mrf.mxu0 }
 0x410   : > { %v2123_v8 = vsub.f32 1.0, %v15728_v3  ;;  %v2487_v18 = vmax.f32 %v2199_v49, 0.0  ;;  %v2367_v19 = vmax.f32 %v2079_v32, 0.0  ;;  %6162 = vmatpush.msra.mxu1 %v4885_v20  ;;  %v15738_v3 = vand.u32 2147483647, %v15737_v48  ;;  %v15739_v9 = vld [vmem:[#allocation99_spill] sm:$0xff] }
 0x411   : > { %v2077_v50 = vsub.f32 1.0, %v15734_v34  ;;  %v2121_v36 = vsub.f32 1.0, %v15736_v15  ;;  %v2567_v25 = vmax.f32 %v2279_v12, 0.0  ;;  %v2485_v63 = vmax.f32 %v2197_v21, 0.0  ;;  %v15741_v32 = vld [vmem:[#allocation74_spill] sm:$0xff]  ;;  %v15743_v20 = vld [vmem:[#allocation123_spill] sm:$0xff] }
 0x412   : > { %v2411_v51 = vmax.f32 %v2123_v8, 0.0  ;;  %v2277_v1 = vsub.f32 1.0, %v15738_v3  ;;  %v15740_v27 = vmax.f32 %v15739_v9, 0.0  ;;  %v15742_v46 = vmax.f32 %v15741_v32, 0.0  ;;  %v15746_v10 = vld [vmem:[#allocation6_spill] sm:$0xff] }
 0x413   : > { %v2365_v2 = vmax.f32 %v2077_v50, 0.0  ;;  %v2409_v34 = vmax.f32 %v2121_v36, 0.0  ;;  %v4009_v5 = vand.u32 2147483647, %v12826_v54  ;;  %v15744_v8 = vmax.f32 %v15743_v20, 0.0  ;;  %v12890_v20 = vpop.f32.mrf.mxu2 }
 0x414   : > { %v4803_v49 = vmul.f32 %v15740_v27, %v2487_v18  ;;  %v4683_v11 = vmul.f32 %v15742_v46, %v2367_v19  ;;  %v15745_v21 = vmax.f32 %v12532_v41, 0.0  ;;  %v2565_v48 = vmax.f32 %v2277_v1, 0.0  ;;  %v15748_v18 = vld [vmem:[#allocation9_spill] sm:$0xff]  ;;  %v15750_v19 = vld [vmem:[#allocation158_spill] sm:$0xff] }
 0x415   : > { %v4727_v12 = vmul.f32 %v15744_v8, %v2411_v51  ;;  %v15747_v3 = vmax.f32 %v15746_v10, 0.0  ;;  %v15749_v27 = vmax.f32 %v15748_v18, 0.0  ;;  %v15751_v50 = vmax.f32 %v15750_v19, 0.0  ;;  %v15752_v46 = vld [vmem:[#allocation181_spill] sm:$0xff]  ;;  %v15765_v19 = vld [vmem:[#allocation254_spill] sm:$0xff] }
 0x416   : > { %v4883_v15 = vmul.f32 %v15745_v21, %v2567_v25  ;;  %5960 = vmatpush.msra.mxu2 %v4803_v49  ;;  %5777 = vmatpush.msrb.mxu3 %v4683_v11  ;;  %v15753_v54 = vand.u32 2147483647, %v15752_v46  ;;  %v15754_v41 = vmax.f32 %v12450_v42, 0.0  ;;  %v15755_v25 = vld [vmem:[#allocation100_spill] sm:$0xff] }
 0x417   : > { %v4801_v9 = vmul.f32 %v15747_v3, %v2485_v63  ;;  %v4681_v32 = vmul.f32 %v15749_v27, %v2365_v2  ;;  %v4725_v36 = vmul.f32 %v15751_v50, %v2409_v34  ;;  %5836 = vmatpush.msrb.mxu0 %v4727_v12  ;;  %v15756_v1 = vand.u32 2147483647, %v15755_v25  ;;  %v15757_v63 = vld [vmem:[#allocation235_spill] sm:$0xff]  ;;  %v15759_v2 = vld [vmem:[#allocation182_spill] sm:$0xff]  ;;  %v4939_v34 = vld [vmem:[%s14284_s0 + $0x118] sm:$0xff] }
 0x418   : > { %v2195_v23 = vsub.f32 1.0, %v15753_v54  ;;  %6163 = vmatpush.msra.mxu1 %v4883_v15  ;;  %v4881_v51 = vmul.f32 %v15754_v41, %v2565_v48  ;;  %v15758_v11 = vand.u32 2147483647, %v15757_v63  ;;  %v15760_v21 = vand.u32 2147483647, %v15759_v2  ;;  %v15761_v15 = vld [vmem:[#allocation194_spill] sm:$0xff]  ;;  %5593 = vmatmul.f32.gmra.mxu0 %v4939_v34 }
 0x419   : > { %v2119_v49 = vsub.f32 1.0, %v15756_v1  ;;  %5961 = vmatpush.msra.mxu2 %v4801_v9  ;;  %5778 = vmatpush.msrb.mxu3 %v4681_v32  ;;  %v15762_v3 = vand.u32 2147483647, %v15761_v15  ;;  %v15763_v48 = vld [vmem:[#allocation36_spill] sm:$0xff]  ;;  %v15766_v50 = vand.u32 2147483647, %v15765_v19  ;;  %v12917_v1 = vpop.f32.mrf.mxu1 }
 0x41a   : > { %v2275_v8 = vsub.f32 1.0, %v15758_v11  ;;  %v2193_v10 = vsub.f32 1.0, %v15760_v21  ;;  %v2483_v12 = vmax.f32 %v2195_v23, 0.0  ;;  %v15764_v18 = vand.u32 2147483647, %v15763_v48  ;;  %v4964_v54 = vld [vmem:[%s14284_s0 + $0x1e0] sm:$0xff]  ;;  %5837 = vmatpush.msrb.mxu0 %v4725_v36  ;;  %6164 = vmatpush.msra.mxu1 %v4881_v51 }
 0x41b   : > { %v2233_v42 = vsub.f32 1.0, %v15762_v3  ;;  %v2273_v46 = vsub.f32 1.0, %v15766_v50  ;;  %v4587_v41 = vmax.f32 %v12516_v22, 0.0  ;;  %v4589_v25 = vmax.f32 %v12836_v56, 0.0  ;;  %v4956_v32 = vld [vmem:[%s14284_s0 + $0x1a0] sm:$0xff]  ;;  %15767 = vst [vmem:[#allocation200_spill] sm:$0xff] %v12917_v1  ;;  %6023 = vmatpush.msra.mxu3 %v11814_v16  ;;  %v12922_v56 = vpop.f32.mrf.mxu3  ;;  %5472 = vmatmul.f32.gmra.mxu2 %v4964_v54 }
 0x41c   : > { %v2117_v27 = vsub.f32 1.0, %v15764_v18  ;;  %v2407_v23 = vmax.f32 %v2119_v49, 0.0  ;;  %v2563_v9 = vmax.f32 %v2275_v8, 0.0  ;;  %v15768_v63 = vld [vmem:[#allocation103_spill] sm:$0xff]  ;;  %v2481_v21 = vmax.f32 %v2193_v10, 0.0  ;;  %v15773_v19 = vld [vmem:[#allocation96_spill] sm:$0xff]  ;;  %5534 = vmatmul.f32.gmra.mxu3 %v4956_v32 }
 0x41d   : > { %v15769_v11 = vmax.f32 %v15768_v63, 0.0  ;;  %v2521_v15 = vmax.f32 %v2233_v42, 0.0  ;;  %v4297_v36 = vsub.f32 1.0, %v4009_v5  ;;  %v15770_v51 = vld [vmem:[#allocation95_spill] sm:$0xff]  ;;  %v15772_v3 = vmax.f32 %v12732_v53, 0.0  ;;  %v15775_v16 = vld [vmem:[#allocation173_spill] sm:$0xff] }
 0x41e   : > { %v2405_v22 = vmax.f32 %v2117_v27, 0.0  ;;  %v15771_v49 = vmax.f32 %v15770_v51, 0.0  ;;  %v2561_v18 = vmax.f32 %v2273_v46, 0.0  ;;  %v15776_v10 = vmax.f32 %v15775_v16, 0.0  ;;  %v15777_v27 = vld [vmem:[#allocation154_spill] sm:$0xff] }
 0x41f   : > { %v4799_v2 = vmul.f32 %v15769_v11, %v2483_v12  ;;  %v4879_v48 = vmul.f32 %v15772_v3, %v2563_v9  ;;  %v15774_v12 = vmax.f32 %v15773_v19, 0.0  ;;  %v15778_v34 = vmax.f32 %v15777_v27, 0.0  ;;  %v15779_v11 = vld [vmem:[#allocation160_spill] sm:$0xff]  ;;  %v15783_v9 = vld [vmem:[#allocation115_spill] sm:$0xff]  ;;  %v15787_v19 = vld [vmem:[#allocation177_spill] sm:$0xff] }
 0x420   : > { %v4723_v8 = vmul.f32 %v15771_v49, %v2407_v23  ;;  %v4837_v42 = vmul.f32 %v15776_v10, %v2521_v15  ;;  %v15780_v5 = vand.u32 2147483647, %v15779_v11  ;;  %v4877_v53 = vmul.f32 %v4589_v25, %v2561_v18  ;;  %v15781_v23 = vld [vmem:[#allocation213_spill] sm:$0xff]  ;;  %v12942_v15 = vpop.f32.mrf.mxu0  ;;  %v15791_v18 = vld [vmem:[#allocation8_spill] sm:$0xff] }
 0x421   : > { %5962 = vmatpush.msra.mxu2 %v4799_v2  ;;  %v4797_v50 = vmul.f32 %v15774_v12, %v2481_v21  ;;  %v4721_v63 = vmul.f32 %v15778_v34, %v2405_v22  ;;  %6165 = vmatpush.msra.mxu1 %v4879_v48  ;;  %v15782_v46 = vand.u32 2147483647, %v15781_v23  ;;  %v15784_v2 = vand.u32 2147483647, %v15783_v9  ;;  %v15785_v21 = vld [vmem:[#allocation256_spill] sm:$0xff] }
 0x422   : > { %v2191_v1 = vsub.f32 1.0, %v15780_v5  ;;  %5838 = vmatpush.msrb.mxu0 %v4723_v8  ;;  %v15786_v49 = vand.u32 2147483647, %v15785_v21  ;;  %6024 = vmatpush.msra.mxu3 %v4837_v42  ;;  %v15788_v12 = vand.u32 2147483647, %v15787_v19  ;;  %v15789_v8 = vld [vmem:[#allocation215_spill] sm:$0xff] }
 0x423   : > { %v2231_v54 = vsub.f32 1.0, %v15782_v46  ;;  %v2115_v51 = vsub.f32 1.0, %v15784_v2  ;;  %5963 = vmatpush.msra.mxu2 %v4797_v50  ;;  %v15790_v48 = vand.u32 2147483647, %v15789_v8  ;;  %v15792_v16 = vand.u32 2147483647, %v15791_v18  ;;  %6166 = vmatpush.msra.mxu1 %v4877_v53 }
 0x424   : > { %v2271_v3 = vsub.f32 1.0, %v15786_v49  ;;  %v2479_v22 = vmax.f32 %v2191_v1, 0.0  ;;  %v2189_v32 = vsub.f32 1.0, %v15788_v12  ;;  %v4585_v27 = vmax.f32 %v4297_v36, 0.0  ;;  %5839 = vmatpush.msrb.mxu0 %v4721_v63  ;;  %v15793_v5 = vld [vmem:[#allocation229_spill] sm:$0xff]  ;;  %v12954_v49 = vpop.f32.mrf.mxu2  ;;  %v6883_v19 = vld [vmem:[%s14284_s0 + $0x1b0] sm:$0xff] }
 0x425   : > { %v2229_v25 = vsub.f32 1.0, %v15790_v48  ;;  %v2113_v10 = vsub.f32 1.0, %v15792_v16  ;;  %v2519_v34 = vmax.f32 %v2231_v54, 0.0  ;;  %v2403_v11 = vmax.f32 %v2115_v51, 0.0  ;;  %v15795_v50 = vld [vmem:[#allocation165_spill] sm:$0xff]  ;;  %5667 = vmatmul.f32.gmra.mxu1 %v6883_v19  ;;  %v15798_v54 = vld [vmem:[#allocation136_spill] sm:$0xff] }
 0x426   : > { %v15794_v23 = vand.u32 2147483647, %v15793_v5  ;;  %v15796_v42 = vmax.f32 %v15795_v50, 0.0  ;;  %v2559_v9 = vmax.f32 %v2271_v3, 0.0  ;;  %v2477_v2 = vmax.f32 %v2189_v32, 0.0  ;;  %v15800_v32 = vld [vmem:[#allocation4_spill] sm:$0xff]  ;;  %v12969_v5 = vpop.f32.mrf.mxu1 }
 0x427   : > { %v2517_v21 = vmax.f32 %v2229_v25, 0.0  ;;  %v3365_v36 = vsub.f32 %v12281_v37, %v9534_v43  ;;  %v15797_v63 = vmax.f32 %v11826_v17, 0.0  ;;  %v15799_v51 = vmax.f32 %v15798_v54, 0.0  ;;  %v15803_v37 = vld [vmem:[#allocation133_spill] sm:$0xff] }
 0x428   : > { %v2269_v46 = vsub.f32 1.0, %v15794_v23  ;;  %v4795_v1 = vmul.f32 %v15796_v42, %v2479_v22  ;;  %v2401_v22 = vmax.f32 %v2113_v10, 0.0  ;;  %v4875_v3 = vmul.f32 %v4587_v41, %v2559_v9  ;;  %v15805_v23 = vld [vmem:[#allocation178_spill] sm:$0xff]  ;;  %v15807_v10 = vld [vmem:[#allocation188_spill] sm:$0xff] }
 0x429   : > { %v4835_v53 = vmul.f32 %v15797_v63, %v2519_v34  ;;  %v4719_v12 = vmul.f32 %v15799_v51, %v2403_v11  ;;  %v15801_v8 = vmax.f32 %v15800_v32, 0.0  ;;  %v15802_v25 = vmax.f32 %v11900_v39, 0.0  ;;  %v4948_v39 = vld [vmem:[%s14284_s0 + $0x160] sm:$0xff] }
 0x42a   : > { %5964 = vmatpush.msra.mxu2 %v4795_v1  ;;  %v2557_v16 = vmax.f32 %v2269_v46, 0.0  ;;  %v15804_v17 = vmax.f32 %v15803_v37, 0.0  ;;  %v15806_v50 = vand.u32 2147483647, %v15805_v23  ;;  %v15808_v42 = vand.u32 2147483647, %v15807_v10  ;;  %6167 = vmatpush.msra.mxu1 %v4875_v3  ;;  %v12994_v3 = vpop.f32.mrf.mxu3 }
 0x42b   : > { %v4793_v48 = vmul.f32 %v15801_v8, %v2477_v2  ;;  %v4833_v18 = vmul.f32 %v15802_v25, %v2517_v21  ;;  %6025 = vmatpush.msra.mxu3 %v4835_v53  ;;  %5840 = vmatpush.msrb.mxu0 %v4719_v12  ;;  %v15809_v1 = vld [vmem:[#allocation107_spill] sm:$0xff]  ;;  %v15811_v21 = vld [vmem:[#allocation153_spill] sm:$0xff]  ;;  %v15817_v10 = vld [vmem:[#allocation170_spill] sm:$0xff] }
 0x42c   : > { %v4717_v34 = vmul.f32 %v15804_v17, %v2401_v22  ;;  %v2187_v11 = vsub.f32 1.0, %v15806_v50  ;;  %v2227_v41 = vsub.f32 1.0, %v15808_v42  ;;  %v15810_v9 = vand.u32 2147483647, %v15809_v1  ;;  %v15813_v53 = vld [vmem:[#allocation207_spill] sm:$0xff]  ;;  %v15815_v12 = vld [vmem:[#allocation109_spill] sm:$0xff]  ;;  %5596 = vmatmul.f32.gmra.mxu0 %v4948_v39 }
 0x42d   : > { %5965 = vmatpush.msra.mxu2 %v4793_v48  ;;  %v4873_v46 = vmul.f32 %v4585_v27, %v2557_v16  ;;  %v15812_v19 = vand.u32 2147483647, %v15811_v21  ;;  %v15814_v54 = vand.u32 2147483647, %v15813_v53  ;;  %v15816_v22 = vand.u32 2147483647, %v15815_v12  ;;  %6026 = vmatpush.msra.mxu3 %v4833_v18 }
 0x42e   : > { %v2111_v2 = vsub.f32 1.0, %v15810_v9  ;;  %v4973_v8 = vld [vmem:[%s14284_s0 + $0x228] sm:$0xff]  ;;  %v4525_v27 = vmax.f32 %v12501_v31, 0.0  ;;  %v12998_v48 = vsub.f32 %v3365_v36, %v9565_v38  ;;  %5841 = vmatpush.msrb.mxu0 %v4717_v34  ;;  %v2475_v16 = vmax.f32 %v2187_v11, 0.0  ;;  %v15819_v21 = vld [vmem:[#allocation116_spill] sm:$0xff]  ;;  %v15821_v36 = vld [vmem:[#allocation169_spill] sm:$0xff] }
 0x42f   : > { %v2185_v63 = vsub.f32 1.0, %v15812_v19  ;;  %v2225_v51 = vsub.f32 1.0, %v15814_v54  ;;  %v2109_v32 = vsub.f32 1.0, %v15816_v22  ;;  %v4965_v25 = vld [vmem:[%s14284_s0 + $0x1e8] sm:$0xff]  ;;  %v2515_v37 = vmax.f32 %v2227_v41, 0.0  ;;  %6168 = vmatpush.msra.mxu1 %v4873_v46  ;;  %v15823_v34 = vld [vmem:[#allocation209_spill] sm:$0xff]  ;;  %5475 = vmatmul.f32.gmra.mxu2 %v4973_v8 }
 0x430   : > { %v2399_v17 = vmax.f32 %v2111_v2, 0.0  ;;  %v15818_v42 = vand.u32 2147483647, %v15817_v10  ;;  %v3363_v9 = vsub.f32 %v12340_v29, %v9534_v43  ;;  %v15820_v19 = vmax.f32 %v15819_v21, 0.0  ;;  %5537 = vmatmul.f32.gmra.mxu3 %v4965_v25  ;;  %v13010_v2 = vpop.f32.mrf.mxu0  ;;  %v15825_v46 = vld [vmem:[#allocation163_spill] sm:$0xff]  ;;  %v15827_v39 = vld [vmem:[#allocation68_spill] sm:$0xff] }
 0x431   : > { %v2473_v23 = vmax.f32 %v2185_v63, 0.0  ;;  %v2513_v50 = vmax.f32 %v2225_v51, 0.0  ;;  %v15822_v54 = vmax.f32 %v15821_v36, 0.0  ;;  %v15824_v11 = vand.u32 2147483647, %v15823_v34  ;;  %v6886_v31 = vld [vmem:[%s14284_s0 + $0x288] sm:$0xff] }
 0x432   : > { %v2183_v1 = vsub.f32 1.0, %v15818_v42  ;;  %v4791_v53 = vmul.f32 %v15820_v19, %v2475_v16  ;;  %v15826_v63 = vmax.f32 %v15825_v46, 0.0  ;;  %v15828_v12 = vmax.f32 %v15827_v39, 0.0  ;;  %v15830_v42 = vld [vmem:[#allocation171_spill] sm:$0xff]  ;;  %v15838_v46 = vld [vmem:[#allocation148_spill] sm:$0xff] }
 0x433   : > { %v4831_v18 = vmul.f32 %v15822_v54, %v2515_v37  ;;  %v2223_v41 = vsub.f32 1.0, %v15824_v11  ;;  %v15829_v29 = vmax.f32 %v11996_v24, 0.0  ;;  %v2397_v16 = vmax.f32 %v2109_v32, 0.0  ;;  %v6884_v37 = vld [vmem:[%s14284_s0 + $0x1f8] sm:$0xff] }
 0x434   : > { %v4715_v51 = vmul.f32 %v15826_v63, %v2399_v17  ;;  %v4789_v22 = vmul.f32 %v15828_v12, %v2473_v23  ;;  %5670 = vmatmul.f32.gmra.mxu1 %v6884_v37  ;;  %5966 = vmatpush.msra.mxu2 %v4791_v53  ;;  %v2471_v8 = vmax.f32 %v2183_v1, 0.0  ;;  %v15831_v21 = vand.u32 2147483647, %v15830_v42  ;;  %v15832_v17 = vld [vmem:[#allocation184_spill] sm:$0xff]  ;;  %v15834_v23 = vld [vmem:[#allocation147_spill] sm:$0xff]  ;;  %v15836_v32 = vld [vmem:[#allocation249_spill] sm:$0xff]  ;;  %v13035_v12 = vpop.f32.mrf.mxu1 }
 0x435   : > { %v4829_v10 = vmul.f32 %v15829_v29, %v2513_v50  ;;  %6027 = vmatpush.msra.mxu3 %v4831_v18  ;;  %v2511_v25 = vmax.f32 %v2223_v41, 0.0  ;;  %v15833_v36 = vand.u32 2147483647, %v15832_v17  ;;  %v15835_v24 = vmax.f32 %v15834_v23, 0.0  ;;  %v15840_v53 = vld [vmem:[#allocation201_spill] sm:$0xff]  ;;  %v13033_v41 = vpop.f32.mrf.mxu2 }
 0x436   : > { %v2181_v19 = vsub.f32 1.0, %v15831_v21  ;;  %5842 = vmatpush.msrb.mxu0 %v4715_v51  ;;  %v15837_v34 = vand.u32 2147483647, %v15836_v32  ;;  %v15839_v63 = vand.u32 2147483647, %v15838_v46  ;;  %5967 = vmatpush.msra.mxu2 %v4789_v22  ;;  %v15842_v29 = vld [vmem:[#allocation161_spill] sm:$0xff] }
 0x437   : > { %v2221_v54 = vsub.f32 1.0, %v15833_v36  ;;  %v4713_v50 = vmul.f32 %v15835_v24, %v2397_v16  ;;  %v15841_v18 = vand.u32 2147483647, %v15840_v53  ;;  %6028 = vmatpush.msra.mxu3 %v4829_v10  ;;  %v15843_v51 = vmax.f32 %v15842_v29, 0.0  ;;  %v15845_v32 = vld [vmem:[#allocation223_spill] sm:$0xff] }
 0x438   : > { %v2265_v11 = vsub.f32 1.0, %v15837_v34  ;;  %v2179_v39 = vsub.f32 1.0, %v15839_v63  ;;  %v15844_v16 = vmax.f32 %v12086_v13, 0.0  ;;  %v2469_v21 = vmax.f32 %v2181_v19, 0.0  ;;  %v15847_v63 = vld [vmem:[#allocation94_spill] sm:$0xff]  ;;  %v15852_v19 = vld [vmem:[#allocation203_spill] sm:$0xff] }
 0x439   : > { %v2219_v1 = vsub.f32 1.0, %v15841_v18  ;;  %v4787_v37 = vmul.f32 %v15843_v51, %v2471_v8  ;;  %v2509_v17 = vmax.f32 %v2221_v54, 0.0  ;;  %5843 = vmatpush.msrb.mxu0 %v4713_v50  ;;  %v15846_v34 = vand.u32 2147483647, %v15845_v32  ;;  %v15850_v18 = vld [vmem:[#allocation166_spill] sm:$0xff] }
 0x43a   : > { %v4827_v42 = vmul.f32 %v15844_v16, %v2511_v25  ;;  %v2553_v36 = vmax.f32 %v2265_v11, 0.0  ;;  %v2467_v23 = vmax.f32 %v2179_v39, 0.0  ;;  %v15848_v22 = vmax.f32 %v15847_v63, 0.0  ;;  %v4982_v11 = vld [vmem:[%s14284_s0 + $0x270] sm:$0xff] }
 0x43b   : > { %v2507_v24 = vmax.f32 %v2219_v1, 0.0  ;;  %v2263_v46 = vsub.f32 1.0, %v15846_v34  ;;  %5968 = vmatpush.msra.mxu2 %v4787_v37  ;;  %v15849_v53 = vmax.f32 %v12168_v59, 0.0  ;;  %v15851_v13 = vand.u32 2147483647, %v15850_v18  ;;  %6088 = vmatpush.msra.mxu0 %v11969_v52  ;;  %v15854_v1 = vld [vmem:[#allocation141_spill] sm:$0xff] }
 0x43c   : > { %6029 = vmatpush.msra.mxu3 %v4827_v42  ;;  %v4785_v10 = vmul.f32 %v15848_v22, %v2469_v21  ;;  %v15853_v54 = vand.u32 2147483647, %v15852_v19  ;;  %v3657_v39 = vsub.f32 %v3363_v9, %v9565_v38  ;;  %v15855_v29 = vmax.f32 %v15854_v1, 0.0  ;;  %v15856_v37 = vld [vmem:[#allocation140_spill] sm:$0xff]  ;;  %v13060_v21 = vpop.f32.mrf.mxu3  ;;  %v15859_v22 = vld [vmem:[#allocation243_spill] sm:$0xff]  ;;  %5478 = vmatmul.f32.gmra.mxu2 %v4982_v11 }
 0x43d   : > { %v4825_v8 = vmul.f32 %v15849_v53, %v2509_v17  ;;  %v2177_v25 = vsub.f32 1.0, %v15851_v13  ;;  %v15857_v59 = vmax.f32 %v15856_v37, 0.0  ;;  %v2551_v42 = vmax.f32 %v2263_v46, 0.0  ;;  %v4974_v52 = vld [vmem:[%s14284_s0 + $0x230] sm:$0xff]  ;;  %v4957_v37 = vld [vmem:[%s14284_s0 + $0x1a8] sm:$0xff] }
 0x43e   : > { %v2217_v50 = vsub.f32 1.0, %v15853_v54  ;;  %v4869_v51 = vmul.f32 %v15855_v29, %v2553_v36  ;;  %5969 = vmatpush.msra.mxu2 %v4785_v10  ;;  %v15858_v17 = vmax.f32 %v12232_v7, 0.0  ;;  %v15860_v9 = vand.u32 2147483647, %v15859_v22  ;;  %v15862_v10 = vld [vmem:[#allocation167_spill] sm:$0xff]  ;;  %v15864_v7 = vld [vmem:[#allocation180_spill] sm:$0xff]  ;;  %5540 = vmatmul.f32.gmra.mxu3 %v4974_v52 }
 0x43f   : > { %v4783_v16 = vmul.f32 %v15857_v59, %v2467_v23  ;;  %6030 = vmatpush.msra.mxu3 %v4825_v8  ;;  %v2465_v34 = vmax.f32 %v2177_v25, 0.0  ;;  %v3947_v36 = vand.u32 2147483647, %v12998_v48  ;;  %v15861_v23 = vmax.f32 %v11982_v30, 0.0  ;;  %v15866_v25 = vld [vmem:[#allocation121_spill] sm:$0xff]  ;;  %v13085_v59 = vpop.f32.mrf.mxu0  ;;  %5599 = vmatmul.f32.gmra.mxu0 %v4957_v37 }
 0x440   : > { %v4823_v32 = vmul.f32 %v15858_v17, %v2507_v24  ;;  %v2505_v63 = vmax.f32 %v2217_v50, 0.0  ;;  %v2261_v53 = vsub.f32 1.0, %v15860_v9  ;;  %6089 = vmatpush.msra.mxu0 %v4869_v51  ;;  %v15863_v8 = vand.u32 2147483647, %v15862_v10  ;;  %v15869_v29 = vld [vmem:[#allocation245_spill] sm:$0xff]  ;;  %v15871_v17 = vld [vmem:[#allocation143_spill] sm:$0xff] }
 0x441   : > { %v4867_v46 = vmul.f32 %v15861_v23, %v2551_v42  ;;  %v15865_v24 = vand.u32 2147483647, %v15864_v7  ;;  %5970 = vmatpush.msra.mxu2 %v4783_v16  ;;  %v15867_v19 = vmax.f32 %v15866_v25, 0.0  ;;  %v15868_v50 = vmax.f32 %v12288_v14, 0.0  ;;  %v13089_v14 = vpop.f32.mrf.mxu1  ;;  %v15879_v7 = vld [vmem:[#allocation129_spill] sm:$0xff] }
 0x442   : > { %v2175_v18 = vsub.f32 1.0, %v15863_v8  ;;  %6031 = vmatpush.msra.mxu3 %v4823_v32  ;;  %v2549_v48 = vmax.f32 %v2261_v53, 0.0  ;;  %v15870_v51 = vand.u32 2147483647, %v15869_v29  ;;  %v3945_v42 = vand.u32 2147483647, %v3657_v39 }
 0x443   : > { %v2215_v13 = vsub.f32 1.0, %v15865_v24  ;;  %v4781_v54 = vmul.f32 %v15867_v19, %v2465_v34  ;;  %v4821_v1 = vmul.f32 %v15868_v50, %v2505_v63  ;;  %6090 = vmatpush.msra.mxu0 %v4867_v46  ;;  %v15872_v32 = vand.u32 2147483647, %v15871_v17  ;;  %15873 = vst [vmem:[#allocation232_spill] sm:$0xff] %v13089_v14  ;;  %v15875_v53 = vld [vmem:[#allocation196_spill] sm:$0xff]  ;;  %v15877_v8 = vld [vmem:[#allocation217_spill] sm:$0xff] }
 0x444   : > { %v2259_v30 = vsub.f32 1.0, %v15870_v51  ;;  %v2463_v11 = vmax.f32 %v2175_v18, 0.0  ;;  %v15874_v63 = vmax.f32 %v11994_v60, 0.0  ;;  %v15876_v23 = vand.u32 2147483647, %v15875_v53  ;;  %v6885_v60 = vld [vmem:[%s14284_s0 + $0x240] sm:$0xff] }
 0x445   : > { %v2503_v16 = vmax.f32 %v2215_v13, 0.0  ;;  %v2173_v34 = vsub.f32 1.0, %v15872_v32  ;;  %5971 = vmatpush.msra.mxu2 %v4781_v54  ;;  %6032 = vmatpush.msra.mxu3 %v4821_v1  ;;  %v15878_v39 = vand.u32 2147483647, %v15877_v8  ;;  %v13097_v18 = vsub.f32 1.0, %v3947_v36  ;;  %v13103_v54 = vpop.f32.mrf.mxu2  ;;  %v15883_v29 = vld [vmem:[#allocation198_spill] sm:$0xff] }
 0x446   : > { %v4865_v22 = vmul.f32 %v15874_v63, %v2549_v48  ;;  %v2547_v9 = vmax.f32 %v2259_v30, 0.0  ;;  %v2213_v10 = vsub.f32 1.0, %v15876_v23  ;;  %v15880_v24 = vmax.f32 %v15879_v7, 0.0  ;;  %5673 = vmatmul.f32.gmra.mxu1 %v6885_v60 }
 0x447   : > { %v2257_v46 = vsub.f32 1.0, %v15878_v39  ;;  %v15881_v52 = vmax.f32 %v12332_v61, 0.0  ;;  %v2461_v19 = vmax.f32 %v2173_v34, 0.0  ;;  %v15882_v50 = vmax.f32 %v11733_v58, 0.0  ;;  %v15885_v61 = vld [vmem:[#allocation172_spill] sm:$0xff]  ;;  %v15889_v34 = vld [vmem:[#allocation175_spill] sm:$0xff] }
 0x448   : > { %v4779_v13 = vmul.f32 %v15880_v24, %v2463_v11  ;;  %6091 = vmatpush.msra.mxu0 %v4865_v22  ;;  %v2501_v1 = vmax.f32 %v2213_v10, 0.0  ;;  %v15884_v51 = vand.u32 2147483647, %v15883_v29  ;;  %v15886_v37 = vmax.f32 %v15885_v61, 0.0  ;;  %v15891_v22 = vld [vmem:[#allocation239_spill] sm:$0xff]  ;;  %v15893_v10 = vld [vmem:[#allocation14_spill] sm:$0xff]  ;;  %v13134_v29 = vpop.f32.mrf.mxu3 }
 0x449   : > { %v4819_v25 = vmul.f32 %v15881_v52, %v2503_v16  ;;  %v4863_v36 = vmul.f32 %v15882_v50, %v2547_v9  ;;  %v2545_v48 = vmax.f32 %v2257_v46, 0.0  ;;  %v15887_v16 = vld [vmem:[#allocation237_spill] sm:$0xff]  ;;  %v15890_v63 = vand.u32 2147483647, %v15889_v34  ;;  %v15895_v46 = vld [vmem:[#allocation111_spill] sm:$0xff]  ;;  %v15898_v50 = vld [vmem:[#allocation208_spill] sm:$0xff] }
 0x44a   : > { %v2211_v30 = vsub.f32 1.0, %v15884_v51  ;;  %5972 = vmatpush.msra.mxu2 %v4779_v13  ;;  %v4777_v11 = vmul.f32 %v15886_v37, %v2461_v19  ;;  %v15888_v17 = vand.u32 2147483647, %v15887_v16  ;;  %v15892_v23 = vand.u32 2147483647, %v15891_v22  ;;  %v4991_v52 = vld [vmem:[%s14284_s0 + $0x2b8] sm:$0xff] }
 0x44b   : > { %6033 = vmatpush.msra.mxu3 %v4819_v25  ;;  %v2209_v53 = vsub.f32 1.0, %v15890_v63  ;;  %v4233_v9 = vsub.f32 1.0, %v3945_v42  ;;  %6092 = vmatpush.msra.mxu0 %v4863_v36  ;;  %v15894_v8 = vmax.f32 %v15893_v10, 0.0  ;;  %v15896_v7 = vmax.f32 %v15895_v46, 0.0  ;;  %v4983_v25 = vld [vmem:[%s14284_s0 + $0x278] sm:$0xff]  ;;  %v15901_v37 = vld [vmem:[#allocation190_spill] sm:$0xff] }
 0x44c   : > { %v2255_v32 = vsub.f32 1.0, %v15888_v17  ;;  %v2253_v58 = vsub.f32 1.0, %v15892_v23  ;;  %v2499_v13 = vmax.f32 %v2211_v30, 0.0  ;;  %v15897_v19 = vld [vmem:[#allocation221_spill] sm:$0xff]  ;;  %v4523_v42 = vmax.f32 %v13097_v18, 0.0  ;;  %5973 = vmatpush.msra.mxu2 %v4777_v11  ;;  %v15903_v34 = vld [vmem:[#allocation211_spill] sm:$0xff]  ;;  %5543 = vmatmul.f32.gmra.mxu3 %v4983_v25 }
 0x44d   : > { %v4817_v39 = vmul.f32 %v15894_v8, %v2501_v1  ;;  %v4861_v24 = vmul.f32 %v15896_v7, %v2545_v48  ;;  %v3981_v60 = vand.u32 2147483647, %v15897_v19  ;;  %v3395_v36 = vsub.f32 %v15898_v50, %v9534_v43  ;;  %v15899_v48 = vld [vmem:[#allocation210_spill] sm:$0xff]  ;;  %v4966_v46 = vld [vmem:[%s14284_s0 + $0x1f0] sm:$0xff]  ;;  %5481 = vmatmul.f32.gmra.mxu2 %v4991_v52 }
 0x44e   : > { %v2543_v1 = vmax.f32 %v2255_v32, 0.0  ;;  %v15900_v51 = vmax.f32 %v15899_v48, 0.0  ;;  %v2497_v61 = vmax.f32 %v2209_v53, 0.0  ;;  %v15902_v16 = vand.u32 2147483647, %v15901_v37  ;;  %v15905_v18 = vld [vmem:[#allocation222_spill] sm:$0xff]  ;;  %5676 = vmatmul.f32.gmra.mxu1 %v6886_v31  ;;  %5602 = vmatmul.f32.gmra.mxu0 %v4966_v46 }
 0x44f   : > { %6034 = vmatpush.msra.mxu3 %v4817_v39  ;;  %6093 = vmatpush.msra.mxu0 %v4861_v24  ;;  %v15904_v63 = vand.u32 2147483647, %v15903_v34  ;;  %v15906_v23 = vsub.f32 %v15905_v18, %v9534_v43  ;;  %v15907_v32 = vld [vmem:[#allocation37_spill] sm:$0xff]  ;;  %v2541_v39 = vmax.f32 %v2253_v58, 0.0  ;;  %v15909_v53 = vld [vmem:[#allocation192_spill] sm:$0xff]  ;;  %v4521_v19 = vmax.f32 %v4233_v9, 0.0 }
 0x450   : > { %v4815_v30 = vmul.f32 %v15900_v51, %v2499_v13  ;;  %v2207_v17 = vsub.f32 1.0, %v15902_v16  ;;  %v15908_v10 = vmax.f32 %v15907_v32, 0.0  ;;  %v15910_v7 = vand.u32 2147483647, %v15909_v53  ;;  %v13153_v13 = vpop.f32.mrf.mxu1  ;;  %v15912_v48 = vld [vmem:[#allocation231_spill] sm:$0xff]  ;;  %v13159_v51 = vpop.f32.mrf.mxu0  ;;  %v15923_v53 = vld [vmem:[#allocation205_spill] sm:$0xff] }
 0x451   : > { %v2251_v22 = vsub.f32 1.0, %v15904_v63  ;;  %v3691_v11 = vsub.f32 %v15906_v23, %v9565_v38  ;;  %15911 = vst [vmem:[#allocation251_spill] sm:$0xff] %v13153_v13  ;;  %v4813_v43 = vmul.f32 %v4525_v27, %v2497_v61  ;;  %v3689_v37 = vsub.f32 %v3395_v36, %v9565_v38  ;;  %v15914_v16 = vld [vmem:[#allocation59_spill] sm:$0xff]  ;;  %v15916_v63 = vld [vmem:[#allocation233_spill] sm:$0xff] }
 0x452   : > { %v4859_v8 = vmul.f32 %v15908_v10, %v2543_v1  ;;  %v2205_v24 = vsub.f32 1.0, %v15910_v7  ;;  %6035 = vmatpush.msra.mxu3 %v4815_v30  ;;  %v2495_v50 = vmax.f32 %v2207_v17, 0.0  ;;  %v15913_v1 = vand.u32 2147483647, %v15912_v48  ;;  %v15918_v27 = vld [vmem:[#allocation75_spill] sm:$0xff] }
 0x453   : > { %v15915_v34 = vmax.f32 %v15914_v16, 0.0  ;;  %v2539_v25 = vmax.f32 %v2251_v22, 0.0  ;;  %v15917_v18 = vand.u32 2147483647, %v15916_v63  ;;  %v4563_v30 = vmax.f32 %v15918_v27, 0.0  ;;  %v15919_v61 = vld [vmem:[#allocation23_spill] sm:$0xff] }
 0x454   : > { %v2249_v58 = vsub.f32 1.0, %v15913_v1  ;;  %6094 = vmatpush.msra.mxu0 %v4859_v8  ;;  %v15920_v17 = vand.u32 2147483647, %v15919_v61  ;;  %6036 = vmatpush.msra.mxu3 %v4813_v43  ;;  %v4811_v38 = vmul.f32 %v4523_v42, %v2495_v50  ;;  %v2493_v36 = vmax.f32 %v2205_v24, 0.0  ;;  %v15921_v22 = vld [vmem:[#allocation49_spill] sm:$0xff]  ;;  %v13176_v1 = vpop.f32.mrf.mxu2  ;;  %v15925_v16 = vld [vmem:[#allocation219_spill] sm:$0xff] }
 0x455   : > { %v4857_v52 = vmul.f32 %v15915_v34, %v2541_v39  ;;  %v2247_v9 = vsub.f32 1.0, %v15917_v18  ;;  %v3979_v32 = vand.u32 2147483647, %v3691_v11  ;;  %v15922_v10 = vmax.f32 %v15921_v22, 0.0  ;;  %v15926_v63 = vld [vmem:[#allocation236_spill] sm:$0xff]  ;;  %v5000_v11 = vld [vmem:[%s14284_s0 + $0x300] sm:$0xff] }
 0x456   : > { %v4271_v23 = vsub.f32 1.0, %v15920_v17  ;;  %v2537_v39 = vmax.f32 %v2249_v58, 0.0  ;;  %v15924_v7 = vand.u32 2147483647, %v15923_v53  ;;  %v1951_v34 = vand.u32 2147483647, %v15925_v16  ;;  %6037 = vmatpush.msra.mxu3 %v4811_v38  ;;  %5484 = vmatmul.f32.gmra.mxu2 %v5000_v11 }
 0x457   : > { %6095 = vmatpush.msra.mxu0 %v4857_v52  ;;  %v4855_v8 = vmul.f32 %v15922_v10, %v2539_v25  ;;  %v4561_v18 = vmax.f32 %v15926_v63, 0.0  ;;  %v4269_v31 = vsub.f32 1.0, %v3981_v60  ;;  %v4809_v42 = vmul.f32 %v4521_v19, %v2493_v36  ;;  %v15927_v24 = vld [vmem:[#allocation45_spill] sm:$0xff]  ;;  %v4992_v61 = vld [vmem:[%s14284_s0 + $0x2c0] sm:$0xff]  ;;  %v15931_v60 = vld [vmem:[#allocation220_spill] sm:$0xff] }
 0x458   : > { %v2245_v48 = vsub.f32 1.0, %v15924_v7  ;;  %v3977_v46 = vand.u32 2147483647, %v3689_v37  ;;  %v15928_v43 = vmax.f32 %v15927_v24, 0.0  ;;  %v2535_v58 = vmax.f32 %v2247_v9, 0.0  ;;  %v15929_v52 = vld [vmem:[#allocation225_spill] sm:$0xff]  ;;  %v13198_v53 = vpop.f32.mrf.mxu1  ;;  %5546 = vmatmul.f32.gmra.mxu3 %v4992_v61  ;;  %v13203_v63 = vpop.f32.mrf.mxu0 }
 0x459   : > { %6096 = vmatpush.msra.mxu0 %v4855_v8  ;;  %v15930_v25 = vand.u32 2147483647, %v15929_v52  ;;  %v1949_v17 = vand.u32 2147483647, %v15931_v60  ;;  %v4559_v19 = vmax.f32 %v4271_v23, 0.0  ;;  %6038 = vmatpush.msra.mxu3 %v4809_v42  ;;  %v4267_v38 = vsub.f32 1.0, %v3979_v32 }
 0x45a   : > { %v4853_v50 = vmul.f32 %v15928_v43, %v2537_v39  ;;  %v4851_v36 = vmul.f32 %v4563_v30, %v2535_v58  ;;  %v2533_v37 = vmax.f32 %v2245_v48, 0.0  ;;  %v4975_v22 = vld [vmem:[%s14284_s0 + $0x238] sm:$0xff]  ;;  %v15932_v9 = vld [vmem:[#allocation227_spill] sm:$0xff]  ;;  %v13196_v39 = vpop.f32.mrf.mxu3  ;;  %15934 = vst [vmem:[#allocation138_spill] sm:$0xff] %v13198_v53  ;;  %v4557_v7 = vmax.f32 %v4269_v31, 0.0  ;;  %v6887_v48 = vld [vmem:[%s14284_s0 + $0x2d0] sm:$0xff] }
 0x45b   : > { %v2243_v27 = vsub.f32 1.0, %v15930_v25  ;;  %v15933_v10 = vand.u32 2147483647, %v15932_v9  ;;  %v4265_v23 = vsub.f32 1.0, %v3977_v46  ;;  %v2239_v30 = vsub.f32 1.0, %v1951_v34  ;;  %5679 = vmatmul.f32.gmra.mxu1 %v6887_v48  ;;  %5605 = vmatmul.f32.gmra.mxu0 %v4975_v22  ;;  %v5009_v31 = vld [vmem:[%s14284_s0 + $0x348] sm:$0xff] }
 0x45c   : > { %6097 = vmatpush.msra.mxu0 %v4853_v50  ;;  %v4849_v32 = vmul.f32 %v4561_v18, %v2533_v37  ;;  %v4555_v42 = vmax.f32 %v4267_v38, 0.0  ;;  %v2237_v43 = vsub.f32 1.0, %v1949_v17  ;;  %v13208_v50 = vpop.f32.mrf.mxu2  ;;  %v5001_v58 = vld [vmem:[%s14284_s0 + $0x308] sm:$0xff]  ;;  %v5018_v38 = vld [vmem:[%s14284_s0 + $0x390] sm:$0xff]  ;;  %v16020_v53 = vld [vmem:[#allocation149_spill] sm:$0xff] }
 0x45d   : > { %v2241_v8 = vsub.f32 1.0, %v15933_v10  ;;  %v2531_v16 = vmax.f32 %v2243_v27, 0.0  ;;  %v4553_v18 = vmax.f32 %v4265_v23, 0.0  ;;  %v2527_v46 = vmax.f32 %v2239_v30, 0.0  ;;  %v4984_v27 = vld [vmem:[%s14284_s0 + $0x280] sm:$0xff]  ;;  %v5010_v37 = vld [vmem:[%s14284_s0 + $0x350] sm:$0xff] }
 0x45e   : > { %6098 = vmatpush.msra.mxu0 %v4851_v36  ;;  %v2525_v25 = vmax.f32 %v2237_v43, 0.0  ;;  %5487 = vmatmul.f32.gmra.mxu2 %v5009_v31  ;;  %v4993_v9 = vld [vmem:[%s14284_s0 + $0x2c8] sm:$0xff]  ;;  %v5027_v23 = vld [vmem:[%s14284_s0 + $0x3d8] sm:$0xff]  ;;  %v5002_v30 = vld [vmem:[%s14284_s0 + $0x310] sm:$0xff] }
 0x45f   : > { %v4847_v11 = vmul.f32 %v4559_v19, %v2531_v16  ;;  %v2529_v24 = vmax.f32 %v2241_v8, 0.0  ;;  %v4843_v52 = vmul.f32 %v4555_v42, %v2527_v46  ;;  %v6888_v19 = vld [vmem:[%s14284_s0 + $0x318] sm:$0xff]  ;;  %v6889_v8 = vld [vmem:[%s14284_s0 + $0x360] sm:$0xff]  ;;  %v16022_v13 = vld [vmem:[#allocation187_spill] sm:$0xff] }
 0x460   : > { %6099 = vmatpush.msra.mxu0 %v4849_v32  ;;  %v13216_v61 = vpop.f32.mrf.mxu1  ;;  %5549 = vmatmul.f32.gmra.mxu3 %v5001_v58  ;;  %v4841_v60 = vmul.f32 %v4553_v18, %v2525_v25  ;;  %v13226_v36 = vpop.f32.mrf.mxu0  ;;  %v5019_v32 = vld [vmem:[%s14284_s0 + $0x398] sm:$0xff]  ;;  %v5028_v31 = vld [vmem:[%s14284_s0 + $0x3e0] sm:$0xff]  ;;  %v5045_v25 = vld [vmem:[%s14284_s0 + $0x468] sm:$0xff] }
 0x461   : > { %v4845_v34 = vmul.f32 %v4557_v7, %v2529_v24  ;;  %15935 = vst [vmem:[#allocation139_spill] sm:$0xff] %v13216_v61  ;;  %v5036_v24 = vld [vmem:[%s14284_s0 + $0x420] sm:$0xff]  ;;  %v5011_v18 = vld [vmem:[%s14284_s0 + $0x358] sm:$0xff] }
 0x462   : > { %6100 = vmatpush.msra.mxu0 %v4847_v11  ;;  %v13218_v17 = vpop.f32.mrf.mxu3  ;;  %v6890_v11 = vld [vmem:[%s14284_s0 + $0x3a8] sm:$0xff] }
 0x463   : > { %5682 = vmatmul.f32.gmra.mxu1 %v6888_v19  ;;  %5608 = vmatmul.f32.gmra.mxu0 %v4984_v27  ;;  %v5037_v27 = vld [vmem:[%s14284_s0 + $0x428] sm:$0xff]  ;;  %v5020_v19 = vld [vmem:[%s14284_s0 + $0x3a0] sm:$0xff] }
 0x464   : > { %6101 = vmatpush.msra.mxu0 %v4845_v34  ;;  %v13231_v22 = vpop.f32.mrf.mxu2 }
 0x466   : > { %6102 = vmatpush.msra.mxu0 %v4843_v52  ;;  %5490 = vmatmul.f32.gmra.mxu2 %v5018_v38  ;;  %v6891_v52 = vld [vmem:[%s14284_s0 + $0x3f0] sm:$0xff] }
 0x468   : > { %6103 = vmatpush.msra.mxu0 %v4841_v60  ;;  %v13236_v10 = vpop.f32.mrf.mxu1  ;;  %5552 = vmatmul.f32.gmra.mxu3 %v5010_v37  ;;  %v13249_v16 = vpop.f32.mrf.mxu0  ;;  %v6892_v37 = vld [vmem:[%s14284_s0 + $0x438] sm:$0xff] }
 0x469   : > { %15936 = vst [vmem:[#allocation114_spill] sm:$0xff] %v13236_v10 }
 0x46a   : > { %v13241_v7 = vpop.f32.mrf.mxu3 }
 0x46b   : > { %5685 = vmatmul.f32.gmra.mxu1 %v6889_v8  ;;  %5611 = vmatmul.f32.gmra.mxu0 %v4993_v9  ;;  %15937 = vst [vmem:[#allocation262_spill] sm:$0xff] %v13241_v7  ;;  %v16028_v7 = vld [vmem:[#allocation86_spill] sm:$0xff] }
 0x46c   : > { %v13256_v42 = vpop.f32.mrf.mxu2 }
 0x46e   : > { %5493 = vmatmul.f32.gmra.mxu2 %v5027_v23  ;;  %v5046_v23 = vld [vmem:[%s14284_s0 + $0x470] sm:$0xff] }
 0x470   : > { %v13254_v48 = vpop.f32.mrf.mxu1  ;;  %5555 = vmatmul.f32.gmra.mxu3 %v5019_v32  ;;  %v13274_v46 = vpop.f32.mrf.mxu0  ;;  %v5029_v32 = vld [vmem:[%s14284_s0 + $0x3e8] sm:$0xff] }
 0x471   : > { %15938 = vst [vmem:[#allocation176_spill] sm:$0xff] %v13254_v48  ;;  %v16017_v48 = vld [vmem:[#allocation20_spill] sm:$0xff] }
 0x472   : > { %v13264_v43 = vpop.f32.mrf.mxu3  ;;  %15940 = vst [vmem:[#allocation134_spill] sm:$0xff] %v13274_v46 }
 0x473   : > { %5688 = vmatmul.f32.gmra.mxu1 %v6890_v11  ;;  %5614 = vmatmul.f32.gmra.mxu0 %v5002_v30  ;;  %v6893_v30 = vld [vmem:[%s14284_s0 + $0x8] sm:$0xff] }
 0x474   : > { %v13276_v58 = vpop.f32.mrf.mxu2 }
 0x475   : > { %15941 = vst [vmem:[#allocation146_spill] sm:$0xff] %v13276_v58 }
 0x476   : > { %5496 = vmatmul.f32.gmra.mxu2 %v5036_v24 }
 0x478   : > { %v13272_v34 = vpop.f32.mrf.mxu1  ;;  %5558 = vmatmul.f32.gmra.mxu3 %v5028_v31  ;;  %v13297_v9 = vpop.f32.mrf.mxu0  ;;  %v6894_v31 = vld [vmem:[%s14284_s0 + $0x20] sm:$0xff] }
 0x479   : > { %15939 = vst [vmem:[#allocation118_spill] sm:$0xff] %v13272_v34 }
 0x47a   : > { %v13287_v60 = vpop.f32.mrf.mxu3  ;;  %15944 = vst [vmem:[#allocation204_spill] sm:$0xff] %v13297_v9 }
 0x47b   : > { %5691 = vmatmul.f32.gmra.mxu1 %v6891_v52  ;;  %5617 = vmatmul.f32.gmra.mxu0 %v5011_v18  ;;  %15942 = vst [vmem:[#allocation202_spill] sm:$0xff] %v13287_v60 }
 0x47c   : > { %v13299_v8 = vpop.f32.mrf.mxu2 }
 0x47d   : > { %15945 = vst [vmem:[#allocation267_spill] sm:$0xff] %v13299_v8  ;;  %v6908_v8 = vld [vmem:[%s14284_s0 + $0x60] sm:$0xff] }
 0x47e   : > { %5499 = vmatmul.f32.gmra.mxu2 %v5045_v25  ;;  %v5038_v25 = vld [vmem:[%s14284_s0 + $0x430] sm:$0xff] }
 0x480   : > { %v13292_v38 = vpop.f32.mrf.mxu1  ;;  %5561 = vmatmul.f32.gmra.mxu3 %v5037_v27  ;;  %v13317_v18 = vpop.f32.mrf.mxu0  ;;  %v6895_v27 = vld [vmem:[%s14284_s0 + $0x50] sm:$0xff] }
 0x481   : > { %15943 = vst [vmem:[#allocation157_spill] sm:$0xff] %v13292_v38 }
 0x482   : > { %v13310_v11 = vpop.f32.mrf.mxu3  ;;  %15948 = vst [vmem:[#allocation269_spill] sm:$0xff] %v13317_v18  ;;  %v16026_v18 = vld [vmem:[#allocation44_spill] sm:$0xff] }
 0x483   : > { %5694 = vmatmul.f32.gmra.mxu1 %v6892_v37  ;;  %5620 = vmatmul.f32.gmra.mxu0 %v5020_v19  ;;  %15946 = vst [vmem:[#allocation179_spill] sm:$0xff] %v13310_v11  ;;  %v6896_v37 = vld [vmem:[%s14284_s0 + $0x10] sm:$0xff]  ;;  %v6899_v11 = vld [vmem:[%s14284_s0 + $0x58] sm:$0xff] }
 0x484   : > { %v13319_v52 = vpop.f32.mrf.mxu2 }
 0x485   : > { %15949 = vst [vmem:[#allocation195_spill] sm:$0xff] %v13319_v52 }
 0x486   : > { %5714 = vmatmul.f32.vlgmr.msrb.gmra.mxu2 %v6893_v30 }
 0x488   : > { %v13312_v24 = vpop.f32.mrf.mxu1  ;;  %5564 = vmatmul.f32.gmra.mxu3 %v5046_v23  ;;  %v13337_v30 = vpop.f32.mrf.mxu0 }
 0x489   : > { %15947 = vst [vmem:[#allocation224_spill] sm:$0xff] %v13312_v24  ;;  %v16007_v24 = vld [vmem:[#allocation54_spill] sm:$0xff] }
 0x48a   : > { %v13327_v19 = vpop.f32.mrf.mxu3  ;;  %15952 = vst [vmem:[#allocation197_spill] sm:$0xff] %v13337_v30  ;;  %v6900_v30 = vld [vmem:[%s14284_s0 + $0xb0] sm:$0xff] }
 0x48b   : > { %5909 = vmatmul.f32.vlgmr.msrb.gmra.mxu1 %v6894_v31  ;;  %5623 = vmatmul.f32.gmra.mxu0 %v5029_v32  ;;  %15950 = vst [vmem:[#allocation226_spill] sm:$0xff] %v13327_v19  ;;  %v6897_v32 = vld [vmem:[%s14284_s0 + $0x68] sm:$0xff]  ;;  %v5047_v31 = vld [vmem:[%s14284_s0 + $0x478] sm:$0xff] }
 0x48e   : > { %5717 = vmatmul.f32.gmra.mxu2 %v6895_v27  ;;  %v6898_v27 = vld [vmem:[%s14284_s0 + $0x98] sm:$0xff] }
 0x490   : > { %5779 = vmatmul.f32.vlgmr.msrb.gmra.mxu3 %v6896_v37  ;;  %v13332_v23 = vpop.f32.mrf.mxu1  ;;  %v13345_v37 = vpop.f32.mrf.mxu2 }
 0x491   : > { %15951 = vst [vmem:[#allocation246_spill] sm:$0xff] %v13332_v23  ;;  %v13357_v19 = vpop.f32.mrf.mxu0  ;;  %v6947_v23 = vld [vmem:[%s14284_s0 + $0x410] sm:$0xff] }
 0x492   : > { %15953 = vst [vmem:[#allocation199_spill] sm:$0xff] %v13345_v37  ;;  %v15971_v37 = vld [vmem:[#allocation162_spill] sm:$0xff] }
 0x493   : > { %5912 = vmatmul.f32.gmra.mxu1 %v6897_v32  ;;  %5626 = vmatmul.f32.gmra.mxu0 %v5038_v25  ;;  %v13352_v25 = vpop.f32.mrf.mxu3  ;;  %15956 = vst [vmem:[#allocation265_spill] sm:$0xff] %v13357_v19 }
 0x494   : > { %15955 = vst [vmem:[#allocation174_spill] sm:$0xff] %v13352_v25 }
 0x496   : > { %5720 = vmatmul.f32.gmra.mxu2 %v6898_v27  ;;  %v6901_v27 = vld [vmem:[%s14284_s0 + $0xe0] sm:$0xff] }
 0x498   : > { %5782 = vmatmul.f32.gmra.mxu3 %v6899_v11  ;;  %v13350_v32 = vpop.f32.mrf.mxu1  ;;  %v6902_v11 = vld [vmem:[%s14284_s0 + $0xa0] sm:$0xff]  ;;  %v13367_v25 = vpop.f32.mrf.mxu2 }
 0x499   : > { %15954 = vst [vmem:[#allocation263_spill] sm:$0xff] %v13350_v32  ;;  %v13383_v19 = vpop.f32.mrf.mxu0 }
 0x49a   : > { %15958 = vst [vmem:[#allocation240_spill] sm:$0xff] %v13367_v25 }
 0x49b   : > { %5915 = vmatmul.f32.gmra.mxu1 %v6900_v30  ;;  %5629 = vmatmul.f32.gmra.mxu0 %v5047_v31  ;;  %v6903_v30 = vld [vmem:[%s14284_s0 + $0xf8] sm:$0xff]  ;;  %15960 = vst [vmem:[#allocation257_spill] sm:$0xff] %v13383_v19 }
 0x49c   : > { %v6904_v31 = vld [vmem:[%s14284_s0 + $0x18] sm:$0xff] }
 0x49e   : > { %5723 = vmatmul.f32.gmra.mxu2 %v6901_v27  ;;  %v13375_v27 = vpop.f32.mrf.mxu3 }
 0x49f   : > { %15959 = vst [vmem:[#allocation191_spill] sm:$0xff] %v13375_v27 }
 0x4a0   : > { %5785 = vmatmul.f32.gmra.mxu3 %v6902_v11  ;;  %v13365_v58 = vpop.f32.mrf.mxu1  ;;  %v6905_v11 = vld [vmem:[%s14284_s0 + $0x128] sm:$0xff] }
 0x4a1   : > { %15957 = vst [vmem:[#allocation189_spill] sm:$0xff] %v13365_v58  ;;  %v6906_v58 = vld [vmem:[%s14284_s0 + $0xe8] sm:$0xff]  ;;  %v13409_v19 = vpop.f32.mrf.mxu0 }
 0x4a2   : > { %15964 = vst [vmem:[#allocation84_spill] sm:$0xff] %v13409_v19 }
 0x4a3   : > { %5918 = vmatmul.f32.gmra.mxu1 %v6903_v30  ;;  %5844 = vmatmul.f32.vlgmr.msrb.gmra.mxu0 %v6904_v31  ;;  %v6907_v30 = vld [vmem:[%s14284_s0 + $0x140] sm:$0xff] }
 0x4a6   : > { %5726 = vmatmul.f32.gmra.mxu2 %v6905_v11  ;;  %v13393_v11 = vpop.f32.mrf.mxu2  ;;  %v13395_v27 = vpop.f32.mrf.mxu3 }
 0x4a7   : > { %15962 = vst [vmem:[#allocation85_spill] sm:$0xff] %v13393_v11  ;;  %v6918_v11 = vld [vmem:[%s14284_s0 + $0x1c0] sm:$0xff] }
 0x4a8   : > { %5788 = vmatmul.f32.gmra.mxu3 %v6906_v58  ;;  %v13388_v31 = vpop.f32.mrf.mxu1  ;;  %15963 = vst [vmem:[#allocation42_spill] sm:$0xff] %v13395_v27  ;;  %v6909_v58 = vld [vmem:[%s14284_s0 + $0x170] sm:$0xff] }
 0x4a9   : > { %15961 = vst [vmem:[#allocation259_spill] sm:$0xff] %v13388_v31  ;;  %v6911_v31 = vld [vmem:[%s14284_s0 + $0x188] sm:$0xff]  ;;  %v13429_v19 = vpop.f32.mrf.mxu0 }
 0x4aa   : > { %15968 = vst [vmem:[#allocation77_spill] sm:$0xff] %v13429_v19 }
 0x4ab   : > { %5921 = vmatmul.f32.gmra.mxu1 %v6907_v30  ;;  %5847 = vmatmul.f32.gmra.mxu0 %v6908_v8  ;;  %v6910_v30 = vld [vmem:[%s14284_s0 + $0x130] sm:$0xff]  ;;  %v6912_v8 = vld [vmem:[%s14284_s0 + $0xa8] sm:$0xff] }
 0x4ae   : > { %5729 = vmatmul.f32.gmra.mxu2 %v6909_v58  ;;  %v13413_v58 = vpop.f32.mrf.mxu2  ;;  %v13415_v32 = vpop.f32.mrf.mxu3 }
 0x4af   : > { %15966 = vst [vmem:[#allocation57_spill] sm:$0xff] %v13413_v58 }
 0x4b0   : > { %5791 = vmatmul.f32.gmra.mxu3 %v6910_v30  ;;  %v13411_v52 = vpop.f32.mrf.mxu1  ;;  %15967 = vst [vmem:[#allocation87_spill] sm:$0xff] %v13415_v32  ;;  %v6913_v30 = vld [vmem:[%s14284_s0 + $0x1b8] sm:$0xff] }
 0x4b1   : > { %15965 = vst [vmem:[#allocation80_spill] sm:$0xff] %v13411_v52  ;;  %v6916_v52 = vld [vmem:[%s14284_s0 + $0xf0] sm:$0xff] }
 0x4b3   : > { %5924 = vmatmul.f32.gmra.mxu1 %v6911_v31  ;;  %5850 = vmatmul.f32.gmra.mxu0 %v6912_v8  ;;  %v6914_v31 = vld [vmem:[%s14284_s0 + $0x178] sm:$0xff]  ;;  %v6915_v8 = vld [vmem:[%s14284_s0 + $0x1d0] sm:$0xff] }
 0x4b6   : > { %5732 = vmatmul.f32.gmra.mxu2 %v6913_v30  ;;  %v15970_v30 = vld [vmem:[#allocation137_spill] sm:$0xff] }
 0x4b7   : > { %v5152_v32 = vadd.f32 %v15971_v37, %v15970_v30  ;;  %v6919_v37 = vld [vmem:[%s14284_s0 + $0x218] sm:$0xff]  ;;  %v15973_v30 = vld [vmem:[#allocation132_spill] sm:$0xff] }
 0x4b8   : > { %5794 = vmatmul.f32.gmra.mxu3 %v6914_v31  ;;  %v13431_v27 = vpop.f32.mrf.mxu1  ;;  %v6917_v31 = vld [vmem:[%s14284_s0 + $0x200] sm:$0xff] }
 0x4b9   : > { %15969 = vst [vmem:[#allocation39_spill] sm:$0xff] %v13431_v27  ;;  %v5217_v25 = vadd.f32 %v12819_v45, %v5152_v32  ;;  %v6920_v45 = vld [vmem:[%s14284_s0 + $0x138] sm:$0xff] }
 0x4bb   : > { %5927 = vmatmul.f32.gmra.mxu1 %v6915_v8  ;;  %5853 = vmatmul.f32.gmra.mxu0 %v6916_v52  ;;  %v5476_v8 = vpop.f32.mrf.mxu2  ;;  %v13442_v52 = vpop.f32.mrf.mxu3  ;;  %v5282_v27 = vadd.f32 %v12922_v56, %v5217_v25 }
 0x4bc   : > { %15972 = vst [vmem:[#allocation218_spill] sm:$0xff] %v13442_v52 }
 0x4bd   : > { %v5347_v32 = vadd.f32 %v13010_v2, %v5282_v27  ;;  %v6922_v2 = vld [vmem:[%s14284_s0 + $0x208] sm:$0xff] }
 0x4be   : > { %5735 = vmatmul.f32.gmra.mxu2 %v6917_v31  ;;  %v15974_v31 = vld [vmem:[#allocation156_spill] sm:$0xff] }
 0x4bf   : > { %v5155_v19 = vadd.f32 %v15974_v31, %v15973_v30  ;;  %v5412_v25 = vadd.f32 %v12969_v5, %v5347_v32  ;;  %v6924_v5 = vld [vmem:[%s14284_s0 + $0x180] sm:$0xff] }
 0x4c0   : > { %5797 = vmatmul.f32.gmra.mxu3 %v6918_v11  ;;  %v13454_v11 = vpop.f32.mrf.mxu0 }
 0x4c1   : > { %15975 = vst [vmem:[#allocation234_spill] sm:$0xff] %v13454_v11  ;;  %v5220_v56 = vadd.f32 %v12890_v20, %v5155_v19  ;;  %v5477_v30 = vadd.f32 %v5476_v8, %v5412_v25  ;;  %v6923_v20 = vld [vmem:[%s14284_s0 + $0x260] sm:$0xff]  ;;  %v6926_v25 = vld [vmem:[%s14284_s0 + $0x250] sm:$0xff] }
 0x4c3   : > { %5930 = vmatmul.f32.gmra.mxu1 %v6919_v37  ;;  %5856 = vmatmul.f32.gmra.mxu0 %v6920_v45  ;;  %v13456_v52 = vpop.f32.mrf.mxu1  ;;  %v6921_v37 = vld [vmem:[%s14284_s0 + $0x248] sm:$0xff]  ;;  %v5479_v27 = vpop.f32.mrf.mxu2  ;;  %v5285_v45 = vadd.f32 %v12994_v3, %v5220_v56  ;;  %v6925_v56 = vld [vmem:[%s14284_s0 + $0x290] sm:$0xff] }
 0x4c4   : > { %15976 = vst [vmem:[#allocation79_spill] sm:$0xff] %v13456_v52  ;;  %v5541_v19 = vpop.f32.mrf.mxu3 }
 0x4c5   : > { %v5350_v32 = vadd.f32 %v13085_v59, %v5285_v45  ;;  %v13474_v31 = vadd.f32 %v5541_v19, %v5477_v30  ;;  %v6927_v59 = vld [vmem:[%s14284_s0 + $0x2a8] sm:$0xff] }
 0x4c6   : > { %5738 = vmatmul.f32.gmra.mxu2 %v6921_v37 }
 0x4c7   : > { %15977 = vst [vmem:[#allocation51_spill] sm:$0xff] %v13474_v31  ;;  %v5415_v3 = vadd.f32 %v13035_v12, %v5350_v32  ;;  %v6928_v12 = vld [vmem:[%s14284_s0 + $0x1c8] sm:$0xff]  ;;  %v6930_v32 = vld [vmem:[%s14284_s0 + $0x298] sm:$0xff] }
 0x4c8   : > { %5800 = vmatmul.f32.gmra.mxu3 %v6922_v2 }
 0x4c9   : > { %v5480_v2 = vadd.f32 %v5479_v27, %v5415_v3  ;;  %v6929_v27 = vld [vmem:[%s14284_s0 + $0x2d8] sm:$0xff]  ;;  %v6931_v3 = vld [vmem:[%s14284_s0 + $0x2f0] sm:$0xff] }
 0x4cb   : > { %5933 = vmatmul.f32.gmra.mxu1 %v6923_v20  ;;  %5859 = vmatmul.f32.gmra.mxu0 %v6924_v5  ;;  %v13476_v37 = vpop.f32.mrf.mxu1  ;;  %v13479_v8 = vpop.f32.mrf.mxu0 }
 0x4cc   : > { %15978 = vst [vmem:[#allocation53_spill] sm:$0xff] %v13476_v37  ;;  %v13557_v37 = vpop.permute.xlu2 %6306 }
 0x4cd   : > { %15979 = vst [vmem:[#allocation104_spill] sm:$0xff] %v13479_v8 }
 0x4ce   : > { %5741 = vmatmul.f32.gmra.mxu2 %v6925_v56  ;;  %v6932_v56 = vld [vmem:[%s14284_s0 + $0x210] sm:$0xff] }
 0x4cf   : > { %v5544_v30 = vpop.f32.mrf.mxu3 }
 0x4d0   : > { %5803 = vmatmul.f32.gmra.mxu3 %v6926_v25  ;;  %v13493_v45 = vpop.f32.mrf.mxu2  ;;  %v5545_v20 = vadd.f32 %v5544_v30, %v5480_v2  ;;  %v6933_v30 = vld [vmem:[%s14284_s0 + $0x320] sm:$0xff] }
 0x4d1   : > { %15980 = vst [vmem:[#allocation78_spill] sm:$0xff] %v13493_v45  ;;  %v16004_v45 = vld [vmem:[#allocation212_spill] sm:$0xff] }
 0x4d3   : > { %5936 = vmatmul.f32.gmra.mxu1 %v6927_v59  ;;  %5862 = vmatmul.f32.gmra.mxu0 %v6928_v12 }
 0x4d6   : > { %5744 = vmatmul.f32.gmra.mxu2 %v6929_v27 }
 0x4d8   : > { %v13495_v5 = vpop.f32.mrf.mxu1  ;;  %v13497_v19 = vpop.f32.mrf.mxu0  ;;  %5806 = vmatmul.f32.gmra.mxu3 %v6930_v32  ;;  %v6934_v32 = vld [vmem:[%s14284_s0 + $0x2e0] sm:$0xff] }
 0x4d9   : > { %15981 = vst [vmem:[#allocation72_spill] sm:$0xff] %v13495_v5  ;;  %v13511_v25 = vpop.f32.mrf.mxu2 }
 0x4da   : > { %15982 = vst [vmem:[#allocation19_spill] sm:$0xff] %v13497_v19 }
 0x4db   : > { %5939 = vmatmul.f32.gmra.mxu1 %v6931_v3  ;;  %5865 = vmatmul.f32.gmra.mxu0 %v6932_v56  ;;  %15983 = vst [vmem:[#allocation73_spill] sm:$0xff] %v13511_v25  ;;  %v13513_v2 = vpop.f32.mrf.mxu3  ;;  %v6935_v3 = vld [vmem:[%s14284_s0 + $0x338] sm:$0xff]  ;;  %v6948_v25 = vld [vmem:[%s14284_s0 + $0x330] sm:$0xff] }
 0x4dc   : > { %15984 = vst [vmem:[#allocation89_spill] sm:$0xff] %v13513_v2  ;;  %v6936_v56 = vld [vmem:[%s14284_s0 + $0x258] sm:$0xff] }
 0x4dd   : > { %v16002_v2 = vld [vmem:[#allocation21_spill] sm:$0xff] }
 0x4de   : > { %5747 = vmatmul.f32.gmra.mxu2 %v6933_v30 }
 0x4e0   : > { %v13515_v59 = vpop.f32.mrf.mxu1  ;;  %v5609_v12 = vpop.f32.mrf.mxu0  ;;  %5809 = vmatmul.f32.gmra.mxu3 %v6934_v32  ;;  %v6937_v32 = vld [vmem:[%s14284_s0 + $0x368] sm:$0xff] }
 0x4e1   : > { %15985 = vst [vmem:[#allocation253_spill] sm:$0xff] %v13515_v59  ;;  %v13520_v27 = vadd.f32 %v5609_v12, %v5545_v20  ;;  %v13531_v59 = vpop.f32.mrf.mxu2 }
 0x4e2   : > { %15987 = vst [vmem:[#allocation38_spill] sm:$0xff] %v13531_v59 }
 0x4e3   : > { %15986 = vst [vmem:[#allocation168_spill] sm:$0xff] %v13520_v27  ;;  %5942 = vmatmul.f32.gmra.mxu1 %v6935_v3  ;;  %5868 = vmatmul.f32.gmra.mxu0 %v6936_v56  ;;  %v13533_v30 = vpop.f32.mrf.mxu3  ;;  %v6938_v3 = vld [vmem:[%s14284_s0 + $0x328] sm:$0xff]  ;;  %v6939_v56 = vld [vmem:[%s14284_s0 + $0x380] sm:$0xff] }
 0x4e4   : > { %15988 = vst [vmem:[#allocation46_spill] sm:$0xff] %v13533_v30  ;;  %v6943_v27 = vld [vmem:[%s14284_s0 + $0x3c8] sm:$0xff] }
 0x4e6   : > { %5750 = vmatmul.f32.gmra.mxu2 %v6937_v32  ;;  %v13555_v32 = vpop.permute.xlu1 %6311 }
 0x4e7   : > { %15993 = vst [vmem:[#allocation255_spill] sm:$0xff] %v13555_v32 }
 0x4e8   : > { %v13535_v20 = vpop.f32.mrf.mxu1  ;;  %v13537_v12 = vpop.f32.mrf.mxu0  ;;  %5812 = vmatmul.f32.gmra.mxu3 %v6938_v3 }
 0x4e9   : > { %15989 = vst [vmem:[#allocation101_spill] sm:$0xff] %v13535_v20  ;;  %v6940_v20 = vld [vmem:[%s14284_s0 + $0x2a0] sm:$0xff]  ;;  %v13551_v5 = vpop.f32.mrf.mxu2 }
 0x4ea   : > { %15990 = vst [vmem:[#allocation40_spill] sm:$0xff] %v13537_v12  ;;  %v16001_v12 = vld [vmem:[#allocation61_spill] sm:$0xff] }
 0x4eb   : > { %5945 = vmatmul.f32.gmra.mxu1 %v6939_v56  ;;  %5871 = vmatmul.f32.gmra.mxu0 %v6940_v20  ;;  %15991 = vst [vmem:[#allocation62_spill] sm:$0xff] %v13551_v5  ;;  %v13553_v52 = vpop.f32.mrf.mxu3  ;;  %v6941_v56 = vld [vmem:[%s14284_s0 + $0x3b0] sm:$0xff]  ;;  %v16010_v5 = vld [vmem:[#allocation13_spill] sm:$0xff] }
 0x4ec   : > { %15992 = vst [vmem:[#allocation15_spill] sm:$0xff] %v13553_v52  ;;  %v6942_v20 = vld [vmem:[%s14284_s0 + $0x370] sm:$0xff] }
 0x4ee   : > { %5753 = vmatmul.f32.gmra.mxu2 %v6941_v56  ;;  %v13579_v56 = vpop.permute.xlu1 %6296 }
 0x4f0   : > { %v13559_v11 = vpop.f32.mrf.mxu1  ;;  %v13561_v3 = vpop.f32.mrf.mxu0  ;;  %5815 = vmatmul.f32.gmra.mxu3 %v6942_v20  ;;  %v6945_v20 = vld [vmem:[%s14284_s0 + $0x3f8] sm:$0xff] }
 0x4f1   : > { %15994 = vst [vmem:[#allocation66_spill] sm:$0xff] %v13559_v11  ;;  %v6944_v11 = vld [vmem:[%s14284_s0 + $0x2e8] sm:$0xff]  ;;  %v13575_v8 = vpop.f32.mrf.mxu2 }
 0x4f2   : > { %15995 = vst [vmem:[#allocation102_spill] sm:$0xff] %v13561_v3 }
 0x4f3   : > { %5948 = vmatmul.f32.gmra.mxu1 %v6943_v27  ;;  %5874 = vmatmul.f32.gmra.mxu0 %v6944_v11  ;;  %15996 = vst [vmem:[#allocation25_spill] sm:$0xff] %v13575_v8  ;;  %v13577_v19 = vpop.f32.mrf.mxu3  ;;  %v13588_v27 = vpop.permute.xlu2 %6291  ;;  %v6946_v11 = vld [vmem:[%s14284_s0 + $0x3b8] sm:$0xff] }
 0x4f4   : > { %15997 = vst [vmem:[#allocation48_spill] sm:$0xff] %v13577_v19  ;;  %v16008_v19 = vld [vmem:[#allocation151_spill] sm:$0xff] }
 0x4f5   : > { %v5131_v59 = vadd.f32 %v16008_v19, %v16007_v24  ;;  %v16021_v19 = vld [vmem:[#allocation214_spill] sm:$0xff] }
 0x4f6   : > { %5756 = vmatmul.f32.gmra.mxu2 %v6945_v20  ;;  %v16005_v20 = vld [vmem:[#allocation33_spill] sm:$0xff] }
 0x4f7   : > { %v5137_v52 = vadd.f32 %v16005_v20, %v16004_v45  ;;  %v16015_v45 = vld [vmem:[#allocation50_spill] sm:$0xff]  ;;  %v16016_v20 = vld [vmem:[#allocation17_spill] sm:$0xff] }
 0x4f8   : > { %v13581_v31 = vpop.f32.mrf.mxu1  ;;  %v13583_v58 = vpop.f32.mrf.mxu0  ;;  %5818 = vmatmul.f32.gmra.mxu3 %v6946_v11  ;;  %v5140_v34 = vadd.f32 %v16016_v20, %v16015_v45  ;;  %v16029_v20 = vld [vmem:[#allocation150_spill] sm:$0xff] }
 0x4f9   : > { %15998 = vst [vmem:[#allocation26_spill] sm:$0xff] %v13581_v31  ;;  %v16000_v31 = vld [vmem:[#allocation142_spill] sm:$0xff]  ;;  %v13605_v11 = vpop.f32.mrf.mxu2  ;;  %v5202_v24 = vadd.f32 %v16020_v53, %v5137_v52  ;;  %v13633_v53 = vpop.permute.xlu0 %6301 }
 0x4fa   : > { %15999 = vst [vmem:[#allocation110_spill] sm:$0xff] %v13583_v58  ;;  %v5158_v3 = vadd.f32 %v16001_v12, %v16000_v31  ;;  %v16003_v58 = vld [vmem:[#allocation248_spill] sm:$0xff]  ;;  %v16012_v12 = vld [vmem:[#allocation81_spill] sm:$0xff]  ;;  %v5205_v45 = vadd.f32 %v16028_v7, %v5140_v34 }
 0x4fb   : > { %5951 = vmatmul.f32.gmra.mxu1 %v6947_v23  ;;  %v5134_v30 = vadd.f32 %v16003_v58, %v16002_v2  ;;  %5877 = vmatmul.f32.gmra.mxu0 %v6948_v25  ;;  %16006 = vst [vmem:[#allocation228_spill] sm:$0xff] %v13605_v11  ;;  %v16009_v23 = vld [vmem:[#allocation193_spill] sm:$0xff]  ;;  %v16011_v31 = vld [vmem:[#allocation24_spill] sm:$0xff]  ;;  %v16013_v58 = vld [vmem:[#allocation2_spill] sm:$0xff]  ;;  %v13614_v38 = vpop.f32.mrf.mxu3 }
 0x4fc   : > { %v5161_v8 = vadd.f32 %v16010_v5, %v16009_v23  ;;  %v5164_v10 = vadd.f32 %v16012_v12, %v16011_v31  ;;  %v6314_v2 = vperm.slane %v16013_v58, 0  ;;  %16014 = vst [vmem:[#allocation67_spill] sm:$0xff] %v13614_v38  ;;  %v16018_v25 = vld [vmem:[#allocation32_spill] sm:$0xff]  ;;  %v16019_v11 = vld [vmem:[#allocation155_spill] sm:$0xff]  ;;  %v5167_v5 = vadd.f32 %v16022_v13, %v16021_v19  ;;  %v16023_v23 = vld [vmem:[#allocation206_spill] sm:$0xff] }
 0x4fd   : > { %v5143_v46 = vadd.f32 %v16018_v25, %v16017_v48  ;;  %v5199_v61 = vadd.f32 %v16019_v11, %v5134_v30  ;;  %v5196_v14 = vadd.f32 %v16023_v23, %v5131_v59  ;;  %v16024_v31 = vld [vmem:[#allocation22_spill] sm:$0xff]  ;;  %v16025_v12 = vld [vmem:[#allocation260_spill] sm:$0xff]  ;;  %v16030_v48 = vld [vmem:[#allocation145_spill] sm:$0xff]  ;;  %v5270_v7 = vadd.f32 %v12615_v35, %v5205_v45 }
 0x4fe   : > { %v5146_v58 = vadd.f32 %v16025_v12, %v16024_v31  ;;  %v16027_v38 = vld [vmem:[#allocation216_spill] sm:$0xff]  ;;  %v13639_v19 = vperm.slane %v6314_v2, 0  ;;  %v16032_v23 = vld [vmem:[#allocation5_spill] sm:$0xff]  ;;  %v16035_v2 = vld [vmem:[#allocation242_spill] sm:$0xff] }
 0x4ff   : > { %v5149_v9 = vadd.f32 %v16027_v38, %v16026_v18  ;;  %v5264_v60 = vadd.f32 %v16029_v20, %v5199_v61  ;;  %v5208_v25 = vadd.f32 %v16030_v48, %v5143_v46  ;;  %v16031_v30 = vld [vmem:[#allocation128_spill] sm:$0xff]  ;;  %v6352_v38 = vperm.slane %v16032_v23, 0  ;;  %v6949_v61 = vld [vmem:[%s14284_s0 + $0x440] sm:$0xff]  ;;  %v16038_v48 = vld [vmem:[#allocation29_spill] sm:$0xff] }
 0x500   : > { %v5267_v11 = vadd.f32 %v16031_v30, %v5202_v24  ;;  %v13635_v52 = vpop.f32.mrf.mxu1  ;;  %v5211_v13 = vadd.f32 %v12657_v6, %v5146_v58  ;;  %v13642_v18 = vpop.f32.mrf.mxu0  ;;  %5759 = vmatmul.f32.gmra.mxu2 %v6949_v61  ;;  %v16033_v34 = vld [vmem:[#allocation144_spill] sm:$0xff]  ;;  %v16034_v58 = vld [vmem:[#allocation43_spill] sm:$0xff]  ;;  %v5335_v30 = vadd.f32 %v12715_v62, %v5270_v7  ;;  %v16040_v61 = vld [vmem:[#allocation238_spill] sm:$0xff] }
 0x501   : > { %v5214_v59 = vadd.f32 %v12736_v44, %v5149_v9  ;;  %v5329_v46 = vadd.f32 %v16033_v34, %v5264_v60  ;;  %v5273_v24 = vadd.f32 %v12686_v57, %v5208_v25  ;;  %v13651_v44 = vpop.permute.xlu1 %6286  ;;  %v6950_v9 = vld [vmem:[%s14284_s0 + $0x400] sm:$0xff]  ;;  %v5170_v31 = vadd.f32 %v16035_v2, %v16034_v58  ;;  %v16036_v57 = vld [vmem:[#allocation12_spill] sm:$0xff] }
 0x502   : > { %v5332_v6 = vadd.f32 %v12638_v26, %v5267_v11  ;;  %5821 = vmatmul.f32.gmra.mxu3 %v6950_v9  ;;  %v5276_v12 = vadd.f32 %v12774_v47, %v5211_v13  ;;  %v6348_v60 = vsub.f32 %v13557_v37, %v13639_v19  ;;  %v6951_v26 = vld [vmem:[%s14284_s0 + $0x458] sm:$0xff]  ;;  %v16037_v45 = vld [vmem:[#allocation28_spill] sm:$0xff]  ;;  %v5261_v25 = vadd.f32 %v16038_v48, %v5196_v14  ;;  %v13670_v47 = vpop.permute.xlu2 %6281  ;;  %v13675_v13 = vpop.f32.mrf.mxu2 }
 0x503   : > { %v5279_v35 = vadd.f32 %v12853_v28, %v5214_v59  ;;  %5954 = vmatmul.f32.gmra.mxu1 %v6951_v26  ;;  %v5173_v20 = vadd.f32 %v16037_v45, %v16036_v57  ;;  %v5338_v11 = vadd.f32 %v12794_v4, %v5273_v24  ;;  %v6952_v28 = vld [vmem:[%s14284_s0 + $0x378] sm:$0xff]  ;;  %v16039_v59 = vld [vmem:[#allocation244_spill] sm:$0xff]  ;;  %v13681_v58 = vperm.slane %v6352_v38, 0  ;;  %v13683_v62 = vpop.f32.mrf.mxu3  ;;  %v16041_v4 = vld [vmem:[#allocation230_spill] sm:$0xff] }
 0x504   : > { %5880 = vmatmul.f32.gmra.mxu0 %v6952_v28  ;;  %v5176_v34 = vadd.f32 %v16040_v61, %v16039_v59  ;;  %v5341_v9 = vadd.f32 %v12871_v33, %v5276_v12  ;;  %v13686_v7 = vadd.f32 %v16041_v4, %v5261_v25  ;;  %v16042_v24 = vld [vmem:[#allocation250_spill] sm:$0xff]  ;;  %v13692_v26 = vadd.f32 %v12617_v0, %v5332_v6 }
 0x505   : > { %v5344_v14 = vadd.f32 %v12942_v15, %v5279_v35  ;;  %v13689_v2 = vadd.f32 %v16042_v24, %v5329_v46  ;;  %v6350_v57 = vsub.f32 %v13555_v32, %v13639_v19  ;;  %v5223_v33 = vadd.f32 %v12954_v49, %v5158_v3  ;;  %v16043_v46 = vld [vmem:[#allocation124_spill] sm:$0xff] }
 0x506   : > { %v6386_v15 = vsub.f32 %v6348_v60, %v13681_v58  ;;  %v6342_v38 = vsub.f32 %v13588_v27, %v13639_v19  ;;  %v6344_v12 = vsub.f32 %v13579_v56, %v13639_v19  ;;  %v13703_v35 = vadd.f32 %v12688_v55, %v5335_v30  ;;  %v16044_v3 = vld [vmem:[#allocation200_spill] sm:$0xff] }
 0x507   : > { %v13706_v45 = vadd.f32 %v16043_v46, %v5338_v11  ;;  %v5226_v0 = vadd.f32 %v13033_v41, %v5161_v8  ;;  %v5229_v6 = vadd.f32 %v13103_v54, %v5164_v10  ;;  %v13713_v49 = vadd.f32 %v12855_v40, %v5341_v9  ;;  %v6953_v41 = vld [vmem:[%s14284_s0 + $0x28] sm:$0xff]  ;;  %v13729_v11 = vpop.permute.xlu0 %6276 }
 0x508   : > { %v13710_v48 = vpop.f32.mrf.mxu1  ;;  %v13716_v60 = vadd.f32 %v16044_v3, %v5344_v14  ;;  %v5288_v25 = vadd.f32 %v13060_v21, %v5223_v33  ;;  %v5232_v55 = vadd.f32 %v13176_v1, %v5167_v5  ;;  %v13720_v30 = vpop.f32.mrf.mxu0  ;;  %5974 = vmatmul.f32.vlgmr.msra.gmra.mxu2 %v6953_v41  ;;  %v5235_v10 = vadd.f32 %v13208_v50, %v5170_v31  ;;  %v6954_v21 = vld [vmem:[%s14284_s0 + $0x448] sm:$0xff]  ;;  %v6956_v14 = vld [vmem:[%s14284_s0 + $0x3c0] sm:$0xff]  ;;  %v16048_v41 = vld [vmem:[#allocation269_spill] sm:$0xff] }
 0x509   : > { %v5291_v54 = vadd.f32 %v13134_v29, %v5226_v0  ;;  %v5294_v40 = vadd.f32 %v13196_v39, %v5229_v6  ;;  %v6388_v8 = vsub.f32 %v6350_v57, %v13681_v58  ;;  %v6418_v1 = vand.u32 2147483647, %v6386_v15  ;;  %v6955_v39 = vld [vmem:[%s14284_s0 + $0x40] sm:$0xff]  ;;  %v13746_v9 = vpop.permute.xlu1 %6271 }
 0x50a   : > { %5824 = vmatmul.f32.gmra.mxu3 %v6954_v21  ;;  %v6380_v5 = vsub.f32 %v6342_v38, %v13681_v58  ;;  %v6382_v28 = vsub.f32 %v6344_v12, %v13681_v58  ;;  %v6346_v29 = vsub.f32 %v13633_v53, %v13639_v19  ;;  %v5238_v50 = vadd.f32 %v13231_v22, %v5173_v20  ;;  %v5715_v4 = vpop.f32.mrf.mxu2  ;;  %v16045_v15 = vld [vmem:[#allocation202_spill] sm:$0xff]  ;;  %v13759_v12 = vpop.permute.xlu2 %6266 }
 0x50b   : > { %6169 = vmatmul.f32.vlgmr.msra.gmra.mxu1 %v6955_v39  ;;  %v5297_v31 = vadd.f32 %v13218_v17, %v5232_v55  ;;  %v5241_v59 = vadd.f32 %v13256_v42, %v5176_v34  ;;  %v6338_v61 = vsub.f32 %v13670_v47, %v13639_v19  ;;  %v5353_v24 = vadd.f32 %v13159_v51, %v5288_v25  ;;  %v5565_v42 = vpop.f32.mrf.mxu3  ;;  %v16047_v25 = vld [vmem:[#allocation204_spill] sm:$0xff] }
 0x50c   : > { %5883 = vmatmul.f32.gmra.mxu0 %v6956_v14  ;;  %v5356_v57 = vadd.f32 %v13203_v63, %v5291_v54  ;;  %v5359_v22 = vadd.f32 %v13226_v36, %v5294_v40  ;;  %v6340_v17 = vsub.f32 %v13651_v44, %v13639_v19  ;;  %v6420_v20 = vand.u32 2147483647, %v6388_v8  ;;  %v16046_v36 = vld [vmem:[#allocation262_spill] sm:$0xff]  ;;  %v16050_v8 = vld [vmem:[#allocation251_spill] sm:$0xff] }
 0x50d   : > { %v5303_v34 = vadd.f32 %v13264_v43, %v5238_v50  ;;  %v5362_v33 = vadd.f32 %v13249_v16, %v5297_v31  ;;  %v5306_v38 = vadd.f32 %v16045_v15, %v5241_v59  ;;  %v13761_v46 = vsub.f32 1.0, %v6418_v1  ;;  %v16049_v16 = vld [vmem:[#allocation232_spill] sm:$0xff]  ;;  %v16052_v31 = vld [vmem:[#allocation139_spill] sm:$0xff] }
 0x50e   : > { %v6412_v51 = vand.u32 2147483647, %v6380_v5  ;;  %v6414_v0 = vand.u32 2147483647, %v6382_v28  ;;  %v6384_v63 = vsub.f32 %v6346_v29, %v13681_v58  ;;  %v5300_v6 = vadd.f32 %v16046_v36, %v5235_v10  ;;  %v6957_v28 = vld [vmem:[%s14284_s0 + $0x70] sm:$0xff]  ;;  %v16051_v29 = vld [vmem:[#allocation138_spill] sm:$0xff] }
 0x50f   : > { %v6376_v3 = vsub.f32 %v6338_v61, %v13681_v58  ;;  %v5368_v55 = vadd.f32 %v16047_v25, %v5303_v34  ;;  %v5371_v43 = vadd.f32 %v16048_v41, %v5306_v38  ;;  %v13771_v40 = vadd.f32 %v16049_v16, %v5353_v24  ;;  %v16053_v61 = vld [vmem:[#allocation134_spill] sm:$0xff]  ;;  %v6958_v24 = vld [vmem:[%s14284_s0 + $0x30] sm:$0xff]  ;;  %v13798_v25 = vpop.permute.xlu0 %6261  ;;  %v16056_v41 = vld [vmem:[#allocation157_spill] sm:$0xff] }
 0x510   : > { %v13768_v54 = vpop.f32.mrf.mxu1  ;;  %v13774_v21 = vadd.f32 %v16050_v8, %v5356_v57  ;;  %v6378_v1 = vsub.f32 %v6340_v17, %v13681_v58  ;;  %v6332_v5 = vsub.f32 %v13759_v12, %v13639_v19  ;;  %v5627_v10 = vpop.f32.mrf.mxu0  ;;  %5977 = vmatmul.f32.gmra.mxu2 %v6957_v28  ;;  %v5424_v39 = vadd.f32 %v16051_v29, %v5359_v22  ;;  %v6959_v22 = vld [vmem:[%s14284_s0 + $0x88] sm:$0xff]  ;;  %v16055_v36 = vld [vmem:[#allocation118_spill] sm:$0xff]  ;;  %v16059_v57 = vld [vmem:[#allocation25_spill] sm:$0xff] }
 0x511   : > { %v6452_v50 = vsub.f32 1.0, %v6420_v20  ;;  %v5427_v59 = vadd.f32 %v16052_v31, %v5362_v33  ;;  %v5365_v14 = vadd.f32 %v16053_v61, %v5300_v6  ;;  %v13789_v17 = vsub.f32 1.0, %v6412_v51  ;;  %v16054_v33 = vld [vmem:[#allocation176_spill] sm:$0xff]  ;;  %v6960_v51 = vld [vmem:[%s14284_s0 + $0x408] sm:$0xff]  ;;  %v16057_v28 = vld [vmem:[#allocation114_spill] sm:$0xff]  ;;  %v13810_v31 = vpop.permute.xlu1 %6256 }
 0x512   : > { %6039 = vmatmul.f32.vlgmr.msra.gmra.mxu3 %v6958_v24  ;;  %v13791_v34 = vsub.f32 1.0, %v6414_v0  ;;  %v6416_v15 = vand.u32 2147483647, %v6384_v63  ;;  %v6408_v20 = vand.u32 2147483647, %v6376_v3  ;;  %v5433_v38 = vadd.f32 %v16054_v33, %v5368_v55  ;;  %v5718_v0 = vpop.f32.mrf.mxu2 }
 0x513   : > { %6172 = vmatmul.f32.gmra.mxu1 %v6959_v22  ;;  %v5436_v6 = vadd.f32 %v16055_v36, %v5371_v43  ;;  %v5716_v16 = vadd.f32 %v5715_v4, %v16056_v41  ;;  %v6410_v63 = vand.u32 2147483647, %v6378_v1  ;;  %v6370_v8 = vsub.f32 %v6332_v5, %v13681_v58  ;;  %v5780_v43 = vpop.f32.mrf.mxu3  ;;  %v16058_v4 = vld [vmem:[#allocation228_spill] sm:$0xff] }
 0x514   : > { %5886 = vmatmul.f32.gmra.mxu0 %v6960_v51  ;;  %v6334_v3 = vsub.f32 %v13746_v9, %v13639_v19  ;;  %v6336_v55 = vsub.f32 %v13729_v11, %v13639_v19  ;;  %v5430_v29 = vadd.f32 %v16057_v28, %v5365_v14  ;;  %v5498_v61 = vadd.f32 %v16058_v4, %v5433_v38  ;;  %v13820_v51 = vpop.permute.xlu2 %6251 }
 0x515   : > { %v5501_v24 = vadd.f32 %v13675_v13, %v5436_v6  ;;  %v13814_v22 = vadd.f32 %v5780_v43, %v5716_v16  ;;  %v6484_v1 = vmax.f32 %v6452_v50, 0.0  ;;  %v6478_v33 = vmax.f32 %v13791_v34, 0.0  ;;  %v6967_v34 = vld [vmem:[%s14284_s0 + $0x118] sm:$0xff] }
 0x516   : > { %v6448_v36 = vsub.f32 1.0, %v6416_v15  ;;  %v13818_v41 = vsub.f32 1.0, %v6408_v20  ;;  %v5495_v14 = vadd.f32 %v16059_v57, %v5430_v29  ;;  %v5563_v28 = vadd.f32 %v13683_v62, %v5498_v61  ;;  %v6961_v15 = vld [vmem:[%s14284_s0 + $0xb8] sm:$0xff]  ;;  %v16060_v20 = vld [vmem:[#allocation62_spill] sm:$0xff]  ;;  %v16061_v29 = vld [vmem:[#allocation67_spill] sm:$0xff] }
 0x517   : > { %v5566_v32 = vadd.f32 %v5565_v42, %v5501_v24  ;;  %v13826_v13 = vsub.f32 1.0, %v6410_v63  ;;  %v6402_v6 = vand.u32 2147483647, %v6370_v8  ;;  %v6372_v50 = vsub.f32 %v6334_v3, %v13681_v58  ;;  %v6962_v63 = vld [vmem:[%s14284_s0 + $0x78] sm:$0xff]  ;;  %v16062_v61 = vld [vmem:[#allocation38_spill] sm:$0xff] }
 0x518   : > { %v13824_v38 = vpop.f32.mrf.mxu1  ;;  %v6374_v16 = vsub.f32 %v6336_v55, %v13681_v58  ;;  %v5630_v43 = vpop.f32.mrf.mxu0  ;;  %5980 = vmatmul.f32.gmra.mxu2 %v6961_v15  ;;  %v5492_v57 = vadd.f32 %v16060_v20, %v5427_v59  ;;  %v5560_v62 = vadd.f32 %v16061_v29, %v5495_v14  ;;  %v5628_v42 = vadd.f32 %v5627_v10, %v5563_v28  ;;  %v6963_v59 = vld [vmem:[%s14284_s0 + $0xd0] sm:$0xff] }
 0x519   : > { %v5631_v4 = vadd.f32 %v5630_v43, %v5566_v32  ;;  %v6480_v8 = vmax.f32 %v6448_v36, 0.0  ;;  %v6328_v3 = vsub.f32 %v13810_v31, %v13639_v19  ;;  %v6330_v55 = vsub.f32 %v13798_v25, %v13639_v19  ;;  %v16063_v32 = vld [vmem:[#allocation48_spill] sm:$0xff]  ;;  %v13870_v5 = vpop.permute.xlu1 %6241 }
 0x51a   : > { %6042 = vmatmul.f32.gmra.mxu3 %v6962_v63  ;;  %v5489_v24 = vadd.f32 %v16062_v61, %v5424_v39  ;;  %v5557_v10 = vadd.f32 %v16063_v32, %v5492_v57  ;;  %v5625_v14 = vadd.f32 %v13720_v30, %v5560_v62  ;;  %v16064_v43 = vld [vmem:[#allocation224_spill] sm:$0xff]  ;;  %v5721_v20 = vpop.f32.mrf.mxu2  ;;  %v6326_v29 = vsub.f32 %v13820_v51, %v13639_v19  ;;  %v16065_v61 = vld [vmem:[#allocation73_spill] sm:$0xff]  ;;  %v13857_v30 = vpop.permute.xlu0 %6246 }
 0x51b   : > { %6175 = vmatmul.f32.gmra.mxu1 %v6963_v59  ;;  %v6517_v28 = vmul.f32 %v6484_v1, %v5631_v4  ;;  %v5719_v36 = vadd.f32 %v5718_v0, %v16064_v43  ;;  %v6964_v15 = vld [vmem:[%s14284_s0 + $0x450] sm:$0xff]  ;;  %v6406_v63 = vand.u32 2147483647, %v6374_v16  ;;  %v5486_v57 = vadd.f32 %v16065_v61, %v13774_v21  ;;  %v5783_v59 = vpop.f32.mrf.mxu3  ;;  %v16066_v1 = vld [vmem:[#allocation15_spill] sm:$0xff]  ;;  %v16068_v21 = vld [vmem:[#allocation78_spill] sm:$0xff] }
 0x51c   : > { %5889 = vmatmul.f32.gmra.mxu0 %v6964_v15  ;;  %v5554_v0 = vadd.f32 %v16066_v1, %v5489_v24  ;;  %v5622_v62 = vadd.f32 %v13642_v18, %v5557_v10  ;;  %v16067_v4 = vmax.f32 %v13761_v46, 0.0  ;;  %v13865_v15 = vsub.f32 1.0, %v6402_v6  ;;  %v16069_v1 = vld [vmem:[#allocation46_spill] sm:$0xff] }
 0x51d   : > { %6519 = vmatpush.msrb.mxu2 %v6517_v28  ;;  %v13863_v43 = vadd.f32 %v5783_v59, %v5719_v36  ;;  %v6404_v39 = vand.u32 2147483647, %v6372_v50  ;;  %v6366_v16 = vsub.f32 %v6328_v3, %v13681_v58  ;;  %v5483_v61 = vadd.f32 %v16068_v21, %v13771_v40  ;;  %v16070_v10 = vld [vmem:[#allocation110_spill] sm:$0xff]  ;;  %v16071_v40 = vld [vmem:[#allocation89_spill] sm:$0xff] }
 0x51e   : > { %v6515_v32 = vmul.f32 %v16067_v4, %v5628_v42  ;;  %v6368_v24 = vsub.f32 %v6330_v55, %v13681_v58  ;;  %v5551_v18 = vadd.f32 %v16069_v1, %v5486_v57  ;;  %v5619_v46 = vadd.f32 %v16070_v10, %v5554_v0  ;;  %v6965_v55 = vld [vmem:[%s14284_s0 + $0x100] sm:$0xff]  ;;  %v13885_v57 = vpop.permute.xlu2 %6236  ;;  %v16073_v1 = vld [vmem:[#allocation40_spill] sm:$0xff] }
 0x51f   : > { %v6513_v42 = vmul.f32 %v6480_v8, %v5625_v14  ;;  %v6474_v6 = vmax.f32 %v13826_v13, 0.0  ;;  %v6364_v50 = vsub.f32 %v6326_v29, %v13681_v58  ;;  %v6324_v3 = vsub.f32 %v13857_v30, %v13639_v19  ;;  %v16072_v14 = vld [vmem:[#allocation102_spill] sm:$0xff] }
 0x520   : > { %6520 = vmatpush.msrb.mxu2 %v6515_v32  ;;  %v13875_v28 = vpop.f32.mrf.mxu1  ;;  %v5548_v36 = vadd.f32 %v16071_v40, %v5483_v61  ;;  %v5845_v59 = vpop.f32.mrf.mxu0  ;;  %v6438_v8 = vsub.f32 1.0, %v6406_v63  ;;  %v5616_v0 = vadd.f32 %v16072_v14, %v5551_v18  ;;  %v6511_v13 = vmul.f32 %v6478_v33, %v5622_v62  ;;  %v6966_v4 = vld [vmem:[%s14284_s0 + $0xc0] sm:$0xff] }
 0x521   : > { %5983 = vmatmul.f32.gmra.mxu2 %v6965_v55  ;;  %v5846_v29 = vadd.f32 %v5845_v59, %v13814_v22  ;;  %v6436_v32 = vsub.f32 1.0, %v6404_v39  ;;  %v6398_v21 = vand.u32 2147483647, %v6366_v16  ;;  %v6322_v61 = vsub.f32 %v13870_v5, %v13639_v19  ;;  %v16075_v18 = vld [vmem:[#allocation246_spill] sm:$0xff]  ;;  %v6968_v39 = vld [vmem:[%s14284_s0 + $0x38] sm:$0xff] }
 0x522   : > { %6521 = vmatpush.msrb.mxu2 %v6513_v42  ;;  %6045 = vmatmul.f32.gmra.mxu3 %v6966_v4  ;;  %v5613_v63 = vadd.f32 %v16073_v1, %v5548_v36  ;;  %v6400_v33 = vand.u32 2147483647, %v6368_v24  ;;  %v16074_v22 = vmax.f32 %v13789_v17, 0.0  ;;  %v5722_v10 = vadd.f32 %v5721_v20, %v16075_v18  ;;  %v5724_v16 = vpop.f32.mrf.mxu2  ;;  %v16078_v1 = vld [vmem:[#allocation218_spill] sm:$0xff]  ;;  %v16083_v18 = vld [vmem:[#allocation87_spill] sm:$0xff] }
 0x523   : > { %6178 = vmatmul.f32.gmra.mxu1 %v6967_v34  ;;  %v13904_v42 = vadd.f32 %v13710_v48, %v5846_v29  ;;  %v6466_v40 = vmax.f32 %v13865_v15, 0.0  ;;  %v6396_v36 = vand.u32 2147483647, %v6364_v50  ;;  %v6320_v24 = vsub.f32 %v13885_v57, %v13639_v19  ;;  %v16076_v48 = vld [vmem:[#allocation57_spill] sm:$0xff]  ;;  %v16079_v34 = vld [vmem:[#allocation51_spill] sm:$0xff] }
 0x524   : > { %v6509_v62 = vmul.f32 %v16074_v22, %v5619_v46  ;;  %6104 = vmatmul.f32.vlgmr.msra.gmra.mxu0 %v6968_v39  ;;  %6522 = vmatpush.msrb.mxu2 %v6511_v13  ;;  %v6362_v17 = vsub.f32 %v6324_v3, %v13681_v58  ;;  %v5786_v46 = vpop.f32.mrf.mxu3  ;;  %v6470_v20 = vmax.f32 %v6438_v8, 0.0  ;;  %v5474_v59 = vadd.f32 %v16076_v48, %v13716_v60  ;;  %v16077_v50 = vld [vmem:[#allocation85_spill] sm:$0xff]  ;;  %v16080_v8 = vld [vmem:[#allocation19_spill] sm:$0xff] }
 0x525   : > { %v6507_v55 = vmul.f32 %v6474_v6, %v5616_v0  ;;  %v13915_v14 = vadd.f32 %v5786_v46, %v5722_v10  ;;  %v6468_v29 = vmax.f32 %v6436_v32, 0.0  ;;  %v13917_v13 = vsub.f32 1.0, %v6398_v21  ;;  %v6969_v10 = vld [vmem:[%s14284_s0 + $0x148] sm:$0xff]  ;;  %v16085_v46 = vld [vmem:[#allocation168_spill] sm:$0xff] }
 0x526   : > { %6523 = vmatpush.msrb.mxu2 %v6509_v62  ;;  %v6360_v15 = vsub.f32 %v6322_v61, %v13681_v58  ;;  %v5471_v4 = vadd.f32 %v16077_v50, %v13713_v49  ;;  %v6432_v19 = vsub.f32 1.0, %v6400_v33  ;;  %v5539_v3 = vadd.f32 %v16078_v1, %v5474_v59  ;;  %v16082_v61 = vld [vmem:[#allocation240_spill] sm:$0xff] }
 0x527   : > { %v5607_v22 = vadd.f32 %v16080_v8, %v16079_v34  ;;  %v16081_v60 = vmax.f32 %v13818_v41, 0.0  ;;  %v6358_v32 = vsub.f32 %v6320_v24, %v13681_v58  ;;  %v6394_v21 = vand.u32 2147483647, %v6362_v17  ;;  %v16084_v41 = vld [vmem:[#allocation104_spill] sm:$0xff]  ;;  %v6970_v58 = vld [vmem:[%s14284_s0 + $0x108] sm:$0xff] }
 0x528   : > { %6524 = vmatpush.msrb.mxu2 %v6507_v55  ;;  %v13927_v0 = vpop.f32.mrf.mxu1  ;;  %v5468_v62 = vadd.f32 %v16082_v61, %v13706_v45  ;;  %v5536_v49 = vadd.f32 %v16083_v18, %v5471_v4  ;;  %v5848_v33 = vpop.f32.mrf.mxu0  ;;  %v6428_v39 = vsub.f32 1.0, %v6396_v36  ;;  %v6503_v48 = vmul.f32 %v6470_v20, %v16085_v46  ;;  %v16086_v24 = vld [vmem:[#allocation199_spill] sm:$0xff]  ;;  %v16087_v55 = vld [vmem:[#allocation42_spill] sm:$0xff]  ;;  %v16092_v18 = vld [vmem:[#allocation77_spill] sm:$0xff] }
 0x529   : > { %v6505_v6 = vmul.f32 %v16081_v60, %v5613_v63  ;;  %5986 = vmatmul.f32.gmra.mxu2 %v6969_v10  ;;  %v5604_v63 = vadd.f32 %v16084_v41, %v5539_v3  ;;  %v5849_v59 = vadd.f32 %v5848_v33, %v13863_v43  ;;  %v6392_v45 = vand.u32 2147483647, %v6360_v15  ;;  %v16088_v4 = vld [vmem:[#allocation234_spill] sm:$0xff]  ;;  %v16089_v3 = vld [vmem:[#allocation263_spill] sm:$0xff] }
 0x52a   : > { %6048 = vmatmul.f32.gmra.mxu3 %v6970_v58  ;;  %v5465_v17 = vadd.f32 %v16086_v24, %v13703_v35  ;;  %v5533_v50 = vadd.f32 %v16087_v55, %v5468_v62  ;;  %v5601_v36 = vadd.f32 %v16088_v4, %v5536_v49  ;;  %v6971_v20 = vld [vmem:[%s14284_s0 + $0x160] sm:$0xff]  ;;  %v6464_v43 = vmax.f32 %v6432_v19, 0.0  ;;  %v5727_v15 = vpop.f32.mrf.mxu2  ;;  %v16090_v61 = vld [vmem:[#allocation195_spill] sm:$0xff] }
 0x52b   : > { %6525 = vmatpush.msrb.mxu2 %v6505_v6  ;;  %6181 = vmatmul.f32.gmra.mxu1 %v6971_v20  ;;  %v6501_v1 = vmul.f32 %v6468_v29, %v5607_v22  ;;  %v5725_v34 = vadd.f32 %v5724_v16, %v16089_v3  ;;  %v13951_v8 = vadd.f32 %v13768_v54, %v5849_v59  ;;  %v6972_v35 = vld [vmem:[%s14284_s0 + $0x80] sm:$0xff]  ;;  %v6462_v60 = vmax.f32 %v13917_v13, 0.0  ;;  %v16091_v22 = vld [vmem:[#allocation191_spill] sm:$0xff] }
 0x52c   : > { %6107 = vmatmul.f32.gmra.mxu0 %v6972_v35  ;;  %v6390_v6 = vand.u32 2147483647, %v6358_v32  ;;  %v5462_v62 = vadd.f32 %v16090_v61, %v13692_v26  ;;  %v6426_v19 = vsub.f32 1.0, %v6394_v21  ;;  %v5789_v29 = vpop.f32.mrf.mxu3  ;;  %v5530_v16 = vadd.f32 %v16091_v22, %v5465_v17  ;;  %v16093_v10 = vld [vmem:[#allocation183_spill] sm:$0xff]  ;;  %v16095_v59 = vld [vmem:[#allocation174_spill] sm:$0xff]  ;;  %v16096_v26 = vld [vmem:[#allocation84_spill] sm:$0xff] }
 0x52d   : > { %6526 = vmatpush.msrb.mxu2 %v6503_v48  ;;  %v5598_v54 = vadd.f32 %v16092_v18, %v5533_v50  ;;  %v6499_v49 = vmul.f32 %v6466_v40, %v5604_v63  ;;  %v5790_v33 = vadd.f32 %v5789_v29, %v5725_v34  ;;  %v5391_v41 = vadd.f32 %v16093_v10, %v13686_v7  ;;  %v16094_v48 = vld [vmem:[#allocation267_spill] sm:$0xff]  ;;  %v16097_v55 = vld [vmem:[#allocation146_spill] sm:$0xff]  ;;  %v6973_v7 = vld [vmem:[%s14284_s0 + $0x190] sm:$0xff] }
 0x52e   : > { %v6460_v46 = vmax.f32 %v6428_v39, 0.0  ;;  %v5459_v13 = vadd.f32 %v16094_v48, %v13689_v2  ;;  %v6424_v32 = vsub.f32 1.0, %v6392_v45  ;;  %v5527_v58 = vadd.f32 %v16095_v59, %v5462_v62  ;;  %v16098_v50 = vld [vmem:[#allocation226_spill] sm:$0xff]  ;;  %v16099_v39 = vld [vmem:[#allocation257_spill] sm:$0xff]  ;;  %v16100_v3 = vld [vmem:[#allocation179_spill] sm:$0xff] }
 0x52f   : > { %6527 = vmatpush.msrb.mxu2 %v6501_v1  ;;  %v5595_v21 = vadd.f32 %v16096_v26, %v5530_v16  ;;  %v6497_v24 = vmul.f32 %v6464_v43, %v5601_v36  ;;  %v5456_v40 = vadd.f32 %v16097_v55, %v5391_v41  ;;  %v6422_v63 = vsub.f32 1.0, %v6390_v6  ;;  %v6974_v43 = vld [vmem:[%s14284_s0 + $0x150] sm:$0xff]  ;;  %v16101_v35 = vld [vmem:[#allocation265_spill] sm:$0xff]  ;;  %v6975_v61 = vld [vmem:[%s14284_s0 + $0x1a8] sm:$0xff] }
 0x530   : > { %v13967_v17 = vpop.f32.mrf.mxu1  ;;  %v5524_v4 = vadd.f32 %v16098_v50, %v5459_v13  ;;  %v5851_v20 = vpop.f32.mrf.mxu0  ;;  %v6458_v2 = vmax.f32 %v6426_v19, 0.0  ;;  %v5592_v45 = vadd.f32 %v16099_v39, %v5527_v58  ;;  %v6495_v1 = vmul.f32 %v6462_v60, %v5598_v54  ;;  %v16102_v60 = vld [vmem:[#allocation189_spill] sm:$0xff]  ;;  %v6976_v22 = vld [vmem:[%s14284_s0 + $0xc8] sm:$0xff]  ;;  %v6979_v26 = vld [vmem:[%s14284_s0 + $0x1f0] sm:$0xff] }
 0x531   : > { %6528 = vmatpush.msrb.mxu2 %v6499_v49  ;;  %v5852_v36 = vadd.f32 %v5851_v20, %v13915_v14  ;;  %v5521_v34 = vadd.f32 %v16100_v3, %v5456_v40  ;;  %v6456_v62 = vmax.f32 %v6424_v32, 0.0  ;;  %v6493_v19 = vmul.f32 %v6460_v46, %v5595_v21  ;;  %v16103_v49 = vld [vmem:[#allocation197_spill] sm:$0xff]  ;;  %v16104_v21 = vld [vmem:[#allocation259_spill] sm:$0xff] }
 0x532   : > { %5989 = vmatmul.f32.gmra.mxu2 %v6973_v7  ;;  %6051 = vmatmul.f32.gmra.mxu3 %v6974_v43  ;;  %v5589_v6 = vadd.f32 %v16101_v35, %v5524_v4  ;;  %v5728_v29 = vadd.f32 %v5727_v15, %v16102_v60  ;;  %v5730_v16 = vpop.f32.mrf.mxu2  ;;  %v6454_v54 = vmax.f32 %v6422_v63, 0.0  ;;  %v6491_v41 = vmul.f32 %v6458_v2, %v5592_v45  ;;  %v6978_v58 = vld [vmem:[%s14284_s0 + $0x198] sm:$0xff]  ;;  %v6981_v7 = vld [vmem:[%s14284_s0 + $0x220] sm:$0xff]  ;;  %v16105_v45 = vld [vmem:[#allocation80_spill] sm:$0xff] }
 0x533   : > { %6529 = vmatpush.msrb.mxu2 %v6497_v24  ;;  %6184 = vmatmul.f32.gmra.mxu1 %v6975_v61  ;;  %v13986_v14 = vadd.f32 %v13824_v38, %v5852_v36  ;;  %v5586_v10 = vadd.f32 %v16103_v49, %v5521_v34  ;;  %v6977_v38 = vld [vmem:[%s14284_s0 + $0x1d8] sm:$0xff]  ;;  %v5731_v24 = vadd.f32 %v5730_v16, %v16104_v21  ;;  %v6987_v60 = vld [vmem:[%s14284_s0 + $0x280] sm:$0xff] }
 0x534   : > { %6110 = vmatmul.f32.gmra.mxu0 %v6976_v22  ;;  %v5792_v18 = vpop.f32.mrf.mxu3  ;;  %v6489_v46 = vmul.f32 %v6456_v62, %v5589_v6  ;;  %v6983_v39 = vld [vmem:[%s14284_s0 + $0x238] sm:$0xff]  ;;  %v6985_v62 = vld [vmem:[%s14284_s0 + $0x268] sm:$0xff] }
 0x535   : > { %6530 = vmatpush.msrb.mxu2 %v6495_v1  ;;  %v5793_v48 = vadd.f32 %v5792_v18, %v5728_v29  ;;  %v6487_v32 = vmul.f32 %v6454_v54, %v5586_v10  ;;  %v6984_v43 = vld [vmem:[%s14284_s0 + $0x158] sm:$0xff]  ;;  %v16106_v29 = vld [vmem:[#allocation39_spill] sm:$0xff]  ;;  %v6988_v18 = vld [vmem:[%s14284_s0 + $0x1a0] sm:$0xff] }
 0x537   : > { %6531 = vmatpush.msrb.mxu2 %v6493_v19 }
 0x538   : > { %v5928_v15 = vpop.f32.mrf.mxu1  ;;  %v5854_v13 = vpop.f32.mrf.mxu0 }
 0x539   : > { %6532 = vmatpush.msrb.mxu2 %v6491_v41  ;;  %v5855_v59 = vadd.f32 %v5854_v13, %v5790_v33  ;;  %v6980_v33 = vld [vmem:[%s14284_s0 + $0x110] sm:$0xff] }
 0x53a   : > { %5992 = vmatmul.f32.gmra.mxu2 %v6977_v38  ;;  %6054 = vmatmul.f32.gmra.mxu3 %v6978_v58  ;;  %v5733_v40 = vpop.f32.mrf.mxu2  ;;  %v6991_v38 = vld [vmem:[%s14284_s0 + $0x2c8] sm:$0xff] }
 0x53b   : > { %6533 = vmatpush.msrb.mxu2 %v6489_v46  ;;  %6187 = vmatmul.f32.gmra.mxu1 %v6979_v26  ;;  %v14003_v55 = vadd.f32 %v13875_v28, %v5855_v59  ;;  %v6982_v28 = vld [vmem:[%s14284_s0 + $0x1e0] sm:$0xff]  ;;  %v5734_v1 = vadd.f32 %v5733_v40, %v16105_v45  ;;  %v6989_v46 = vld [vmem:[%s14284_s0 + $0x2b0] sm:$0xff]  ;;  %v6992_v59 = vld [vmem:[%s14284_s0 + $0x1e8] sm:$0xff] }
 0x53c   : > { %6113 = vmatmul.f32.gmra.mxu0 %v6980_v33  ;;  %v5795_v63 = vpop.f32.mrf.mxu3  ;;  %v6993_v33 = vld [vmem:[%s14284_s0 + $0x2f8] sm:$0xff]  ;;  %v16108_v45 = vld [vmem:[#allocation79_spill] sm:$0xff] }
 0x53d   : > { %6534 = vmatpush.msrb.mxu2 %v6487_v32  ;;  %v5796_v50 = vadd.f32 %v5795_v63, %v5731_v24  ;;  %v6995_v63 = vld [vmem:[%s14284_s0 + $0x310] sm:$0xff] }
 0x540   : > { %v5931_v4 = vpop.f32.mrf.mxu1  ;;  %v5857_v20 = vpop.f32.mrf.mxu0 }
 0x541   : > { %v5858_v2 = vadd.f32 %v5857_v20, %v5793_v48 }
 0x542   : > { %5995 = vmatmul.f32.gmra.mxu2 %v6981_v7  ;;  %6057 = vmatmul.f32.gmra.mxu3 %v6982_v28  ;;  %v5736_v3 = vpop.f32.mrf.mxu2 }
 0x543   : > { %6190 = vmatmul.f32.gmra.mxu1 %v6983_v39  ;;  %v14019_v36 = vadd.f32 %v13927_v0, %v5858_v2  ;;  %v6986_v0 = vld [vmem:[%s14284_s0 + $0x228] sm:$0xff]  ;;  %v5737_v22 = vadd.f32 %v5736_v3, %v16106_v29  ;;  %v6996_v2 = vld [vmem:[%s14284_s0 + $0x230] sm:$0xff] }
 0x544   : > { %6116 = vmatmul.f32.gmra.mxu0 %v6984_v43  ;;  %v5798_v34 = vpop.f32.mrf.mxu3 }
 0x545   : > { %v5799_v35 = vadd.f32 %v5798_v34, %v5734_v1 }
 0x548   : > { %v5934_v6 = vpop.f32.mrf.mxu1  ;;  %v5860_v61 = vpop.f32.mrf.mxu0 }
 0x549   : > { %v5861_v19 = vadd.f32 %v5860_v61, %v5796_v50  ;;  %v16107_v50 = vld [vmem:[#allocation53_spill] sm:$0xff]  ;;  %v6997_v61 = vld [vmem:[%s14284_s0 + $0x340] sm:$0xff] }
 0x54a   : > { %5998 = vmatmul.f32.gmra.mxu2 %v6985_v62  ;;  %6060 = vmatmul.f32.gmra.mxu3 %v6986_v0  ;;  %v5739_v54 = vpop.f32.mrf.mxu2  ;;  %v6998_v62 = vld [vmem:[%s14284_s0 + $0x300] sm:$0xff]  ;;  %v16109_v0 = vld [vmem:[#allocation72_spill] sm:$0xff] }
 0x54b   : > { %6193 = vmatmul.f32.gmra.mxu1 %v6987_v60  ;;  %v14035_v16 = vadd.f32 %v13967_v17, %v5861_v19  ;;  %v6990_v17 = vld [vmem:[%s14284_s0 + $0x270] sm:$0xff]  ;;  %v5740_v1 = vadd.f32 %v5739_v54, %v16108_v45  ;;  %v6999_v19 = vld [vmem:[%s14284_s0 + $0x358] sm:$0xff] }
 0x54c   : > { %6119 = vmatmul.f32.gmra.mxu0 %v6988_v18  ;;  %v5801_v49 = vpop.f32.mrf.mxu3 }
 0x54d   : > { %v5802_v10 = vadd.f32 %v5801_v49, %v5737_v22  ;;  %v7000_v22 = vld [vmem:[%s14284_s0 + $0x278] sm:$0xff] }
 0x550   : > { %v5937_v41 = vpop.f32.mrf.mxu1  ;;  %v5863_v48 = vpop.f32.mrf.mxu0 }
 0x551   : > { %v5864_v13 = vadd.f32 %v5863_v48, %v5799_v35 }
 0x552   : > { %6001 = vmatmul.f32.gmra.mxu2 %v6989_v46  ;;  %6063 = vmatmul.f32.gmra.mxu3 %v6990_v17  ;;  %v5742_v58 = vpop.f32.mrf.mxu2  ;;  %v7001_v46 = vld [vmem:[%s14284_s0 + $0x388] sm:$0xff]  ;;  %v7003_v17 = vld [vmem:[%s14284_s0 + $0x3a0] sm:$0xff] }
 0x553   : > { %6196 = vmatmul.f32.gmra.mxu1 %v6991_v38  ;;  %v14049_v32 = vadd.f32 %v5928_v15, %v5864_v13  ;;  %v6994_v15 = vld [vmem:[%s14284_s0 + $0x2b8] sm:$0xff]  ;;  %v5743_v20 = vadd.f32 %v5742_v58, %v16107_v50  ;;  %v7005_v50 = vld [vmem:[%s14284_s0 + $0x3d0] sm:$0xff] }
 0x554   : > { %6122 = vmatmul.f32.gmra.mxu0 %v6992_v59  ;;  %v5804_v26 = vpop.f32.mrf.mxu3  ;;  %v16110_v38 = vld [vmem:[#allocation253_spill] sm:$0xff] }
 0x555   : > { %v5805_v3 = vadd.f32 %v5804_v26, %v5740_v1  ;;  %v7004_v26 = vld [vmem:[%s14284_s0 + $0x2c0] sm:$0xff]  ;;  %v7008_v1 = vld [vmem:[%s14284_s0 + $0x308] sm:$0xff] }
 0x558   : > { %v5940_v21 = vpop.f32.mrf.mxu1  ;;  %v5866_v24 = vpop.f32.mrf.mxu0 }
 0x559   : > { %v5867_v40 = vadd.f32 %v5866_v24, %v5802_v10 }
 0x55a   : > { %6004 = vmatmul.f32.gmra.mxu2 %v6993_v33  ;;  %6066 = vmatmul.f32.gmra.mxu3 %v6994_v15  ;;  %v5745_v28 = vpop.f32.mrf.mxu2 }
 0x55b   : > { %6199 = vmatmul.f32.gmra.mxu1 %v6995_v63  ;;  %v14064_v7 = vadd.f32 %v5931_v4, %v5867_v40  ;;  %v5746_v60 = vadd.f32 %v5745_v28, %v16109_v0  ;;  %v16111_v28 = vld [vmem:[#allocation101_spill] sm:$0xff]  ;;  %v7011_v0 = vld [vmem:[%s14284_s0 + $0x430] sm:$0xff] }
 0x55c   : > { %6125 = vmatmul.f32.gmra.mxu0 %v6996_v2  ;;  %v5807_v39 = vpop.f32.mrf.mxu3  ;;  %v7007_v2 = vld [vmem:[%s14284_s0 + $0x3e8] sm:$0xff] }
 0x55d   : > { %v5808_v43 = vadd.f32 %v5807_v39, %v5743_v20 }
 0x560   : > { %v5943_v34 = vpop.f32.mrf.mxu1  ;;  %v5869_v35 = vpop.f32.mrf.mxu0 }
 0x561   : > { %v5870_v4 = vadd.f32 %v5869_v35, %v5805_v3 }
 0x562   : > { %6007 = vmatmul.f32.gmra.mxu2 %v6997_v61  ;;  %6069 = vmatmul.f32.gmra.mxu3 %v6998_v62  ;;  %v5748_v18 = vpop.f32.mrf.mxu2  ;;  %v7009_v62 = vld [vmem:[%s14284_s0 + $0x418] sm:$0xff] }
 0x563   : > { %6202 = vmatmul.f32.gmra.mxu1 %v6999_v19  ;;  %v14080_v29 = vadd.f32 %v5934_v6, %v5870_v4  ;;  %v7002_v6 = vld [vmem:[%s14284_s0 + $0x348] sm:$0xff]  ;;  %v5749_v59 = vadd.f32 %v5748_v18, %v16110_v38 }
 0x564   : > { %6128 = vmatmul.f32.gmra.mxu0 %v7000_v22  ;;  %v5810_v54 = vpop.f32.mrf.mxu3 }
 0x565   : > { %v5811_v49 = vadd.f32 %v5810_v54, %v5746_v60  ;;  %v16112_v60 = vld [vmem:[#allocation66_spill] sm:$0xff]  ;;  %v7012_v54 = vld [vmem:[%s14284_s0 + $0x350] sm:$0xff] }
 0x568   : > { %v5946_v10 = vpop.f32.mrf.mxu1  ;;  %v5872_v48 = vpop.f32.mrf.mxu0 }
 0x569   : > { %v5873_v13 = vadd.f32 %v5872_v48, %v5808_v43 }
 0x56a   : > { %6010 = vmatmul.f32.gmra.mxu2 %v7001_v46  ;;  %6072 = vmatmul.f32.gmra.mxu3 %v7002_v6  ;;  %v5751_v24 = vpop.f32.mrf.mxu2 }
 0x56b   : > { %6205 = vmatmul.f32.gmra.mxu1 %v7003_v17  ;;  %v14095_v58 = vadd.f32 %v5937_v41, %v5873_v13  ;;  %v7006_v41 = vld [vmem:[%s14284_s0 + $0x390] sm:$0xff]  ;;  %v5752_v39 = vadd.f32 %v5751_v24, %v16111_v28  ;;  %v7013_v17 = vld [vmem:[%s14284_s0 + $0x460] sm:$0xff] }
 0x56c   : > { %6131 = vmatmul.f32.gmra.mxu0 %v7004_v26  ;;  %v5813_v33 = vpop.f32.mrf.mxu3  ;;  %v16113_v26 = vld [vmem:[#allocation26_spill] sm:$0xff] }
 0x56d   : > { %v5814_v40 = vadd.f32 %v5813_v33, %v5749_v59  ;;  %v7015_v59 = vld [vmem:[%s14284_s0 + $0x478] sm:$0xff]  ;;  %v16114_v28 = vld [vmem:[#allocation2_spill] sm:$0xff] }
 0x570   : > { %v5949_v15 = vpop.f32.mrf.mxu1  ;;  %v5875_v63 = vpop.f32.mrf.mxu0 }
 0x571   : > { %v5876_v20 = vadd.f32 %v5875_v63, %v5811_v49 }
 0x572   : > { %6013 = vmatmul.f32.gmra.mxu2 %v7005_v50  ;;  %6075 = vmatmul.f32.gmra.mxu3 %v7006_v41  ;;  %v5754_v43 = vpop.f32.mrf.mxu2 }
 0x573   : > { %6208 = vmatmul.f32.gmra.mxu1 %v7007_v2  ;;  %v14110_v45 = vadd.f32 %v5940_v21, %v5876_v20  ;;  %v7010_v21 = vld [vmem:[%s14284_s0 + $0x3d8] sm:$0xff]  ;;  %v5755_v22 = vadd.f32 %v5754_v43, %v16112_v60  ;;  %v7017_v43 = vld [vmem:[%s14284_s0 + $0x468] sm:$0xff] }
 0x574   : > { %6134 = vmatmul.f32.gmra.mxu0 %v7008_v1  ;;  %v5816_v3 = vpop.f32.mrf.mxu3 }
 0x575   : > { %v5817_v35 = vadd.f32 %v5816_v3, %v5752_v39  ;;  %v6315_v39 = vperm.slane %v16114_v28, 4 }
 0x578   : > { %v5952_v61 = vpop.f32.mrf.mxu1  ;;  %v5878_v4 = vpop.f32.mrf.mxu0 }
 0x579   : > { %v5879_v19 = vadd.f32 %v5878_v4, %v5814_v40  ;;  %v7016_v40 = vld [vmem:[%s14284_s0 + $0x398] sm:$0xff] }
 0x57a   : > { %6016 = vmatmul.f32.gmra.mxu2 %v7009_v62  ;;  %6078 = vmatmul.f32.gmra.mxu3 %v7010_v21  ;;  %v5757_v49 = vpop.f32.mrf.mxu2  ;;  %v14156_v21 = vperm.slane %v6315_v39, 0 }
 0x57b   : > { %6211 = vmatmul.f32.gmra.mxu1 %v7011_v0  ;;  %v14125_v18 = vadd.f32 %v5943_v34, %v5879_v19  ;;  %v7014_v34 = vld [vmem:[%s14284_s0 + $0x420] sm:$0xff]  ;;  %v5758_v24 = vadd.f32 %v5757_v49, %v16113_v26  ;;  %v6353_v0 = vperm.slane %v16032_v23, 4 }
 0x57c   : > { %6137 = vmatmul.f32.gmra.mxu0 %v7012_v54  ;;  %v5819_v48 = vpop.f32.mrf.mxu3 }
 0x57d   : > { %v5820_v46 = vadd.f32 %v5819_v48, %v5755_v22  ;;  %v14159_v49 = vperm.slane %v6353_v0, 0 }
 0x580   : > { %v5955_v13 = vpop.f32.mrf.mxu1 }
 0x581   : > { %v5881_v6 = vpop.f32.mrf.mxu0 }
 0x582   : > { %6019 = vmatmul.f32.gmra.mxu2 %v7013_v17  ;;  %v5882_v38 = vadd.f32 %v5881_v6, %v5817_v35  ;;  %6081 = vmatmul.f32.gmra.mxu3 %v7014_v34  ;;  %v7018_v35 = vld [vmem:[%s14284_s0 + $0x3e0] sm:$0xff] }
 0x583   : > { %6214 = vmatmul.f32.gmra.mxu1 %v7015_v59  ;;  %v5760_v63 = vpop.f32.mrf.mxu2 }
 0x584   : > { %v14140_v33 = vadd.f32 %v5946_v10, %v5882_v38  ;;  %6140 = vmatmul.f32.gmra.mxu0 %v7016_v40  ;;  %v5761_v10 = vadd.f32 %v5760_v63, %v13635_v52  ;;  %v6321_v52 = vsub.f32 %v13885_v57, %v14156_v21  ;;  %v6323_v57 = vsub.f32 %v13870_v5, %v14156_v21  ;;  %v7020_v40 = vld [vmem:[%s14284_s0 + $0x470] sm:$0xff] }
 0x585   : > { %v5822_v50 = vpop.f32.mrf.mxu3 }
 0x586   : > { %v5823_v20 = vadd.f32 %v5822_v50, %v5758_v24  ;;  %v6359_v17 = vsub.f32 %v6321_v52, %v14159_v49 }
 0x588   : > { %v6170_v41 = vpop.f32.mrf.mxu1  ;;  %v6391_v26 = vand.u32 2147483647, %v6359_v17 }
 0x589   : > { %v5884_v2 = vpop.f32.mrf.mxu0 }
 0x58a   : > { %v5885_v1 = vadd.f32 %v5884_v2, %v5820_v46  ;;  %6084 = vmatmul.f32.gmra.mxu3 %v7017_v43  ;;  %v7019_v46 = vld [vmem:[%s14284_s0 + $0x428] sm:$0xff]  ;;  %v6361_v2 = vsub.f32 %v6323_v57, %v14159_v49 }
 0x58b   : > { %v5975_v4 = vpop.f32.mrf.mxu2 }
 0x58c   : > { %v14150_v3 = vadd.f32 %v5949_v15, %v5885_v1  ;;  %6143 = vmatmul.f32.gmra.mxu0 %v7018_v35  ;;  %v5976_v19 = vadd.f32 %v5975_v4, %v13904_v42  ;;  %v6393_v5 = vand.u32 2147483647, %v6361_v2 }
 0x58d   : > { %v5825_v62 = vpop.f32.mrf.mxu3 }
 0x58e   : > { %v5826_v60 = vadd.f32 %v5825_v62, %v5761_v10  ;;  %v6425_v0 = vsub.f32 1.0, %v6393_v5 }
 0x590   : > { %v6173_v22 = vpop.f32.mrf.mxu1 }
 0x591   : > { %v5887_v54 = vpop.f32.mrf.mxu0 }
 0x592   : > { %v5888_v15 = vadd.f32 %v5887_v54, %v5823_v20  ;;  %v6423_v20 = vsub.f32 1.0, %v6391_v26 }
 0x593   : > { %v5978_v42 = vpop.f32.mrf.mxu2 }
 0x594   : > { %v14163_v48 = vadd.f32 %v5952_v61, %v5888_v15  ;;  %6146 = vmatmul.f32.gmra.mxu0 %v7019_v46  ;;  %v5979_v6 = vadd.f32 %v5978_v42, %v13951_v8  ;;  %v6455_v43 = vmax.f32 %v6423_v20, 0.0  ;;  %v6327_v15 = vsub.f32 %v13820_v51, %v14156_v21 }
 0x595   : > { %v6040_v23 = vpop.f32.mrf.mxu3  ;;  %v6457_v46 = vmax.f32 %v6425_v0, 0.0  ;;  %v6329_v51 = vsub.f32 %v13810_v31, %v14156_v21 }
 0x596   : > { %v6041_v38 = vadd.f32 %v6040_v23, %v5976_v19 }
 0x598   : > { %v6176_v34 = vpop.f32.mrf.mxu1 }
 0x599   : > { %v5890_v59 = vpop.f32.mrf.mxu0 }
 0x59a   : > { %v5891_v61 = vadd.f32 %v5890_v59, %v5826_v60 }
 0x59b   : > { %v5981_v63 = vpop.f32.mrf.mxu2 }
 0x59c   : > { %v14172_v24 = vadd.f32 %v5955_v13, %v5891_v61  ;;  %6149 = vmatmul.f32.gmra.mxu0 %v7020_v40  ;;  %v5982_v8 = vadd.f32 %v5981_v63, %v13986_v14  ;;  %v6325_v13 = vsub.f32 %v13857_v30, %v14156_v21 }
 0x59d   : > { %v6043_v50 = vpop.f32.mrf.mxu3 }
 0x59e   : > { %v6044_v28 = vadd.f32 %v6043_v50, %v5979_v6  ;;  %v6363_v14 = vsub.f32 %v6325_v13, %v14159_v49 }
 0x5a0   : > { %v6179_v1 = vpop.f32.mrf.mxu1  ;;  %v6395_v42 = vand.u32 2147483647, %v6363_v14 }
 0x5a1   : > { %v6105_v39 = vpop.f32.mrf.mxu0 }
 0x5a2   : > { %v6106_v10 = vadd.f32 %v6105_v39, %v6041_v38  ;;  %v6365_v38 = vsub.f32 %v6327_v15, %v14159_v49  ;;  %v6427_v59 = vsub.f32 1.0, %v6395_v42  ;;  %v6367_v39 = vsub.f32 %v6329_v51, %v14159_v49 }
 0x5a3   : > { %v6333_v42 = vsub.f32 %v13759_v12, %v14156_v21  ;;  %v6335_v12 = vsub.f32 %v13746_v9, %v14156_v21 }
 0x5a4   : > { %v6171_v35 = vadd.f32 %v6170_v41, %v6106_v10  ;;  %v5984_v4 = vpop.f32.mrf.mxu2  ;;  %v6397_v40 = vand.u32 2147483647, %v6365_v38  ;;  %v6459_v63 = vmax.f32 %v6427_v59, 0.0  ;;  %v6399_v10 = vand.u32 2147483647, %v6367_v39 }
 0x5a5   : > { %v5985_v62 = vadd.f32 %v5984_v4, %v14003_v55  ;;  %v6046_v19 = vpop.f32.mrf.mxu3 }
 0x5a6   : > { %v14183_v60 = vmul.f32 %v6455_v43, %v6171_v35  ;;  %v6047_v54 = vadd.f32 %v6046_v19, %v5982_v8  ;;  %v6331_v35 = vsub.f32 %v13798_v25, %v14156_v21  ;;  %v6431_v0 = vsub.f32 1.0, %v6399_v10 }
 0x5a7   : > { %v6337_v10 = vsub.f32 %v13729_v11, %v14156_v21 }
 0x5a8   : > { %v6182_v30 = vpop.f32.mrf.mxu1  ;;  %v6369_v14 = vsub.f32 %v6331_v35, %v14159_v49 }
 0x5a9   : > { %v6108_v52 = vpop.f32.mrf.mxu0 }
 0x5aa   : > { %v6109_v6 = vadd.f32 %v6108_v52, %v6044_v28  ;;  %v6429_v28 = vsub.f32 1.0, %v6397_v40 }
 0x5ac   : > { %v6174_v23 = vadd.f32 %v6173_v22, %v6109_v6  ;;  %v5987_v41 = vpop.f32.mrf.mxu2  ;;  %v6461_v4 = vmax.f32 %v6429_v28, 0.0  ;;  %v6401_v6 = vand.u32 2147483647, %v6369_v14  ;;  %v6339_v14 = vsub.f32 %v13670_v47, %v14156_v21 }
 0x5ad   : > { %v5988_v17 = vadd.f32 %v5987_v41, %v14019_v36  ;;  %v6049_v55 = vpop.f32.mrf.mxu3 }
 0x5ae   : > { %v14189_v26 = vmul.f32 %v6457_v46, %v6174_v23  ;;  %v6050_v57 = vadd.f32 %v6049_v55, %v5985_v62  ;;  %v6463_v23 = vmax.f32 %v6431_v0, 0.0  ;;  %v6371_v55 = vsub.f32 %v6333_v42, %v14159_v49 }
 0x5af   : > { %v6433_v38 = vsub.f32 1.0, %v6401_v6 }
 0x5b0   : > { %v6185_v36 = vpop.f32.mrf.mxu1  ;;  %v6403_v51 = vand.u32 2147483647, %v6371_v55  ;;  %v6341_v55 = vsub.f32 %v13651_v44, %v14156_v21 }
 0x5b1   : > { %v6111_v61 = vpop.f32.mrf.mxu0 }
 0x5b2   : > { %v6112_v8 = vadd.f32 %v6111_v61, %v6047_v54 }
 0x5b4   : > { %v6177_v50 = vadd.f32 %v6176_v34, %v6112_v8  ;;  %v6465_v8 = vmax.f32 %v6433_v38, 0.0 }
 0x5b5   : > { %v5990_v20 = vpop.f32.mrf.mxu2  ;;  %v6052_v2 = vpop.f32.mrf.mxu3 }
 0x5b6   : > { %v5991_v22 = vadd.f32 %v5990_v20, %v14035_v16  ;;  %v14195_v43 = vmul.f32 %v6459_v63, %v6177_v50  ;;  %v6053_v5 = vadd.f32 %v6052_v2, %v5988_v17  ;;  %v6373_v2 = vsub.f32 %v6335_v12, %v14159_v49 }
 0x5b8   : > { %v6188_v15 = vpop.f32.mrf.mxu1 }
 0x5b9   : > { %v6114_v13 = vpop.f32.mrf.mxu0 }
 0x5ba   : > { %v6115_v31 = vadd.f32 %v6114_v13, %v6050_v57  ;;  %v6405_v13 = vand.u32 2147483647, %v6373_v2 }
 0x5bc   : > { %v6180_v62 = vadd.f32 %v6179_v1, %v6115_v31 }
 0x5bd   : > { %v5993_v34 = vpop.f32.mrf.mxu2  ;;  %v6055_v16 = vpop.f32.mrf.mxu3 }
 0x5be   : > { %v5994_v19 = vadd.f32 %v5993_v34, %v14049_v32  ;;  %v14201_v54 = vmul.f32 %v6461_v4, %v6180_v62  ;;  %v6056_v52 = vadd.f32 %v6055_v16, %v5991_v22  ;;  %v6435_v22 = vsub.f32 1.0, %v6403_v51 }
 0x5bf   : > { %v6437_v62 = vsub.f32 1.0, %v6405_v13 }
 0x5c0   : > { %v6191_v40 = vpop.f32.mrf.mxu1  ;;  %v6467_v9 = vmax.f32 %v6435_v22, 0.0 }
 0x5c1   : > { %v6117_v46 = vpop.f32.mrf.mxu0  ;;  %v6469_v42 = vmax.f32 %v6437_v62, 0.0 }
 0x5c2   : > { %v6118_v25 = vadd.f32 %v6117_v46, %v6053_v5 }
 0x5c4   : > { %v6183_v41 = vadd.f32 %v6182_v30, %v6118_v25 }
 0x5c5   : > { %v5996_v1 = vpop.f32.mrf.mxu2  ;;  %v6058_v32 = vpop.f32.mrf.mxu3 }
 0x5c6   : > { %v5997_v17 = vadd.f32 %v5996_v1, %v14064_v7  ;;  %v14207_v59 = vmul.f32 %v6463_v23, %v6183_v41  ;;  %v6059_v57 = vadd.f32 %v6058_v32, %v5994_v19 }
 0x5c8   : > { %v6194_v31 = vpop.f32.mrf.mxu1 }
 0x5c9   : > { %v6120_v61 = vpop.f32.mrf.mxu0 }
 0x5ca   : > { %v6121_v63 = vadd.f32 %v6120_v61, %v6056_v52 }
 0x5cc   : > { %v6186_v50 = vadd.f32 %v6185_v36, %v6121_v63 }
 0x5cd   : > { %v5999_v30 = vpop.f32.mrf.mxu2  ;;  %v6061_v7 = vpop.f32.mrf.mxu3 }
 0x5ce   : > { %v6000_v20 = vadd.f32 %v5999_v30, %v14080_v29  ;;  %v14213_v28 = vmul.f32 %v6465_v8, %v6186_v50  ;;  %v6062_v39 = vadd.f32 %v6061_v7, %v5997_v17  ;;  %v6375_v29 = vsub.f32 %v6337_v10, %v14159_v49 }
 0x5d0   : > { %v6407_v52 = vand.u32 2147483647, %v6375_v29  ;;  %v6197_v25 = vpop.f32.mrf.mxu1 }
 0x5d1   : > { %v6123_v5 = vpop.f32.mrf.mxu0 }
 0x5d2   : > { %v6124_v35 = vadd.f32 %v6123_v5, %v6059_v57  ;;  %v6439_v23 = vsub.f32 1.0, %v6407_v52 }
 0x5d4   : > { %v6189_v4 = vadd.f32 %v6188_v15, %v6124_v35  ;;  %v6377_v15 = vsub.f32 %v6339_v14, %v14159_v49  ;;  %v6471_v57 = vmax.f32 %v6439_v23, 0.0 }
 0x5d5   : > { %v6064_v36 = vpop.f32.mrf.mxu3  ;;  %v6002_v16 = vpop.f32.mrf.mxu2 }
 0x5d6   : > { %v14218_v34 = vmul.f32 %v6467_v9, %v6189_v4  ;;  %v6065_v19 = vadd.f32 %v6064_v36, %v6000_v20  ;;  %v6409_v32 = vand.u32 2147483647, %v6377_v15  ;;  %v6003_v12 = vadd.f32 %v6002_v16, %v14095_v58 }
 0x5d7   : > { %v6343_v20 = vsub.f32 %v13588_v27, %v14156_v21  ;;  %v6345_v27 = vsub.f32 %v13579_v56, %v14156_v21 }
 0x5d8   : > { %v6441_v51 = vsub.f32 1.0, %v6409_v32  ;;  %v6200_v8 = vpop.f32.mrf.mxu1 }
 0x5d9   : > { %v6126_v0 = vpop.f32.mrf.mxu0  ;;  %v6381_v13 = vsub.f32 %v6343_v20, %v14159_v49  ;;  %v6383_v14 = vsub.f32 %v6345_v27, %v14159_v49 }
 0x5da   : > { %v6127_v46 = vadd.f32 %v6126_v0, %v6062_v39  ;;  %v6473_v44 = vmax.f32 %v6441_v51, 0.0 }
 0x5db   : > { %v6413_v36 = vand.u32 2147483647, %v6381_v13 }
 0x5dc   : > { %v6192_v11 = vadd.f32 %v6191_v40, %v6127_v46  ;;  %v6379_v40 = vsub.f32 %v6341_v55, %v14159_v49 }
 0x5dd   : > { %v6067_v6 = vpop.f32.mrf.mxu3  ;;  %v6005_v17 = vpop.f32.mrf.mxu2  ;;  %v6445_v0 = vsub.f32 1.0, %v6413_v36 }
 0x5de   : > { %v14223_v41 = vmul.f32 %v6469_v42, %v6192_v11  ;;  %v6068_v50 = vadd.f32 %v6067_v6, %v6003_v12  ;;  %v6411_v7 = vand.u32 2147483647, %v6379_v40  ;;  %v6006_v35 = vadd.f32 %v6005_v17, %v14110_v45 }
 0x5df   : > { %v6415_v6 = vand.u32 2147483647, %v6383_v14  ;;  %v6477_v56 = vmax.f32 %v6445_v0, 0.0 }
 0x5e0   : > { %v6443_v10 = vsub.f32 1.0, %v6411_v7  ;;  %v6203_v4 = vpop.f32.mrf.mxu1 }
 0x5e1   : > { %v6129_v1 = vpop.f32.mrf.mxu0  ;;  %v6447_v17 = vsub.f32 1.0, %v6415_v6 }
 0x5e2   : > { %v6130_v38 = vadd.f32 %v6129_v1, %v6065_v19  ;;  %v6475_v29 = vmax.f32 %v6443_v10, 0.0 }
 0x5e3   : > { %v6479_v12 = vmax.f32 %v6447_v17, 0.0 }
 0x5e4   : > { %v6195_v47 = vadd.f32 %v6194_v31, %v6130_v38 }
 0x5e5   : > { %v6070_v61 = vpop.f32.mrf.mxu3  ;;  %v6008_v2 = vpop.f32.mrf.mxu2 }
 0x5e6   : > { %v14229_v63 = vmul.f32 %v6471_v57, %v6195_v47  ;;  %v6071_v9 = vadd.f32 %v6070_v61, %v6006_v35  ;;  %v6009_v52 = vadd.f32 %v6008_v2, %v14125_v18  ;;  %v16115_v35 = vld [vmem:[#allocation255_spill] sm:$0xff] }
 0x5e8   : > { %v6206_v23 = vpop.f32.mrf.mxu1 }
 0x5e9   : > { %v6132_v30 = vpop.f32.mrf.mxu0 }
 0x5ea   : > { %v6133_v22 = vadd.f32 %v6132_v30, %v6068_v50 }
 0x5ec   : > { %v6198_v39 = vadd.f32 %v6197_v25, %v6133_v22  ;;  %v6347_v25 = vsub.f32 %v13633_v53, %v14156_v21  ;;  %v6349_v53 = vsub.f32 %v13557_v37, %v14156_v21 }
 0x5ed   : > { %v6073_v5 = vpop.f32.mrf.mxu3  ;;  %v6011_v16 = vpop.f32.mrf.mxu2 }
 0x5ee   : > { %v14235_v58 = vmul.f32 %v6473_v44, %v6198_v39  ;;  %v6074_v42 = vadd.f32 %v6073_v5, %v6009_v52  ;;  %v6385_v32 = vsub.f32 %v6347_v25, %v14159_v49  ;;  %v6012_v55 = vadd.f32 %v6011_v16, %v14140_v33 }
 0x5ef   : > { %v6387_v22 = vsub.f32 %v6349_v53, %v14159_v49 }
 0x5f0   : > { %v6417_v51 = vand.u32 2147483647, %v6385_v32  ;;  %v6209_v50 = vpop.f32.mrf.mxu1 }
 0x5f1   : > { %v6135_v31 = vpop.f32.mrf.mxu0  ;;  %v6419_v10 = vand.u32 2147483647, %v6387_v22 }
 0x5f2   : > { %v6136_v62 = vadd.f32 %v6135_v31, %v6071_v9  ;;  %v6449_v30 = vsub.f32 1.0, %v6417_v51  ;;  %v6351_v9 = vsub.f32 %v16115_v35, %v14156_v21 }
 0x5f3   : > { %v6451_v27 = vsub.f32 1.0, %v6419_v10 }
 0x5f4   : > { %v6201_v19 = vadd.f32 %v6200_v8, %v6136_v62  ;;  %v6481_v5 = vmax.f32 %v6449_v30, 0.0 }
 0x5f5   : > { %v6076_v45 = vpop.f32.mrf.mxu3  ;;  %v6014_v18 = vpop.f32.mrf.mxu2  ;;  %v6483_v52 = vmax.f32 %v6451_v27, 0.0 }
 0x5f6   : > { %v14241_v46 = vmul.f32 %v6475_v29, %v6201_v19  ;;  %v6077_v57 = vadd.f32 %v6076_v45, %v6012_v55  ;;  %v6015_v20 = vadd.f32 %v6014_v18, %v14150_v3  ;;  %v6389_v3 = vsub.f32 %v6351_v9, %v14159_v49  ;;  %v6486_v49 = vld [vmem:[%s14287_s3] sm:$0xff] }
 0x5f7   : > { %6535 = vmatmul.f32.vlgmr.msrb.gmra.mxu2 %v6486_v49 }
 0x5f8   : > { %v6212_v36 = vpop.f32.mrf.mxu1  ;;  %v6421_v0 = vand.u32 2147483647, %v6389_v3 }
 0x5f9   : > { %v6138_v11 = vpop.f32.mrf.mxu0 }
 0x5fa   : > { %v6139_v15 = vadd.f32 %v6138_v11, %v6074_v42  ;;  %v6453_v21 = vsub.f32 1.0, %v6421_v0 }
 0x5fc   : > { %v6204_v1 = vadd.f32 %v6203_v4, %v6139_v15 }
 0x5fd   : > { %v6079_v61 = vpop.f32.mrf.mxu3  ;;  %v6017_v44 = vpop.f32.mrf.mxu2 }
 0x5fe   : > { %v6510_v38 = vmul.f32 %v6477_v56, %v6204_v1  ;;  %v6080_v33 = vadd.f32 %v6079_v61, %v6015_v20  ;;  %v6018_v37 = vadd.f32 %v6017_v44, %v14163_v48 }
 0x600   : > { %v6215_v48 = vpop.f32.mrf.mxu1 }
 0x601   : > { %v6141_v47 = vpop.f32.mrf.mxu0 }
 0x602   : > { %v6142_v40 = vadd.f32 %v6141_v47, %v6077_v57 }
 0x604   : > { %v6207_v8 = vadd.f32 %v6206_v23, %v6142_v40  ;;  %v6485_v23 = vmax.f32 %v6453_v21, 0.0 }
 0x605   : > { %v6082_v13 = vpop.f32.mrf.mxu3  ;;  %v6020_v16 = vpop.f32.mrf.mxu2 }
 0x606   : > { %v6512_v7 = vmul.f32 %v6479_v12, %v6207_v8  ;;  %v6083_v62 = vadd.f32 %v6082_v13, %v6018_v37  ;;  %v6021_v42 = vadd.f32 %v6020_v16, %v14172_v24 }
 0x609   : > { %v6144_v2 = vpop.f32.mrf.mxu0 }
 0x60a   : > { %v6145_v39 = vadd.f32 %v6144_v2, %v6080_v33 }
 0x60c   : > { %v6210_v31 = vadd.f32 %v6209_v50, %v6145_v39 }
 0x60d   : > { %v6085_v45 = vpop.f32.mrf.mxu3 }
 0x60e   : > { %v6514_v4 = vmul.f32 %v6481_v5, %v6210_v31  ;;  %v6086_v6 = vadd.f32 %v6085_v45, %v6021_v42 }
 0x611   : > { %v6147_v29 = vpop.f32.mrf.mxu0 }
 0x612   : > { %v6148_v19 = vadd.f32 %v6147_v29, %v6083_v62 }
 0x614   : > { %v6213_v14 = vadd.f32 %v6212_v36, %v6148_v19 }
 0x616   : > { %v6516_v11 = vmul.f32 %v6483_v52, %v6213_v14 }
 0x619   : > { %v6150_v25 = vpop.f32.mrf.mxu0 }
 0x61a   : > { %v6151_v15 = vadd.f32 %v6150_v25, %v6086_v6 }
 0x61c   : > { %v6216_v56 = vadd.f32 %v6215_v48, %v6151_v15 }
 0x61e   : > { %v6518_v1 = vmul.f32 %v6485_v23, %v6216_v56 }
 0x620   : > { %6539 = vmatpush.msrb.mxu3 %v6518_v1 }
 0x622   : > { %6540 = vmatpush.msrb.mxu3 %v6516_v11 }
 0x624   : > { %6541 = vmatpush.msrb.mxu3 %v6514_v4 }
 0x626   : > { %6542 = vmatpush.msrb.mxu3 %v6512_v7 }
 0x628   : > { %6543 = vmatpush.msrb.mxu3 %v6510_v38 }
 0x62a   : > { %6544 = vmatpush.msrb.mxu3 %v14241_v46 }
 0x62c   : > { %6545 = vmatpush.msrb.mxu3 %v14235_v58 }
 0x62e   : > { %6546 = vmatpush.msrb.mxu3 %v14229_v63 }
 0x630   : > { %6547 = vmatpush.msrb.mxu3 %v14223_v41 }
 0x632   : > { %6548 = vmatpush.msrb.mxu3 %v14218_v34 }
 0x634   : > { %6549 = vmatpush.msrb.mxu3 %v14213_v28 }
 0x636   : > { %6550 = vmatpush.msrb.mxu3 %v14207_v59 }
 0x638   : > { %6551 = vmatpush.msrb.mxu3 %v14201_v54 }
 0x63a   : > { %6552 = vmatpush.msrb.mxu3 %v14195_v43 }
 0x63c   : > { %6553 = vmatpush.msrb.mxu3 %v14189_v26 }
 0x63e   : > { %6554 = vmatpush.msrb.mxu3 %v14183_v60 }
 0x63f   : > { %6555 = vmatmul.f32.vlgmr.msrb.gmra.mxu3 %v6486_v49 }
 0x67a   : > { %v6536_v58 = vpop.f32.mrf.mxu2 }
 0x6c2   : > { %v6556_v24 = vpop.f32.mrf.mxu3 }
 0x6c3   : > { %v6561_v63 = vrot.slane %v6556_v24, 4 }
 0x6c5   : > { %v6563_v28 = vsel %vm6562_vm0, %v6536_v58, %v6561_v63 }
 0x6c6   : > { %6565 = vst [vmem:[%s262_s27] sm:$0x77] %v6563_v28 }
 0x6c7 PF: > { %s15_s20 = sadd.s32 1, %s7043_s20   ;;  %s16116_s18 = smov %s7039_s19 }
 0x6c8   : > { %p12_p5 = scmp.ge.s32.totalorder %s15_s20, 4   ;;  %s16117_s19 = smov %s16119_s21 }
 0x6ca   :  { %14 = sbr.rel (!%p12_p5) target bundleno = 2 (0x2), region = 70 }

</bundles_post_ra>
